<compile_context>
chip_gen: v6e
topology: v6e:2x2x1
jax: 0.10.0
libtpu: 0.0.40
codegen_flags: <defaults>
</compile_context>

<pallas_src>
import functools

import jax
import jax.numpy as jnp
from jax.experimental import pallas as pl
from jax.experimental.pallas import tpu as pltpu


def attention_conv_kernel(x_ref, w_ref, rel_ref, o_ref, kvpad_ref,
                          *, H, W, K, pad, Cin, Cout):
    """One grid step == one batch element.

    x_ref    : (1, H, W, Cin)      unpadded input, NHWC
    w_ref    : (Cin, 3*Cout)       fused 1x1 conv weights, columns = [k | v | q]
    rel_ref  : (K, K, Cout)        relative position bias per kernel offset
    o_ref    : (1, H, W, Cout)
    kvpad_ref: (Hp, Wp_al, 2*Cout) VMEM scratch holding the zero-padded k|v map
    """
    C2 = 2 * Cout

    # ---- fused q/k/v projection on the unpadded map (single MXU matmul) ----
    x2d = x_ref[0].reshape(H * W, Cin)
    f = jnp.dot(x2d, w_ref[...], preferred_element_type=jnp.float32)
    f = f.reshape(H, W, 3 * Cout)
    kv = f[:, :, :C2]          # (H, W, 2*Cout), lane-offset-0 slice
    q = f[:, :, C2:]           # (H, W, Cout)

    # ---- zero-pad k|v in VMEM (1x1 conv of zero padding, bias=False -> 0) ----
    # Re-zeroed every grid step so megacore sharding of the batch axis is safe.
    kvpad_ref[...] = jnp.zeros_like(kvpad_ref)
    kvpad_ref[pad:pad + H, pad:pad + W, :] = kv

    # ---- K width(sublane)-shifted copies, made once; the kh offsets below
    #      are free leading-dim slices ----
    k_shift = []
    v_shift = []
    for kw in range(K):
        s = kvpad_ref[:, kw:kw + W, :]          # (Hp, W, 2*Cout)
        k_shift.append(s[:, :, :Cout])
        v_shift.append(s[:, :, Cout:])

    rel = rel_ref[...]                           # (K, K, Cout)

    # ---- compute each of the K*K score maps exactly once (cached) ----
    scores = []
    vals = []
    for kh in range(K):
        for kw in range(K):
            kwin = k_shift[kw][kh:kh + H] + rel[kh, kw]
            scores.append(q * kwin)
            vals.append(v_shift[kw][kh:kh + H])

    # ---- stable softmax over the window + weighted value sum ----
    m = scores[0]
    for s in scores[1:]:
        m = jnp.maximum(m, s)
    denom = jnp.zeros((H, W, Cout), jnp.float32)
    acc = jnp.zeros((H, W, Cout), jnp.float32)
    for s, v in zip(scores, vals):
        p = jnp.exp(s - m)
        denom = denom + p
        acc = acc + p * v

    inv = pl.reciprocal(denom, approx=True)      # EUP slot, not the VPU divider
    inv = inv * (2.0 - denom * inv)              # one Newton step -> ~f32 exact
    o_ref[0] = (acc * inv).astype(o_ref.dtype)


def attention_conv(x_nchw, wq, wk, wv, rel_h, rel_w, *, kernel_size, padding,
                   stride=1, groups=1):
    """Pallas implementation of AttentionConv.forward. Inputs/outputs are NCHW."""
    assert stride == 1, "forward-pass view() only holds for stride=1"
    B, Cin, H, W = x_nchw.shape
    Cout = wq.shape[0]
    assert Cout % groups == 0
    K, p = kernel_size, padding
    assert 2 * p == K - 1, "output spatial size must equal input spatial size"
    Hp, Wp = H + 2 * p, W + 2 * p
    Wp_al = -(-Wp // 8) * 8                      # scratch sublane dim, multiple of 8

    # NCHW -> NHWC (NO wrapper-side padding: padding is done inside the kernel)
    x_nhwc = jnp.transpose(x_nchw, (0, 2, 3, 1))

    # fused 1x1 conv weights: (Cout, Cin, 1, 1) -> (Cin, 3*Cout), order [k|v|q]
    w_all = jnp.concatenate(
        [wk[:, :, 0, 0].T, wv[:, :, 0, 0].T, wq[:, :, 0, 0].T], axis=1
    ).astype(jnp.float32)

    # relative positional bias rel[kh, kw, c]:
    #   first Cout/2 channels use rel_h (indexed by kh), second half rel_w (kw)
    relh2 = rel_h.reshape(Cout // 2, K)          # [c, kh]
    relw2 = rel_w.reshape(Cout // 2, K)          # [c, kw]
    rel_full = jnp.concatenate([
        jnp.broadcast_to(relh2.T[:, None, :], (K, K, Cout // 2)),
        jnp.broadcast_to(relw2.T[None, :, :], (K, K, Cout // 2)),
    ], axis=-1).astype(jnp.float32)

    kern = functools.partial(attention_conv_kernel,
                             H=H, W=W, K=K, pad=p, Cin=Cin, Cout=Cout)

    out_nhwc = pl.pallas_call(
        kern,
        out_shape=jax.ShapeDtypeStruct((B, H, W, Cout), x_nchw.dtype),
        grid=(B,),
        in_specs=[
            pl.BlockSpec((1, H, W, Cin), lambda b: (b, 0, 0, 0)),
            pl.BlockSpec((Cin, 3 * Cout), lambda b: (0, 0)),
            pl.BlockSpec((K, K, Cout), lambda b: (0, 0, 0)),
        ],
        out_specs=pl.BlockSpec((1, H, W, Cout), lambda b: (b, 0, 0, 0)),
        scratch_shapes=[pltpu.VMEM((Hp, Wp_al, 2 * Cout), jnp.float32)],
        compiler_params=pltpu.CompilerParams(
            dimension_semantics=("parallel",),
            vmem_limit_bytes=32 * 1024 * 1024),
    )(x_nhwc, w_all, rel_full)

    return jnp.transpose(out_nhwc, (0, 3, 1, 2))  # back to NCHW


def reference(x, wq, wk, wv, rel_h, rel_w, K, p):
    """Pure-JAX replica of the PyTorch forward (NCHW), used only to validate."""
    B, Cin, H, W = x.shape
    Cout = wq.shape[0]
    xpad = jnp.pad(x, ((0, 0), (0, 0), (p, p), (p, p)))
    Wq, Wk, Wv = wq[:, :, 0, 0], wk[:, :, 0, 0], wv[:, :, 0, 0]
    q = jnp.einsum('oi,bihw->bohw', Wq, x)
    k = jnp.einsum('oi,bihw->bohw', Wk, xpad)
    v = jnp.einsum('oi,bihw->bohw', Wv, xpad)
    k_unf = jnp.stack([jnp.stack([k[:, :, i:i + H, j:j + W] for j in range(K)], axis=-1)
                       for i in range(K)], axis=4)   # (B, C, H, W, Kh, Kw)
    v_unf = jnp.stack([jnp.stack([v[:, :, i:i + H, j:j + W] for j in range(K)], axis=-1)
                       for i in range(K)], axis=4)
    k_h, k_w = k_unf[:, :Cout // 2], k_unf[:, Cout // 2:]
    k_unf = jnp.concatenate([k_h + rel_h[None], k_w + rel_w[None]], axis=1)
    scores = (q[..., None, None] * k_unf).reshape(B, Cout, H, W, K * K)
    soft = jax.nn.softmax(scores, axis=-1)
    v_flat = v_unf.reshape(B, Cout, H, W, K * K)
    return jnp.sum(soft * v_flat, axis=-1)


if __name__ == "__main__":
    key = jax.random.PRNGKey(0)
    B, Cin, Cout, H, W = 2, 8, 16, 16, 16
    K, pad, groups = 3, 1, 2

    ks = jax.random.split(key, 6)
    x = jax.random.normal(ks[0], (B, Cin, H, W), jnp.float32)

    # kaiming_normal_(mode='fan_out', relu) on (Cout, Cin, 1, 1): std = sqrt(2/Cout)
    std = (2.0 / Cout) ** 0.5
    wq = jax.random.normal(ks[1], (Cout, Cin, 1, 1), jnp.float32) * std
    wk = jax.random.normal(ks[2], (Cout, Cin, 1, 1), jnp.float32) * std
    wv = jax.random.normal(ks[3], (Cout, Cin, 1, 1), jnp.float32) * std
    rel_h = jax.random.normal(ks[4], (Cout // 2, 1, 1, K, 1), jnp.float32)
    rel_w = jax.random.normal(ks[5], (Cout // 2, 1, 1, 1, K), jnp.float32)

    out = attention_conv(x, wq, wk, wv, rel_h, rel_w,
                         kernel_size=K, padding=pad, stride=1, groups=groups)
    out = jax.block_until_ready(out)

    ref = reference(x, wq, wk, wv, rel_h, rel_w, K, pad)
    assert out.shape == (B, Cout, H, W), out.shape
    err = float(jnp.max(jnp.abs(out - ref)))
    assert jnp.allclose(out, ref, atol=1e-3, rtol=1e-3), err
    print("KERNEL_OK")
</pallas_src>

<mosaic_0001>
module attributes {stable_mosaic.version = 11 : i64} {
  func.func @attention_conv_kernel(%arg0: i32, %arg1: memref<1x16x16x8xf32, #tpu.memory_space<vmem>>, %arg2: memref<8x48xf32, #tpu.memory_space<vmem>>, %arg3: memref<3x3x16xf32, #tpu.memory_space<vmem>>, %arg4: memref<1x16x16x16xf32, #tpu.memory_space<vmem>>, %arg5: memref<18x24x32xf32, #tpu.memory_space<vmem>>) attributes {dimension_semantics = [#tpu.dimension_semantics<parallel>], iteration_bounds = array<i64: 2>, scalar_prefetch = 0 : i64, scratch_operands = 1 : i64, tpu.core_type = #tpu.core_type<tc>, window_params = [{transform_indices = @transform_0, window_bounds = array<i64: 1, 16, 16, 8>}, {pipeline_mode = #tpu.pipeline_mode<synchronous>, transform_indices = @transform_1, window_bounds = array<i64: 8, 48>}, {pipeline_mode = #tpu.pipeline_mode<synchronous>, transform_indices = @transform_2, window_bounds = array<i64: 3, 3, 16>}, {transform_indices = @transform_3, window_bounds = array<i64: 1, 16, 16, 16>}]} {
    %c0 = arith.constant 0 : index
    %c0_0 = arith.constant 0 : index
    %c0_1 = arith.constant 0 : index
    %c0_2 = arith.constant 0 : index
    %0 = vector.load %arg1[%c0, %c0_0, %c0_1, %c0_2] : memref<1x16x16x8xf32, #tpu.memory_space<vmem>>, vector<1x16x16x8xf32>
    %1 = vector.shape_cast %0 : vector<1x16x16x8xf32> to vector<16x16x8xf32>
    %2 = vector.shape_cast %1 : vector<16x16x8xf32> to vector<256x8xf32>
    %c0_3 = arith.constant 0 : index
    %c0_4 = arith.constant 0 : index
    %3 = vector.load %arg2[%c0_3, %c0_4] : memref<8x48xf32, #tpu.memory_space<vmem>>, vector<8x48xf32>
    %cst = arith.constant dense<0.000000e+00> : vector<256x48xf32>
    %4 = tpu.matmul %2, %3, %cst {dimension_numbers = #tpu.dot_dimension_numbers<[1], [0], [0], [1], [0, 0, 1, 1], [], []>} : vector<256x8xf32>, vector<8x48xf32>, vector<256x48xf32> -> vector<256x48xf32>
    %5 = vector.shape_cast %4 : vector<256x48xf32> to vector<16x16x48xf32>
    %6 = vector.extract_strided_slice %5 {offsets = [0, 0, 0], sizes = [16, 16, 32], strides = [1, 1, 1]} : vector<16x16x48xf32> to vector<16x16x32xf32>
    %7 = vector.extract_strided_slice %5 {offsets = [0, 0, 32], sizes = [16, 16, 16], strides = [1, 1, 1]} : vector<16x16x48xf32> to vector<16x16x16xf32>
    %cst_5 = arith.constant 0.000000e+00 : f32
    %8 = vector.broadcast %cst_5 : f32 to vector<18x24x32xf32>
    %c0_6 = arith.constant 0 : index
    %c0_7 = arith.constant 0 : index
    %c0_8 = arith.constant 0 : index
    %9 = vector.load %arg5[%c0_6, %c0_7, %c0_8] : memref<18x24x32xf32, #tpu.memory_space<vmem>>, vector<18x24x32xf32>
    tpu.vector_store %arg5[%c0_6, %c0_7, %c0_8], %8 {strides = array<i32>} : memref<18x24x32xf32, #tpu.memory_space<vmem>>, vector<18x24x32xf32>,
    %c1 = arith.constant 1 : index
    %c1_9 = arith.constant 1 : index
    %c0_10 = arith.constant 0 : index
    %10 = vector.load %arg5[%c1, %c1_9, %c0_10] : memref<18x24x32xf32, #tpu.memory_space<vmem>>, vector<16x16x32xf32>
    tpu.vector_store %arg5[%c1, %c1_9, %c0_10], %6 {strides = array<i32>} : memref<18x24x32xf32, #tpu.memory_space<vmem>>, vector<16x16x32xf32>,
    %c0_11 = arith.constant 0 : index
    %c0_12 = arith.constant 0 : index
    %c0_13 = arith.constant 0 : index
    %11 = vector.load %arg5[%c0_11, %c0_12, %c0_13] : memref<18x24x32xf32, #tpu.memory_space<vmem>>, vector<18x16x32xf32>
    %12 = vector.extract_strided_slice %11 {offsets = [0, 0, 0], sizes = [18, 16, 16], strides = [1, 1, 1]} : vector<18x16x32xf32> to vector<18x16x16xf32>
    %13 = vector.extract_strided_slice %11 {offsets = [0, 0, 16], sizes = [18, 16, 16], strides = [1, 1, 1]} : vector<18x16x32xf32> to vector<18x16x16xf32>
    %c0_14 = arith.constant 0 : index
    %c1_15 = arith.constant 1 : index
    %c0_16 = arith.constant 0 : index
    %14 = vector.load %arg5[%c0_14, %c1_15, %c0_16] : memref<18x24x32xf32, #tpu.memory_space<vmem>>, vector<18x16x32xf32>
    %15 = vector.extract_strided_slice %14 {offsets = [0, 0, 0], sizes = [18, 16, 16], strides = [1, 1, 1]} : vector<18x16x32xf32> to vector<18x16x16xf32>
    %16 = vector.extract_strided_slice %14 {offsets = [0, 0, 16], sizes = [18, 16, 16], strides = [1, 1, 1]} : vector<18x16x32xf32> to vector<18x16x16xf32>
    %c0_17 = arith.constant 0 : index
    %c2 = arith.constant 2 : index
    %c0_18 = arith.constant 0 : index
    %17 = vector.load %arg5[%c0_17, %c2, %c0_18] : memref<18x24x32xf32, #tpu.memory_space<vmem>>, vector<18x16x32xf32>
    %18 = vector.extract_strided_slice %17 {offsets = [0, 0, 0], sizes = [18, 16, 16], strides = [1, 1, 1]} : vector<18x16x32xf32> to vector<18x16x16xf32>
    %19 = vector.extract_strided_slice %17 {offsets = [0, 0, 16], sizes = [18, 16, 16], strides = [1, 1, 1]} : vector<18x16x32xf32> to vector<18x16x16xf32>
    %c0_19 = arith.constant 0 : index
    %c0_20 = arith.constant 0 : index
    %c0_21 = arith.constant 0 : index
    %20 = vector.load %arg3[%c0_19, %c0_20, %c0_21] : memref<3x3x16xf32, #tpu.memory_space<vmem>>, vector<3x3x16xf32>
    %21 = vector.extract_strided_slice %12 {offsets = [0, 0, 0], sizes = [16, 16, 16], strides = [1, 1, 1]} : vector<18x16x16xf32> to vector<16x16x16xf32>
    %22 = vector.extract_strided_slice %20 {offsets = [0, 0, 0], sizes = [1, 1, 16], strides = [1, 1, 1]} : vector<3x3x16xf32> to vector<1x1x16xf32>
    %23 = vector.shape_cast %22 : vector<1x1x16xf32> to vector<16xf32>
    %24 = vector.shape_cast %23 : vector<16xf32> to vector<1x1x16xf32>
    %25 = vector.broadcast %24 : vector<1x1x16xf32> to vector<16x16x16xf32>
    %26 = arith.addf %21, %25 : vector<16x16x16xf32>
    %27 = arith.mulf %7, %26 : vector<16x16x16xf32>
    %28 = vector.extract_strided_slice %13 {offsets = [0, 0, 0], sizes = [16, 16, 16], strides = [1, 1, 1]} : vector<18x16x16xf32> to vector<16x16x16xf32>
    %29 = vector.extract_strided_slice %15 {offsets = [0, 0, 0], sizes = [16, 16, 16], strides = [1, 1, 1]} : vector<18x16x16xf32> to vector<16x16x16xf32>
    %30 = vector.extract_strided_slice %20 {offsets = [0, 1, 0], sizes = [1, 1, 16], strides = [1, 1, 1]} : vector<3x3x16xf32> to vector<1x1x16xf32>
    %31 = vector.shape_cast %30 : vector<1x1x16xf32> to vector<16xf32>
    %32 = vector.shape_cast %31 : vector<16xf32> to vector<1x1x16xf32>
    %33 = vector.broadcast %32 : vector<1x1x16xf32> to vector<16x16x16xf32>
    %34 = arith.addf %29, %33 : vector<16x16x16xf32>
    %35 = arith.mulf %7, %34 : vector<16x16x16xf32>
    %36 = vector.extract_strided_slice %16 {offsets = [0, 0, 0], sizes = [16, 16, 16], strides = [1, 1, 1]} : vector<18x16x16xf32> to vector<16x16x16xf32>
    %37 = vector.extract_strided_slice %18 {offsets = [0, 0, 0], sizes = [16, 16, 16], strides = [1, 1, 1]} : vector<18x16x16xf32> to vector<16x16x16xf32>
    %38 = vector.extract_strided_slice %20 {offsets = [0, 2, 0], sizes = [1, 1, 16], strides = [1, 1, 1]} : vector<3x3x16xf32> to vector<1x1x16xf32>
    %39 = vector.shape_cast %38 : vector<1x1x16xf32> to vector<16xf32>
    %40 = vector.shape_cast %39 : vector<16xf32> to vector<1x1x16xf32>
    %41 = vector.broadcast %40 : vector<1x1x16xf32> to vector<16x16x16xf32>
    %42 = arith.addf %37, %41 : vector<16x16x16xf32>
    %43 = arith.mulf %7, %42 : vector<16x16x16xf32>
    %44 = vector.extract_strided_slice %19 {offsets = [0, 0, 0], sizes = [16, 16, 16], strides = [1, 1, 1]} : vector<18x16x16xf32> to vector<16x16x16xf32>
    %45 = vector.extract_strided_slice %12 {offsets = [1, 0, 0], sizes = [16, 16, 16], strides = [1, 1, 1]} : vector<18x16x16xf32> to vector<16x16x16xf32>
    %46 = vector.extract_strided_slice %20 {offsets = [1, 0, 0], sizes = [1, 1, 16], strides = [1, 1, 1]} : vector<3x3x16xf32> to vector<1x1x16xf32>
    %47 = vector.shape_cast %46 : vector<1x1x16xf32> to vector<16xf32>
    %48 = vector.shape_cast %47 : vector<16xf32> to vector<1x1x16xf32>
    %49 = vector.broadcast %48 : vector<1x1x16xf32> to vector<16x16x16xf32>
    %50 = arith.addf %45, %49 : vector<16x16x16xf32>
    %51 = arith.mulf %7, %50 : vector<16x16x16xf32>
    %52 = vector.extract_strided_slice %13 {offsets = [1, 0, 0], sizes = [16, 16, 16], strides = [1, 1, 1]} : vector<18x16x16xf32> to vector<16x16x16xf32>
    %53 = vector.extract_strided_slice %15 {offsets = [1, 0, 0], sizes = [16, 16, 16], strides = [1, 1, 1]} : vector<18x16x16xf32> to vector<16x16x16xf32>
    %54 = vector.extract_strided_slice %20 {offsets = [1, 1, 0], sizes = [1, 1, 16], strides = [1, 1, 1]} : vector<3x3x16xf32> to vector<1x1x16xf32>
    %55 = vector.shape_cast %54 : vector<1x1x16xf32> to vector<16xf32>
    %56 = vector.shape_cast %55 : vector<16xf32> to vector<1x1x16xf32>
    %57 = vector.broadcast %56 : vector<1x1x16xf32> to vector<16x16x16xf32>
    %58 = arith.addf %53, %57 : vector<16x16x16xf32>
    %59 = arith.mulf %7, %58 : vector<16x16x16xf32>
    %60 = vector.extract_strided_slice %16 {offsets = [1, 0, 0], sizes = [16, 16, 16], strides = [1, 1, 1]} : vector<18x16x16xf32> to vector<16x16x16xf32>
    %61 = vector.extract_strided_slice %18 {offsets = [1, 0, 0], sizes = [16, 16, 16], strides = [1, 1, 1]} : vector<18x16x16xf32> to vector<16x16x16xf32>
    %62 = vector.extract_strided_slice %20 {offsets = [1, 2, 0], sizes = [1, 1, 16], strides = [1, 1, 1]} : vector<3x3x16xf32> to vector<1x1x16xf32>
    %63 = vector.shape_cast %62 : vector<1x1x16xf32> to vector<16xf32>
    %64 = vector.shape_cast %63 : vector<16xf32> to vector<1x1x16xf32>
    %65 = vector.broadcast %64 : vector<1x1x16xf32> to vector<16x16x16xf32>
    %66 = arith.addf %61, %65 : vector<16x16x16xf32>
    %67 = arith.mulf %7, %66 : vector<16x16x16xf32>
    %68 = vector.extract_strided_slice %19 {offsets = [1, 0, 0], sizes = [16, 16, 16], strides = [1, 1, 1]} : vector<18x16x16xf32> to vector<16x16x16xf32>
    %69 = vector.extract_strided_slice %12 {offsets = [2, 0, 0], sizes = [16, 16, 16], strides = [1, 1, 1]} : vector<18x16x16xf32> to vector<16x16x16xf32>
    %70 = vector.extract_strided_slice %20 {offsets = [2, 0, 0], sizes = [1, 1, 16], strides = [1, 1, 1]} : vector<3x3x16xf32> to vector<1x1x16xf32>
    %71 = vector.shape_cast %70 : vector<1x1x16xf32> to vector<16xf32>
    %72 = vector.shape_cast %71 : vector<16xf32> to vector<1x1x16xf32>
    %73 = vector.broadcast %72 : vector<1x1x16xf32> to vector<16x16x16xf32>
    %74 = arith.addf %69, %73 : vector<16x16x16xf32>
    %75 = arith.mulf %7, %74 : vector<16x16x16xf32>
    %76 = vector.extract_strided_slice %13 {offsets = [2, 0, 0], sizes = [16, 16, 16], strides = [1, 1, 1]} : vector<18x16x16xf32> to vector<16x16x16xf32>
    %77 = vector.extract_strided_slice %15 {offsets = [2, 0, 0], sizes = [16, 16, 16], strides = [1, 1, 1]} : vector<18x16x16xf32> to vector<16x16x16xf32>
    %78 = vector.extract_strided_slice %20 {offsets = [2, 1, 0], sizes = [1, 1, 16], strides = [1, 1, 1]} : vector<3x3x16xf32> to vector<1x1x16xf32>
    %79 = vector.shape_cast %78 : vector<1x1x16xf32> to vector<16xf32>
    %80 = vector.shape_cast %79 : vector<16xf32> to vector<1x1x16xf32>
    %81 = vector.broadcast %80 : vector<1x1x16xf32> to vector<16x16x16xf32>
    %82 = arith.addf %77, %81 : vector<16x16x16xf32>
    %83 = arith.mulf %7, %82 : vector<16x16x16xf32>
    %84 = vector.extract_strided_slice %16 {offsets = [2, 0, 0], sizes = [16, 16, 16], strides = [1, 1, 1]} : vector<18x16x16xf32> to vector<16x16x16xf32>
    %85 = vector.extract_strided_slice %18 {offsets = [2, 0, 0], sizes = [16, 16, 16], strides = [1, 1, 1]} : vector<18x16x16xf32> to vector<16x16x16xf32>
    %86 = vector.extract_strided_slice %20 {offsets = [2, 2, 0], sizes = [1, 1, 16], strides = [1, 1, 1]} : vector<3x3x16xf32> to vector<1x1x16xf32>
    %87 = vector.shape_cast %86 : vector<1x1x16xf32> to vector<16xf32>
    %88 = vector.shape_cast %87 : vector<16xf32> to vector<1x1x16xf32>
    %89 = vector.broadcast %88 : vector<1x1x16xf32> to vector<16x16x16xf32>
    %90 = arith.addf %85, %89 : vector<16x16x16xf32>
    %91 = arith.mulf %7, %90 : vector<16x16x16xf32>
    %92 = vector.extract_strided_slice %19 {offsets = [2, 0, 0], sizes = [16, 16, 16], strides = [1, 1, 1]} : vector<18x16x16xf32> to vector<16x16x16xf32>
    %93 = arith.maximumf %27, %35 : vector<16x16x16xf32>
    %94 = arith.maximumf %93, %43 : vector<16x16x16xf32>
    %95 = arith.maximumf %94, %51 : vector<16x16x16xf32>
    %96 = arith.maximumf %95, %59 : vector<16x16x16xf32>
    %97 = arith.maximumf %96, %67 : vector<16x16x16xf32>
    %98 = arith.maximumf %97, %75 : vector<16x16x16xf32>
    %99 = arith.maximumf %98, %83 : vector<16x16x16xf32>
    %100 = arith.maximumf %99, %91 : vector<16x16x16xf32>
    %cst_22 = arith.constant 0.000000e+00 : f32
    %101 = vector.broadcast %cst_22 : f32 to vector<16x16x16xf32>
    %cst_23 = arith.constant 0.000000e+00 : f32
    %102 = vector.broadcast %cst_23 : f32 to vector<16x16x16xf32>
    %103 = arith.subf %27, %100 : vector<16x16x16xf32>
    %104 = math.exp %103 : vector<16x16x16xf32>
    %105 = arith.addf %101, %104 : vector<16x16x16xf32>
    %106 = arith.mulf %104, %28 : vector<16x16x16xf32>
    %107 = arith.addf %102, %106 : vector<16x16x16xf32>
    %108 = arith.subf %35, %100 : vector<16x16x16xf32>
    %109 = math.exp %108 : vector<16x16x16xf32>
    %110 = arith.addf %105, %109 : vector<16x16x16xf32>
    %111 = arith.mulf %109, %36 : vector<16x16x16xf32>
    %112 = arith.addf %107, %111 : vector<16x16x16xf32>
    %113 = arith.subf %43, %100 : vector<16x16x16xf32>
    %114 = math.exp %113 : vector<16x16x16xf32>
    %115 = arith.addf %110, %114 : vector<16x16x16xf32>
    %116 = arith.mulf %114, %44 : vector<16x16x16xf32>
    %117 = arith.addf %112, %116 : vector<16x16x16xf32>
    %118 = arith.subf %51, %100 : vector<16x16x16xf32>
    %119 = math.exp %118 : vector<16x16x16xf32>
    %120 = arith.addf %115, %119 : vector<16x16x16xf32>
    %121 = arith.mulf %119, %52 : vector<16x16x16xf32>
    %122 = arith.addf %117, %121 : vector<16x16x16xf32>
    %123 = arith.subf %59, %100 : vector<16x16x16xf32>
    %124 = math.exp %123 : vector<16x16x16xf32>
    %125 = arith.addf %120, %124 : vector<16x16x16xf32>
    %126 = arith.mulf %124, %60 : vector<16x16x16xf32>
    %127 = arith.addf %122, %126 : vector<16x16x16xf32>
    %128 = arith.subf %67, %100 : vector<16x16x16xf32>
    %129 = math.exp %128 : vector<16x16x16xf32>
    %130 = arith.addf %125, %129 : vector<16x16x16xf32>
    %131 = arith.mulf %129, %68 : vector<16x16x16xf32>
    %132 = arith.addf %127, %131 : vector<16x16x16xf32>
    %133 = arith.subf %75, %100 : vector<16x16x16xf32>
    %134 = math.exp %133 : vector<16x16x16xf32>
    %135 = arith.addf %130, %134 : vector<16x16x16xf32>
    %136 = arith.mulf %134, %76 : vector<16x16x16xf32>
    %137 = arith.addf %132, %136 : vector<16x16x16xf32>
    %138 = arith.subf %83, %100 : vector<16x16x16xf32>
    %139 = math.exp %138 : vector<16x16x16xf32>
    %140 = arith.addf %135, %139 : vector<16x16x16xf32>
    %141 = arith.mulf %139, %84 : vector<16x16x16xf32>
    %142 = arith.addf %137, %141 : vector<16x16x16xf32>
    %143 = arith.subf %91, %100 : vector<16x16x16xf32>
    %144 = math.exp %143 : vector<16x16x16xf32>
    %145 = arith.addf %140, %144 : vector<16x16x16xf32>
    %146 = arith.mulf %144, %92 : vector<16x16x16xf32>
    %147 = arith.addf %142, %146 : vector<16x16x16xf32>
    %148 = tpu.reciprocal %145 {approx = true} : vector<16x16x16xf32> -> vector<16x16x16xf32>
    %149 = arith.mulf %145, %148 : vector<16x16x16xf32>
    %cst_24 = arith.constant 2.000000e+00 : f32
    %150 = vector.broadcast %cst_24 : f32 to vector<16x16x16xf32>
    %151 = arith.subf %150, %149 : vector<16x16x16xf32>
    %152 = arith.mulf %148, %151 : vector<16x16x16xf32>
    %153 = arith.mulf %147, %152 : vector<16x16x16xf32>
    %c0_25 = arith.constant 0 : index
    %c0_26 = arith.constant 0 : index
    %c0_27 = arith.constant 0 : index
    %c0_28 = arith.constant 0 : index
    %154 = vector.load %arg4[%c0_25, %c0_26, %c0_27, %c0_28] : memref<1x16x16x16xf32, #tpu.memory_space<vmem>>, vector<1x16x16x16xf32>
    %155 = vector.shape_cast %154 : vector<1x16x16x16xf32> to vector<16x16x16xf32>
    %156 = vector.shape_cast %153 : vector<16x16x16xf32> to vector<1x16x16x16xf32>
    tpu.vector_store %arg4[%c0_25, %c0_26, %c0_27, %c0_28], %156 {strides = array<i32>} : memref<1x16x16x16xf32, #tpu.memory_space<vmem>>, vector<1x16x16x16xf32>,
    return
  }
  func.func @transform_0(%arg0: i32) -> (i32, i32, i32, i32) {
    %c0_i32 = arith.constant 0 : i32
    %c0_i32_0 = arith.constant 0 : i32
    %c0_i32_1 = arith.constant 0 : i32
    %c0_i32_2 = arith.constant 0 : i32
    return %arg0, %c0_i32, %c0_i32_0, %c0_i32_1 : i32, i32, i32, i32
  }
  func.func @transform_1(%arg0: i32) -> (i32, i32) {
    %c0_i32 = arith.constant 0 : i32
    %c0_i32_0 = arith.constant 0 : i32
    %c0_i32_1 = arith.constant 0 : i32
    return %c0_i32, %c0_i32_0 : i32, i32
  }
  func.func @transform_2(%arg0: i32) -> (i32, i32, i32) {
    %c0_i32 = arith.constant 0 : i32
    %c0_i32_0 = arith.constant 0 : i32
    %c0_i32_1 = arith.constant 0 : i32
    %c0_i32_2 = arith.constant 0 : i32
    return %c0_i32, %c0_i32_0, %c0_i32_1 : i32, i32, i32
  }
  func.func @transform_3(%arg0: i32) -> (i32, i32, i32, i32) {
    %c0_i32 = arith.constant 0 : i32
    %c0_i32_0 = arith.constant 0 : i32
    %c0_i32_1 = arith.constant 0 : i32
    %c0_i32_2 = arith.constant 0 : i32
    return %arg0, %c0_i32, %c0_i32_0, %c0_i32_1 : i32, i32, i32, i32
  }
}

</mosaic_0001>

<bundles_post_ra>
// kernel: tpu_custom_call.1
= control target key start
LH: loop header
LB: loop body
LE: loop exit
PB: predicated region body
PF: predicated region fallthrough
CT: control target
= control target key end

     0   :  { %8 = vsyncpa [#allocation4], 0  ;;  %s13590_s0 = inlined_call_operand.vmem [shape: f32[2,16,16,8], index: 0, kind: input, shape index: {}]   ;;  %s13591_s1 = inlined_call_operand.vmem [shape: f32[8,48], index: 1, kind: input, shape index: {}]   ;;  %s13592_s2 = inlined_call_operand.vmem [shape: f32[3,3,16], index: 2, kind: input, shape index: {}]   ;;  %s13593_s3 = inlined_call_operand.hbm [shape: f32[2,16,16,16], index: 3, kind: output, shape index: {}]  }
   0x1   :  { %10 = vsyncpa [#allocation4 + $0x1], 0  ;;  %s6370_s12 = smov 0   ;;  %s6372_s13 = smov 0  }
   0x2   :  { %s6374_s14 = smov 0   ;;  %s6376_s15 = smov 0  }
   0x3 LB: > { %s6391_s16 = sadd.s32 4294967295, %s6341_s15   ;;  %s5300_s17 = sadd.s32 4294967294, %s6341_s15   ;;  %s6341_s15 = sphi %s6376_s15, %s16684_s15   ;;  %s6337_s14 = sphi %s6374_s14, %s16683_s14   ;;  %s6333_s13 = sphi %s6372_s13, %s16682_s13   ;;  %s6329_s12 = sphi %s6370_s12, %s16681_s12  }
   0x4   : > { %s6395_s18 = sadd.s32 1, %s6341_s15   ;;  %s91_s19 = sadd.s32 1, %s6337_s14 }
   0x5   : > { %s88_s20 = ssub.s32 %s6341_s15, %s6395_s18  ;;  %p101_p0 = scmp.ne.s32.totalorder %s6337_s14, %s6333_s13 }
   0x6   : > { %p89_p1 = scmp.eq.s32.totalorder %s88_s20, 0  ;;  %p102_p2 = scmp.eq.s32.totalorder %s6391_s16, 1 }
   0x7   : > { %p107_p3 = scmp.ne.s32.totalorder %s6333_s13, %s6329_s12  ;;  %p108_p4 = scmp.eq.s32.totalorder %s5300_s17, 1 }
   0x8   : > { %s6406_s21 = scalar_select %p89_p1, %s6337_s14, %s91_s19  }
   0x9   : > { %p6408_p5 = por %p102_p2, %p101_p0  ;;  %p6412_p6 = por %p108_p4, %p107_p3 }
   0xa   : > { %p5303_p7 = scmp.ge.s32.totalorder %s6341_s15, 1  ;;  %p140_p8 = scmp.lt.s32.totalorder %s6341_s15, 3 }
   0xc   : > { %p141_p9 = pnand %p5303_p7, %p140_p8 }
   0xe   : > { %144 = sbr.rel (%p141_p9) target bundleno = 1578 (0x62a), region = 32 }
  0x13   : > { %v201_v0 = vld [vmem:[%s13591_s1] sm:$0xff]  ;;  %p164_p10 = scmp.lt.s32.totalorder %s6391_s16, 1  ;;  %vm524_vm0 = vcmask 261120   ;;  %v723_v1 = vlaneseq  ;;  %v6343_v2 = vmov 0.0   ;;  %vm202_vm1 = vcmask 64512   ;;  %s6344_s6 = smov 32  }
  0x14   : > { %5379 = vmatprep.subr.mxu0 %v201_v0  ;;  %5429 = vmatprep.subr.mxu1 %v201_v0  ;;  %525 = vst.msk [vmem:[#allocation2] sm:$0xff] %vm524_vm0, %v6343_v2  ;;  %526 = vst.msk [vmem:[#allocation2 + $0x8] sm:$0xff] %vm524_vm0, %v6343_v2  ;;  %v720_v4 = vld [vmem:[%s13592_s2] sm:$0x7]  ;;  %s6345_s11 = smov 16   ;;  %s6346_s17 = smov 96  }
  0x15   : > { %527 = vst.msk [vmem:[#allocation2 + $0x10] sm:$0xff] %vm524_vm0, %v6343_v2  ;;  %528 = vst.msk [vmem:[#allocation2 + $0x18] sm:$0xff] %vm524_vm0, %v6343_v2  ;;  %5380 = vmatpush3.msra.mxu0 %v201_v0  ;;  %5430 = vmatpush3.msra.mxu1 %v201_v0  ;;  %s165_s26 = scalar_select %p164_p10, %s6391_s16, 1  ;;  %v724_v3 = vshrl.u32 %v723_v1, 7  ;;  %vm5191_vm2 = vcmask 130048  }
  0x16   : > { %529 = vst.msk [vmem:[#allocation2 + $0x20] sm:$0xff] %vm524_vm0, %v6343_v2  ;;  %530 = vst.msk [vmem:[#allocation2 + $0x28] sm:$0xff] %vm524_vm0, %v6343_v2  ;;  %s161_s19 = sand.u32 1, %s6333_s13   ;;  %s5345_s25 = sshll.u32 %s6391_s16, 12 }
  0x17   : > { %531 = vst.msk [vmem:[#allocation2 + $0x30] sm:$0xff] %vm524_vm0, %v6343_v2  ;;  %532 = vst.msk [vmem:[#allocation2 + $0x38] sm:$0xff] %vm524_vm0, %v6343_v2  ;;  %s5344_s27 = sshll.u32 %s165_s26, 8  ;;  %v6482_v5 = vsub.s32 0, %v724_v3  ;;  %v6484_v6 = vsub.s32 1, %v724_v3  ;;  %v6494_v10 = vsub.s32 2, %v724_v3  ;;  %s13542_s29 = scalar_lea.hbm %s13593_s3, %s5345_s25 }
  0x18   : > { %533 = vst.msk [vmem:[#allocation2 + $0x40] sm:$0xff] %vm524_vm0, %v6343_v2  ;;  %534 = vst.msk [vmem:[#allocation2 + $0x48] sm:$0xff] %vm524_vm0, %v6343_v2  ;;  %s6489_s5 = scalar_lea.vmem %s13590_s0, %s5344_s27  ;;  %s13348_s20 = sshll.u32 %s161_s19, 8 }
  0x19   : > { %535 = vst.msk [vmem:[#allocation2 + $0x50] sm:$0xff] %vm524_vm0, %v6343_v2  ;;  %536 = vst.msk [vmem:[#allocation2 + $0x58] sm:$0xff] %vm524_vm0, %v6343_v2  ;;  %v169_v7 = vld [vmem:[%s6489_s5] sm:$0xff]  ;;  %v170_v9 = vld [vmem:[%s6489_s5 + $0x8] sm:$0xff]  ;;  %v6501_v13 = vrot.slane %v720_v4, %v6482_v5  ;;  %v6504_v14 = vrot.slane %v720_v4, %v6484_v6  ;;  %v6516_v22 = vrot.slane %v720_v4, %v6494_v10  ;;  %s13384_s24 = scalar_lea.vmem [#allocation3], %s13348_s20  ;;  %s13550_s30 = scalar_lea.sflag [#allocation4], %s161_s19 }
  0x1a   : > { %537 = vst.msk [vmem:[#allocation2 + $0x60] sm:$0xff] %vm524_vm0, %v6343_v2  ;;  %538 = vst.msk [vmem:[#allocation2 + $0x68] sm:$0xff] %vm524_vm0, %v6343_v2  ;;  %v185_v8 = vld [vmem:[%s6489_s5 + $0x80] sm:$0xff]  ;;  %5381 = vmatprep.mubr.msk.f32.mxu0 %vm202_vm1, %v169_v7  ;;  %v186_v11 = vld [vmem:[%s6489_s5 + $0x88] sm:$0xff]  ;;  %s5238_s26 = sshll.u32 %s13384_s24, 4  ;;  %s6347_s16 = smov [#allocation3]   ;;  %s13544_s26 = int_to_ptr.vmem [resolvable:$true] %s5238_s26 }
  0x1b   : > { %539 = vst.msk [vmem:[#allocation2 + $0x70] sm:$0xff] %vm524_vm0, %v6343_v2  ;;  %540 = vst.msk [vmem:[#allocation2 + $0x78] sm:$0xff] %vm524_vm0, %v6343_v2  ;;  %5405 = vmatprep.mubr.msk.f32.mxu1 %vm202_vm1, %v185_v8  ;;  %v171_v12 = vld [vmem:[%s6489_s5 + $0x10] sm:$0xff]  ;;  %5382 = vmatmul.mubr.msk.f32.vlgmr.msra.gmra.mxu0 %vm202_vm1, %v170_v9  ;;  %v172_v16 = vld [vmem:[%s6489_s5 + $0x18] sm:$0xff]  ;;  %s6281_s4 = scalar_lea.vmem %s13544_s26, 4096 }
  0x1c   : > { %541 = vst.msk [vmem:[#allocation2 + $0x80] sm:$0xff] %vm524_vm0, %v6343_v2  ;;  %542 = vst.msk [vmem:[#allocation2 + $0x88] sm:$0xff] %vm524_vm0, %v6343_v2  ;;  %5406 = vmatmul.mubr.msk.f32.vlgmr.msra.gmra.mxu1 %vm202_vm1, %v186_v11  ;;  %v187_v15 = vld [vmem:[%s6489_s5 + $0x90] sm:$0xff]  ;;  %5384 = vmatprep.mubr.msk.f32.mxu0 %vm202_vm1, %v171_v12  ;;  %v188_v17 = vld [vmem:[%s6489_s5 + $0x98] sm:$0xff]  ;;  %p6282_p11 = scmp.ne.s32.totalorder %s13544_s26, %s6281_s4 }
  0x1d   : > { %543 = vst.msk [vmem:[#allocation2 + $0x90] sm:$0xff] %vm524_vm0, %v6343_v2  ;;  %544 = vst.msk [vmem:[#allocation2 + $0x98] sm:$0xff] %vm524_vm0, %v6343_v2  ;;  %5408 = vmatprep.mubr.msk.f32.mxu1 %vm202_vm1, %v187_v15  ;;  %v173_v18 = vld [vmem:[%s6489_s5 + $0x20] sm:$0xff]  ;;  %v649_v21 = vld [vmem:[#allocation2 + $0x9] sm:$0xff] }
  0x1e   : > { %545 = vst.msk [vmem:[#allocation2 + $0xa0] sm:$0xff] %vm524_vm0, %v6343_v2  ;;  %546 = vst.msk [vmem:[#allocation2 + $0xa8] sm:$0xff] %vm524_vm0, %v6343_v2  ;;  %v189_v19 = vld [vmem:[%s6489_s5 + $0xa0] sm:$0xff]  ;;  %v613_v24 = vld [vmem:[#allocation2 + $0x8] sm:$0xff]  ;;  %v924_v25 = vadd.f32 %v6504_v14, %v649_v21  ;;  %p6283_p12 = pnand %p6282_p11, %p6408_p5 }
  0x1f   : > { %547 = vst.msk [vmem:[#allocation2 + $0xb0] sm:$0xff] %vm524_vm0, %v6343_v2  ;;  %548 = vst.msk [vmem:[#allocation2 + $0xb8] sm:$0xff] %vm524_vm0, %v6343_v2  ;;  %v612_v20 = vld [vmem:[#allocation2] sm:$0xff]  ;;  %v685_v26 = vld [vmem:[#allocation2 + $0xa] sm:$0xff]  ;;  %5385 = vmatmul.mubr.msk.f32.gmra.mxu0 %vm202_vm1, %v172_v16  ;;  %v728_v29 = vadd.f32 %v6501_v13, %v613_v24 }
  0x20   : > { %549 = vst.msk [vmem:[#allocation2 + $0xc0] sm:$0xff] %vm524_vm0, %v6343_v2  ;;  %550 = vst.msk [vmem:[#allocation2 + $0xc8] sm:$0xff] %vm524_vm0, %v6343_v2  ;;  %v727_v23 = vadd.f32 %v6501_v13, %v612_v20  ;;  %5409 = vmatmul.mubr.msk.f32.gmra.mxu1 %vm202_vm1, %v188_v17  ;;  %5387 = vmatprep.mubr.msk.f32.mxu0 %vm202_vm1, %v173_v18  ;;  %v174_v27 = vld [vmem:[%s6489_s5 + $0x28] sm:$0xff]  ;;  %v1120_v30 = vadd.f32 %v6516_v22, %v685_v26  ;;  %v175_v31 = vld [vmem:[%s6489_s5 + $0x30] sm:$0xff]  ;;  %p6284_p13 = pneg %p6283_p12 }
  0x21   : > { %551 = vst.msk [vmem:[#allocation2 + $0xd0] sm:$0xff] %vm524_vm0, %v6343_v2  ;;  %552 = vst.msk [vmem:[#allocation2 + $0xd8] sm:$0xff] %vm524_vm0, %v6343_v2  ;;  %5411 = vmatprep.mubr.msk.f32.mxu1 %vm202_vm1, %v189_v19  ;;  %v190_v28 = vld [vmem:[%s6489_s5 + $0xa8] sm:$0xff]  ;;  %989 = vrot.lane.b32.xlu1 %v924_v25, %s6344_s6  ;;  %v191_v32 = vld [vmem:[%s6489_s5 + $0xb0] sm:$0xff] }
  0x22   : > { %553 = vst.msk [vmem:[#allocation2 + $0xe0] sm:$0xff] %vm524_vm0, %v6343_v2  ;;  %554 = vst.msk [vmem:[#allocation2 + $0xe8] sm:$0xff] %vm524_vm0, %v6343_v2  ;;  %791 = vrot.lane.b32.xlu0 %v727_v23, %s6344_s6  ;;  %v648_v33 = vld [vmem:[#allocation2 + $0x1] sm:$0xff]  ;;  %v176_v34 = vld [vmem:[%s6489_s5 + $0x38] sm:$0xff] }
  0x23   : > { %555 = vst.msk [vmem:[#allocation2 + $0xf0] sm:$0xff] %vm524_vm0, %v6343_v2  ;;  %556 = vst.msk [vmem:[#allocation2 + $0xf8] sm:$0xff] %vm524_vm0, %v6343_v2  ;;  %5388 = vmatmul.mubr.msk.f32.gmra.mxu0 %vm202_vm1, %v174_v27  ;;  %v192_v35 = vld [vmem:[%s6489_s5 + $0xb8] sm:$0xff]  ;;  %v923_v36 = vadd.f32 %v6504_v14, %v648_v33  ;;  %v177_v37 = vld [vmem:[%s6489_s5 + $0x40] sm:$0xff] }
  0x24   : > { %557 = vst.msk [vmem:[#allocation2 + $0x100] sm:$0xff] %vm524_vm0, %v6343_v2  ;;  %558 = vst.msk [vmem:[#allocation2 + $0x108] sm:$0xff] %vm524_vm0, %v6343_v2  ;;  %5412 = vmatmul.mubr.msk.f32.gmra.mxu1 %vm202_vm1, %v190_v28  ;;  %5390 = vmatprep.mubr.msk.f32.mxu0 %vm202_vm1, %v175_v31  ;;  %v193_v38 = vld [vmem:[%s6489_s5 + $0xc0] sm:$0xff]  ;;  %v178_v40 = vld [vmem:[%s6489_s5 + $0x48] sm:$0xff] }
  0x25   : > { %559 = vst.msk [vmem:[#allocation2 + $0x110] sm:$0xff] %vm524_vm0, %v6343_v2  ;;  %560 = vst.msk [vmem:[#allocation2 + $0x118] sm:$0xff] %vm524_vm0, %v6343_v2  ;;  %5414 = vmatprep.mubr.msk.f32.mxu1 %vm202_vm1, %v191_v32  ;;  %1185 = vrot.lane.b32.xlu1 %v1120_v30, %s6344_s6  ;;  %v684_v39 = vld [vmem:[#allocation2 + $0x2] sm:$0xff]  ;;  %v179_v43 = vld [vmem:[%s6489_s5 + $0x50] sm:$0xff] }
  0x26   : > { %561 = vst.msk [vmem:[#allocation2 + $0x120] sm:$0xff] %vm524_vm0, %v6343_v2  ;;  %562 = vst.msk [vmem:[#allocation2 + $0x128] sm:$0xff] %vm524_vm0, %v6343_v2  ;;  %793 = vrot.lane.b32.xlu0 %v728_v29, %s6344_s6  ;;  %v194_v41 = vld [vmem:[%s6489_s5 + $0xc8] sm:$0xff]  ;;  %v1119_v42 = vadd.f32 %v6516_v22, %v684_v39  ;;  %v195_v44 = vld [vmem:[%s6489_s5 + $0xd0] sm:$0xff] }
  0x27   : > { %563 = vst.msk [vmem:[#allocation2 + $0x130] sm:$0xff] %vm524_vm0, %v6343_v2  ;;  %564 = vst.msk [vmem:[#allocation2 + $0x138] sm:$0xff] %vm524_vm0, %v6343_v2  ;;  %5391 = vmatmul.mubr.msk.f32.gmra.mxu0 %vm202_vm1, %v176_v34  ;;  %v180_v45 = vld [vmem:[%s6489_s5 + $0x58] sm:$0xff]  ;;  %v181_v47 = vld [vmem:[%s6489_s5 + $0x60] sm:$0xff] }
  0x28   : > { %565 = vst.msk [vmem:[#allocation2 + $0x140] sm:$0xff] %vm524_vm0, %v6343_v2  ;;  %566 = vst.msk [vmem:[#allocation2 + $0x148] sm:$0xff] %vm524_vm0, %v6343_v2  ;;  %5415 = vmatmul.mubr.msk.f32.gmra.mxu1 %vm202_vm1, %v192_v35  ;;  %5393 = vmatprep.mubr.msk.f32.mxu0 %vm202_vm1, %v177_v37  ;;  %v196_v46 = vld [vmem:[%s6489_s5 + $0xd8] sm:$0xff]  ;;  %v197_v48 = vld [vmem:[%s6489_s5 + $0xe0] sm:$0xff] }
  0x29   : > { %567 = vst.msk [vmem:[#allocation2 + $0x150] sm:$0xff] %vm524_vm0, %v6343_v2  ;;  %568 = vst.msk [vmem:[#allocation2 + $0x158] sm:$0xff] %vm524_vm0, %v6343_v2  ;;  %5417 = vmatprep.mubr.msk.f32.mxu1 %vm202_vm1, %v193_v38  ;;  %v182_v49 = vld [vmem:[%s6489_s5 + $0x68] sm:$0xff]  ;;  %v183_v51 = vld [vmem:[%s6489_s5 + $0x70] sm:$0xff] }
  0x2a   : > { %569 = vst.msk [vmem:[#allocation2 + $0x160] sm:$0xff] %vm524_vm0, %v6343_v2  ;;  %570 = vst.msk [vmem:[#allocation2 + $0x168] sm:$0xff] %vm524_vm0, %v6343_v2  ;;  %987 = vrot.lane.b32.xlu0 %v923_v36, %s6344_s6  ;;  %v198_v50 = vld [vmem:[%s6489_s5 + $0xe8] sm:$0xff]  ;;  %v184_v52 = vld [vmem:[%s6489_s5 + $0x78] sm:$0xff] }
  0x2b   : > { %571 = vst.msk [vmem:[#allocation2 + $0x170] sm:$0xff] %vm524_vm0, %v6343_v2  ;;  %572 = vst.msk [vmem:[#allocation2 + $0x178] sm:$0xff] %vm524_vm0, %v6343_v2  ;;  %5394 = vmatmul.mubr.msk.f32.gmra.mxu0 %vm202_vm1, %v178_v40  ;;  %v199_v53 = vld [vmem:[%s6489_s5 + $0xf0] sm:$0xff]  ;;  %v200_v54 = vld [vmem:[%s6489_s5 + $0xf8] sm:$0xff]  ;;  %s6285_s5 = sshll.u32 %s6347_s16, 4  ;;  %s6286_s5 = int_to_ptr.vmem [resolvable:$false] %s6285_s5 }
  0x2c   : > { %573 = vst.msk [vmem:[#allocation2 + $0x180] sm:$0xff] %vm524_vm0, %v6343_v2  ;;  %574 = vst.msk [vmem:[#allocation2 + $0x188] sm:$0xff] %vm524_vm0, %v6343_v2  ;;  %5418 = vmatmul.mubr.msk.f32.gmra.mxu1 %vm202_vm1, %v194_v41  ;;  %5396 = vmatprep.mubr.msk.f32.mxu0 %vm202_vm1, %v179_v43  ;;  %v6693_v37 = vld [vmem:[%s13592_s2 + $0x4] sm:$0x7]  ;;  %p6288_p0 = scmp.lt.s32.totalorder %s13544_s26, %s6286_s5 }
  0x2d   : > { %575 = vst.msk [vmem:[#allocation2 + $0x190] sm:$0xff] %vm524_vm0, %v6343_v2  ;;  %576 = vst.msk [vmem:[#allocation2 + $0x198] sm:$0xff] %vm524_vm0, %v6343_v2  ;;  %5420 = vmatprep.mubr.msk.f32.mxu1 %vm202_vm1, %v195_v44  ;;  %v6699_v39 = vrot.slane %v6693_v37, %v6482_v5 }
  0x2e   : > { %577 = vst.msk [vmem:[#allocation2 + $0x1a0] sm:$0xff] %vm524_vm0, %v6343_v2  ;;  %578 = vst.msk [vmem:[#allocation2 + $0x1a8] sm:$0xff] %vm524_vm0, %v6343_v2  ;;  %1183 = vrot.lane.b32.xlu0 %v1119_v42, %s6344_s6 }
  0x2f   : > { %14393 = vst [vmem:[#allocation6_spill] sm:$0xff] %v6482_v5  ;;  %14394 = vst [vmem:[#allocation7_spill] sm:$0xff] %v6484_v6  ;;  %5397 = vmatmul.mubr.msk.f32.gmra.mxu0 %vm202_vm1, %v180_v45 }
  0x30   : > { %5421 = vmatmul.mubr.msk.f32.gmra.mxu1 %vm202_vm1, %v196_v46  ;;  %5399 = vmatprep.mubr.msk.f32.mxu0 %vm202_vm1, %v181_v47 }
  0x31   : > { %5423 = vmatprep.mubr.msk.f32.mxu1 %vm202_vm1, %v197_v48 }
  0x33   : > { %5400 = vmatmul.mubr.msk.f32.gmra.mxu0 %vm202_vm1, %v182_v49 }
  0x34   : > { %5424 = vmatmul.mubr.msk.f32.gmra.mxu1 %vm202_vm1, %v198_v50  ;;  %5402 = vmatprep.mubr.msk.f32.mxu0 %vm202_vm1, %v183_v51 }
  0x35   : > { %5426 = vmatprep.mubr.msk.f32.mxu1 %vm202_vm1, %v199_v53 }
  0x37   : > { %5403 = vmatmul.mubr.msk.f32.gmra.mxu0 %vm202_vm1, %v184_v52 }
  0x38   : > { %5427 = vmatmul.mubr.msk.f32.gmra.mxu1 %vm202_vm1, %v200_v54 }
  0xdb   : > { %v6578_v55 = vpop.f32.mrf.mxu0 }
  0xdc   : > { %14395 = vst [vmem:[#allocation8_spill] sm:$0xff] %v6578_v55  ;;  %v6580_v56 = vpop.f32.mrf.mxu1  ;;  %581 = vst.msk [vmem:[#allocation2 + $0x21] sm:$0xff] %vm524_vm0, %v6578_v55 }
  0xdd   : > { %14396 = vst [vmem:[#allocation9_spill] sm:$0xff] %v6580_v56  ;;  %597 = vst.msk [vmem:[#allocation2 + $0xe1] sm:$0xff] %vm524_vm0, %v6580_v56  ;;  %v6586_v57 = vpop.f32.mrf.mxu0 }
  0xde   : > { %14397 = vst [vmem:[#allocation10_spill] sm:$0xff] %v6586_v57  ;;  %v6588_v58 = vpop.f32.mrf.mxu1  ;;  %580 = vst.msk [vmem:[#allocation2 + $0x19] sm:$0xff] %vm524_vm0, %v6586_v57 }
  0xdf   : > { %14398 = vst [vmem:[#allocation11_spill] sm:$0xff] %v6588_v58  ;;  %596 = vst.msk [vmem:[#allocation2 + $0xd9] sm:$0xff] %vm524_vm0, %v6588_v58  ;;  %v6594_v59 = vpop.f32.mrf.mxu0 }
  0xe0   : > { %14399 = vst [vmem:[#allocation12_spill] sm:$0xff] %v6594_v59  ;;  %v6596_v60 = vpop.f32.mrf.mxu1  ;;  %583 = vst.msk [vmem:[#allocation2 + $0x39] sm:$0xff] %vm524_vm0, %v6594_v59 }
  0xe1   : > { %14400 = vst [vmem:[#allocation13_spill] sm:$0xff] %v6596_v60  ;;  %599 = vst.msk [vmem:[#allocation2 + $0xf9] sm:$0xff] %vm524_vm0, %v6596_v60  ;;  %v6602_v61 = vpop.f32.mrf.mxu0 }
  0xe2   : > { %14401 = vst [vmem:[#allocation14_spill] sm:$0xff] %v6602_v61  ;;  %v6604_v62 = vpop.f32.mrf.mxu1  ;;  %582 = vst.msk [vmem:[#allocation2 + $0x31] sm:$0xff] %vm524_vm0, %v6602_v61 }
  0xe3   : > { %14402 = vst [vmem:[#allocation15_spill] sm:$0xff] %v6604_v62  ;;  %598 = vst.msk [vmem:[#allocation2 + $0xf1] sm:$0xff] %vm524_vm0, %v6604_v62  ;;  %v6610_v63 = vld [vmem:[#allocation2 + $0x21] sm:$0xff]  ;;  %v6614_v1 = vpop.f32.mrf.mxu0 }
  0xe4   : > { %v6612_v0 = vld [vmem:[#allocation2 + $0xe1] sm:$0xff]  ;;  %14403 = vst [vmem:[#allocation16_spill] sm:$0xff] %v6614_v1  ;;  %v6616_v2 = vpop.f32.mrf.mxu1  ;;  %v926_v3 = vadd.f32 %v6504_v14, %v6610_v63  ;;  %585 = vst.msk [vmem:[#allocation2 + $0x51] sm:$0xff] %vm524_vm0, %v6614_v1 }
  0xe5   : > { %14404 = vst [vmem:[#allocation17_spill] sm:$0xff] %v6616_v2  ;;  %601 = vst.msk [vmem:[#allocation2 + $0x111] sm:$0xff] %vm524_vm0, %v6616_v2  ;;  %v6626_v7 = vpop.f32.mrf.mxu0  ;;  %v942_v11 = vadd.f32 %v6504_v14, %v6612_v0  ;;  %v6639_v12 = vld [vmem:[#allocation2 + $0x19] sm:$0xff]  ;;  %v687_v17 = vld [vmem:[#allocation2 + $0x22] sm:$0xff] }
  0xe6   : > { %v6624_v4 = vld [vmem:[#allocation2 + $0xd8] sm:$0xff]  ;;  %14405 = vst [vmem:[#allocation18_spill] sm:$0xff] %v6626_v7  ;;  %v6628_v8 = vpop.f32.mrf.mxu1  ;;  %993 = vrot.lane.b32.xlu1 %v926_v3, %s6344_s6  ;;  %584 = vst.msk [vmem:[#allocation2 + $0x49] sm:$0xff] %vm524_vm0, %v6626_v7  ;;  %v925_v20 = vadd.f32 %v6504_v14, %v6639_v12  ;;  %v1122_v25 = vadd.f32 %v6516_v22, %v687_v17  ;;  %v703_v26 = vld [vmem:[#allocation2 + $0xe2] sm:$0xff] }
  0xe7   : > { %14406 = vst [vmem:[#allocation19_spill] sm:$0xff] %v6628_v8  ;;  %v745_v9 = vadd.f32 %v6501_v13, %v6624_v4  ;;  %600 = vst.msk [vmem:[#allocation2 + $0x109] sm:$0xff] %vm524_vm0, %v6628_v8  ;;  %v6641_v15 = vpop.f32.mrf.mxu0  ;;  %v6661_v21 = vld [vmem:[#allocation2 + $0xd9] sm:$0xff]  ;;  %v1138_v31 = vadd.f32 %v6516_v22, %v703_v26  ;;  %v1331_v49 = vadd.f32 %v6699_v39, %v6624_v4 }
  0xe8   : > { %14407 = vst [vmem:[#allocation20_spill] sm:$0xff] %v6641_v15  ;;  %v6643_v16 = vpop.f32.mrf.mxu1  ;;  %587 = vst.msk [vmem:[#allocation2 + $0x69] sm:$0xff] %vm524_vm0, %v6641_v15  ;;  %v941_v29 = vadd.f32 %v6504_v14, %v6661_v21  ;;  %v686_v30 = vld [vmem:[#allocation2 + $0x1a] sm:$0xff] }
  0xe9   : > { %14408 = vst [vmem:[#allocation21_spill] sm:$0xff] %v6643_v16  ;;  %827 = vrot.lane.b32.xlu0 %v745_v9, %s6344_s6  ;;  %603 = vst.msk [vmem:[#allocation2 + $0x129] sm:$0xff] %vm524_vm0, %v6643_v16  ;;  %v6650_v18 = vpop.f32.mrf.mxu0  ;;  %v614_v32 = vld [vmem:[#allocation2 + $0x18] sm:$0xff]  ;;  %v1121_v33 = vadd.f32 %v6516_v22, %v686_v30  ;;  %v615_v36 = vld [vmem:[#allocation2 + $0x20] sm:$0xff] }
  0xea   : > { %14409 = vst [vmem:[#allocation22_spill] sm:$0xff] %v6650_v18  ;;  %v6652_v19 = vpop.f32.mrf.mxu1  ;;  %1025 = vrot.lane.b32.xlu1 %v942_v11, %s6344_s6  ;;  %586 = vst.msk [vmem:[#allocation2 + $0x61] sm:$0xff] %vm524_vm0, %v6650_v18  ;;  %v702_v34 = vld [vmem:[#allocation2 + $0xda] sm:$0xff]  ;;  %v729_v35 = vadd.f32 %v6501_v13, %v614_v32  ;;  %v730_v41 = vadd.f32 %v6501_v13, %v615_v36  ;;  %v1315_v44 = vadd.f32 %v6699_v39, %v614_v32  ;;  %v616_v47 = vld [vmem:[#allocation2 + $0x30] sm:$0xff] }
  0xeb   : > { %14410 = vst [vmem:[#allocation23_spill] sm:$0xff] %v6652_v19  ;;  %602 = vst.msk [vmem:[#allocation2 + $0x121] sm:$0xff] %vm524_vm0, %v6652_v19  ;;  %v6663_v23 = vpop.f32.mrf.mxu0  ;;  %v1137_v38 = vadd.f32 %v6516_v22, %v702_v34  ;;  %v631_v42 = vld [vmem:[#allocation2 + $0xe0] sm:$0xff]  ;;  %v1316_v50 = vadd.f32 %v6699_v39, %v615_v36  ;;  %v731_v51 = vadd.f32 %v6501_v13, %v616_v47  ;;  %v632_v52 = vld [vmem:[#allocation2 + $0xf0] sm:$0xff] }
  0xec   : > { %14411 = vst [vmem:[#allocation24_spill] sm:$0xff] %v6663_v23  ;;  %v6665_v24 = vpop.f32.mrf.mxu1  ;;  %589 = vst.msk [vmem:[#allocation2 + $0x81] sm:$0xff] %vm524_vm0, %v6663_v23  ;;  %v746_v46 = vadd.f32 %v6501_v13, %v631_v42  ;;  %v1332_v53 = vadd.f32 %v6699_v39, %v631_v42  ;;  %v747_v54 = vadd.f32 %v6501_v13, %v632_v52  ;;  %v6733_v3 = vld [vmem:[#allocation2 + $0x39] sm:$0xff]  ;;  %v6736_v4 = vld [vmem:[#allocation2 + $0x31] sm:$0xff] }
  0xed   : > { %14412 = vst [vmem:[#allocation25_spill] sm:$0xff] %v6665_v24  ;;  %991 = vrot.lane.b32.xlu0 %v925_v20, %s6344_s6  ;;  %605 = vst.msk [vmem:[#allocation2 + $0x141] sm:$0xff] %vm524_vm0, %v6665_v24  ;;  %v6673_v27 = vpop.f32.mrf.mxu0  ;;  %v928_v9 = vadd.f32 %v6504_v14, %v6733_v3  ;;  %v6741_v11 = vld [vmem:[#allocation2 + $0xf9] sm:$0xff]  ;;  %v927_v17 = vadd.f32 %v6504_v14, %v6736_v4  ;;  %v6746_v20 = vld [vmem:[#allocation2 + $0xf1] sm:$0xff] }
  0xee   : > { %14413 = vst [vmem:[#allocation26_spill] sm:$0xff] %v6673_v27  ;;  %v6675_v28 = vpop.f32.mrf.mxu1  ;;  %1189 = vrot.lane.b32.xlu1 %v1122_v25, %s6344_s6  ;;  %588 = vst.msk [vmem:[#allocation2 + $0x79] sm:$0xff] %vm524_vm0, %v6673_v27  ;;  %v944_v25 = vadd.f32 %v6504_v14, %v6741_v11  ;;  %v6751_v26 = vld [vmem:[#allocation2 + $0x3a] sm:$0xff]  ;;  %v6756_v30 = vld [vmem:[#allocation2 + $0x32] sm:$0xff] }
  0xef   : > { %14414 = vst [vmem:[#allocation27_spill] sm:$0xff] %v6675_v28  ;;  %604 = vst.msk [vmem:[#allocation2 + $0x139] sm:$0xff] %vm524_vm0, %v6675_v28  ;;  %v6701_v40 = vpop.f32.mrf.mxu0  ;;  %v705_v32 = vld [vmem:[#allocation2 + $0xfa] sm:$0xff]  ;;  %v6764_v34 = vld [vmem:[#allocation2 + $0xf2] sm:$0xff] }
  0xf0   : > { %14415 = vst [vmem:[#allocation28_spill] sm:$0xff] %v6701_v40  ;;  %591 = vst.msk [vmem:[#allocation2 + $0x99] sm:$0xff] %vm524_vm0, %v6701_v40  ;;  %v6713_v45 = vpop.f32.mrf.mxu1  ;;  %v617_v36 = vld [vmem:[#allocation2 + $0x38] sm:$0xff]  ;;  %v6903_v40 = vld [vmem:[#allocation2 + $0x6a] sm:$0xff] }
  0xf1   : > { %1023 = vrot.lane.b32.xlu0 %v941_v29, %s6344_s6  ;;  %v6707_v43 = vpop.f32.mrf.mxu0  ;;  %14417 = vst [vmem:[#allocation30_spill] sm:$0xff] %v6713_v45  ;;  %607 = vst.msk [vmem:[#allocation2 + $0x159] sm:$0xff] %vm524_vm0, %v6713_v45  ;;  %v943_v29 = vadd.f32 %v6504_v14, %v6746_v20  ;;  %v6917_v24 = vld [vmem:[#allocation2 + $0x12a] sm:$0xff] }
  0xf2   : > { %1221 = vrot.lane.b32.xlu1 %v1138_v31, %s6344_s6  ;;  %14416 = vst [vmem:[#allocation29_spill] sm:$0xff] %v6707_v43  ;;  %590 = vst.msk [vmem:[#allocation2 + $0x91] sm:$0xff] %vm524_vm0, %v6707_v43  ;;  %v6719_v48 = vpop.f32.mrf.mxu1  ;;  %v1124_v31 = vadd.f32 %v6516_v22, %v6751_v26  ;;  %v1144_v28 = vadd.f32 %v6516_v22, %v6917_v24 }
  0xf3   : > { %14418 = vst [vmem:[#allocation31_spill] sm:$0xff] %v6719_v48  ;;  %606 = vst.msk [vmem:[#allocation2 + $0x151] sm:$0xff] %vm524_vm0, %v6719_v48  ;;  %v6910_v48 = vld [vmem:[#allocation2 + $0x62] sm:$0xff] }
  0xf4   : > { %14435 = vst [vmem:[#allocation48_spill] sm:$0xff] %v6917_v24 }
  0xf5   : > { %1187 = vrot.lane.b32.xlu0 %v1121_v33, %s6344_s6  ;;  %v1123_v33 = vadd.f32 %v6516_v22, %v6756_v30  ;;  %v6983_v60 = vld [vmem:[#allocation2 + $0x79] sm:$0xff] }
  0xf6   : > { %795 = vrot.lane.b32.xlu1 %v729_v35, %s6344_s6  ;;  %v1140_v35 = vadd.f32 %v6516_v22, %v705_v32  ;;  %v6802_v32 = vld [vmem:[#allocation2 + $0x51] sm:$0xff] }
  0xf7   : > { %v6966_v8 = vld [vmem:[#allocation2 + $0x138] sm:$0xff] }
  0xf8   : > { %14447 = vst [vmem:[#allocation60_spill] sm:$0xff] %v6966_v8 }
  0xf9   : > { %1219 = vrot.lane.b32.xlu0 %v1137_v38, %s6344_s6  ;;  %v6768_v38 = vpop.f32.mrf.mxu0 }
  0xfa   : > { %797 = vrot.lane.b32.xlu1 %v730_v41, %s6344_s6  ;;  %14419 = vst [vmem:[#allocation32_spill] sm:$0xff] %v6768_v38  ;;  %v1139_v41 = vadd.f32 %v6516_v22, %v6764_v34  ;;  %593 = vst.msk [vmem:[#allocation2 + $0xb1] sm:$0xff] %vm524_vm0, %v6768_v38 }
  0xfb   : > { %v6775_v42 = vpop.f32.mrf.mxu0 }
  0xfc   : > { %14420 = vst [vmem:[#allocation33_spill] sm:$0xff] %v6775_v42  ;;  %592 = vst.msk [vmem:[#allocation2 + $0xa9] sm:$0xff] %vm524_vm0, %v6775_v42 }
  0xfd   : > { %1379 = vrot.lane.b32.xlu0 %v1315_v44, %s6344_s6  ;;  %v6777_v44 = vpop.f32.mrf.mxu1 }
  0xfe   : > { %829 = vrot.lane.b32.xlu1 %v746_v46, %s6344_s6  ;;  %14421 = vst [vmem:[#allocation34_spill] sm:$0xff] %v6777_v44  ;;  %v732_v46 = vadd.f32 %v6501_v13, %v617_v36  ;;  %609 = vst.msk [vmem:[#allocation2 + $0x171] sm:$0xff] %vm524_vm0, %v6777_v44  ;;  %v6860_v44 = vld [vmem:[#allocation2 + $0x60] sm:$0xff] }
  0xff   : > { %14428 = vst [vmem:[#allocation41_spill] sm:$0xff] %v6860_v44  ;;  %v1321_v18 = vadd.f32 %v6699_v39, %v6860_v44 }
 0x101   : > { %1411 = vrot.lane.b32.xlu0 %v1331_v49, %s6344_s6  ;;  %v633_v49 = vld [vmem:[#allocation2 + $0xf8] sm:$0xff] }
 0x102   : > { %1381 = vrot.lane.b32.xlu1 %v1316_v50, %s6344_s6  ;;  %v1317_v50 = vadd.f32 %v6699_v39, %v616_v47 }
 0x103   : > { %v7181_v5 = vld [vmem:[#allocation2 + $0xa9] sm:$0xff] }
 0x105   : > { %799 = vrot.lane.b32.xlu0 %v731_v51, %s6344_s6  ;;  %v6787_v51 = vpop.f32.mrf.mxu1 }
 0x106   : > { %1413 = vrot.lane.b32.xlu1 %v1332_v53, %s6344_s6  ;;  %14422 = vst [vmem:[#allocation35_spill] sm:$0xff] %v6787_v51  ;;  %v748_v53 = vadd.f32 %v6501_v13, %v633_v49  ;;  %608 = vst.msk [vmem:[#allocation2 + $0x169] sm:$0xff] %vm524_vm0, %v6787_v51  ;;  %v636_v51 = vld [vmem:[#allocation2 + $0x120] sm:$0xff] }
 0x107   : > { %v6885_v38 = vpop.f32.mrf.mxu1  ;;  %v1337_v58 = vadd.f32 %v6699_v39, %v636_v51 }
 0x108   : > { %14430 = vst [vmem:[#allocation43_spill] sm:$0xff] %v6885_v38  ;;  %611 = vst.msk [vmem:[#allocation2 + $0x189] sm:$0xff] %vm524_vm0, %v6885_v38 }
 0x109   : > { %831 = vrot.lane.b32.xlu0 %v747_v54, %s6344_s6  ;;  %v618_v54 = vld [vmem:[#allocation2 + $0x48] sm:$0xff] }
 0x10a   : > { %997 = vrot.lane.b32.xlu1 %v928_v9, %s6344_s6  ;;  %v1333_v9 = vadd.f32 %v6699_v39, %v632_v52  ;;  %v733_v47 = vadd.f32 %v6501_v13, %v618_v54  ;;  %v6805_v52 = vld [vmem:[#allocation2 + $0x49] sm:$0xff] }
 0x10d   : > { %995 = vrot.lane.b32.xlu0 %v927_v17, %s6344_s6  ;;  %v1318_v17 = vadd.f32 %v6699_v39, %v617_v36  ;;  %v929_v36 = vadd.f32 %v6504_v14, %v6805_v52 }
 0x10e   : > { %1029 = vrot.lane.b32.xlu1 %v944_v25, %s6344_s6  ;;  %v634_v25 = vld [vmem:[#allocation2 + $0x108] sm:$0xff] }
 0x111   : > { %1027 = vrot.lane.b32.xlu0 %v943_v29, %s6344_s6  ;;  %v1334_v29 = vadd.f32 %v6699_v39, %v633_v49  ;;  %v6820_v49 = vld [vmem:[#allocation2 + $0x52] sm:$0xff] }
 0x112   : > { %1193 = vrot.lane.b32.xlu1 %v1124_v31, %s6344_s6  ;;  %v749_v31 = vadd.f32 %v6501_v13, %v634_v25 }
 0x115   : > { %1191 = vrot.lane.b32.xlu0 %v1123_v33, %s6344_s6  ;;  %v930_v33 = vadd.f32 %v6504_v14, %v6802_v32 }
 0x116   : > { %1225 = vrot.lane.b32.xlu1 %v1140_v35, %s6344_s6  ;;  %v6810_v35 = vld [vmem:[#allocation2 + $0x111] sm:$0xff] }
 0x119   : > { %1223 = vrot.lane.b32.xlu0 %v1139_v41, %s6344_s6  ;;  %v6815_v41 = vld [vmem:[#allocation2 + $0x109] sm:$0xff] }
 0x11a   : > { %801 = vrot.lane.b32.xlu1 %v732_v46, %s6344_s6  ;;  %v946_v46 = vadd.f32 %v6504_v14, %v6810_v35 }
 0x11d   : > { %1383 = vrot.lane.b32.xlu0 %v1317_v50, %s6344_s6  ;;  %v945_v50 = vadd.f32 %v6504_v14, %v6815_v41 }
 0x11e   : > { %833 = vrot.lane.b32.xlu1 %v748_v53, %s6344_s6  ;;  %v6825_v53 = vld [vmem:[#allocation2 + $0x4a] sm:$0xff] }
 0x121   : > { %1415 = vrot.lane.b32.xlu0 %v1333_v9, %s6344_s6  ;;  %v1126_v9 = vadd.f32 %v6516_v22, %v6820_v49 }
 0x122   : > { %1385 = vrot.lane.b32.xlu1 %v1318_v17, %s6344_s6  ;;  %v6830_v17 = vld [vmem:[#allocation2 + $0x112] sm:$0xff] }
 0x123   : > { %14423 = vst [vmem:[#allocation36_spill] sm:$0xff] %v6830_v17 }
 0x125   : > { %803 = vrot.lane.b32.xlu0 %v733_v47, %s6344_s6  ;;  %v6832_v47 = vpop.f32.mrf.mxu0 }
 0x126   : > { %1417 = vrot.lane.b32.xlu1 %v1334_v29, %s6344_s6  ;;  %14424 = vst [vmem:[#allocation37_spill] sm:$0xff] %v6832_v47  ;;  %v1125_v29 = vadd.f32 %v6516_v22, %v6825_v53  ;;  %595 = vst.msk [vmem:[#allocation2 + $0xc9] sm:$0xff] %vm524_vm0, %v6832_v47  ;;  %v635_v47 = vld [vmem:[#allocation2 + $0x110] sm:$0xff] }
 0x129   : > { %835 = vrot.lane.b32.xlu0 %v749_v31, %s6344_s6  ;;  %v6839_v31 = vld [vmem:[#allocation2 + $0x10a] sm:$0xff] }
 0x12a   : > { %1001 = vrot.lane.b32.xlu1 %v930_v33, %s6344_s6  ;;  %14425 = vst [vmem:[#allocation38_spill] sm:$0xff] %v6839_v31  ;;  %v6841_v33 = vpop.f32.mrf.mxu0 }
 0x12b   : > { %14426 = vst [vmem:[#allocation39_spill] sm:$0xff] %v6841_v33  ;;  %594 = vst.msk [vmem:[#allocation2 + $0xc1] sm:$0xff] %vm524_vm0, %v6841_v33  ;;  %v750_v33 = vadd.f32 %v6501_v13, %v635_v47 }
 0x12d   : > { %999 = vrot.lane.b32.xlu0 %v929_v36, %s6344_s6  ;;  %v1142_v36 = vadd.f32 %v6516_v22, %v6830_v17 }
 0x12e   : > { %1033 = vrot.lane.b32.xlu1 %v946_v46, %s6344_s6  ;;  %v6848_v46 = vld [vmem:[#allocation2 + $0x50] sm:$0xff] }
 0x12f   : > { %14427 = vst [vmem:[#allocation40_spill] sm:$0xff] %v6848_v46 }
 0x131   : > { %1031 = vrot.lane.b32.xlu0 %v945_v50, %s6344_s6  ;;  %v1141_v50 = vadd.f32 %v6516_v22, %v6839_v31 }
 0x132   : > { %1197 = vrot.lane.b32.xlu1 %v1126_v9, %s6344_s6  ;;  %v734_v9 = vadd.f32 %v6501_v13, %v6848_v46  ;;  %v7244_v17 = vld [vmem:[#allocation2 + $0xc0] sm:$0xff] }
 0x133   : > { %v7275_v31 = vld [vmem:[#allocation2 + $0xc2] sm:$0xff] }
 0x135   : > { %1195 = vrot.lane.b32.xlu0 %v1125_v29, %s6344_s6  ;;  %v1319_v29 = vadd.f32 %v6699_v39, %v618_v54  ;;  %v6870_v54 = vpop.permute.xlu0 %791 }
 0x136   : > { %1229 = vrot.lane.b32.xlu1 %v1142_v36, %s6344_s6  ;;  %v1335_v36 = vadd.f32 %v6699_v39, %v634_v25  ;;  %14429 = vst [vmem:[#allocation42_spill] sm:$0xff] %v6870_v54  ;;  %v6875_v25 = vld [vmem:[#allocation2 + $0x69] sm:$0xff]  ;;  %v7101_v54 = vld [vmem:[#allocation2 + $0x151] sm:$0xff] }
 0x137   : > { %v932_v42 = vadd.f32 %v6504_v14, %v6875_v25 }
 0x139   : > { %1227 = vrot.lane.b32.xlu0 %v1141_v50, %s6344_s6  ;;  %v1320_v50 = vadd.f32 %v6699_v39, %v6848_v46  ;;  %v7164_v46 = vld [vmem:[#allocation2 + $0x168] sm:$0xff] }
 0x13a   : > { %805 = vrot.lane.b32.xlu1 %v734_v9, %s6344_s6  ;;  %v735_v9 = vadd.f32 %v6501_v13, %v6860_v44 }
 0x13d   : > { %1387 = vrot.lane.b32.xlu0 %v1319_v29, %s6344_s6  ;;  %v1336_v29 = vadd.f32 %v6699_v39, %v635_v47 }
 0x13e   : > { %837 = vrot.lane.b32.xlu1 %v750_v33, %s6344_s6  ;;  %v751_v33 = vadd.f32 %v6501_v13, %v636_v51  ;;  %v6978_v51 = vld [vmem:[#allocation2 + $0x81] sm:$0xff] }
 0x141   : > { %1419 = vrot.lane.b32.xlu0 %v1335_v36, %s6344_s6  ;;  %v6878_v36 = vld [vmem:[#allocation2 + $0x61] sm:$0xff] }
 0x142   : > { %1389 = vrot.lane.b32.xlu1 %v1320_v50, %s6344_s6  ;;  %v6883_v50 = vld [vmem:[#allocation2 + $0x129] sm:$0xff]  ;;  %v931_v47 = vadd.f32 %v6504_v14, %v6878_v36 }
 0x143   : > { %v948_v45 = vadd.f32 %v6504_v14, %v6883_v50 }
 0x145   : > { %807 = vrot.lane.b32.xlu0 %v735_v9, %s6344_s6  ;;  %v6887_v9 = vpop.permute.xlu0 %793 }
 0x146   : > { %1421 = vrot.lane.b32.xlu1 %v1336_v29, %s6344_s6  ;;  %14431 = vst [vmem:[#allocation44_spill] sm:$0xff] %v6887_v9  ;;  %v6894_v29 = vld [vmem:[#allocation2 + $0x121] sm:$0xff] }
 0x147   : > { %v947_v38 = vadd.f32 %v6504_v14, %v6894_v29 }
 0x149   : > { %839 = vrot.lane.b32.xlu0 %v751_v33, %s6344_s6  ;;  %v6896_v33 = vpop.f32.mrf.mxu1  ;;  %v6912_v43 = vpop.permute.xlu0 %987 }
 0x14a   : > { %1005 = vrot.lane.b32.xlu1 %v932_v42, %s6344_s6  ;;  %14432 = vst [vmem:[#allocation45_spill] sm:$0xff] %v6896_v33  ;;  %610 = vst.msk [vmem:[#allocation2 + $0x181] sm:$0xff] %vm524_vm0, %v6896_v33  ;;  %v6905_v42 = vpop.permute.xlu1 %989  ;;  %v1127_v33 = vadd.f32 %v6516_v22, %v6910_v48 }
 0x14b   : > { %14433 = vst [vmem:[#allocation46_spill] sm:$0xff] %v6905_v42  ;;  %14434 = vst [vmem:[#allocation47_spill] sm:$0xff] %v6912_v43  ;;  %v7070_v42 = vld [vmem:[#allocation2 + $0x150] sm:$0xff] }
 0x14c   : > { %v7087_v43 = vld [vmem:[#allocation2 + $0x91] sm:$0xff] }
 0x14d   : > { %1003 = vrot.lane.b32.xlu0 %v931_v47, %s6344_s6  ;;  %v1128_v47 = vadd.f32 %v6516_v22, %v6903_v40  ;;  %v6931_v27 = vpop.permute.xlu0 %1183 }
 0x14e   : > { %1037 = vrot.lane.b32.xlu1 %v948_v45, %s6344_s6  ;;  %v6922_v45 = vld [vmem:[#allocation2 + $0x122] sm:$0xff]  ;;  %v6924_v23 = vpop.permute.xlu1 %1185  ;;  %14439 = vst [vmem:[#allocation52_spill] sm:$0xff] %v6931_v27 }
 0x14f   : > { %14436 = vst [vmem:[#allocation49_spill] sm:$0xff] %v6922_v45  ;;  %14437 = vst [vmem:[#allocation50_spill] sm:$0xff] %v6924_v23 }
 0x151   : > { %1035 = vrot.lane.b32.xlu0 %v947_v38, %s6344_s6  ;;  %v6929_v38 = vld [vmem:[#allocation2 + $0x68] sm:$0xff] }
 0x152   : > { %1201 = vrot.lane.b32.xlu1 %v1128_v47, %s6344_s6  ;;  %14438 = vst [vmem:[#allocation51_spill] sm:$0xff] %v6929_v38  ;;  %v1143_v47 = vadd.f32 %v6516_v22, %v6922_v45  ;;  %v736_v19 = vadd.f32 %v6501_v13, %v6929_v38 }
 0x155   : > { %1199 = vrot.lane.b32.xlu0 %v1127_v33, %s6344_s6  ;;  %v6941_v33 = vld [vmem:[#allocation2 + $0x128] sm:$0xff] }
 0x156   : > { %1233 = vrot.lane.b32.xlu1 %v1144_v28, %s6344_s6  ;;  %14441 = vst [vmem:[#allocation54_spill] sm:$0xff] %v6941_v33  ;;  %v752_v56 = vadd.f32 %v6501_v13, %v6941_v33 }
 0x158   : > { %v6936_v16 = vpop.permute.xlu1 %993 }
 0x159   : > { %14440 = vst [vmem:[#allocation53_spill] sm:$0xff] %v6936_v16  ;;  %1231 = vrot.lane.b32.xlu0 %v1143_v47, %s6344_s6  ;;  %v6953_v47 = vld [vmem:[#allocation2 + $0x78] sm:$0xff] }
 0x15a   : > { %809 = vrot.lane.b32.xlu1 %v736_v19, %s6344_s6  ;;  %14444 = vst [vmem:[#allocation57_spill] sm:$0xff] %v6953_v47  ;;  %v1322_v19 = vadd.f32 %v6699_v39, %v6929_v38  ;;  %v6997_v16 = vld [vmem:[#allocation2 + $0x139] sm:$0xff]  ;;  %v7150_v38 = vld [vmem:[#allocation2 + $0xa8] sm:$0xff] }
 0x15b   : > { %v6943_v15 = vpop.permute.xlu0 %827  ;;  %14484 = vst [vmem:[#allocation97_spill] sm:$0xff] %v7150_v38 }
 0x15c   : > { %14442 = vst [vmem:[#allocation55_spill] sm:$0xff] %v6943_v15  ;;  %v6948_v28 = vpop.permute.xlu1 %1025 }
 0x15d   : > { %14443 = vst [vmem:[#allocation56_spill] sm:$0xff] %v6948_v28  ;;  %1391 = vrot.lane.b32.xlu0 %v1321_v18, %s6344_s6  ;;  %v737_v18 = vadd.f32 %v6501_v13, %v6953_v47 }
 0x15e   : > { %841 = vrot.lane.b32.xlu1 %v752_v56, %s6344_s6  ;;  %v1338_v56 = vadd.f32 %v6699_v39, %v6941_v33 }
 0x15f   : > { %v6955_v2 = vpop.permute.xlu0 %991 }
 0x160   : > { %14445 = vst [vmem:[#allocation58_spill] sm:$0xff] %v6955_v2  ;;  %v6959_v1 = vpop.permute.xlu1 %1189  ;;  %v7004_v2 = vld [vmem:[#allocation2 + $0x82] sm:$0xff] }
 0x161   : > { %14446 = vst [vmem:[#allocation59_spill] sm:$0xff] %v6959_v1  ;;  %1423 = vrot.lane.b32.xlu0 %v1337_v58, %s6344_s6  ;;  %v753_v58 = vadd.f32 %v6501_v13, %v6966_v8 }
 0x162   : > { %1393 = vrot.lane.b32.xlu1 %v1322_v19, %s6344_s6  ;;  %v934_v19 = vadd.f32 %v6504_v14, %v6978_v51 }
 0x163   : > { %v6968_v7 = vpop.permute.xlu0 %1023 }
 0x164   : > { %14448 = vst [vmem:[#allocation61_spill] sm:$0xff] %v6968_v7  ;;  %v6971_v28 = vpop.permute.xlu1 %1221 }
 0x165   : > { %14449 = vst [vmem:[#allocation62_spill] sm:$0xff] %v6971_v28  ;;  %811 = vrot.lane.b32.xlu0 %v737_v18, %s6344_s6  ;;  %v6990_v18 = vld [vmem:[#allocation2 + $0x141] sm:$0xff] }
 0x166   : > { %1425 = vrot.lane.b32.xlu1 %v1338_v56, %s6344_s6 }
 0x167   : > { %v6980_v1 = vpop.permute.xlu0 %1187 }
 0x168   : > { %14450 = vst [vmem:[#allocation63_spill] sm:$0xff] %v6980_v1  ;;  %v6985_v15 = vpop.permute.xlu1 %795  ;;  %v933_v1 = vadd.f32 %v6504_v14, %v6983_v60 }
 0x169   : > { %14451 = vst [vmem:[#allocation64_spill] sm:$0xff] %v6985_v15  ;;  %843 = vrot.lane.b32.xlu0 %v753_v58, %s6344_s6  ;;  %v950_v58 = vadd.f32 %v6504_v14, %v6990_v18 }
 0x16a   : > { %1009 = vrot.lane.b32.xlu1 %v934_v19, %s6344_s6  ;;  %v949_v19 = vadd.f32 %v6504_v14, %v6997_v16 }
 0x16b   : > { %v6992_v28 = vpop.permute.xlu0 %1219 }
 0x16c   : > { %14452 = vst [vmem:[#allocation65_spill] sm:$0xff] %v6992_v28  ;;  %v6999_v56 = vpop.permute.xlu1 %797  ;;  %v7011_v28 = vld [vmem:[#allocation2 + $0x7a] sm:$0xff] }
 0x16d   : > { %14453 = vst [vmem:[#allocation66_spill] sm:$0xff] %v6999_v56  ;;  %1007 = vrot.lane.b32.xlu0 %v933_v1, %s6344_s6  ;;  %v1130_v1 = vadd.f32 %v6516_v22, %v7004_v2  ;;  %v7018_v56 = vld [vmem:[#allocation2 + $0x142] sm:$0xff] }
 0x16e   : > { %1041 = vrot.lane.b32.xlu1 %v950_v58, %s6344_s6  ;;  %14456 = vst [vmem:[#allocation69_spill] sm:$0xff] %v7018_v56  ;;  %v1129_v58 = vadd.f32 %v6516_v22, %v7011_v28 }
 0x16f   : > { %v7006_v59 = vpop.permute.xlu0 %1379 }
 0x170   : > { %14454 = vst [vmem:[#allocation67_spill] sm:$0xff] %v7006_v59  ;;  %v7013_v7 = vpop.permute.xlu1 %829  ;;  %v7025_v59 = vld [vmem:[#allocation2 + $0x13a] sm:$0xff] }
 0x171   : > { %14455 = vst [vmem:[#allocation68_spill] sm:$0xff] %v7013_v7  ;;  %1039 = vrot.lane.b32.xlu0 %v949_v19, %s6344_s6  ;;  %14458 = vst [vmem:[#allocation71_spill] sm:$0xff] %v7025_v59  ;;  %v1146_v19 = vadd.f32 %v6516_v22, %v7018_v56  ;;  %v7032_v7 = vld [vmem:[#allocation2 + $0x80] sm:$0xff] }
 0x172   : > { %1205 = vrot.lane.b32.xlu1 %v1130_v1, %s6344_s6  ;;  %14460 = vst [vmem:[#allocation73_spill] sm:$0xff] %v7032_v7  ;;  %v1145_v1 = vadd.f32 %v6516_v22, %v7025_v59 }
 0x173   : > { %v7020_v62 = vpop.permute.xlu0 %1411 }
 0x174   : > { %14457 = vst [vmem:[#allocation70_spill] sm:$0xff] %v7020_v62  ;;  %v7027_v15 = vpop.permute.xlu1 %1381 }
 0x175   : > { %14459 = vst [vmem:[#allocation72_spill] sm:$0xff] %v7027_v15  ;;  %1203 = vrot.lane.b32.xlu0 %v1129_v58, %s6344_s6  ;;  %v738_v15 = vadd.f32 %v6501_v13, %v7032_v7  ;;  %v7044_v58 = vld [vmem:[#allocation2 + $0x140] sm:$0xff] }
 0x176   : > { %1237 = vrot.lane.b32.xlu1 %v1146_v19, %s6344_s6  ;;  %14463 = vst [vmem:[#allocation76_spill] sm:$0xff] %v7044_v58 }
 0x177   : > { %v7034_v61 = vpop.permute.xlu0 %799 }
 0x178   : > { %14461 = vst [vmem:[#allocation74_spill] sm:$0xff] %v7034_v61  ;;  %v7039_v62 = vpop.permute.xlu1 %1413  ;;  %v1323_v61 = vadd.f32 %v6699_v39, %v6953_v47 }
 0x179   : > { %14462 = vst [vmem:[#allocation75_spill] sm:$0xff] %v7039_v62  ;;  %1235 = vrot.lane.b32.xlu0 %v1145_v1, %s6344_s6  ;;  %v754_v62 = vadd.f32 %v6501_v13, %v7044_v58  ;;  %v7056_v1 = vld [vmem:[#allocation2 + $0x90] sm:$0xff] }
 0x17a   : > { %813 = vrot.lane.b32.xlu1 %v738_v15, %s6344_s6  ;;  %14466 = vst [vmem:[#allocation79_spill] sm:$0xff] %v7056_v1 }
 0x17b   : > { %v7046_v23 = vpop.permute.xlu0 %831 }
 0x17c   : > { %14464 = vst [vmem:[#allocation77_spill] sm:$0xff] %v7046_v23  ;;  %v7051_v19 = vpop.permute.xlu1 %997  ;;  %v1339_v23 = vadd.f32 %v6699_v39, %v6966_v8 }
 0x17d   : > { %14465 = vst [vmem:[#allocation78_spill] sm:$0xff] %v7051_v19  ;;  %1395 = vrot.lane.b32.xlu0 %v1323_v61, %s6344_s6  ;;  %v1324_v19 = vadd.f32 %v6699_v39, %v7032_v7  ;;  %v739_v61 = vadd.f32 %v6501_v13, %v7056_v1 }
 0x17e   : > { %845 = vrot.lane.b32.xlu1 %v754_v62, %s6344_s6 }
 0x17f   : > { %v7058_v27 = vpop.permute.xlu0 %995 }
 0x180   : > { %14467 = vst [vmem:[#allocation80_spill] sm:$0xff] %v7058_v27  ;;  %v7063_v15 = vpop.permute.xlu1 %1029  ;;  %v7082_v27 = vld [vmem:[#allocation2 + $0x99] sm:$0xff] }
 0x181   : > { %14468 = vst [vmem:[#allocation81_spill] sm:$0xff] %v7063_v15  ;;  %1427 = vrot.lane.b32.xlu0 %v1339_v23, %s6344_s6  ;;  %v1340_v15 = vadd.f32 %v6699_v39, %v7044_v58  ;;  %v755_v23 = vadd.f32 %v6501_v13, %v7070_v42 }
 0x182   : > { %1397 = vrot.lane.b32.xlu1 %v1324_v19, %s6344_s6  ;;  %v936_v19 = vadd.f32 %v6504_v14, %v7082_v27 }
 0x183   : > { %v7072_v55 = vpop.permute.xlu0 %1027 }
 0x184   : > { %14469 = vst [vmem:[#allocation82_spill] sm:$0xff] %v7072_v55  ;;  %v7075_v62 = vpop.permute.xlu1 %1193 }
 0x185   : > { %14470 = vst [vmem:[#allocation83_spill] sm:$0xff] %v7075_v62  ;;  %815 = vrot.lane.b32.xlu0 %v739_v61, %s6344_s6  ;;  %v7094_v61 = vld [vmem:[#allocation2 + $0x159] sm:$0xff] }
 0x186   : > { %1429 = vrot.lane.b32.xlu1 %v1340_v15, %s6344_s6 }
 0x187   : > { %v7084_v9 = vpop.permute.xlu0 %1191 }
 0x188   : > { %14471 = vst [vmem:[#allocation84_spill] sm:$0xff] %v7084_v9  ;;  %v7089_v55 = vpop.permute.xlu1 %1225  ;;  %v935_v9 = vadd.f32 %v6504_v14, %v7087_v43 }
 0x189   : > { %14472 = vst [vmem:[#allocation85_spill] sm:$0xff] %v7089_v55  ;;  %847 = vrot.lane.b32.xlu0 %v755_v23, %s6344_s6  ;;  %v952_v23 = vadd.f32 %v6504_v14, %v7094_v61  ;;  %v7108_v55 = vld [vmem:[#allocation2 + $0x9a] sm:$0xff] }
 0x18a   : > { %1013 = vrot.lane.b32.xlu1 %v936_v19, %s6344_s6  ;;  %v951_v19 = vadd.f32 %v6504_v14, %v7101_v54 }
 0x18b   : > { %v7096_v62 = vpop.permute.xlu0 %1223 }
 0x18c   : > { %14473 = vst [vmem:[#allocation86_spill] sm:$0xff] %v7096_v62  ;;  %v7103_v15 = vpop.permute.xlu1 %801  ;;  %v7115_v62 = vld [vmem:[#allocation2 + $0x92] sm:$0xff] }
 0x18d   : > { %14474 = vst [vmem:[#allocation87_spill] sm:$0xff] %v7103_v15  ;;  %1011 = vrot.lane.b32.xlu0 %v935_v9, %s6344_s6  ;;  %v1132_v9 = vadd.f32 %v6516_v22, %v7108_v55  ;;  %v7122_v15 = vld [vmem:[#allocation2 + $0x15a] sm:$0xff] }
 0x18e   : > { %1045 = vrot.lane.b32.xlu1 %v952_v23, %s6344_s6  ;;  %14477 = vst [vmem:[#allocation90_spill] sm:$0xff] %v7122_v15  ;;  %v1131_v23 = vadd.f32 %v6516_v22, %v7115_v62 }
 0x18f   : > { %v7110_v57 = vpop.permute.xlu0 %1383 }
 0x190   : > { %14475 = vst [vmem:[#allocation88_spill] sm:$0xff] %v7110_v57  ;;  %v7117_v58 = vpop.permute.xlu1 %833  ;;  %v7129_v57 = vld [vmem:[#allocation2 + $0x152] sm:$0xff] }
 0x191   : > { %14476 = vst [vmem:[#allocation89_spill] sm:$0xff] %v7117_v58  ;;  %1043 = vrot.lane.b32.xlu0 %v951_v19, %s6344_s6  ;;  %14479 = vst [vmem:[#allocation92_spill] sm:$0xff] %v7129_v57  ;;  %v1148_v19 = vadd.f32 %v6516_v22, %v7122_v15  ;;  %v7136_v58 = vld [vmem:[#allocation2 + $0x98] sm:$0xff] }
 0x192   : > { %1209 = vrot.lane.b32.xlu1 %v1132_v9, %s6344_s6  ;;  %14481 = vst [vmem:[#allocation94_spill] sm:$0xff] %v7136_v58  ;;  %v1147_v9 = vadd.f32 %v6516_v22, %v7129_v57 }
 0x193   : > { %v7124_v33 = vpop.permute.xlu0 %1415 }
 0x194   : > { %14478 = vst [vmem:[#allocation91_spill] sm:$0xff] %v7124_v33  ;;  %v7131_v8 = vpop.permute.xlu1 %1385 }
 0x195   : > { %14480 = vst [vmem:[#allocation93_spill] sm:$0xff] %v7131_v8  ;;  %1207 = vrot.lane.b32.xlu0 %v1131_v23, %s6344_s6  ;;  %v740_v8 = vadd.f32 %v6501_v13, %v7136_v58  ;;  %v7148_v23 = vld [vmem:[#allocation2 + $0x158] sm:$0xff] }
 0x196   : > { %1241 = vrot.lane.b32.xlu1 %v1148_v19, %s6344_s6  ;;  %v1325_v19 = vadd.f32 %v6699_v39, %v7056_v1 }
 0x197   : > { %v7138_v7 = vpop.permute.xlu0 %803 }
 0x198   : > { %14482 = vst [vmem:[#allocation95_spill] sm:$0xff] %v7138_v7  ;;  %v7143_v33 = vpop.permute.xlu1 %1417 }
 0x199   : > { %14483 = vst [vmem:[#allocation96_spill] sm:$0xff] %v7143_v33  ;;  %1239 = vrot.lane.b32.xlu0 %v1147_v9, %s6344_s6  ;;  %v756_v9 = vadd.f32 %v6501_v13, %v7148_v23  ;;  %v741_v33 = vadd.f32 %v6501_v13, %v7150_v38 }
 0x19a   : > { %817 = vrot.lane.b32.xlu1 %v740_v8, %s6344_s6 }
 0x19b   : > { %v7152_v47 = vpop.permute.xlu0 %835 }
 0x19c   : > { %14485 = vst [vmem:[#allocation98_spill] sm:$0xff] %v7152_v47  ;;  %v7157_v7 = vpop.permute.xlu1 %1001  ;;  %v1326_v47 = vadd.f32 %v6699_v39, %v7136_v58  ;;  %v7195_v58 = vld [vmem:[#allocation2 + $0x169] sm:$0xff] }
 0x19d   : > { %14486 = vst [vmem:[#allocation99_spill] sm:$0xff] %v7157_v7  ;;  %1399 = vrot.lane.b32.xlu0 %v1325_v19, %s6344_s6  ;;  %v757_v19 = vadd.f32 %v6501_v13, %v7164_v46  ;;  %v7176_v7 = vld [vmem:[#allocation2 + $0xb1] sm:$0xff] }
 0x19e   : > { %849 = vrot.lane.b32.xlu1 %v756_v9, %s6344_s6  ;;  %v7188_v9 = vld [vmem:[#allocation2 + $0x171] sm:$0xff] }
 0x19f   : > { %v7166_v44 = vpop.permute.xlu0 %999 }
 0x1a0   : > { %14487 = vst [vmem:[#allocation100_spill] sm:$0xff] %v7166_v44  ;;  %v7169_v8 = vpop.permute.xlu1 %1033 }
 0x1a1   : > { %14488 = vst [vmem:[#allocation101_spill] sm:$0xff] %v7169_v8  ;;  %819 = vrot.lane.b32.xlu0 %v741_v33, %s6344_s6  ;;  %v938_v33 = vadd.f32 %v6504_v14, %v7176_v7 }
 0x1a2   : > { %1401 = vrot.lane.b32.xlu1 %v1326_v47, %s6344_s6 }
 0x1a3   : > { %v7178_v1 = vpop.permute.xlu0 %1031 }
 0x1a4   : > { %14489 = vst [vmem:[#allocation102_spill] sm:$0xff] %v7178_v1  ;;  %v7183_v44 = vpop.permute.xlu1 %1197  ;;  %v937_v1 = vadd.f32 %v6504_v14, %v7181_v5 }
 0x1a5   : > { %14490 = vst [vmem:[#allocation103_spill] sm:$0xff] %v7183_v44  ;;  %851 = vrot.lane.b32.xlu0 %v757_v19, %s6344_s6  ;;  %v954_v19 = vadd.f32 %v6504_v14, %v7188_v9  ;;  %v7202_v44 = vld [vmem:[#allocation2 + $0xb2] sm:$0xff] }
 0x1a6   : > { %1017 = vrot.lane.b32.xlu1 %v938_v33, %s6344_s6  ;;  %v953_v33 = vadd.f32 %v6504_v14, %v7195_v58 }
 0x1a7   : > { %v7190_v8 = vpop.permute.xlu0 %1195 }
 0x1a8   : > { %14491 = vst [vmem:[#allocation104_spill] sm:$0xff] %v7190_v8  ;;  %v7197_v47 = vpop.permute.xlu1 %1229  ;;  %v7209_v8 = vld [vmem:[#allocation2 + $0xaa] sm:$0xff] }
 0x1a9   : > { %14492 = vst [vmem:[#allocation105_spill] sm:$0xff] %v7197_v47  ;;  %1015 = vrot.lane.b32.xlu0 %v937_v1, %s6344_s6  ;;  %v1134_v1 = vadd.f32 %v6516_v22, %v7202_v44  ;;  %v7216_v47 = vld [vmem:[#allocation2 + $0x172] sm:$0xff] }
 0x1aa   : > { %1049 = vrot.lane.b32.xlu1 %v954_v19, %s6344_s6  ;;  %14495 = vst [vmem:[#allocation108_spill] sm:$0xff] %v7216_v47  ;;  %v1133_v19 = vadd.f32 %v6516_v22, %v7209_v8 }
 0x1ab   : > { %v7204_v15 = vpop.permute.xlu0 %1227 }
 0x1ac   : > { %14493 = vst [vmem:[#allocation106_spill] sm:$0xff] %v7204_v15  ;;  %v7211_v56 = vpop.permute.xlu1 %805  ;;  %v7223_v15 = vld [vmem:[#allocation2 + $0x16a] sm:$0xff] }
 0x1ad   : > { %14494 = vst [vmem:[#allocation107_spill] sm:$0xff] %v7211_v56  ;;  %1047 = vrot.lane.b32.xlu0 %v953_v33, %s6344_s6  ;;  %14497 = vst [vmem:[#allocation110_spill] sm:$0xff] %v7223_v15  ;;  %v1150_v33 = vadd.f32 %v6516_v22, %v7216_v47  ;;  %v7230_v56 = vld [vmem:[#allocation2 + $0xb0] sm:$0xff] }
 0x1ae   : > { %1213 = vrot.lane.b32.xlu1 %v1134_v1, %s6344_s6  ;;  %14499 = vst [vmem:[#allocation112_spill] sm:$0xff] %v7230_v56  ;;  %v1149_v1 = vadd.f32 %v6516_v22, %v7223_v15  ;;  %v7258_v15 = vld [vmem:[#allocation2 + $0xc1] sm:$0xff] }
 0x1af   : > { %v7218_v57 = vpop.permute.xlu0 %1387 }
 0x1b0   : > { %14496 = vst [vmem:[#allocation109_spill] sm:$0xff] %v7218_v57  ;;  %v7225_v24 = vpop.permute.xlu1 %837 }
 0x1b1   : > { %14498 = vst [vmem:[#allocation111_spill] sm:$0xff] %v7225_v24  ;;  %1211 = vrot.lane.b32.xlu0 %v1133_v19, %s6344_s6  ;;  %v742_v24 = vadd.f32 %v6501_v13, %v7230_v56  ;;  %v7242_v19 = vld [vmem:[#allocation2 + $0x170] sm:$0xff] }
 0x1b2   : > { %1245 = vrot.lane.b32.xlu1 %v1150_v33, %s6344_s6  ;;  %v1327_v33 = vadd.f32 %v6699_v39, %v7150_v38 }
 0x1b3   : > { %v7232_v59 = vpop.permute.xlu0 %1419 }
 0x1b4   : > { %14500 = vst [vmem:[#allocation113_spill] sm:$0xff] %v7232_v59  ;;  %v7237_v57 = vpop.permute.xlu1 %1389 }
 0x1b5   : > { %14501 = vst [vmem:[#allocation114_spill] sm:$0xff] %v7237_v57  ;;  %1243 = vrot.lane.b32.xlu0 %v1149_v1, %s6344_s6  ;;  %v758_v1 = vadd.f32 %v6501_v13, %v7242_v19  ;;  %v743_v57 = vadd.f32 %v6501_v13, %v7244_v17 }
 0x1b6   : > { %821 = vrot.lane.b32.xlu1 %v742_v24, %s6344_s6 }
 0x1b7   : > { %v7246_v47 = vpop.permute.xlu0 %807 }
 0x1b8   : > { %14502 = vst [vmem:[#allocation115_spill] sm:$0xff] %v7246_v47  ;;  %v7251_v59 = vpop.permute.xlu1 %1421  ;;  %v1328_v47 = vadd.f32 %v6699_v39, %v7230_v56 }
 0x1b9   : > { %14503 = vst [vmem:[#allocation116_spill] sm:$0xff] %v7251_v59  ;;  %1403 = vrot.lane.b32.xlu0 %v1327_v33, %s6344_s6  ;;  %v939_v33 = vadd.f32 %v6504_v14, %v7258_v15  ;;  %v7270_v59 = vld [vmem:[#allocation2 + $0xc9] sm:$0xff] }
 0x1ba   : > { %853 = vrot.lane.b32.xlu1 %v758_v1, %s6344_s6  ;;  %v7282_v1 = vld [vmem:[#allocation2 + $0xca] sm:$0xff] }
 0x1bb   : > { %v7260_v45 = vpop.permute.xlu0 %839 }
 0x1bc   : > { %14504 = vst [vmem:[#allocation117_spill] sm:$0xff] %v7260_v45  ;;  %v7263_v24 = vpop.permute.xlu1 %1005 }
 0x1bd   : > { %14505 = vst [vmem:[#allocation118_spill] sm:$0xff] %v7263_v24  ;;  %823 = vrot.lane.b32.xlu0 %v743_v57, %s6344_s6  ;;  %v940_v57 = vadd.f32 %v6504_v14, %v7270_v59  ;;  %v1329_v14 = vadd.f32 %v6699_v39, %v7244_v17 }
 0x1be   : > { %1405 = vrot.lane.b32.xlu1 %v1328_v47, %s6344_s6  ;;  %v1136_v47 = vadd.f32 %v6516_v22, %v7282_v1 }
 0x1bf   : > { %v7272_v38 = vpop.permute.xlu0 %1003 }
 0x1c0   : > { %14506 = vst [vmem:[#allocation119_spill] sm:$0xff] %v7272_v38  ;;  %v7277_v45 = vpop.permute.xlu1 %1037  ;;  %v1135_v38 = vadd.f32 %v6516_v22, %v7275_v31  ;;  %v1341_v22 = vadd.f32 %v6699_v39, %v7070_v42 }
 0x1c1   : > { %14507 = vst [vmem:[#allocation120_spill] sm:$0xff] %v7277_v45  ;;  %1019 = vrot.lane.b32.xlu0 %v939_v33, %s6344_s6  ;;  %v7294_v33 = vld [vmem:[#allocation2 + $0xc8] sm:$0xff] }
 0x1c2   : > { %1021 = vrot.lane.b32.xlu1 %v940_v57, %s6344_s6 }
 0x1c3   : > { %v7284_v24 = vpop.permute.xlu0 %1035 }
 0x1c4   : > { %14508 = vst [vmem:[#allocation121_spill] sm:$0xff] %v7284_v24  ;;  %v7289_v56 = vpop.permute.xlu1 %1201 }
 0x1c5   : > { %14509 = vst [vmem:[#allocation122_spill] sm:$0xff] %v7289_v56  ;;  %1215 = vrot.lane.b32.xlu0 %v1135_v38, %s6344_s6  ;;  %v744_v56 = vadd.f32 %v6501_v13, %v7294_v33  ;;  %v1343_v13 = vadd.f32 %v6699_v39, %v7164_v46 }
 0x1c6   : > { %1217 = vrot.lane.b32.xlu1 %v1136_v47, %s6344_s6  ;;  %v1330_v47 = vadd.f32 %v6699_v39, %v7294_v33 }
 0x1c7   : > { %v7296_v45 = vpop.permute.xlu0 %1199 }
 0x1c8   : > { %14510 = vst [vmem:[#allocation123_spill] sm:$0xff] %v7296_v45  ;;  %v7301_v57 = vpop.permute.xlu1 %1233 }
 0x1c9   : > { %14511 = vst [vmem:[#allocation124_spill] sm:$0xff] %v7301_v57  ;;  %1407 = vrot.lane.b32.xlu0 %v1329_v14, %s6344_s6  ;;  %v7316_v57 = vld [vmem:[#allocation2 + $0x180] sm:$0xff] }
 0x1ca   : > { %825 = vrot.lane.b32.xlu1 %v744_v56, %s6344_s6 }
 0x1cb   : > { %v7306_v38 = vpop.permute.xlu0 %1231 }
 0x1cc   : > { %14512 = vst [vmem:[#allocation125_spill] sm:$0xff] %v7306_v38  ;;  %v7311_v45 = vpop.permute.xlu1 %809  ;;  %v1342_v38 = vadd.f32 %v6699_v39, %v7148_v23 }
 0x1cd   : > { %14513 = vst [vmem:[#allocation126_spill] sm:$0xff] %v7311_v45  ;;  %1431 = vrot.lane.b32.xlu0 %v1341_v22, %s6344_s6  ;;  %v1345_v22 = vadd.f32 %v6699_v39, %v7316_v57 }
 0x1ce   : > { %1409 = vrot.lane.b32.xlu1 %v1330_v47, %s6344_s6  ;;  %v1344_v47 = vadd.f32 %v6699_v39, %v7242_v19 }
 0x1cf   : > { %v7318_v14 = vpop.permute.xlu0 %1391 }
 0x1d0   : > { %14514 = vst [vmem:[#allocation127_spill] sm:$0xff] %v7318_v14  ;;  %v7323_v56 = vpop.permute.xlu1 %841 }
 0x1d1   : > { %14515 = vst [vmem:[#allocation128_spill] sm:$0xff] %v7323_v56  ;;  %1435 = vrot.lane.b32.xlu0 %v1343_v13, %s6344_s6  ;;  %v7340_v13 = vrot.slane %v6693_v37, %v6484_v6  ;;  %v7342_v56 = vld [vmem:[#allocation2 + $0x188] sm:$0xff] }
 0x1d2   : > { %1433 = vrot.lane.b32.xlu1 %v1342_v38, %s6344_s6 }
 0x1d3   : > { %v7330_v45 = vpop.permute.xlu0 %1423  ;;  %v1511_v38 = vadd.f32 %v7340_v13, %v6639_v12  ;;  %v1513_v6 = vadd.f32 %v7340_v13, %v6736_v4  ;;  %v1512_v12 = vadd.f32 %v7340_v13, %v6610_v63  ;;  %v1514_v4 = vadd.f32 %v7340_v13, %v6733_v3 }
 0x1d4   : > { %14516 = vst [vmem:[#allocation129_spill] sm:$0xff] %v7330_v45  ;;  %v7333_v14 = vpop.permute.xlu1 %1393  ;;  %v1519_v3 = vadd.f32 %v7340_v13, %v6983_v60  ;;  %v1520_v60 = vadd.f32 %v7340_v13, %v6978_v51  ;;  %v1525_v51 = vadd.f32 %v7340_v13, %v7258_v15 }
 0x1d5   : > { %14517 = vst [vmem:[#allocation130_spill] sm:$0xff] %v7333_v14  ;;  %1439 = vrot.lane.b32.xlu0 %v1345_v22, %s6344_s6  ;;  %v1346_v22 = vadd.f32 %v6699_v39, %v7342_v56  ;;  %v1515_v39 = vadd.f32 %v7340_v13, %v6805_v52  ;;  %v1516_v52 = vadd.f32 %v7340_v13, %v6802_v32 }
 0x1d6   : > { %1437 = vrot.lane.b32.xlu1 %v1344_v47, %s6344_s6  ;;  %v1521_v32 = vadd.f32 %v7340_v13, %v7087_v43 }
 0x1d7   : > { %v7344_v24 = vpop.permute.xlu0 %811 }
 0x1d8   : > { %14518 = vst [vmem:[#allocation131_spill] sm:$0xff] %v7344_v24  ;;  %v7349_v45 = vpop.permute.xlu1 %1425 }
 0x1d9   : > { %1575 = vrot.lane.b32.xlu0 %v1511_v38, %s6344_s6 }
 0x1da   : > { %1441 = vrot.lane.b32.xlu1 %v1346_v22, %s6344_s6 }
 0x1db   : > { %v7354_v14 = vpop.permute.xlu0 %843 }
 0x1dc   : > { %v7359_v24 = vpop.permute.xlu1 %1009 }
 0x1dd   : > { %1579 = vrot.lane.b32.xlu0 %v1513_v6, %s6344_s6  ;;  %v1517_v6 = vadd.f32 %v7340_v13, %v6878_v36  ;;  %v1518_v36 = vadd.f32 %v7340_v13, %v6875_v25  ;;  %v1523_v25 = vadd.f32 %v7340_v13, %v7181_v5 }
 0x1de   : > { %1577 = vrot.lane.b32.xlu1 %v1512_v12, %s6344_s6 }
 0x1df   : > { %v7364_v47 = vpop.permute.xlu0 %1007 }
 0x1e0   : > { %v7369_v38 = vpop.permute.xlu1 %1041 }
 0x1e1   : > { %1583 = vrot.lane.b32.xlu0 %v1515_v39, %s6344_s6 }
 0x1e2   : > { %1581 = vrot.lane.b32.xlu1 %v1514_v4, %s6344_s6 }
 0x1e3   : > { %v7374_v22 = vpop.permute.xlu0 %1039 }
 0x1e4   : > { %v7379_v63 = vpop.permute.xlu1 %1205 }
 0x1e5   : > { %1587 = vrot.lane.b32.xlu0 %v1517_v6, %s6344_s6 }
 0x1e6   : > { %1585 = vrot.lane.b32.xlu1 %v1516_v52, %s6344_s6 }
 0x1e7   : > { %v7384_v12 = vpop.permute.xlu0 %1203 }
 0x1e8   : > { %v7389_v39 = vpop.permute.xlu1 %1237 }
 0x1e9   : > { %14519 = vst [vmem:[#allocation132_spill] sm:$0xff] %v7389_v39  ;;  %1591 = vrot.lane.b32.xlu0 %v1519_v3, %s6344_s6 }
 0x1ea   : > { %1589 = vrot.lane.b32.xlu1 %v1518_v36, %s6344_s6  ;;  %v1522_v36 = vadd.f32 %v7340_v13, %v7082_v27 }
 0x1eb   : > { %v7394_v4 = vpop.permute.xlu0 %1235 }
 0x1ec   : > { %v7399_v6 = vpop.permute.xlu1 %813 }
 0x1ed   : > { %1595 = vrot.lane.b32.xlu0 %v1521_v32, %s6344_s6 }
 0x1ee   : > { %1593 = vrot.lane.b32.xlu1 %v1520_v60, %s6344_s6  ;;  %v1524_v60 = vadd.f32 %v7340_v13, %v7176_v7 }
 0x1ef   : > { %v7404_v52 = vpop.permute.xlu0 %1395 }
 0x1f0   : > { %14520 = vst [vmem:[#allocation133_spill] sm:$0xff] %v7404_v52  ;;  %v7409_v3 = vpop.permute.xlu1 %845 }
 0x1f1   : > { %1599 = vrot.lane.b32.xlu0 %v1523_v25, %s6344_s6  ;;  %v1527_v25 = vadd.f32 %v7340_v13, %v6661_v21  ;;  %v1528_v21 = vadd.f32 %v7340_v13, %v6612_v0  ;;  %v1533_v0 = vadd.f32 %v7340_v13, %v6894_v29  ;;  %v1534_v29 = vadd.f32 %v7340_v13, %v6883_v50 }
 0x1f2   : > { %1597 = vrot.lane.b32.xlu1 %v1522_v36, %s6344_s6  ;;  %v1526_v36 = vadd.f32 %v7340_v13, %v7270_v59  ;;  %v1539_v50 = vadd.f32 %v7340_v13, %v7195_v58 }
 0x1f3   : > { %v7414_v39 = vpop.permute.xlu0 %1427 }
 0x1f4   : > { %14521 = vst [vmem:[#allocation134_spill] sm:$0xff] %v7414_v39  ;;  %v7419_v32 = vpop.permute.xlu1 %1397 }
 0x1f5   : > { %14522 = vst [vmem:[#allocation135_spill] sm:$0xff] %v7419_v32  ;;  %1603 = vrot.lane.b32.xlu0 %v1525_v51, %s6344_s6  ;;  %v1529_v51 = vadd.f32 %v7340_v13, %v6746_v20  ;;  %v1530_v20 = vadd.f32 %v7340_v13, %v6741_v11  ;;  %v1535_v11 = vadd.f32 %v7340_v13, %v6997_v16 }
 0x1f6   : > { %1601 = vrot.lane.b32.xlu1 %v1524_v60, %s6344_s6  ;;  %v1536_v16 = vadd.f32 %v7340_v13, %v6990_v18 }
 0x1f7   : > { %v7424_v52 = vpop.permute.xlu0 %815 }
 0x1f8   : > { %14523 = vst [vmem:[#allocation136_spill] sm:$0xff] %v7424_v52  ;;  %v7429_v39 = vpop.permute.xlu1 %1429 }
 0x1f9   : > { %14524 = vst [vmem:[#allocation137_spill] sm:$0xff] %v7429_v39  ;;  %1607 = vrot.lane.b32.xlu0 %v1527_v25, %s6344_s6  ;;  %v1531_v25 = vadd.f32 %v7340_v13, %v6815_v41  ;;  %v1532_v41 = vadd.f32 %v7340_v13, %v6810_v35  ;;  %v1537_v35 = vadd.f32 %v7340_v13, %v7101_v54  ;;  %v14753_v39 = vld [vmem:[#allocation9_spill] sm:$0xff] }
 0x1fa   : > { %1605 = vrot.lane.b32.xlu1 %v1526_v36, %s6344_s6 }
 0x1fb   : > { %v7434_v32 = vpop.permute.xlu0 %847 }
 0x1fc   : > { %14525 = vst [vmem:[#allocation138_spill] sm:$0xff] %v7434_v32  ;;  %v7439_v52 = vpop.permute.xlu1 %1013 }
 0x1fd   : > { %14526 = vst [vmem:[#allocation139_spill] sm:$0xff] %v7439_v52  ;;  %1611 = vrot.lane.b32.xlu0 %v1529_v51, %s6344_s6 }
 0x1fe   : > { %1609 = vrot.lane.b32.xlu1 %v1528_v21, %s6344_s6 }
 0x1ff   : > { %v7444_v60 = vpop.permute.xlu0 %1011 }
 0x200   : > { %v7449_v32 = vpop.permute.xlu1 %1045 }
 0x201   : > { %14527 = vst [vmem:[#allocation140_spill] sm:$0xff] %v7449_v32  ;;  %1615 = vrot.lane.b32.xlu0 %v1531_v25, %s6344_s6  ;;  %v14743_v32 = vld [vmem:[#allocation78_spill] sm:$0xff] }
 0x202   : > { %1613 = vrot.lane.b32.xlu1 %v1530_v20, %s6344_s6 }
 0x203   : > { %v7454_v36 = vpop.permute.xlu0 %1043 }
 0x204   : > { %v7459_v51 = vpop.permute.xlu1 %1209 }
 0x205   : > { %14528 = vst [vmem:[#allocation141_spill] sm:$0xff] %v7459_v51  ;;  %1619 = vrot.lane.b32.xlu0 %v1533_v0, %s6344_s6  ;;  %v1540_v51 = vadd.f32 %v7340_v13, %v7188_v9 }
 0x206   : > { %1617 = vrot.lane.b32.xlu1 %v1532_v41, %s6344_s6 }
 0x207   : > { %v7464_v21 = vpop.permute.xlu0 %1207 }
 0x208   : > { %14529 = vst [vmem:[#allocation142_spill] sm:$0xff] %v7464_v21  ;;  %v7469_v25 = vpop.permute.xlu1 %1241  ;;  %v14728_v21 = vld [vmem:[#allocation87_spill] sm:$0xff] }
 0x209   : > { %14530 = vst [vmem:[#allocation143_spill] sm:$0xff] %v7469_v25  ;;  %1623 = vrot.lane.b32.xlu0 %v1535_v11, %s6344_s6  ;;  %v7489_v11 = vld [vmem:[#allocation2 + $0x181] sm:$0xff]  ;;  %v1538_v25 = vadd.f32 %v7340_v13, %v7094_v61 }
 0x20a   : > { %1621 = vrot.lane.b32.xlu1 %v1534_v29, %s6344_s6  ;;  %v1541_v18 = vadd.f32 %v7340_v13, %v7489_v11 }
 0x20b   : > { %v7474_v20 = vpop.permute.xlu0 %1239 }
 0x20c   : > { %14531 = vst [vmem:[#allocation144_spill] sm:$0xff] %v7474_v20  ;;  %v7479_v0 = vpop.permute.xlu1 %817 }
 0x20d   : > { %1627 = vrot.lane.b32.xlu0 %v1537_v35, %s6344_s6 }
 0x20e   : > { %1625 = vrot.lane.b32.xlu1 %v1536_v16, %s6344_s6 }
 0x20f   : > { %v7484_v41 = vpop.permute.xlu0 %1399 }
 0x210   : > { %14532 = vst [vmem:[#allocation145_spill] sm:$0xff] %v7484_v41  ;;  %v7491_v29 = vpop.permute.xlu1 %849  ;;  %v7510_v41 = vld [vmem:[#allocation2 + $0x189] sm:$0xff] }
 0x211   : > { %14533 = vst [vmem:[#allocation146_spill] sm:$0xff] %v7491_v29  ;;  %1631 = vrot.lane.b32.xlu0 %v1539_v50, %s6344_s6  ;;  %v7508_v50 = vrot.slane %v6693_v37, %v6494_v10 }
 0x212   : > { %1629 = vrot.lane.b32.xlu1 %v1538_v25, %s6344_s6  ;;  %v6116_v25 = vld [vmem:[#allocation2 + $0x1a] sm:$0xff] }
 0x213   : > { %v7496_v35 = vpop.permute.xlu0 %819  ;;  %v1709_v37 = vadd.f32 %v7508_v50, %v6756_v30  ;;  %v1710_v30 = vadd.f32 %v7508_v50, %v6751_v26  ;;  %v1715_v26 = vadd.f32 %v7508_v50, %v7011_v28  ;;  %v1716_v28 = vadd.f32 %v7508_v50, %v7004_v2 }
 0x214   : > { %14534 = vst [vmem:[#allocation147_spill] sm:$0xff] %v7496_v35  ;;  %v7501_v16 = vpop.permute.xlu1 %1401  ;;  %v1707_v35 = vadd.f32 %v6116_v25, %v7508_v50  ;;  %v1721_v2 = vadd.f32 %v7508_v50, %v7275_v31 }
 0x215   : > { %14535 = vst [vmem:[#allocation148_spill] sm:$0xff] %v7501_v16  ;;  %1635 = vrot.lane.b32.xlu0 %v1541_v18, %s6344_s6  ;;  %v1542_v18 = vadd.f32 %v7340_v13, %v7510_v41  ;;  %v1711_v13 = vadd.f32 %v7508_v50, %v6825_v53  ;;  %v1712_v53 = vadd.f32 %v7508_v50, %v6820_v49 }
 0x216   : > { %1633 = vrot.lane.b32.xlu1 %v1540_v51, %s6344_s6  ;;  %v6117_v51 = vld [vmem:[#allocation2 + $0x22] sm:$0xff]  ;;  %v1717_v49 = vadd.f32 %v7508_v50, %v7115_v62  ;;  %v1718_v62 = vadd.f32 %v7508_v50, %v7108_v55 }
 0x217   : > { %v7512_v61 = vpop.permute.xlu0 %851  ;;  %v1708_v25 = vadd.f32 %v6117_v51, %v7508_v50 }
 0x218   : > { %14536 = vst [vmem:[#allocation149_spill] sm:$0xff] %v7512_v61  ;;  %v7516_v20 = vpop.permute.xlu1 %1017 }
 0x219   : > { %14537 = vst [vmem:[#allocation150_spill] sm:$0xff] %v7516_v20  ;;  %1771 = vrot.lane.b32.xlu0 %v1707_v35, %s6344_s6 }
 0x21a   : > { %1637 = vrot.lane.b32.xlu1 %v1542_v18, %s6344_s6 }
 0x21b   : > { %v7521_v16 = vpop.permute.xlu0 %1015 }
 0x21c   : > { %14538 = vst [vmem:[#allocation151_spill] sm:$0xff] %v7521_v16  ;;  %v7526_v61 = vpop.permute.xlu1 %1049  ;;  %v14704_v16 = vld [vmem:[#allocation13_spill] sm:$0xff] }
 0x21d   : > { %14539 = vst [vmem:[#allocation152_spill] sm:$0xff] %v7526_v61  ;;  %1775 = vrot.lane.b32.xlu0 %v1709_v37, %s6344_s6  ;;  %v1713_v37 = vadd.f32 %v7508_v50, %v6910_v48  ;;  %v1714_v48 = vadd.f32 %v7508_v50, %v6903_v40  ;;  %v1719_v40 = vadd.f32 %v7508_v50, %v7209_v8 }
 0x21e   : > { %1773 = vrot.lane.b32.xlu1 %v1708_v25, %s6344_s6  ;;  %v1720_v8 = vadd.f32 %v7508_v50, %v7202_v44  ;;  %v1725_v44 = vadd.f32 %v7508_v50, %v6764_v34  ;;  %v7622_v34 = vld [vmem:[#allocation2 + $0xfa] sm:$0xff] }
 0x21f   : > { %v7530_v20 = vpop.permute.xlu0 %1047 }
 0x220   : > { %14540 = vst [vmem:[#allocation153_spill] sm:$0xff] %v7530_v20  ;;  %v7535_v35 = vpop.permute.xlu1 %1213 }
 0x221   : > { %14541 = vst [vmem:[#allocation154_spill] sm:$0xff] %v7535_v35  ;;  %1779 = vrot.lane.b32.xlu0 %v1711_v13, %s6344_s6  ;;  %v14557_v35 = vld [vmem:[#allocation38_spill] sm:$0xff] }
 0x222   : > { %1777 = vrot.lane.b32.xlu1 %v1710_v30, %s6344_s6 }
 0x223   : > { %v7540_v18 = vpop.permute.xlu0 %1211 }
 0x224   : > { %14542 = vst [vmem:[#allocation155_spill] sm:$0xff] %v7540_v18  ;;  %v7545_v51 = vpop.permute.xlu1 %1245  ;;  %v14564_v18 = vld [vmem:[#allocation71_spill] sm:$0xff] }
 0x225   : > { %14543 = vst [vmem:[#allocation156_spill] sm:$0xff] %v7545_v51  ;;  %1783 = vrot.lane.b32.xlu0 %v1713_v37, %s6344_s6  ;;  %v1722_v51 = vadd.f32 %v7508_v50, %v7282_v1 }
 0x226   : > { %1781 = vrot.lane.b32.xlu1 %v1712_v53, %s6344_s6 }
 0x227   : > { %v7550_v25 = vpop.permute.xlu0 %1243 }
 0x228   : > { %14544 = vst [vmem:[#allocation157_spill] sm:$0xff] %v7550_v25  ;;  %v7555_v13 = vpop.permute.xlu1 %821  ;;  %v14560_v25 = vld [vmem:[#allocation49_spill] sm:$0xff] }
 0x229   : > { %14545 = vst [vmem:[#allocation158_spill] sm:$0xff] %v7555_v13  ;;  %1787 = vrot.lane.b32.xlu0 %v1715_v26, %s6344_s6  ;;  %v14701_v13 = vld [vmem:[#allocation67_spill] sm:$0xff] }
 0x22a   : > { %1785 = vrot.lane.b32.xlu1 %v1714_v48, %s6344_s6 }
 0x22b   : > { %v7560_v30 = vpop.permute.xlu0 %1403 }
 0x22c   : > { %14546 = vst [vmem:[#allocation159_spill] sm:$0xff] %v7560_v30  ;;  %v7565_v37 = vpop.permute.xlu1 %853 }
 0x22d   : > { %14547 = vst [vmem:[#allocation160_spill] sm:$0xff] %v7565_v37  ;;  %1791 = vrot.lane.b32.xlu0 %v1717_v49, %s6344_s6 }
 0x22e   : > { %1789 = vrot.lane.b32.xlu1 %v1716_v28, %s6344_s6 }
 0x22f   : > { %v7571_v53 = vpop.permute.xlu0 %823 }
 0x230   : > { %14548 = vst [vmem:[#allocation161_spill] sm:$0xff] %v7571_v53  ;;  %v7575_v26 = vpop.permute.xlu1 %1405  ;;  %v7687_v53 = vld [vmem:[#allocation2 + $0x18a] sm:$0xff] }
 0x231   : > { %14549 = vst [vmem:[#allocation162_spill] sm:$0xff] %v7575_v26  ;;  %1795 = vrot.lane.b32.xlu0 %v1719_v40, %s6344_s6  ;;  %v7593_v40 = vld [vmem:[#allocation2 + $0xda] sm:$0xff]  ;;  %v7610_v26 = vld [vmem:[#allocation2 + $0xe2] sm:$0xff] }
 0x232   : > { %1793 = vrot.lane.b32.xlu1 %v1718_v62, %s6344_s6  ;;  %v1723_v55 = vadd.f32 %v7593_v40, %v7508_v50 }
 0x233   : > { %v7581_v48 = vpop.permute.xlu0 %1019 }
 0x234   : > { %14550 = vst [vmem:[#allocation163_spill] sm:$0xff] %v7581_v48  ;;  %v7585_v49 = vpop.permute.xlu1 %1021 }
 0x235   : > { %14551 = vst [vmem:[#allocation164_spill] sm:$0xff] %v7585_v49  ;;  %1799 = vrot.lane.b32.xlu0 %v1721_v2, %s6344_s6 }
 0x236   : > { %1797 = vrot.lane.b32.xlu1 %v1720_v8, %s6344_s6 }
 0x237   : > { %v7591_v28 = vpop.permute.xlu0 %1215 }
 0x238   : > { %14552 = vst [vmem:[#allocation165_spill] sm:$0xff] %v7591_v28  ;;  %v7597_v62 = vpop.permute.xlu1 %1217  ;;  %v1731_v28 = vadd.f32 %v7508_v50, %v14564_v18 }
 0x239   : > { %14553 = vst [vmem:[#allocation166_spill] sm:$0xff] %v7597_v62  ;;  %1803 = vrot.lane.b32.xlu0 %v1723_v55, %s6344_s6  ;;  %v1724_v62 = vadd.f32 %v7610_v26, %v7508_v50 }
 0x23a   : > { %1801 = vrot.lane.b32.xlu1 %v1722_v51, %s6344_s6  ;;  %v1727_v51 = vadd.f32 %v7508_v50, %v14557_v35  ;;  %v14562_v35 = vld [vmem:[#allocation36_spill] sm:$0xff] }
 0x23b   : > { %v7603_v2 = vpop.permute.xlu0 %1407 }
 0x23c   : > { %14554 = vst [vmem:[#allocation167_spill] sm:$0xff] %v7603_v2  ;;  %v7607_v8 = vpop.permute.xlu1 %825 }
 0x23d   : > { %14555 = vst [vmem:[#allocation168_spill] sm:$0xff] %v7607_v8  ;;  %1807 = vrot.lane.b32.xlu0 %v1725_v44, %s6344_s6  ;;  %v1726_v44 = vadd.f32 %v7622_v34, %v7508_v50 }
 0x23e   : > { %1805 = vrot.lane.b32.xlu1 %v1724_v62, %s6344_s6  ;;  %v1729_v62 = vadd.f32 %v7508_v50, %v14560_v25 }
 0x23f   : > { %v7615_v55 = vpop.permute.xlu0 %1431 }
 0x240   : > { %14556 = vst [vmem:[#allocation169_spill] sm:$0xff] %v7615_v55  ;;  %v7619_v2 = vpop.permute.xlu1 %1409 }
 0x241   : > { %14558 = vst [vmem:[#allocation38_spill] sm:$0xff] %v7619_v2  ;;  %1811 = vrot.lane.b32.xlu0 %v1727_v51, %s6344_s6  ;;  %v1728_v2 = vadd.f32 %v7508_v50, %v14562_v35 }
 0x242   : > { %1809 = vrot.lane.b32.xlu1 %v1726_v44, %s6344_s6 }
 0x243   : > { %v7627_v30 = vpop.permute.xlu0 %1435 }
 0x244   : > { %14559 = vst [vmem:[#allocation170_spill] sm:$0xff] %v7627_v30  ;;  %v7631_v55 = vpop.permute.xlu1 %1433  ;;  %v14566_v30 = vld [vmem:[#allocation48_spill] sm:$0xff] }
 0x245   : > { %14561 = vst [vmem:[#allocation49_spill] sm:$0xff] %v7631_v55  ;;  %1815 = vrot.lane.b32.xlu0 %v1729_v62, %s6344_s6  ;;  %v1730_v25 = vadd.f32 %v7508_v50, %v14566_v30  ;;  %v14568_v55 = vld [vmem:[#allocation92_spill] sm:$0xff] }
 0x246   : > { %1813 = vrot.lane.b32.xlu1 %v1728_v2, %s6344_s6  ;;  %v1733_v35 = vadd.f32 %v7508_v50, %v14568_v55  ;;  %v14574_v55 = vld [vmem:[#allocation90_spill] sm:$0xff] }
 0x247   : > { %v7637_v51 = vpop.permute.xlu0 %1439 }
 0x248   : > { %14563 = vst [vmem:[#allocation36_spill] sm:$0xff] %v7637_v51  ;;  %v7641_v44 = vpop.permute.xlu1 %1437  ;;  %v14570_v51 = vld [vmem:[#allocation69_spill] sm:$0xff] }
 0x249   : > { %14565 = vst [vmem:[#allocation71_spill] sm:$0xff] %v7641_v44  ;;  %1819 = vrot.lane.b32.xlu0 %v1731_v28, %s6344_s6  ;;  %v1732_v18 = vadd.f32 %v7508_v50, %v14570_v51  ;;  %v14572_v44 = vld [vmem:[#allocation110_spill] sm:$0xff]  ;;  %v7671_v51 = vld [vmem:[%s13592_s2 + $0x8] sm:$0x7] }
 0x24a   : > { %1817 = vrot.lane.b32.xlu1 %v1730_v25, %s6344_s6  ;;  %v1735_v30 = vadd.f32 %v7508_v50, %v14572_v44  ;;  %v7661_v25 = vld [vmem:[#allocation2 + $0x182] sm:$0xff] }
 0x24b   : > { %v7647_v62 = vpop.permute.xlu0 %1575  ;;  %v1737_v44 = vadd.f32 %v7508_v50, %v7661_v25 }
 0x24c   : > { %14567 = vst [vmem:[#allocation48_spill] sm:$0xff] %v7647_v62  ;;  %v7651_v2 = vpop.permute.xlu1 %1441 }
 0x24d   : > { %14569 = vst [vmem:[#allocation92_spill] sm:$0xff] %v7651_v2  ;;  %1823 = vrot.lane.b32.xlu0 %v1733_v35, %s6344_s6  ;;  %v1734_v2 = vadd.f32 %v7508_v50, %v14574_v55  ;;  %v14578_v55 = vld [vmem:[#allocation6_spill] sm:$0xff] }
 0x24e   : > { %1821 = vrot.lane.b32.xlu1 %v1732_v18, %s6344_s6 }
 0x24f   : > { %v7657_v28 = vpop.permute.xlu0 %1579 }
 0x250   : > { %14571 = vst [vmem:[#allocation69_spill] sm:$0xff] %v7657_v28  ;;  %v7663_v62 = vpop.permute.xlu1 %1577  ;;  %v7685_v28 = vrot.slane %v7671_v51, %v14578_v55  ;;  %v6122_v55 = vld [vmem:[#allocation2 + $0x48] sm:$0xff] }
 0x251   : > { %14573 = vst [vmem:[#allocation110_spill] sm:$0xff] %v7663_v62  ;;  %1827 = vrot.lane.b32.xlu0 %v1735_v30, %s6344_s6  ;;  %v14577_v30 = vld [vmem:[#allocation108_spill] sm:$0xff] }
 0x252   : > { %1825 = vrot.lane.b32.xlu1 %v1734_v2, %s6344_s6  ;;  %v1736_v62 = vadd.f32 %v7508_v50, %v14577_v30 }
 0x253   : > { %v7674_v35 = vpop.permute.xlu0 %1583 }
 0x254   : > { %14575 = vst [vmem:[#allocation90_spill] sm:$0xff] %v7674_v35  ;;  %v7678_v18 = vpop.permute.xlu1 %1581  ;;  %v6121_v35 = vld [vmem:[#allocation2 + $0x30] sm:$0xff] }
 0x255   : > { %14576 = vst [vmem:[#allocation171_spill] sm:$0xff] %v7678_v18  ;;  %1831 = vrot.lane.b32.xlu0 %v1737_v44, %s6344_s6  ;;  %v1903_v61 = vadd.f32 %v6121_v35, %v7685_v28  ;;  %v1738_v44 = vadd.f32 %v7508_v50, %v7687_v53  ;;  %v1905_v18 = vadd.f32 %v6122_v55, %v7685_v28 }
 0x256   : > { %1829 = vrot.lane.b32.xlu1 %v1736_v62, %s6344_s6 }
 0x257   : > { %v7690_v2 = vpop.permute.xlu0 %1587 }
 0x258   : > { %14579 = vst [vmem:[#allocation108_spill] sm:$0xff] %v7690_v2  ;;  %v7693_v49 = vpop.permute.xlu1 %1585  ;;  %v6123_v2 = vld [vmem:[#allocation2 + $0x38] sm:$0xff] }
 0x259   : > { %14580 = vst [vmem:[#allocation6_spill] sm:$0xff] %v7693_v49  ;;  %1967 = vrot.lane.b32.xlu0 %v1903_v61, %s6344_s6  ;;  %v1904_v35 = vadd.f32 %v6123_v2, %v7685_v28  ;;  %v14584_v49 = vld [vmem:[#allocation41_spill] sm:$0xff] }
 0x25a   : > { %1833 = vrot.lane.b32.xlu1 %v1738_v44, %s6344_s6  ;;  %v1907_v50 = vadd.f32 %v7685_v28, %v14584_v49 }
 0x25b   : > { %v7699_v30 = vpop.permute.xlu0 %1591 }
 0x25c   : > { %14581 = vst [vmem:[#allocation172_spill] sm:$0xff] %v7699_v30  ;;  %v7702_v62 = vpop.permute.xlu1 %1589  ;;  %v14586_v30 = vld [vmem:[#allocation40_spill] sm:$0xff] }
 0x25d   : > { %14582 = vst [vmem:[#allocation173_spill] sm:$0xff] %v7702_v62  ;;  %1971 = vrot.lane.b32.xlu0 %v1905_v18, %s6344_s6  ;;  %v1906_v55 = vadd.f32 %v7685_v28, %v14586_v30  ;;  %v14588_v62 = vld [vmem:[#allocation57_spill] sm:$0xff] }
 0x25e   : > { %1969 = vrot.lane.b32.xlu1 %v1904_v35, %s6344_s6  ;;  %v1909_v2 = vadd.f32 %v7685_v28, %v14588_v62 }
 0x25f   : > { %v7707_v61 = vpop.permute.xlu0 %1595 }
 0x260   : > { %14583 = vst [vmem:[#allocation174_spill] sm:$0xff] %v7707_v61  ;;  %v7711_v44 = vpop.permute.xlu1 %1593  ;;  %v14590_v61 = vld [vmem:[#allocation51_spill] sm:$0xff] }
 0x261   : > { %14585 = vst [vmem:[#allocation41_spill] sm:$0xff] %v7711_v44  ;;  %1975 = vrot.lane.b32.xlu0 %v1907_v50, %s6344_s6  ;;  %v1908_v49 = vadd.f32 %v7685_v28, %v14590_v61  ;;  %v14592_v44 = vld [vmem:[#allocation79_spill] sm:$0xff] }
 0x262   : > { %1973 = vrot.lane.b32.xlu1 %v1906_v55, %s6344_s6  ;;  %v1911_v30 = vadd.f32 %v7685_v28, %v14592_v44 }
 0x263   : > { %v7717_v18 = vpop.permute.xlu0 %1599 }
 0x264   : > { %14587 = vst [vmem:[#allocation40_spill] sm:$0xff] %v7717_v18  ;;  %v7721_v35 = vpop.permute.xlu1 %1597  ;;  %v14594_v18 = vld [vmem:[#allocation73_spill] sm:$0xff] }
 0x265   : > { %14589 = vst [vmem:[#allocation57_spill] sm:$0xff] %v7721_v35  ;;  %1979 = vrot.lane.b32.xlu0 %v1909_v2, %s6344_s6  ;;  %v1910_v62 = vadd.f32 %v7685_v28, %v14594_v18  ;;  %v14596_v35 = vld [vmem:[#allocation97_spill] sm:$0xff]  ;;  %v1915_v18 = vadd.f32 %v7685_v28, %v7244_v17  ;;  %v1916_v17 = vadd.f32 %v7685_v28, %v7294_v33 }
 0x266   : > { %1977 = vrot.lane.b32.xlu1 %v1908_v49, %s6344_s6  ;;  %v1913_v61 = vadd.f32 %v7685_v28, %v14596_v35 }
 0x267   : > { %v7727_v50 = vpop.permute.xlu0 %1603 }
 0x268   : > { %14591 = vst [vmem:[#allocation51_spill] sm:$0xff] %v7727_v50  ;;  %v7731_v55 = vpop.permute.xlu1 %1601  ;;  %v14598_v50 = vld [vmem:[#allocation94_spill] sm:$0xff] }
 0x269   : > { %14593 = vst [vmem:[#allocation79_spill] sm:$0xff] %v7731_v55  ;;  %1983 = vrot.lane.b32.xlu0 %v1911_v30, %s6344_s6  ;;  %v1912_v44 = vadd.f32 %v7685_v28, %v14598_v50  ;;  %v6166_v55 = vld [vmem:[#allocation2 + $0x9a] sm:$0xff] }
 0x26a   : > { %1981 = vrot.lane.b32.xlu1 %v1910_v62, %s6344_s6 }
 0x26b   : > { %v7737_v2 = vpop.permute.xlu0 %1607 }
 0x26c   : > { %14595 = vst [vmem:[#allocation73_spill] sm:$0xff] %v7737_v2  ;;  %v7741_v49 = vpop.permute.xlu1 %1605  ;;  %v14601_v2 = vld [vmem:[#allocation112_spill] sm:$0xff] }
 0x26d   : > { %14597 = vst [vmem:[#allocation97_spill] sm:$0xff] %v7741_v49  ;;  %1987 = vrot.lane.b32.xlu0 %v1913_v61, %s6344_s6  ;;  %v1914_v35 = vadd.f32 %v7685_v28, %v14601_v2  ;;  %v6124_v49 = vld [vmem:[#allocation2 + $0xd8] sm:$0xff] }
 0x26e   : > { %1985 = vrot.lane.b32.xlu1 %v1912_v44, %s6344_s6  ;;  %v1917_v50 = vadd.f32 %v6124_v49, %v7685_v28 }
 0x26f   : > { %v7747_v30 = vpop.permute.xlu0 %1611 }
 0x270   : > { %14599 = vst [vmem:[#allocation94_spill] sm:$0xff] %v7747_v30  ;;  %v7751_v62 = vpop.permute.xlu1 %1609  ;;  %v6165_v30 = vld [vmem:[#allocation2 + $0x92] sm:$0xff] }
 0x271   : > { %14600 = vst [vmem:[#allocation175_spill] sm:$0xff] %v7751_v62  ;;  %1991 = vrot.lane.b32.xlu0 %v1915_v18, %s6344_s6  ;;  %v6125_v62 = vld [vmem:[#allocation2 + $0xf0] sm:$0xff] }
 0x272   : > { %1989 = vrot.lane.b32.xlu1 %v1914_v35, %s6344_s6  ;;  %v1919_v2 = vadd.f32 %v6125_v62, %v7685_v28 }
 0x273   : > { %v7757_v61 = vpop.permute.xlu0 %1615 }
 0x274   : > { %14602 = vst [vmem:[#allocation112_spill] sm:$0xff] %v7757_v61  ;;  %v7760_v44 = vpop.permute.xlu1 %1613  ;;  %v6126_v61 = vld [vmem:[#allocation2 + $0xe0] sm:$0xff] }
 0x275   : > { %14603 = vst [vmem:[#allocation176_spill] sm:$0xff] %v7760_v44  ;;  %1995 = vrot.lane.b32.xlu0 %v1917_v50, %s6344_s6  ;;  %v1918_v49 = vadd.f32 %v6126_v61, %v7685_v28  ;;  %v6127_v44 = vld [vmem:[#allocation2 + $0x108] sm:$0xff] }
 0x276   : > { %1993 = vrot.lane.b32.xlu1 %v1916_v17, %s6344_s6  ;;  %v1921_v33 = vadd.f32 %v6127_v44, %v7685_v28 }
 0x277   : > { %v7766_v18 = vpop.permute.xlu0 %1619 }
 0x278   : > { %14604 = vst [vmem:[#allocation177_spill] sm:$0xff] %v7766_v18  ;;  %v7769_v35 = vpop.permute.xlu1 %1617  ;;  %v6128_v18 = vld [vmem:[#allocation2 + $0xf8] sm:$0xff] }
 0x279   : > { %14605 = vst [vmem:[#allocation178_spill] sm:$0xff] %v7769_v35  ;;  %1999 = vrot.lane.b32.xlu0 %v1919_v2, %s6344_s6  ;;  %v1920_v62 = vadd.f32 %v6128_v18, %v7685_v28  ;;  %v6129_v35 = vld [vmem:[#allocation2 + $0x120] sm:$0xff] }
 0x27a   : > { %1997 = vrot.lane.b32.xlu1 %v1918_v49, %s6344_s6  ;;  %v1923_v61 = vadd.f32 %v6129_v35, %v7685_v28 }
 0x27b   : > { %v7774_v50 = vpop.permute.xlu0 %1623 }
 0x27c   : > { %14606 = vst [vmem:[#allocation179_spill] sm:$0xff] %v7774_v50  ;;  %v7777_v17 = vpop.permute.xlu1 %1621  ;;  %v6130_v50 = vld [vmem:[#allocation2 + $0x110] sm:$0xff] }
 0x27d   : > { %14607 = vst [vmem:[#allocation180_spill] sm:$0xff] %v7777_v17  ;;  %2003 = vrot.lane.b32.xlu0 %v1921_v33, %s6344_s6  ;;  %v1922_v44 = vadd.f32 %v6130_v50, %v7685_v28  ;;  %v14611_v17 = vld [vmem:[#allocation60_spill] sm:$0xff]  ;;  %v1927_v50 = vadd.f32 %v7685_v28, %v7070_v42  ;;  %v1928_v42 = vadd.f32 %v7685_v28, %v7148_v23 }
 0x27e   : > { %2001 = vrot.lane.b32.xlu1 %v1920_v62, %s6344_s6  ;;  %v1925_v18 = vadd.f32 %v7685_v28, %v14611_v17 }
 0x27f   : > { %v7782_v2 = vpop.permute.xlu0 %1627 }
 0x280   : > { %14608 = vst [vmem:[#allocation181_spill] sm:$0xff] %v7782_v2  ;;  %v7785_v49 = vpop.permute.xlu1 %1625  ;;  %v14613_v2 = vld [vmem:[#allocation54_spill] sm:$0xff] }
 0x281   : > { %14609 = vst [vmem:[#allocation182_spill] sm:$0xff] %v7785_v49  ;;  %2007 = vrot.lane.b32.xlu0 %v1923_v61, %s6344_s6  ;;  %v1924_v35 = vadd.f32 %v7685_v28, %v14613_v2  ;;  %v1929_v2 = vadd.f32 %v7685_v28, %v7164_v46  ;;  %v1930_v46 = vadd.f32 %v7685_v28, %v7242_v19  ;;  %v14690_v49 = vld [vmem:[#allocation58_spill] sm:$0xff] }
 0x282   : > { %2005 = vrot.lane.b32.xlu1 %v1922_v44, %s6344_s6 }
 0x283   : > { %v7790_v33 = vpop.permute.xlu0 %1631 }
 0x284   : > { %14610 = vst [vmem:[#allocation183_spill] sm:$0xff] %v7790_v33  ;;  %v7794_v62 = vpop.permute.xlu1 %1629  ;;  %v14616_v33 = vld [vmem:[#allocation76_spill] sm:$0xff] }
 0x285   : > { %14612 = vst [vmem:[#allocation60_spill] sm:$0xff] %v7794_v62  ;;  %2011 = vrot.lane.b32.xlu0 %v1925_v18, %s6344_s6  ;;  %v1926_v17 = vadd.f32 %v7685_v28, %v14616_v33  ;;  %v1931_v33 = vadd.f32 %v7685_v28, %v7316_v57  ;;  %v1932_v57 = vadd.f32 %v7685_v28, %v7342_v56  ;;  %v6164_v62 = vld [vmem:[#allocation2 + $0x142] sm:$0xff] }
 0x286   : > { %2009 = vrot.lane.b32.xlu1 %v1924_v35, %s6344_s6 }
 0x287   : > { %v7800_v61 = vpop.permute.xlu0 %1635 }
 0x288   : > { %14614 = vst [vmem:[#allocation54_spill] sm:$0xff] %v7800_v61  ;;  %v7804_v44 = vpop.permute.xlu1 %1633  ;;  %v6163_v61 = vld [vmem:[#allocation2 + $0x13a] sm:$0xff] }
 0x289   : > { %14615 = vst [vmem:[#allocation184_spill] sm:$0xff] %v7804_v44  ;;  %2015 = vrot.lane.b32.xlu0 %v1927_v50, %s6344_s6  ;;  %v646_v44 = vld [vmem:[#allocation2 + $0x198] sm:$0xff] }
 0x28a   : > { %2013 = vrot.lane.b32.xlu1 %v1926_v17, %s6344_s6 }
 0x28b   : > { %v7810_v18 = vpop.permute.xlu0 %1771 }
 0x28c   : > { %14617 = vst [vmem:[#allocation76_spill] sm:$0xff] %v7810_v18  ;;  %v7814_v35 = vpop.permute.xlu1 %1637  ;;  %v14685_v18 = vld [vmem:[#allocation12_spill] sm:$0xff] }
 0x28d   : > { %14618 = vst [vmem:[#allocation185_spill] sm:$0xff] %v7814_v35  ;;  %2019 = vrot.lane.b32.xlu0 %v1929_v2, %s6344_s6  ;;  %v1933_v2 = vadd.f32 %v7685_v28, %v646_v44  ;;  %v647_v35 = vld [vmem:[#allocation2 + $0x1a0] sm:$0xff]  ;;  %v6131_v44 = vld [vmem:[#allocation2 + $0x31] sm:$0xff] }
 0x28e   : > { %2017 = vrot.lane.b32.xlu1 %v1928_v42, %s6344_s6 }
 0x28f   : > { %v7820_v50 = vpop.permute.xlu0 %1775 }
 0x290   : > { %14619 = vst [vmem:[#allocation186_spill] sm:$0xff] %v7820_v50  ;;  %v7824_v17 = vpop.permute.xlu1 %1773 }
 0x291   : > { %14620 = vst [vmem:[#allocation187_spill] sm:$0xff] %v7824_v17  ;;  %2023 = vrot.lane.b32.xlu0 %v1931_v33, %s6344_s6  ;;  %v14623_v17 = vld [vmem:[#allocation7_spill] sm:$0xff] }
 0x292   : > { %2021 = vrot.lane.b32.xlu1 %v1930_v46, %s6344_s6  ;;  %v7840_v33 = vrot.slane %v7671_v51, %v14623_v17 }
 0x293   : > { %v7831_v23 = vpop.permute.xlu0 %1779 }
 0x294   : > { %14621 = vst [vmem:[#allocation188_spill] sm:$0xff] %v7831_v23  ;;  %v7833_v42 = vpop.permute.xlu1 %1777  ;;  %v2099_v46 = vadd.f32 %v6131_v44, %v7840_v33  ;;  %v1934_v23 = vadd.f32 %v7685_v28, %v647_v35  ;;  %v6134_v35 = vld [vmem:[#allocation2 + $0x61] sm:$0xff] }
 0x295   : > { %14622 = vst [vmem:[#allocation189_spill] sm:$0xff] %v7833_v42  ;;  %2027 = vrot.lane.b32.xlu0 %v1933_v2, %s6344_s6  ;;  %v6132_v2 = vld [vmem:[#allocation2 + $0x49] sm:$0xff] }
 0x296   : > { %2025 = vrot.lane.b32.xlu1 %v1932_v57, %s6344_s6  ;;  %v2101_v17 = vadd.f32 %v6132_v2, %v7840_v33  ;;  %v6133_v57 = vld [vmem:[#allocation2 + $0x39] sm:$0xff] }
 0x297   : > { %v7843_v19 = vpop.permute.xlu0 %1783  ;;  %v2100_v44 = vadd.f32 %v6133_v57, %v7840_v33 }
 0x298   : > { %14624 = vst [vmem:[#allocation7_spill] sm:$0xff] %v7843_v19  ;;  %v7847_v50 = vpop.permute.xlu1 %1781  ;;  %v14684_v19 = vld [vmem:[#allocation66_spill] sm:$0xff] }
 0x299   : > { %14625 = vst [vmem:[#allocation190_spill] sm:$0xff] %v7847_v50  ;;  %2163 = vrot.lane.b32.xlu0 %v2099_v46, %s6344_s6  ;;  %v2103_v46 = vadd.f32 %v6134_v35, %v7840_v33  ;;  %v14682_v50 = vld [vmem:[#allocation61_spill] sm:$0xff] }
 0x29a   : > { %2029 = vrot.lane.b32.xlu1 %v1934_v23, %s6344_s6 }
 0x29b   : > { %v7851_v56 = vpop.permute.xlu0 %1787 }
 0x29c   : > { %14626 = vst [vmem:[#allocation191_spill] sm:$0xff] %v7851_v56  ;;  %v7854_v42 = vpop.permute.xlu1 %1785  ;;  %v6135_v56 = vld [vmem:[#allocation2 + $0x51] sm:$0xff] }
 0x29d   : > { %14627 = vst [vmem:[#allocation192_spill] sm:$0xff] %v7854_v42  ;;  %2167 = vrot.lane.b32.xlu0 %v2101_v17, %s6344_s6  ;;  %v2102_v2 = vadd.f32 %v6135_v56, %v7840_v33  ;;  %v6136_v42 = vld [vmem:[#allocation2 + $0x79] sm:$0xff]  ;;  %v2107_v56 = vadd.f32 %v7840_v33, %v7087_v43  ;;  %v2108_v43 = vadd.f32 %v7840_v33, %v7082_v27 }
 0x29e   : > { %2165 = vrot.lane.b32.xlu1 %v2100_v44, %s6344_s6  ;;  %v2105_v57 = vadd.f32 %v6136_v42, %v7840_v33 }
 0x29f   : > { %v7859_v28 = vpop.permute.xlu0 %1791 }
 0x2a0   : > { %14628 = vst [vmem:[#allocation193_spill] sm:$0xff] %v7859_v28  ;;  %v7862_v23 = vpop.permute.xlu1 %1789  ;;  %v6137_v28 = vld [vmem:[#allocation2 + $0x69] sm:$0xff] }
 0x2a1   : > { %14629 = vst [vmem:[#allocation194_spill] sm:$0xff] %v7862_v23  ;;  %2171 = vrot.lane.b32.xlu0 %v2103_v46, %s6344_s6  ;;  %v2104_v35 = vadd.f32 %v6137_v28, %v7840_v33  ;;  %v2109_v28 = vadd.f32 %v7840_v33, %v7181_v5  ;;  %v2110_v5 = vadd.f32 %v7840_v33, %v7176_v7  ;;  %v14681_v23 = vld [vmem:[#allocation15_spill] sm:$0xff] }
 0x2a2   : > { %2169 = vrot.lane.b32.xlu1 %v2102_v2, %s6344_s6 }
 0x2a3   : > { %v7867_v17 = vpop.permute.xlu0 %1795 }
 0x2a4   : > { %14630 = vst [vmem:[#allocation195_spill] sm:$0xff] %v7867_v17  ;;  %v7870_v44 = vpop.permute.xlu1 %1793  ;;  %v6138_v17 = vld [vmem:[#allocation2 + $0x81] sm:$0xff] }
 0x2a5   : > { %14631 = vst [vmem:[#allocation196_spill] sm:$0xff] %v7870_v44  ;;  %2175 = vrot.lane.b32.xlu0 %v2105_v57, %s6344_s6  ;;  %v2106_v42 = vadd.f32 %v6138_v17, %v7840_v33  ;;  %v2111_v17 = vadd.f32 %v7840_v33, %v7258_v15  ;;  %v2112_v15 = vadd.f32 %v7840_v33, %v7270_v59  ;;  %v6162_v44 = vld [vmem:[#allocation2 + $0x12a] sm:$0xff] }
 0x2a6   : > { %2173 = vrot.lane.b32.xlu1 %v2104_v35, %s6344_s6 }
 0x2a7   : > { %v7875_v46 = vpop.permute.xlu0 %1799 }
 0x2a8   : > { %14632 = vst [vmem:[#allocation197_spill] sm:$0xff] %v7875_v46  ;;  %v7879_v2 = vpop.permute.xlu1 %1797  ;;  %v6161_v46 = vld [vmem:[#allocation2 + $0x112] sm:$0xff] }
 0x2a9   : > { %14633 = vst [vmem:[#allocation198_spill] sm:$0xff] %v7879_v2  ;;  %2179 = vrot.lane.b32.xlu0 %v2107_v56, %s6344_s6 }
 0x2aa   : > { %2177 = vrot.lane.b32.xlu1 %v2106_v42, %s6344_s6 }
 0x2ab   : > { %v7884_v57 = vpop.permute.xlu0 %1803 }
 0x2ac   : > { %14634 = vst [vmem:[#allocation199_spill] sm:$0xff] %v7884_v57  ;;  %v7888_v35 = vpop.permute.xlu1 %1801 }
 0x2ad   : > { %14635 = vst [vmem:[#allocation200_spill] sm:$0xff] %v7888_v35  ;;  %2183 = vrot.lane.b32.xlu0 %v2109_v28, %s6344_s6  ;;  %v6139_v35 = vld [vmem:[#allocation2 + $0xd9] sm:$0xff] }
 0x2ae   : > { %2181 = vrot.lane.b32.xlu1 %v2108_v43, %s6344_s6  ;;  %v2113_v27 = vadd.f32 %v6139_v35, %v7840_v33 }
 0x2af   : > { %v7894_v56 = vpop.permute.xlu0 %1807 }
 0x2b0   : > { %14636 = vst [vmem:[#allocation201_spill] sm:$0xff] %v7894_v56  ;;  %v7898_v42 = vpop.permute.xlu1 %1805 }
 0x2b1   : > { %14637 = vst [vmem:[#allocation202_spill] sm:$0xff] %v7898_v42  ;;  %2187 = vrot.lane.b32.xlu0 %v2111_v17, %s6344_s6  ;;  %v6140_v42 = vld [vmem:[#allocation2 + $0xf1] sm:$0xff] }
 0x2b2   : > { %2185 = vrot.lane.b32.xlu1 %v2110_v5, %s6344_s6  ;;  %v2115_v7 = vadd.f32 %v6140_v42, %v7840_v33 }
 0x2b3   : > { %v7904_v28 = vpop.permute.xlu0 %1811 }
 0x2b4   : > { %14638 = vst [vmem:[#allocation203_spill] sm:$0xff] %v7904_v28  ;;  %v7907_v43 = vpop.permute.xlu1 %1809  ;;  %v6141_v28 = vld [vmem:[#allocation2 + $0xe1] sm:$0xff] }
 0x2b5   : > { %14639 = vst [vmem:[#allocation204_spill] sm:$0xff] %v7907_v43  ;;  %2191 = vrot.lane.b32.xlu0 %v2113_v27, %s6344_s6  ;;  %v2114_v35 = vadd.f32 %v6141_v28, %v7840_v33  ;;  %v6142_v43 = vld [vmem:[#allocation2 + $0x109] sm:$0xff] }
 0x2b6   : > { %2189 = vrot.lane.b32.xlu1 %v2112_v15, %s6344_s6  ;;  %v2117_v59 = vadd.f32 %v6142_v43, %v7840_v33 }
 0x2b7   : > { %v7913_v17 = vpop.permute.xlu0 %1815 }
 0x2b8   : > { %14640 = vst [vmem:[#allocation205_spill] sm:$0xff] %v7913_v17  ;;  %v7916_v5 = vpop.permute.xlu1 %1813  ;;  %v6143_v17 = vld [vmem:[#allocation2 + $0xf9] sm:$0xff] }
 0x2b9   : > { %14641 = vst [vmem:[#allocation206_spill] sm:$0xff] %v7916_v5  ;;  %2195 = vrot.lane.b32.xlu0 %v2115_v7, %s6344_s6  ;;  %v2116_v42 = vadd.f32 %v6143_v17, %v7840_v33  ;;  %v6144_v5 = vld [vmem:[#allocation2 + $0x121] sm:$0xff] }
 0x2ba   : > { %2193 = vrot.lane.b32.xlu1 %v2114_v35, %s6344_s6  ;;  %v2119_v28 = vadd.f32 %v6144_v5, %v7840_v33 }
 0x2bb   : > { %v7921_v27 = vpop.permute.xlu0 %1819 }
 0x2bc   : > { %14642 = vst [vmem:[#allocation207_spill] sm:$0xff] %v7921_v27  ;;  %v7924_v15 = vpop.permute.xlu1 %1817  ;;  %v6145_v27 = vld [vmem:[#allocation2 + $0x111] sm:$0xff] }
 0x2bd   : > { %14643 = vst [vmem:[#allocation208_spill] sm:$0xff] %v7924_v15  ;;  %2199 = vrot.lane.b32.xlu0 %v2117_v59, %s6344_s6  ;;  %v2118_v43 = vadd.f32 %v6145_v27, %v7840_v33  ;;  %v6146_v15 = vld [vmem:[#allocation2 + $0x139] sm:$0xff]  ;;  %v2123_v27 = vadd.f32 %v7840_v33, %v7101_v54 }
 0x2be   : > { %2197 = vrot.lane.b32.xlu1 %v2116_v42, %s6344_s6  ;;  %v2121_v17 = vadd.f32 %v6146_v15, %v7840_v33 }
 0x2bf   : > { %v7929_v7 = vpop.permute.xlu0 %1823 }
 0x2c0   : > { %14644 = vst [vmem:[#allocation209_spill] sm:$0xff] %v7929_v7  ;;  %v7932_v35 = vpop.permute.xlu1 %1821  ;;  %v6147_v7 = vld [vmem:[#allocation2 + $0x129] sm:$0xff] }
 0x2c1   : > { %14645 = vst [vmem:[#allocation210_spill] sm:$0xff] %v7932_v35  ;;  %2203 = vrot.lane.b32.xlu0 %v2119_v28, %s6344_s6  ;;  %v2120_v5 = vadd.f32 %v6147_v7, %v7840_v33  ;;  %v2125_v7 = vadd.f32 %v7840_v33, %v7195_v58  ;;  %v2126_v58 = vadd.f32 %v7840_v33, %v7188_v9  ;;  %v14660_v35 = vld [vmem:[#allocation8_spill] sm:$0xff] }
 0x2c2   : > { %2201 = vrot.lane.b32.xlu1 %v2118_v43, %s6344_s6 }
 0x2c3   : > { %v7937_v59 = vpop.permute.xlu0 %1827 }
 0x2c4   : > { %14646 = vst [vmem:[#allocation211_spill] sm:$0xff] %v7937_v59  ;;  %v7940_v42 = vpop.permute.xlu1 %1825  ;;  %v6148_v59 = vld [vmem:[#allocation2 + $0x141] sm:$0xff] }
 0x2c5   : > { %14647 = vst [vmem:[#allocation212_spill] sm:$0xff] %v7940_v42  ;;  %2207 = vrot.lane.b32.xlu0 %v2121_v17, %s6344_s6  ;;  %v2122_v15 = vadd.f32 %v6148_v59, %v7840_v33  ;;  %v2127_v59 = vadd.f32 %v7840_v33, %v7489_v11 }
 0x2c6   : > { %2205 = vrot.lane.b32.xlu1 %v2120_v5, %s6344_s6 }
 0x2c7   : > { %v7945_v28 = vpop.permute.xlu0 %1831 }
 0x2c8   : > { %14648 = vst [vmem:[#allocation213_spill] sm:$0xff] %v7945_v28  ;;  %v7949_v43 = vpop.permute.xlu1 %1829  ;;  %v6149_v28 = vld [vmem:[#allocation2 + $0x159] sm:$0xff] }
 0x2c9   : > { %14649 = vst [vmem:[#allocation214_spill] sm:$0xff] %v7949_v43  ;;  %2211 = vrot.lane.b32.xlu0 %v2123_v27, %s6344_s6  ;;  %v2124_v54 = vadd.f32 %v6149_v28, %v7840_v33  ;;  %v682_v43 = vld [vmem:[#allocation2 + $0x199] sm:$0xff] }
 0x2ca   : > { %2209 = vrot.lane.b32.xlu1 %v2122_v15, %s6344_s6 }
 0x2cb   : > { %v7954_v17 = vpop.permute.xlu0 %1967 }
 0x2cc   : > { %14650 = vst [vmem:[#allocation215_spill] sm:$0xff] %v7954_v17  ;;  %v7958_v5 = vpop.permute.xlu1 %1833  ;;  %v14655_v17 = vld [vmem:[#allocation42_spill] sm:$0xff] }
 0x2cd   : > { %14651 = vst [vmem:[#allocation216_spill] sm:$0xff] %v7958_v5  ;;  %2215 = vrot.lane.b32.xlu0 %v2125_v7, %s6344_s6  ;;  %v2129_v7 = vadd.f32 %v7840_v33, %v682_v43  ;;  %v14654_v5 = vld [vmem:[#allocation10_spill] sm:$0xff]  ;;  %v683_v43 = vld [vmem:[#allocation2 + $0x1a1] sm:$0xff] }
 0x2ce   : > { %2213 = vrot.lane.b32.xlu1 %v2124_v54, %s6344_s6  ;;  %v7975_v28 = vmul.f32 %v14655_v17, %v14654_v5  ;;  %v14657_v54 = vld [vmem:[#allocation47_spill] sm:$0xff]  ;;  %v2128_v17 = vadd.f32 %v7840_v33, %v7510_v41  ;;  %v14667_v41 = vld [vmem:[#allocation52_spill] sm:$0xff]  ;;  %v8127_v8 = vmul.f32 %v14701_v13, %v14654_v5 }
 0x2cf   : > { %v7963_v27 = vpop.permute.xlu0 %1971  ;;  %v7979_v42 = vmul.f32 %v14657_v54, %v14654_v5  ;;  %v8012_v57 = vmul.f32 %v14667_v41, %v14654_v5  ;;  %v6152_v41 = vld [vmem:[#allocation2 + $0x3a] sm:$0xff]  ;;  %v6171_v5 = vld [vmem:[#allocation2 + $0x16a] sm:$0xff] }
 0x2d0   : > { %14652 = vst [vmem:[#allocation217_spill] sm:$0xff] %v7963_v27  ;;  %v7967_v15 = vpop.permute.xlu1 %1969  ;;  %14656 = vst [vmem:[#allocation42_spill] sm:$0xff] %v7975_v28  ;;  %v14659_v27 = vld [vmem:[#allocation44_spill] sm:$0xff] }
 0x2d1   : > { %14653 = vst [vmem:[#allocation218_spill] sm:$0xff] %v7967_v15  ;;  %2219 = vrot.lane.b32.xlu0 %v2127_v59, %s6344_s6  ;;  %14658 = vst [vmem:[#allocation47_spill] sm:$0xff] %v7979_v42  ;;  %v7983_v11 = vmul.f32 %v14660_v35, %v14659_v27  ;;  %v14662_v15 = vld [vmem:[#allocation46_spill] sm:$0xff]  ;;  %v7999_v27 = vrot.slane %v7671_v51, %v6494_v10 }
 0x2d2   : > { %v7987_v59 = vmul.f32 %v14660_v35, %v14662_v15  ;;  %2217 = vrot.lane.b32.xlu1 %v2126_v58, %s6344_s6  ;;  %v2487_v15 = vmax.f32 %v7975_v28, %v7979_v42  ;;  %14668 = vst [vmem:[#allocation52_spill] sm:$0xff] %v8012_v57  ;;  %v14669_v10 = vld [vmem:[#allocation50_spill] sm:$0xff]  ;;  %14702 = vst [vmem:[#allocation67_spill] sm:$0xff] %v8127_v8 }
 0x2d3   : > { %14661 = vst [vmem:[#allocation44_spill] sm:$0xff] %v7983_v11  ;;  %v7990_v9 = vpop.permute.xlu0 %1975  ;;  %v8016_v51 = vmul.f32 %v14660_v35, %v14669_v10  ;;  %v2296_v10 = vadd.f32 %v6152_v41, %v7999_v27  ;;  %v8045_v41 = vadd.f32 %v7593_v40, %v7999_v27  ;;  %v8062_v40 = vadd.f32 %v7622_v34, %v7999_v27 }
 0x2d4   : > { %14663 = vst [vmem:[#allocation46_spill] sm:$0xff] %v7987_v59  ;;  %14664 = vst [vmem:[#allocation219_spill] sm:$0xff] %v7990_v9  ;;  %v7992_v56 = vpop.permute.xlu1 %1973  ;;  %v2488_v58 = vmax.f32 %v7983_v11, %v7987_v59  ;;  %v2130_v9 = vadd.f32 %v7840_v33, %v683_v43  ;;  %v6153_v11 = vld [vmem:[#allocation2 + $0x62] sm:$0xff]  ;;  %v8079_v34 = vmul.f32 %v14682_v50, %v14681_v23 }
 0x2d5   : > { %14665 = vst [vmem:[#allocation220_spill] sm:$0xff] %v7992_v56  ;;  %2223 = vrot.lane.b32.xlu0 %v2129_v7, %s6344_s6  ;;  %v6150_v56 = vld [vmem:[#allocation2 + $0x32] sm:$0xff]  ;;  %14670 = vst [vmem:[#allocation50_spill] sm:$0xff] %v8016_v51  ;;  %v2299_v28 = vadd.f32 %v6153_v11, %v7999_v27 }
 0x2d6   : > { %2221 = vrot.lane.b32.xlu1 %v2128_v17, %s6344_s6  ;;  %v2295_v7 = vadd.f32 %v6150_v56, %v7999_v27  ;;  %v8022_v17 = vmax.f32 %v2487_v15, %v8012_v57  ;;  %v8025_v59 = vmax.f32 %v2488_v58, %v8016_v51  ;;  %v6151_v56 = vld [vmem:[#allocation2 + $0x4a] sm:$0xff]  ;;  %v6155_v57 = vld [vmem:[#allocation2 + $0x7a] sm:$0xff]  ;;  %14683 = vst [vmem:[#allocation61_spill] sm:$0xff] %v8079_v34 }
 0x2d7   : > { %v8006_v54 = vpop.permute.xlu0 %1979  ;;  %v2297_v43 = vadd.f32 %v6151_v56, %v7999_v27  ;;  %v8035_v58 = vadd.f32 %v6155_v57, %v7999_v27  ;;  %v6156_v51 = vld [vmem:[#allocation2 + $0x6a] sm:$0xff] }
 0x2d8   : > { %14666 = vst [vmem:[#allocation221_spill] sm:$0xff] %v8006_v54  ;;  %v8018_v42 = vpop.permute.xlu1 %1977  ;;  %14672 = vst [vmem:[#allocation223_spill] sm:$0xff] %v8022_v17  ;;  %v14676_v54 = vld [vmem:[#allocation14_spill] sm:$0xff]  ;;  %v14738_v17 = vld [vmem:[#allocation77_spill] sm:$0xff] }
 0x2d9   : > { %14671 = vst [vmem:[#allocation222_spill] sm:$0xff] %v8018_v42  ;;  %2359 = vrot.lane.b32.xlu0 %v2295_v7, %s6344_s6  ;;  %14673 = vst [vmem:[#allocation224_spill] sm:$0xff] %v8025_v59  ;;  %v6154_v7 = vld [vmem:[#allocation2 + $0x52] sm:$0xff]  ;;  %v6159_v42 = vld [vmem:[#allocation2 + $0x10a] sm:$0xff]  ;;  %v8096_v50 = vmul.f32 %v14690_v49, %v14676_v54 }
 0x2da   : > { %2225 = vrot.lane.b32.xlu1 %v2130_v9, %s6344_s6  ;;  %v2298_v15 = vadd.f32 %v6154_v7, %v7999_v27  ;;  %v8038_v9 = vadd.f32 %v6156_v51, %v7999_v27  ;;  %v6158_v7 = vld [vmem:[#allocation2 + $0xf2] sm:$0xff]  ;;  %v8055_v51 = vadd.f32 %v7610_v26, %v7999_v27  ;;  %v8072_v26 = vadd.f32 %v6161_v46, %v7999_v27  ;;  %v14697_v49 = vld [vmem:[#allocation65_spill] sm:$0xff] }
 0x2db   : > { %v8028_v33 = vpop.permute.xlu0 %1983  ;;  %v8051_v57 = vadd.f32 %v6158_v7, %v7999_v27  ;;  %v8089_v46 = vadd.f32 %v6163_v61, %v7999_v27  ;;  %14691 = vst [vmem:[#allocation58_spill] sm:$0xff] %v8096_v50  ;;  %v14693_v61 = vld [vmem:[#allocation53_spill] sm:$0xff]  ;;  %v8115_v37 = vmul.f32 %v14697_v49, %v14681_v23 }
 0x2dc   : > { %14674 = vst [vmem:[#allocation225_spill] sm:$0xff] %v8028_v33  ;;  %v6157_v33 = vld [vmem:[#allocation2 + $0x82] sm:$0xff]  ;;  %v8047_v11 = vpop.permute.xlu1 %1981  ;;  %14679 = vst [vmem:[#allocation227_spill] sm:$0xff] %v8072_v26  ;;  %v8107_v48 = vmul.f32 %v14685_v18, %v14693_v61  ;;  %v6169_v49 = vld [vmem:[#allocation2 + $0xaa] sm:$0xff] }
 0x2dd   : > { %v8041_v56 = vadd.f32 %v6157_v33, %v7999_v27  ;;  %14675 = vst [vmem:[#allocation226_spill] sm:$0xff] %v8047_v11  ;;  %2363 = vrot.lane.b32.xlu0 %v2297_v43, %s6344_s6  ;;  %v8058_v33 = vadd.f32 %v6159_v42, %v7999_v27  ;;  %v14677_v11 = vld [vmem:[#allocation64_spill] sm:$0xff]  ;;  %v8075_v42 = vadd.f32 %v6162_v44, %v7999_v27  ;;  %14688 = vst [vmem:[#allocation229_spill] sm:$0xff] %v8089_v46 }
 0x2de   : > { %v8066_v2 = vmul.f32 %v14677_v11, %v14676_v54  ;;  %v6160_v43 = vld [vmem:[#allocation2 + $0x122] sm:$0xff]  ;;  %v8083_v11 = vmul.f32 %v14685_v18, %v14684_v19  ;;  %2361 = vrot.lane.b32.xlu1 %v2296_v10, %s6344_s6  ;;  %v8092_v44 = vadd.f32 %v6164_v62, %v7999_v27  ;;  %v2303_v19 = vadd.f32 %v6165_v30, %v7999_v27  ;;  %v14695_v62 = vld [vmem:[#allocation55_spill] sm:$0xff] }
 0x2df   : > { %v8069_v7 = vadd.f32 %v6160_v43, %v7999_v27  ;;  %14680 = vst [vmem:[#allocation228_spill] sm:$0xff] %v8075_v42  ;;  %v8086_v43 = vpop.permute.xlu0 %1987  ;;  %v8100_v10 = vadd.f32 %v6166_v55, %v7999_v27  ;;  %14694 = vst [vmem:[#allocation53_spill] sm:$0xff] %v8107_v48  ;;  %v6168_v55 = vld [vmem:[#allocation2 + $0x15a] sm:$0xff] }
 0x2e0   : > { %14678 = vst [vmem:[#allocation64_spill] sm:$0xff] %v8066_v2  ;;  %14686 = vst [vmem:[#allocation66_spill] sm:$0xff] %v8083_v11  ;;  %v8117_v30 = vpop.permute.xlu1 %1985  ;;  %v2489_v61 = vmax.f32 %v8066_v2, %v8096_v50  ;;  %v6170_v2 = vld [vmem:[#allocation2 + $0xb2] sm:$0xff] }
 0x2e1   : > { %14687 = vst [vmem:[#allocation12_spill] sm:$0xff] %v8086_v43  ;;  %14689 = vst [vmem:[#allocation230_spill] sm:$0xff] %v8092_v44  ;;  %v6167_v43 = vld [vmem:[#allocation2 + $0x152] sm:$0xff]  ;;  %v8111_v44 = vmul.f32 %v14695_v62, %v14681_v23  ;;  %2367 = vrot.lane.b32.xlu0 %v2299_v28, %s6344_s6  ;;  %v14703_v62 = vld [vmem:[#allocation68_spill] sm:$0xff]  ;;  %v8142_v13 = vadd.f32 %v6170_v2, %v7999_v27 }
 0x2e2   : > { %v8103_v20 = vadd.f32 %v6167_v43, %v7999_v27  ;;  %14698 = vst [vmem:[#allocation65_spill] sm:$0xff] %v8115_v37  ;;  %14699 = vst [vmem:[#allocation232_spill] sm:$0xff] %v8117_v30  ;;  %v8121_v43 = vadd.f32 %v6168_v55, %v7999_v27  ;;  %v2305_v30 = vadd.f32 %v6169_v49, %v7999_v27  ;;  %2365 = vrot.lane.b32.xlu1 %v2298_v15, %s6344_s6  ;;  %v14712_v15 = vld [vmem:[#allocation63_spill] sm:$0xff] }
 0x2e3   : > { %14696 = vst [vmem:[#allocation55_spill] sm:$0xff] %v8111_v44  ;;  %v2505_v28 = vmax.f32 %v8111_v44, %v8079_v34  ;;  %v2490_v55 = vmax.f32 %v8083_v11, %v8107_v48  ;;  %v8139_v50 = vpop.permute.xlu0 %1991  ;;  %v14710_v34 = vld [vmem:[#allocation59_spill] sm:$0xff]  ;;  %v8157_v48 = vmul.f32 %v14712_v15, %v14676_v54  ;;  %v8177_v15 = vadd.f32 %v7999_v27, %v7282_v1  ;;  %v14726_v1 = vld [vmem:[#allocation82_spill] sm:$0xff] }
 0x2e4   : > { %14692 = vst [vmem:[#allocation231_spill] sm:$0xff] %v8103_v20  ;;  %14700 = vst [vmem:[#allocation233_spill] sm:$0xff] %v8121_v43  ;;  %v8131_v20 = vmul.f32 %v14704_v16, %v14703_v62  ;;  %v8145_v62 = vadd.f32 %v6171_v5, %v7999_v27  ;;  %v14708_v43 = vld [vmem:[#allocation56_spill] sm:$0xff]  ;;  %v8153_v44 = vmul.f32 %v14685_v18, %v14710_v34  ;;  %v6172_v11 = vld [vmem:[#allocation2 + $0x172] sm:$0xff] }
 0x2e5   : > { %14706 = vst [vmem:[#allocation234_spill] sm:$0xff] %v8139_v50  ;;  %v8149_v49 = vmul.f32 %v14704_v16, %v14708_v43  ;;  %14713 = vst [vmem:[#allocation63_spill] sm:$0xff] %v8157_v48  ;;  %v8160_v2 = vadd.f32 %v6172_v11, %v7999_v27  ;;  %v14715_v50 = vld [vmem:[#allocation62_spill] sm:$0xff]  ;;  %v8169_v43 = vpop.permute.xlu1 %1989  ;;  %2371 = vrot.lane.b32.xlu0 %v8035_v58, %s6344_s6  ;;  %v2307_v34 = vadd.f32 %v7999_v27, %v7275_v31  ;;  %v14725_v42 = vld [vmem:[#allocation19_spill] sm:$0xff] }
 0x2e6   : > { %14705 = vst [vmem:[#allocation68_spill] sm:$0xff] %v8131_v20  ;;  %14707 = vst [vmem:[#allocation235_spill] sm:$0xff] %v8145_v62  ;;  %v8164_v5 = vmul.f32 %v14704_v16, %v14715_v50  ;;  %v8167_v62 = vmax.f32 %v2505_v28, %v8115_v37  ;;  %v14719_v28 = vld [vmem:[#allocation72_spill] sm:$0xff]  ;;  %v14722_v58 = vld [vmem:[#allocation18_spill] sm:$0xff]  ;;  %v8196_v46 = vmul.f32 %v14726_v1, %v14725_v42  ;;  %2369 = vrot.lane.b32.xlu1 %v8038_v9, %s6344_s6 }
 0x2e7   : > { %14709 = vst [vmem:[#allocation56_spill] sm:$0xff] %v8149_v49  ;;  %14711 = vst [vmem:[#allocation59_spill] sm:$0xff] %v8153_v44  ;;  %v2506_v50 = vmax.f32 %v8131_v20, %v8149_v49  ;;  %v8185_v37 = vmul.f32 %v14660_v35, %v14719_v28  ;;  %v14729_v11 = vld [vmem:[#allocation16_spill] sm:$0xff]  ;;  %v8203_v49 = vmax.f32 %v2490_v55, %v8153_v44  ;;  %v14733_v28 = vld [vmem:[#allocation11_spill] sm:$0xff] }
 0x2e8   : > { %14714 = vst [vmem:[#allocation236_spill] sm:$0xff] %v8160_v2  ;;  %14716 = vst [vmem:[#allocation62_spill] sm:$0xff] %v8164_v5  ;;  %v14723_v2 = vld [vmem:[#allocation80_spill] sm:$0xff]  ;;  %v8200_v8 = vmul.f32 %v14729_v11, %v14728_v21  ;;  %v14736_v20 = vld [vmem:[#allocation74_spill] sm:$0xff]  ;;  %v8219_v21 = vmul.f32 %v14738_v17, %v14725_v42  ;;  %v8227_v9 = vmul.f32 %v14729_v11, %v14743_v32 }
 0x2e9   : > { %14717 = vst [vmem:[#allocation237_spill] sm:$0xff] %v8167_v62  ;;  %14718 = vst [vmem:[#allocation238_spill] sm:$0xff] %v8169_v43  ;;  %v8188_v43 = vmax.f32 %v2489_v61, %v8157_v48  ;;  %v8192_v31 = vmul.f32 %v14723_v2, %v14722_v58  ;;  %v8207_v61 = vpop.permute.xlu0 %1995  ;;  %v14734_v48 = vld [vmem:[#allocation70_spill] sm:$0xff]  ;;  %v8215_v1 = vmul.f32 %v14736_v20, %v14722_v58  ;;  %v14740_v35 = vld [vmem:[#allocation89_spill] sm:$0xff]  ;;  %v8241_v52 = vpop.permute.xlu1 %1993  ;;  %2375 = vrot.lane.b32.xlu0 %v2303_v19, %s6344_s6 }
 0x2ea   : > { %14720 = vst [vmem:[#allocation72_spill] sm:$0xff] %v8185_v37  ;;  %14727 = vst [vmem:[#allocation82_spill] sm:$0xff] %v8196_v46  ;;  %v8211_v2 = vmul.f32 %v14734_v48, %v14733_v28  ;;  %v14741_v55 = vld [vmem:[#allocation17_spill] sm:$0xff]  ;;  %v14749_v28 = vld [vmem:[#allocation88_spill] sm:$0xff]  ;;  %v2507_v19 = vmax.f32 %v8219_v21, %v8196_v46  ;;  %v2492_v32 = vmax.f32 %v8200_v8, %v8227_v9  ;;  %2373 = vrot.lane.b32.xlu1 %v8041_v56, %s6344_s6 }
 0x2eb   : > { %14721 = vst [vmem:[#allocation239_spill] sm:$0xff] %v8188_v43  ;;  %14724 = vst [vmem:[#allocation80_spill] sm:$0xff] %v8192_v31  ;;  %v8223_v44 = vmul.f32 %v14741_v55, %v14740_v35  ;;  %v8239_v17 = vmul.f32 %v14749_v28, %v14676_v54  ;;  %v14752_v35 = vld [vmem:[#allocation75_spill] sm:$0xff]  ;;  %v2491_v28 = vmax.f32 %v8215_v1, %v8192_v31  ;;  %v14763_v56 = vld [vmem:[#allocation85_spill] sm:$0xff] }
 0x2ec   : > { %14730 = vst [vmem:[#allocation87_spill] sm:$0xff] %v8200_v8  ;;  %14731 = vst [vmem:[#allocation240_spill] sm:$0xff] %v8203_v49  ;;  %v8248_v26 = vmul.f32 %v14753_v39, %v14752_v35  ;;  %v8279_v46 = vadd.f32 %v7999_v27, %v7661_v25  ;;  %v14767_v25 = vld [vmem:[#allocation93_spill] sm:$0xff]  ;;  %v14772_v8 = vld [vmem:[#allocation100_spill] sm:$0xff] }
 0x2ed   : > { %14732 = vst [vmem:[#allocation241_spill] sm:$0xff] %v8207_v61  ;;  %14735 = vst [vmem:[#allocation70_spill] sm:$0xff] %v8211_v2  ;;  %v14745_v61 = vld [vmem:[#allocation84_spill] sm:$0xff]  ;;  %v14747_v2 = vld [vmem:[#allocation86_spill] sm:$0xff]  ;;  %2379 = vrot.lane.b32.xlu0 %v2305_v30, %s6344_s6 }
 0x2ee   : > { %14737 = vst [vmem:[#allocation74_spill] sm:$0xff] %v8215_v1  ;;  %14739 = vst [vmem:[#allocation77_spill] sm:$0xff] %v8219_v21  ;;  %v8231_v48 = vmul.f32 %v14745_v61, %v14722_v58  ;;  %v8235_v20 = vmul.f32 %v14747_v2, %v14725_v42  ;;  %v14755_v61 = vld [vmem:[#allocation81_spill] sm:$0xff]  ;;  %v8255_v2 = vmax.f32 %v2506_v50, %v8164_v5  ;;  %v14761_v50 = vld [vmem:[#allocation83_spill] sm:$0xff]  ;;  %2377 = vrot.lane.b32.xlu1 %v8100_v10, %s6344_s6 }
 0x2ef   : > { %14742 = vst [vmem:[#allocation89_spill] sm:$0xff] %v8223_v44  ;;  %14744 = vst [vmem:[#allocation78_spill] sm:$0xff] %v8227_v9  ;;  %v8252_v29 = vmul.f32 %v14741_v55, %v14755_v61  ;;  %v8269_v61 = vpop.permute.xlu0 %1999  ;;  %v8273_v5 = vmul.f32 %v14729_v11, %v14761_v50  ;;  %v8290_v21 = vmul.f32 %v14741_v55, %v14763_v56  ;;  %v14771_v56 = vld [vmem:[#allocation22_spill] sm:$0xff]  ;;  %v14777_v30 = vld [vmem:[#allocation23_spill] sm:$0xff] }
 0x2f0   : > { %14746 = vst [vmem:[#allocation84_spill] sm:$0xff] %v8231_v48  ;;  %14748 = vst [vmem:[#allocation86_spill] sm:$0xff] %v8235_v20  ;;  %v8286_v9 = vmax.f32 %v2491_v28, %v8231_v48  ;;  %v8293_v50 = vmax.f32 %v2507_v19, %v8235_v20  ;;  %v14769_v28 = vld [vmem:[#allocation96_spill] sm:$0xff]  ;;  %v8310_v1 = vmul.f32 %v14772_v8, %v14771_v56  ;;  %v14774_v19 = vld [vmem:[#allocation107_spill] sm:$0xff] }
 0x2f1   : > { %14750 = vst [vmem:[#allocation88_spill] sm:$0xff] %v8239_v17  ;;  %14751 = vst [vmem:[#allocation242_spill] sm:$0xff] %v8241_v52  ;;  %v14758_v52 = vld [vmem:[#allocation91_spill] sm:$0xff]  ;;  %v2508_v31 = vmax.f32 %v8223_v44, %v8252_v29  ;;  %v8297_v44 = vpop.permute.xlu1 %1997  ;;  %v8306_v48 = vmul.f32 %v14704_v16, %v14769_v28  ;;  %v14775_v20 = vld [vmem:[#allocation20_spill] sm:$0xff]  ;;  %v8327_v28 = vmax.f32 %v2492_v32, %v8273_v5  ;;  %2383 = vrot.lane.b32.xlu0 %v2307_v34, %s6344_s6 }
 0x2f2   : > { %14754 = vst [vmem:[#allocation75_spill] sm:$0xff] %v8248_v26  ;;  %14756 = vst [vmem:[#allocation81_spill] sm:$0xff] %v8252_v29  ;;  %v8265_v35 = vmul.f32 %v14758_v52, %v14681_v23  ;;  %v8283_v52 = vadd.f32 %v7999_v27, %v7687_v53  ;;  %v8302_v53 = vmul.f32 %v14685_v18, %v14767_v25  ;;  %v14780_v25 = vld [vmem:[#allocation111_spill] sm:$0xff]  ;;  %v14781_v37 = vld [vmem:[#allocation21_spill] sm:$0xff]  ;;  %2381 = vrot.lane.b32.xlu1 %v8142_v13, %s6344_s6 }
 0x2f3   : > { %14757 = vst [vmem:[#allocation243_spill] sm:$0xff] %v8255_v2  ;;  %14760 = vst [vmem:[#allocation244_spill] sm:$0xff] %v8269_v61  ;;  %v8314_v61 = vmul.f32 %v14775_v20, %v14774_v19  ;;  %v8324_v59 = vmul.f32 %v14781_v37, %v14780_v25  ;;  %v8331_v8 = vpop.permute.xlu0 %2003  ;;  %v14784_v19 = vld [vmem:[#allocation95_spill] sm:$0xff]  ;;  %v8346_v32 = vmax.f32 %v2508_v31, %v8290_v21 }
 0x2f4   : > { %14759 = vst [vmem:[#allocation91_spill] sm:$0xff] %v8265_v35  ;;  %14762 = vst [vmem:[#allocation83_spill] sm:$0xff] %v8273_v5  ;;  %v8335_v16 = vmul.f32 %v14784_v19, %v14771_v56  ;;  %v14786_v29 = vld [vmem:[#allocation99_spill] sm:$0xff]  ;;  %v14788_v35 = vld [vmem:[#allocation104_spill] sm:$0xff] }
 0x2f5   : > { %14764 = vst [vmem:[#allocation85_spill] sm:$0xff] %v8290_v21  ;;  %14765 = vst [vmem:[#allocation245_spill] sm:$0xff] %v8293_v50  ;;  %v8343_v25 = vmul.f32 %v14788_v35, %v14771_v56  ;;  %v14791_v5 = vld [vmem:[#allocation98_spill] sm:$0xff]  ;;  %v8364_v35 = vpop.permute.xlu1 %2001  ;;  %v14800_v21 = vld [vmem:[#allocation103_spill] sm:$0xff]  ;;  %2387 = vrot.lane.b32.xlu0 %v8045_v41, %s6344_s6 }
 0x2f6   : > { %14766 = vst [vmem:[#allocation246_spill] sm:$0xff] %v8297_v44  ;;  %14768 = vst [vmem:[#allocation93_spill] sm:$0xff] %v8302_v53  ;;  %v14778_v44 = vld [vmem:[#allocation102_spill] sm:$0xff]  ;;  %v8350_v10 = vmul.f32 %v14791_v5, %v14777_v30  ;;  %v14802_v5 = vld [vmem:[#allocation113_spill] sm:$0xff]  ;;  %2385 = vrot.lane.b32.xlu1 %v8177_v15, %s6344_s6 }
 0x2f7   : > { %14770 = vst [vmem:[#allocation96_spill] sm:$0xff] %v8306_v48  ;;  %14773 = vst [vmem:[#allocation100_spill] sm:$0xff] %v8310_v1  ;;  %v8320_v23 = vmul.f32 %v14778_v44, %v14777_v30  ;;  %v8339_v44 = vmul.f32 %v14775_v20, %v14786_v29  ;;  %v14795_v19 = vld [vmem:[#allocation106_spill] sm:$0xff]  ;;  %v14797_v29 = vld [vmem:[#allocation109_spill] sm:$0xff]  ;;  %v8385_v53 = vmul.f32 %v14802_v5, %v14725_v42  ;;  %v8389_v31 = vpop.permute.xlu0 %2007 }
 0x2f8   : > { %14776 = vst [vmem:[#allocation107_spill] sm:$0xff] %v8314_v61  ;;  %14782 = vst [vmem:[#allocation111_spill] sm:$0xff] %v8324_v59  ;;  %v8358_v17 = vmul.f32 %v14795_v19, %v14777_v30  ;;  %v8362_v43 = vmul.f32 %v14797_v29, %v14722_v58  ;;  %v14823_v48 = vld [vmem:[#allocation126_spill] sm:$0xff]  ;;  %v14826_v41 = vld [vmem:[#allocation117_spill] sm:$0xff] }
 0x2f9   : > { %14779 = vst [vmem:[#allocation102_spill] sm:$0xff] %v8320_v23  ;;  %14783 = vst [vmem:[#allocation247_spill] sm:$0xff] %v8331_v8  ;;  %v14793_v8 = vld [vmem:[#allocation101_spill] sm:$0xff]  ;;  %v2494_v19 = vmax.f32 %v8314_v61, %v8339_v44  ;;  %v2509_v29 = vmax.f32 %v8350_v10, %v8320_v23  ;;  %v14837_v15 = vld [vmem:[#allocation120_spill] sm:$0xff]  ;;  %2391 = vrot.lane.b32.xlu0 %v8051_v57, %s6344_s6 }
 0x2fa   : > { %14785 = vst [vmem:[#allocation95_spill] sm:$0xff] %v8335_v16  ;;  %14787 = vst [vmem:[#allocation99_spill] sm:$0xff] %v8339_v44  ;;  %v8354_v62 = vmul.f32 %v14781_v37, %v14793_v8  ;;  %v2493_v8 = vmax.f32 %v8335_v16, %v8310_v1  ;;  %v14805_v23 = vld [vmem:[#allocation105_spill] sm:$0xff]  ;;  %2389 = vrot.lane.b32.xlu1 %v8055_v51, %s6344_s6 }
 0x2fb   : > { %14789 = vst [vmem:[#allocation104_spill] sm:$0xff] %v8343_v25  ;;  %14790 = vst [vmem:[#allocation248_spill] sm:$0xff] %v8346_v32  ;;  %v8396_v1 = vmul.f32 %v14781_v37, %v14805_v23  ;;  %v8407_v61 = vmax.f32 %v2509_v29, %v8358_v17  ;;  %v14815_v23 = vld [vmem:[#allocation27_spill] sm:$0xff]  ;;  %v14816_v16 = vld [vmem:[#allocation121_spill] sm:$0xff] }
 0x2fc   : > { %14792 = vst [vmem:[#allocation98_spill] sm:$0xff] %v8350_v10  ;;  %14794 = vst [vmem:[#allocation101_spill] sm:$0xff] %v8354_v62  ;;  %v2510_v34 = vmax.f32 %v8324_v59, %v8354_v62  ;;  %v8392_v44 = vmax.f32 %v2493_v8, %v8343_v25  ;;  %v14809_v62 = vld [vmem:[#allocation26_spill] sm:$0xff]  ;;  %v14810_v59 = vld [vmem:[#allocation119_spill] sm:$0xff] }
 0x2fd   : > { %14796 = vst [vmem:[#allocation106_spill] sm:$0xff] %v8358_v17  ;;  %14798 = vst [vmem:[#allocation109_spill] sm:$0xff] %v8362_v43  ;;  %v8404_v5 = vmul.f32 %v14810_v59, %v14809_v62  ;;  %v14813_v8 = vld [vmem:[#allocation116_spill] sm:$0xff]  ;;  %v14819_v59 = vld [vmem:[#allocation115_spill] sm:$0xff]  ;;  %2395 = vrot.lane.b32.xlu0 %v8058_v33, %s6344_s6 }
 0x2fe   : > { %14799 = vst [vmem:[#allocation249_spill] sm:$0xff] %v8364_v35  ;;  %v8379_v35 = vmul.f32 %v14775_v20, %v14800_v21  ;;  %14803 = vst [vmem:[#allocation113_spill] sm:$0xff] %v8385_v53  ;;  %v14807_v21 = vld [vmem:[#allocation114_spill] sm:$0xff]  ;;  %v8413_v25 = vmul.f32 %v14741_v55, %v14813_v8  ;;  %v8425_v29 = vmul.f32 %v14819_v59, %v14809_v62  ;;  %v14821_v17 = vld [vmem:[#allocation123_spill] sm:$0xff]  ;;  %2393 = vrot.lane.b32.xlu1 %v8062_v40, %s6344_s6 }
 0x2ff   : > { %14804 = vst [vmem:[#allocation250_spill] sm:$0xff] %v8389_v31  ;;  %14806 = vst [vmem:[#allocation105_spill] sm:$0xff] %v8396_v1  ;;  %v8400_v10 = vmul.f32 %v14729_v11, %v14807_v21  ;;  %v8417_v31 = vmul.f32 %v14816_v16, %v14815_v23  ;;  %v8419_v21 = vpop.permute.xlu1 %2005  ;;  %v8429_v13 = vmul.f32 %v14821_v17, %v14809_v62  ;;  %v14824_v8 = vld [vmem:[#allocation24_spill] sm:$0xff]  ;;  %v14829_v42 = vld [vmem:[#allocation25_spill] sm:$0xff] }
 0x300   : > { %14801 = vst [vmem:[#allocation103_spill] sm:$0xff] %v8379_v35  ;;  %14811 = vst [vmem:[#allocation119_spill] sm:$0xff] %v8404_v5  ;;  %v8433_v2 = vmul.f32 %v14824_v8, %v14823_v48  ;;  %v8436_v16 = vmax.f32 %v2494_v19, %v8379_v35  ;;  %v8442_v55 = vmul.f32 %v14826_v41, %v14815_v23  ;;  %v14828_v59 = vld [vmem:[#allocation128_spill] sm:$0xff]  ;;  %v8453_v48 = vpop.permute.xlu0 %2011 }
 0x301   : > { %14808 = vst [vmem:[#allocation114_spill] sm:$0xff] %v8400_v10  ;;  %14812 = vst [vmem:[#allocation251_spill] sm:$0xff] %v8407_v61  ;;  %v8446_v49 = vmul.f32 %v14829_v42, %v14828_v59  ;;  %v8449_v17 = vmax.f32 %v2510_v34, %v8396_v1  ;;  %v2495_v41 = vmax.f32 %v8425_v29, %v8404_v5  ;;  %v14835_v59 = vld [vmem:[#allocation125_spill] sm:$0xff]  ;;  %v14874_v40 = vld [vmem:[#allocation132_spill] sm:$0xff]  ;;  %2399 = vrot.lane.b32.xlu0 %v8069_v7, %s6344_s6 }
 0x302   : > { %14814 = vst [vmem:[#allocation116_spill] sm:$0xff] %v8413_v25  ;;  %14817 = vst [vmem:[#allocation121_spill] sm:$0xff] %v8417_v31  ;;  %v8465_v53 = vmul.f32 %v14835_v59, %v14815_v23  ;;  %v8471_v1 = vmul.f32 %v14829_v42, %v14837_v15  ;;  %v2511_v19 = vmax.f32 %v8442_v55, %v8417_v31  ;;  %v14842_v15 = vld [vmem:[#allocation127_spill] sm:$0xff]  ;;  %v14844_v31 = vld [vmem:[#allocation129_spill] sm:$0xff] }
 0x303   : > { %14818 = vst [vmem:[#allocation252_spill] sm:$0xff] %v8419_v21  ;;  %14820 = vst [vmem:[#allocation115_spill] sm:$0xff] %v8425_v29  ;;  %v14833_v21 = vld [vmem:[#allocation118_spill] sm:$0xff]  ;;  %v8479_v50 = vpop.permute.xlu1 %2009  ;;  %v8484_v59 = vmax.f32 %v2495_v41, %v8429_v13  ;;  %v8490_v5 = vmul.f32 %v14842_v15, %v14771_v56  ;;  %v14848_v41 = vld [vmem:[#allocation29_spill] sm:$0xff] }
 0x304   : > { %14822 = vst [vmem:[#allocation123_spill] sm:$0xff] %v8429_v13  ;;  %14825 = vst [vmem:[#allocation126_spill] sm:$0xff] %v8433_v2  ;;  %v8459_v35 = vmul.f32 %v14824_v8, %v14833_v21  ;;  %v2512_v57 = vmax.f32 %v8446_v49, %v8471_v1  ;;  %v8504_v13 = vmul.f32 %v7364_v47, %v14848_v41  ;;  %v14885_v7 = vld [vmem:[#allocation33_spill] sm:$0xff]  ;;  %v14902_v25 = vld [vmem:[#allocation140_spill] sm:$0xff] }
 0x305   : > { %14827 = vst [vmem:[#allocation117_spill] sm:$0xff] %v8442_v55  ;;  %14830 = vst [vmem:[#allocation128_spill] sm:$0xff] %v8446_v49  ;;  %v8494_v55 = vmul.f32 %v14844_v31, %v14777_v30  ;;  %v8512_v31 = vpop.permute.xlu0 %2015  ;;  %v8515_v15 = vmax.f32 %v2511_v19, %v8465_v53  ;;  %v8535_v19 = vmul.f32 %v7384_v12, %v14848_v41  ;;  %v14865_v12 = vld [vmem:[#allocation30_spill] sm:$0xff]  ;;  %v14906_v32 = vld [vmem:[#allocation144_spill] sm:$0xff] }
 0x306   : > { %14831 = vst [vmem:[#allocation253_spill] sm:$0xff] %v8449_v17  ;;  %14832 = vst [vmem:[#allocation254_spill] sm:$0xff] %v8453_v48  ;;  %v14839_v48 = vld [vmem:[#allocation122_spill] sm:$0xff]  ;;  %v2496_v34 = vmax.f32 %v8433_v2, %v8459_v35  ;;  %v14900_v17 = vld [vmem:[#allocation139_spill] sm:$0xff] }
 0x307   : > { %14834 = vst [vmem:[#allocation118_spill] sm:$0xff] %v8459_v35  ;;  %14836 = vst [vmem:[#allocation125_spill] sm:$0xff] %v8465_v53  ;;  %v8477_v21 = vmul.f32 %v14824_v8, %v14839_v48  ;;  %v14846_v48 = vld [vmem:[#allocation124_spill] sm:$0xff]  ;;  %v14850_v35 = vld [vmem:[#allocation31_spill] sm:$0xff]  ;;  %v8545_v49 = vpop.permute.xlu1 %2013 }
 0x308   : > { %14838 = vst [vmem:[#allocation120_spill] sm:$0xff] %v8471_v1  ;;  %14841 = vst [vmem:[#allocation255_spill] sm:$0xff] %v8479_v50  ;;  %v8498_v29 = vmul.f32 %v14829_v42, %v14846_v48  ;;  %v8508_v2 = vmul.f32 %v7374_v22, %v14850_v35  ;;  %v14854_v48 = vld [vmem:[#allocation130_spill] sm:$0xff]  ;;  %v14856_v1 = vld [vmem:[#allocation131_spill] sm:$0xff]  ;;  %v8527_v22 = vmul.f32 %v14781_v37, %v7349_v45 }
 0x309   : > { %14840 = vst [vmem:[#allocation122_spill] sm:$0xff] %v8477_v21  ;;  %14843 = vst [vmem:[#allocation127_spill] sm:$0xff] %v8490_v5  ;;  %v8519_v50 = vmul.f32 %v14775_v20, %v14854_v48  ;;  %v8523_v47 = vmul.f32 %v14856_v1, %v14848_v41  ;;  %v8531_v51 = vmul.f32 %v7354_v14, %v14850_v35  ;;  %v14862_v53 = vld [vmem:[#allocation28_spill] sm:$0xff]  ;;  %v14942_v37 = vld [vmem:[#allocation149_spill] sm:$0xff] }
 0x30a   : > { %14845 = vst [vmem:[#allocation129_spill] sm:$0xff] %v8494_v55  ;;  %14847 = vst [vmem:[#allocation124_spill] sm:$0xff] %v8498_v29  ;;  %v8539_v48 = vmul.f32 %v7394_v4, %v14850_v35  ;;  %v8543_v1 = vmul.f32 %v14862_v53, %v7399_v6  ;;  %v8558_v4 = vmax.f32 %v2496_v34, %v8477_v21  ;;  %v14908_v55 = vld [vmem:[#allocation145_spill] sm:$0xff] }
 0x30b   : > { %14849 = vst [vmem:[#allocation256_spill] sm:$0xff] %v8504_v13  ;;  %14851 = vst [vmem:[#allocation257_spill] sm:$0xff] %v8508_v2  ;;  %v8562_v6 = vmul.f32 %v14862_v53, %v7359_v24  ;;  %v2497_v33 = vmax.f32 %v8523_v47, %v8504_v13  ;;  %v2513_v45 = vmax.f32 %v8531_v51, %v8508_v2  ;;  %v8599_v2 = vpop.permute.xlu1 %2017 }
 0x30c   : > { %14852 = vst [vmem:[#allocation258_spill] sm:$0xff] %v8512_v31  ;;  %14853 = vst [vmem:[#allocation259_spill] sm:$0xff] %v8515_v15  ;;  %v8555_v31 = vmul.f32 %v14865_v12, %v7409_v3  ;;  %v8573_v3 = vpop.permute.xlu0 %2019  ;;  %v8581_v14 = vmul.f32 %v14865_v12, %v7369_v38  ;;  %v8585_v21 = vmul.f32 %v14862_v53, %v7379_v63  ;;  %v14877_v38 = vld [vmem:[#allocation133_spill] sm:$0xff] }
 0x30d   : > { %14855 = vst [vmem:[#allocation130_spill] sm:$0xff] %v8519_v50  ;;  %14857 = vst [vmem:[#allocation131_spill] sm:$0xff] %v8523_v47  ;;  %v8595_v34 = vmax.f32 %v2513_v45, %v8539_v48  ;;  %v2498_v24 = vmax.f32 %v8543_v1, %v8562_v6  ;;  %v8605_v63 = vmul.f32 %v14877_v38, %v14809_v62  ;;  %v14881_v45 = vld [vmem:[#allocation32_spill] sm:$0xff]  ;;  %v14887_v38 = vld [vmem:[#allocation35_spill] sm:$0xff] }
 0x30e   : > { %14858 = vst [vmem:[#allocation260_spill] sm:$0xff] %v8527_v22  ;;  %14859 = vst [vmem:[#allocation261_spill] sm:$0xff] %v8531_v51  ;;  %v8623_v51 = vmul.f32 %v7444_v60, %v14885_v7  ;;  %v14892_v47 = vld [vmem:[#allocation227_spill] sm:$0xff] }
 0x30f   : > { %14860 = vst [vmem:[#allocation262_spill] sm:$0xff] %v8535_v19  ;;  %14861 = vst [vmem:[#allocation263_spill] sm:$0xff] %v8539_v48  ;;  %v8615_v48 = vmul.f32 %v14881_v45, %v7479_v0  ;;  %2397 = vrot.lane.b32.xlu1 %v14892_v47, %s6344_s6  ;;  %v8669_v61 = vpop.permute.xlu1 %2021 }
 0x310   : > { %14863 = vst [vmem:[#allocation264_spill] sm:$0xff] %v8543_v1  ;;  %14864 = vst [vmem:[#allocation265_spill] sm:$0xff] %v8545_v49  ;;  %v8569_v49 = vmax.f32 %v2512_v57, %v8498_v29  ;;  %v8588_v57 = vmax.f32 %v2497_v33, %v8535_v19  ;;  %v8592_v29 = vmul.f32 %v14865_v12, %v14874_v40  ;;  %v14879_v40 = vld [vmem:[#allocation134_spill] sm:$0xff]  ;;  %v8635_v0 = vpop.permute.xlu0 %2023 }
 0x311   : > { %14866 = vst [vmem:[#allocation266_spill] sm:$0xff] %v8555_v31  ;;  %14867 = vst [vmem:[#allocation267_spill] sm:$0xff] %v8558_v4  ;;  %v2514_v33 = vmax.f32 %v8555_v31, %v8581_v14  ;;  %v8611_v19 = vmul.f32 %v14879_v40, %v14815_v23  ;;  %v8627_v1 = vmul.f32 %v7454_v36, %v14887_v38  ;;  %v14890_v31 = vld [vmem:[#allocation34_spill] sm:$0xff]  ;;  %v14958_v4 = vld [vmem:[#allocation155_spill] sm:$0xff] }
 0x312   : > { %14868 = vst [vmem:[#allocation268_spill] sm:$0xff] %v8562_v6  ;;  %14869 = vst [vmem:[#allocation269_spill] sm:$0xff] %v8569_v49  ;;  %v14883_v6 = vld [vmem:[#allocation135_spill] sm:$0xff]  ;;  %v14898_v36 = vld [vmem:[#allocation138_spill] sm:$0xff]  ;;  %v8655_v47 = vmul.f32 %v14890_v31, %v14902_v25 }
 0x313   : > { %14870 = vst [vmem:[#allocation270_spill] sm:$0xff] %v8573_v3  ;;  %14871 = vst [vmem:[#allocation271_spill] sm:$0xff] %v8581_v14  ;;  %v8619_v13 = vmul.f32 %v14824_v8, %v14883_v6  ;;  %v14889_v14 = vld [vmem:[#allocation146_spill] sm:$0xff]  ;;  %v14894_v6 = vld [vmem:[#allocation136_spill] sm:$0xff]  ;;  %v8647_v22 = vmul.f32 %v14898_v36, %v14887_v38  ;;  %v8667_v36 = vmul.f32 %v14908_v55, %v14848_v41 }
 0x314   : > { %14872 = vst [vmem:[#allocation272_spill] sm:$0xff] %v8585_v21  ;;  %14873 = vst [vmem:[#allocation273_spill] sm:$0xff] %v8588_v57  ;;  %v8631_v40 = vmul.f32 %v14890_v31, %v14889_v14  ;;  %v14896_v3 = vld [vmem:[#allocation137_spill] sm:$0xff]  ;;  %v8651_v14 = vmul.f32 %v14881_v45, %v14900_v17  ;;  %v8689_v25 = vmax.f32 %v2514_v33, %v8592_v29  ;;  %v14937_v49 = vld [vmem:[#allocation163_spill] sm:$0xff] }
 0x315   : > { %14875 = vst [vmem:[#allocation132_spill] sm:$0xff] %v8592_v29  ;;  %14876 = vst [vmem:[#allocation274_spill] sm:$0xff] %v8599_v2  ;;  %v8639_v2 = vmul.f32 %v14894_v6, %v14885_v7  ;;  %v8643_v60 = vmul.f32 %v14829_v42, %v14896_v3  ;;  %v8663_v3 = vmul.f32 %v14906_v32, %v14887_v38  ;;  %v14911_v17 = vld [vmem:[#allocation229_spill] sm:$0xff]  ;;  %v718_v57 = vld [vmem:[#allocation2 + $0x19a] sm:$0xff] }
 0x316   : > { %14878 = vst [vmem:[#allocation133_spill] sm:$0xff] %v8605_v63  ;;  %14880 = vst [vmem:[#allocation134_spill] sm:$0xff] %v8611_v19  ;;  %2403 = vrot.lane.b32.xlu0 %v14911_v17, %s6344_s6  ;;  %v2500_v42 = vmax.f32 %v8615_v48, %v8651_v14  ;;  %v8680_v32 = vmax.f32 %v2498_v24, %v8585_v21  ;;  %v2516_v17 = vmax.f32 %v8631_v40, %v8655_v47  ;;  %v8693_v19 = vpop.permute.xlu0 %2027  ;;  %v14930_v21 = vld [vmem:[#allocation158_spill] sm:$0xff] }
 0x317   : > { %14882 = vst [vmem:[#allocation275_spill] sm:$0xff] %v8615_v48  ;;  %14884 = vst [vmem:[#allocation135_spill] sm:$0xff] %v8619_v13  ;;  %v2499_v55 = vmax.f32 %v8639_v2, %v8623_v51 }
 0x318   : > { %14886 = vst [vmem:[#allocation276_spill] sm:$0xff] %v8623_v51  ;;  %14888 = vst [vmem:[#allocation277_spill] sm:$0xff] %v8627_v1  ;;  %v14917_v51 = vld [vmem:[#allocation148_spill] sm:$0xff] }
 0x319   : > { %14891 = vst [vmem:[#allocation146_spill] sm:$0xff] %v8631_v40  ;;  %14893 = vst [vmem:[#allocation227_spill] sm:$0xff] %v8635_v0  ;;  %v14904_v0 = vld [vmem:[#allocation142_spill] sm:$0xff]  ;;  %v8719_v40 = vpop.permute.xlu1 %2025 }
 0x31a   : > { %14895 = vst [vmem:[#allocation136_spill] sm:$0xff] %v8639_v2  ;;  %14897 = vst [vmem:[#allocation137_spill] sm:$0xff] %v8643_v60  ;;  %v8659_v6 = vmul.f32 %v14904_v0, %v14885_v7  ;;  %v14913_v0 = vld [vmem:[#allocation228_spill] sm:$0xff]  ;;  %v14931_v2 = vld [vmem:[#allocation37_spill] sm:$0xff] }
 0x31b   : > { %14899 = vst [vmem:[#allocation138_spill] sm:$0xff] %v8647_v22  ;;  %14901 = vst [vmem:[#allocation139_spill] sm:$0xff] %v8651_v14  ;;  %2401 = vrot.lane.b32.xlu1 %v14913_v0, %s6344_s6  ;;  %v14915_v14 = vld [vmem:[#allocation141_spill] sm:$0xff]  ;;  %v14919_v0 = vld [vmem:[#allocation143_spill] sm:$0xff] }
 0x31c   : > { %14903 = vst [vmem:[#allocation140_spill] sm:$0xff] %v8655_v47  ;;  %14905 = vst [vmem:[#allocation142_spill] sm:$0xff] %v8659_v6  ;;  %v8705_v47 = vmul.f32 %v14862_v53, %v14917_v51  ;;  %v8708_v33 = vmax.f32 %v2499_v55, %v8659_v6  ;;  %v8712_v29 = vmul.f32 %v14890_v31, %v14919_v0  ;;  %v14923_v51 = vld [vmem:[#allocation39_spill] sm:$0xff] }
 0x31d   : > { %14907 = vst [vmem:[#allocation144_spill] sm:$0xff] %v8663_v3  ;;  %14909 = vst [vmem:[#allocation145_spill] sm:$0xff] %v8667_v36  ;;  %v14926_v55 = vld [vmem:[#allocation151_spill] sm:$0xff]  ;;  %v14960_v36 = vld [vmem:[#allocation157_spill] sm:$0xff] }
 0x31e   : > { %14910 = vst [vmem:[#allocation278_spill] sm:$0xff] %v8669_v61  ;;  %14912 = vst [vmem:[#allocation229_spill] sm:$0xff] %v8680_v32  ;;  %v2515_v61 = vmax.f32 %v8647_v22, %v8627_v1  ;;  %v8701_v1 = vmul.f32 %v14881_v45, %v14915_v14  ;;  %v14922_v14 = vld [vmem:[#allocation231_spill] sm:$0xff]  ;;  %v8729_v6 = vmul.f32 %v14926_v55, %v14923_v51  ;;  %v8787_v32 = vpop.permute.xlu1 %2029 }
 0x31f   : > { %14914 = vst [vmem:[#allocation228_spill] sm:$0xff] %v8693_v19  ;;  %14918 = vst [vmem:[#allocation148_spill] sm:$0xff] %v8705_v47  ;;  %2407 = vrot.lane.b32.xlu0 %v14922_v14, %s6344_s6  ;;  %v14924_v22 = vld [vmem:[#allocation147_spill] sm:$0xff]  ;;  %v14933_v14 = vld [vmem:[#allocation160_spill] sm:$0xff]  ;;  %v8751_v55 = vmax.f32 %v2516_v17, %v8712_v29 }
 0x320   : > { %14916 = vst [vmem:[#allocation141_spill] sm:$0xff] %v8701_v1  ;;  %14920 = vst [vmem:[#allocation143_spill] sm:$0xff] %v8712_v29  ;;  %v8715_v24 = vmax.f32 %v2515_v61, %v8663_v3  ;;  %v8725_v48 = vmul.f32 %v14924_v22, %v14923_v51  ;;  %v8732_v0 = vmax.f32 %v2500_v42, %v8701_v1  ;;  %v14928_v61 = vld [vmem:[#allocation168_spill] sm:$0xff]  ;;  %v14934_v19 = vld [vmem:[#allocation43_spill] sm:$0xff] }
 0x321   : > { %14921 = vst [vmem:[#allocation279_spill] sm:$0xff] %v8719_v40  ;;  %14927 = vst [vmem:[#allocation147_spill] sm:$0xff] %v8729_v6  ;;  %v8736_v3 = vmul.f32 %v14753_v39, %v14928_v61  ;;  %v8740_v40 = vmul.f32 %v14931_v2, %v14930_v21  ;;  %v8744_v60 = vmul.f32 %v14934_v19, %v14933_v14  ;;  %v14936_v22 = vld [vmem:[#allocation11_spill] sm:$0xff]  ;;  %v14939_v42 = vld [vmem:[#allocation230_spill] sm:$0xff]  ;;  %v8755_v61 = vpop.permute.xlu0 %2163 }
 0x322   : > { %14925 = vst [vmem:[#allocation231_spill] sm:$0xff] %v8725_v48  ;;  %v8748_v15 = vmul.f32 %v14937_v49, %v14936_v22  ;;  %2405 = vrot.lane.b32.xlu1 %v14939_v42, %s6344_s6  ;;  %14940 = vst [vmem:[#allocation163_spill] sm:$0xff] %v8755_v61  ;;  %v14941_v1 = vld [vmem:[#allocation45_spill] sm:$0xff]  ;;  %v14946_v49 = vld [vmem:[#allocation164_spill] sm:$0xff] }
 0x323   : > { %14929 = vst [vmem:[#allocation151_spill] sm:$0xff] %v8736_v3  ;;  %14932 = vst [vmem:[#allocation168_spill] sm:$0xff] %v8740_v40  ;;  %v8761_v23 = vmul.f32 %v14942_v37, %v14941_v1  ;;  %v14944_v14 = vld [vmem:[#allocation153_spill] sm:$0xff]  ;;  %v8769_v17 = vmul.f32 %v14753_v39, %v14946_v49  ;;  %v14948_v29 = vld [vmem:[#allocation150_spill] sm:$0xff] }
 0x324   : > { %14935 = vst [vmem:[#allocation158_spill] sm:$0xff] %v8744_v60  ;;  %14938 = vst [vmem:[#allocation160_spill] sm:$0xff] %v8748_v15  ;;  %v8765_v30 = vmul.f32 %v14944_v14, %v14941_v1  ;;  %v8773_v42 = vmul.f32 %v14931_v2, %v14948_v29  ;;  %v14950_v61 = vld [vmem:[#allocation152_spill] sm:$0xff]  ;;  %v14952_v21 = vld [vmem:[#allocation161_spill] sm:$0xff]  ;;  %v2501_v29 = vmax.f32 %v8725_v48, %v8729_v6 }
 0x325   : > { %14943 = vst [vmem:[#allocation230_spill] sm:$0xff] %v8761_v23  ;;  %14947 = vst [vmem:[#allocation153_spill] sm:$0xff] %v8769_v17  ;;  %v8777_v13 = vmul.f32 %v14934_v19, %v14950_v61  ;;  %v8781_v37 = vmul.f32 %v14952_v21, %v14936_v22  ;;  %v14954_v47 = vld [vmem:[#allocation165_spill] sm:$0xff]  ;;  %v14957_v49 = vld [vmem:[#allocation235_spill] sm:$0xff]  ;;  %v8795_v61 = vmul.f32 %v14958_v4, %v14923_v51  ;;  %v8815_v48 = vpop.permute.xlu0 %2167 }
 0x326   : > { %14945 = vst [vmem:[#allocation149_spill] sm:$0xff] %v8765_v30  ;;  %14949 = vst [vmem:[#allocation164_spill] sm:$0xff] %v8773_v42  ;;  %v8785_v14 = vmul.f32 %v14954_v47, %v14936_v22  ;;  %2411 = vrot.lane.b32.xlu0 %v14957_v49, %s6344_s6  ;;  %v8799_v21 = vmul.f32 %v14960_v36, %v14941_v1  ;;  %v2504_v47 = vmax.f32 %v8736_v3, %v8769_v17  ;;  %v14962_v49 = vld [vmem:[#allocation159_spill] sm:$0xff]  ;;  %v14964_v36 = vld [vmem:[#allocation233_spill] sm:$0xff] }
 0x327   : > { %14951 = vst [vmem:[#allocation150_spill] sm:$0xff] %v8777_v13  ;;  %14953 = vst [vmem:[#allocation152_spill] sm:$0xff] %v8781_v37  ;;  %v8807_v50 = vmul.f32 %v14962_v49, %v14885_v7  ;;  %v2518_v6 = vmax.f32 %v8744_v60, %v8777_v13  ;;  %v2503_v4 = vmax.f32 %v8781_v37, %v8748_v15  ;;  %2409 = vrot.lane.b32.xlu1 %v14964_v36, %s6344_s6  ;;  %v14966_v3 = vld [vmem:[#allocation154_spill] sm:$0xff]  ;;  %v14972_v15 = vld [vmem:[#allocation156_spill] sm:$0xff] }
 0x328   : > { %14955 = vst [vmem:[#allocation161_spill] sm:$0xff] %v8785_v14  ;;  %14956 = vst [vmem:[#allocation165_spill] sm:$0xff] %v8787_v32  ;;  %v2502_v32 = vmax.f32 %v8740_v40, %v8773_v42  ;;  %v2517_v17 = vmax.f32 %v8761_v23, %v8765_v30  ;;  %v8821_v42 = vmul.f32 %v14931_v2, %v14966_v3  ;;  %v14968_v49 = vld [vmem:[#allocation162_spill] sm:$0xff]  ;;  %v14974_v30 = vld [vmem:[#allocation167_spill] sm:$0xff]  ;;  %v8842_v3 = vpop.permute.xlu1 %2165 }
 0x329   : > { %14959 = vst [vmem:[#allocation235_spill] sm:$0xff] %v8795_v61  ;;  %14961 = vst [vmem:[#allocation155_spill] sm:$0xff] %v8799_v21  ;;  %v8825_v40 = vmul.f32 %v14881_v45, %v14968_v49  ;;  %v14970_v13 = vld [vmem:[#allocation166_spill] sm:$0xff]  ;;  %v8833_v36 = vmul.f32 %v14934_v19, %v14972_v15  ;;  %v8836_v37 = vmax.f32 %v2503_v4, %v8785_v14  ;;  %v14977_v4 = vld [vmem:[#allocation169_spill] sm:$0xff] }
 0x32a   : > { %14963 = vst [vmem:[#allocation157_spill] sm:$0xff] %v8807_v50  ;;  %14965 = vst [vmem:[#allocation159_spill] sm:$0xff] %v8815_v48  ;;  %v8829_v60 = vmul.f32 %v14753_v39, %v14970_v13  ;;  %v8840_v23 = vmul.f32 %v14974_v30, %v14923_v51  ;;  %2415 = vrot.lane.b32.xlu0 %v8279_v46, %s6344_s6  ;;  %v2325_v49 = vadd.f32 %v7999_v27, %v718_v57  ;;  %v14979_v48 = vld [vmem:[#allocation38_spill] sm:$0xff] }
 0x32b   : > { %14967 = vst [vmem:[#allocation233_spill] sm:$0xff] %v8821_v42  ;;  %14969 = vst [vmem:[#allocation154_spill] sm:$0xff] %v8825_v40  ;;  %v8848_v13 = vmax.f32 %v2501_v29, %v8795_v61  ;;  %v8855_v14 = vmul.f32 %v14977_v4, %v14850_v35  ;;  %v8859_v30 = vmul.f32 %v14931_v2, %v14979_v48  ;;  %v8874_v4 = vpop.permute.xlu0 %2171  ;;  %v14992_v48 = vld [vmem:[#allocation10_spill] sm:$0xff] }
 0x32c   : > { %14971 = vst [vmem:[#allocation162_spill] sm:$0xff] %v8829_v60  ;;  %14973 = vst [vmem:[#allocation166_spill] sm:$0xff] %v8833_v36  ;;  %v8851_v15 = vmax.f32 %v2504_v47, %v8829_v60  ;;  %v8867_v57 = vmax.f32 %v2502_v32, %v8821_v42  ;;  %v8870_v29 = vmax.f32 %v2518_v6, %v8833_v36  ;;  %v14982_v47 = vld [vmem:[#allocation236_spill] sm:$0xff]  ;;  %v14986_v60 = vld [vmem:[#allocation49_spill] sm:$0xff] }
 0x32d   : > { %14975 = vst [vmem:[#allocation156_spill] sm:$0xff] %v8840_v23  ;;  %14976 = vst [vmem:[#allocation167_spill] sm:$0xff] %v8842_v3  ;;  %v8862_v3 = vmax.f32 %v2517_v17, %v8799_v21  ;;  %2413 = vrot.lane.b32.xlu1 %v14982_v47, %s6344_s6  ;;  %v14984_v17 = vld [vmem:[#allocation170_spill] sm:$0xff]  ;;  %v8884_v46 = vmul.f32 %v14865_v12, %v14986_v60  ;;  %v14988_v32 = vld [vmem:[#allocation36_spill] sm:$0xff]  ;;  %v2565_v47 = vmax.f32 %v8848_v13, %v8840_v23  ;;  %v8902_v12 = vpop.permute.xlu1 %2169 }
 0x32e   : > { %14978 = vst [vmem:[#allocation169_spill] sm:$0xff] %v8855_v14  ;;  %14980 = vst [vmem:[#allocation38_spill] sm:$0xff] %v8859_v30  ;;  %v8880_v21 = vmul.f32 %v14984_v17, %v14887_v38  ;;  %v8888_v6 = vmul.f32 %v14988_v32, %v14941_v1  ;;  %v719_v36 = vld [vmem:[#allocation2 + $0x1a2] sm:$0xff]  ;;  %v14990_v42 = vld [vmem:[#allocation71_spill] sm:$0xff]  ;;  %2419 = vrot.lane.b32.xlu0 %v2325_v49, %s6344_s6 }
 0x32f   : > { %14981 = vst [vmem:[#allocation280_spill] sm:$0xff] %v8870_v29  ;;  %14983 = vst [vmem:[#allocation236_spill] sm:$0xff] %v8874_v4  ;;  %v8894_v61 = vmul.f32 %v14890_v31, %v14990_v42  ;;  %v14993_v4 = vld [vmem:[#allocation48_spill] sm:$0xff]  ;;  %v14995_v38 = vld [vmem:[#allocation70_spill] sm:$0xff]  ;;  %v2326_v13 = vadd.f32 %v7999_v27, %v719_v36 }
 0x330   : > { %14985 = vst [vmem:[#allocation170_spill] sm:$0xff] %v8880_v21  ;;  %14987 = vst [vmem:[#allocation49_spill] sm:$0xff] %v8884_v46  ;;  %v8898_v17 = vmul.f32 %v14993_v4, %v14992_v48  ;;  %v2567_v60 = vmax.f32 %v8836_v37, %v14995_v38  ;;  %v14997_v23 = vld [vmem:[#allocation92_spill] sm:$0xff]  ;;  %v14999_v48 = vld [vmem:[#allocation69_spill] sm:$0xff] }
 0x331   : > { %14989 = vst [vmem:[#allocation36_spill] sm:$0xff] %v8888_v6  ;;  %14991 = vst [vmem:[#allocation71_spill] sm:$0xff] %v8894_v61  ;;  %v8911_v42 = vmul.f32 %v14934_v19, %v14997_v23  ;;  %v8917_v37 = vmul.f32 %v14999_v48, %v14676_v54  ;;  %v15001_v38 = vld [vmem:[#allocation110_spill] sm:$0xff]  ;;  %2417 = vrot.lane.b32.xlu1 %v8283_v52, %s6344_s6  ;;  %v8929_v23 = vpop.permute.xlu0 %2175  ;;  %v15012_v4 = vld [vmem:[#allocation108_spill] sm:$0xff]  ;;  %v8958_v6 = vpop.permute.xlu1 %2173 }
 0x332   : > { %14994 = vst [vmem:[#allocation48_spill] sm:$0xff] %v8898_v17  ;;  %14996 = vst [vmem:[#allocation281_spill] sm:$0xff] %v8902_v12  ;;  %v15002_v12 = vld [vmem:[#allocation8_spill] sm:$0xff]  ;;  %v15004_v32 = vld [vmem:[#allocation90_spill] sm:$0xff]  ;;  %v8952_v21 = vmul.f32 %v15012_v4, %v14771_v56 }
 0x333   : > { %14998 = vst [vmem:[#allocation92_spill] sm:$0xff] %v8911_v42  ;;  %15000 = vst [vmem:[#allocation69_spill] sm:$0xff] %v8917_v37  ;;  %v8921_v49 = vmul.f32 %v15002_v12, %v15001_v38  ;;  %v8925_v14 = vmul.f32 %v15004_v32, %v14722_v58  ;;  %v15007_v12 = vld [vmem:[#allocation171_spill] sm:$0xff]  ;;  %v15014_v48 = vld [vmem:[#allocation6_spill] sm:$0xff] }
 0x334   : > { %15006 = vst [vmem:[#allocation282_spill] sm:$0xff] %v8929_v23  ;;  %v8940_v32 = vmul.f32 %v14685_v18, %v15007_v12  ;;  %v15009_v23 = vld [vmem:[#allocation223_spill] sm:$0xff]  ;;  %v8956_v38 = vmul.f32 %v14729_v11, %v15014_v48  ;;  %15016 = vst [vmem:[#allocation6_spill] sm:$0xff] %v8958_v6  ;;  %v6173_v12 = vld [vmem:[#allocation2] sm:$0xff] }
 0x335   : > { %15003 = vst [vmem:[#allocation110_spill] sm:$0xff] %v8921_v49  ;;  %15005 = vst [vmem:[#allocation90_spill] sm:$0xff] %v8925_v14  ;;  %v15010_v58 = vld [vmem:[#allocation67_spill] sm:$0xff]  ;;  %2903 = vrot.lane.b32.xlu0 %v6173_v12, %s6345_s11  ;;  %v15021_v48 = vld [vmem:[#allocation174_spill] sm:$0xff]  ;;  %2421 = vrot.lane.b32.xlu1 %v2326_v13, %s6344_s6  ;;  %v15042_v13 = vmax.f32 %v8392_v44, %v8490_v5  ;;  %v15049_v44 = vmax.f32 %v8484_v59, %v8605_v63  ;;  %s6287_s6 = scalar_lea.vmem %s6286_s5, 8192 }
 0x336   : > { %15008 = vst [vmem:[#allocation171_spill] sm:$0xff] %v8940_v32  ;;  %v15011_v27 = vmax.f32 %v15009_v23, %v15010_v58  ;;  %15013 = vst [vmem:[#allocation223_spill] sm:$0xff] %v8952_v21  ;;  %v15017_v23 = vld [vmem:[#allocation172_spill] sm:$0xff]  ;;  %v8973_v58 = vmul.f32 %v15021_v48, %v14848_v41  ;;  %v15023_v6 = vld [vmem:[#allocation239_spill] sm:$0xff]  ;;  %p6289_p1 = scmp.lt.s32.totalorder %s6287_s6, %s6281_s4 }
 0x337   : > { %15015 = vst [vmem:[#allocation108_spill] sm:$0xff] %v8956_v38  ;;  %v15024_v11 = vld [vmem:[#allocation88_spill] sm:$0xff]  ;;  %v15030_v48 = vld [vmem:[#allocation41_spill] sm:$0xff]  ;;  %v15057_v59 = vld [vmem:[#allocation267_spill] sm:$0xff] }
 0x338   : > { %v8948_v36 = vmax.f32 %v15011_v27, %v8898_v17  ;;  %v8965_v27 = vmul.f32 %v15017_v23, %v14809_v62  ;;  %v15019_v17 = vld [vmem:[#allocation173_spill] sm:$0xff]  ;;  %15022 = vst [vmem:[#allocation174_spill] sm:$0xff] %v8973_v58  ;;  %v15025_v56 = vmax.f32 %v15023_v6, %v15024_v11  ;;  %v15026_v52 = vld [vmem:[#allocation224_spill] sm:$0xff]  ;;  %v8995_v41 = vmul.f32 %v14824_v8, %v15030_v48  ;;  %v15040_v48 = vld [vmem:[#allocation51_spill] sm:$0xff]  ;;  %p6290_p2 = por %p6289_p1, %p6288_p0 }
 0x339   : > { %v8969_v4 = vmul.f32 %v14775_v20, %v15019_v17  ;;  %v15027_v42 = vld [vmem:[#allocation72_spill] sm:$0xff]  ;;  %v15029_v17 = vmax.f32 %v8286_v9, %v8362_v43  ;;  %v15038_v9 = vld [vmem:[#allocation57_spill] sm:$0xff]  ;;  %v9022_v43 = vmax.f32 %v15042_v13, %v8952_v21  ;;  %v6174_v11 = vld [vmem:[#allocation2 + $0x18] sm:$0xff] }
 0x33a   : > { %15018 = vst [vmem:[#allocation172_spill] sm:$0xff] %v8965_v27  ;;  %v8979_v12 = vmax.f32 %v15025_v56, %v8917_v37  ;;  %v15028_v29 = vmax.f32 %v15026_v52, %v15027_v42  ;;  %15031 = vst [vmem:[#allocation239_spill] sm:$0xff] %v8995_v41  ;;  %v8998_v56 = vpop.permute.xlu0 %2179  ;;  %v15033_v6 = vld [vmem:[#allocation240_spill] sm:$0xff]  ;;  %v15034_v37 = vld [vmem:[#allocation93_spill] sm:$0xff]  ;;  %2907 = vrot.lane.b32.xlu0 %v6174_v11, %s6345_s11  ;;  %p6291_p3 = pnand %p6290_p2, %p6284_p13 }
 0x33b   : > { %15020 = vst [vmem:[#allocation173_spill] sm:$0xff] %v8969_v4  ;;  %v8991_v20 = vmax.f32 %v15029_v17, %v8925_v14  ;;  %15032 = vst [vmem:[#allocation224_spill] sm:$0xff] %v8998_v56  ;;  %v15035_v52 = vmax.f32 %v15033_v6, %v15034_v37  ;;  %v9012_v17 = vmul.f32 %v14862_v53, %v15038_v9  ;;  %v9038_v37 = vpop.permute.xlu1 %2177  ;;  %v15050_v13 = vld [vmem:[#allocation130_spill] sm:$0xff]  ;;  %v15055_v5 = vld [vmem:[#allocation97_spill] sm:$0xff] }
 0x33c   : > { %v8985_v23 = vmax.f32 %v15028_v29, %v8921_v49  ;;  %v15036_v49 = vld [vmem:[#allocation40_spill] sm:$0xff]  ;;  %v9016_v14 = vmul.f32 %v15040_v48, %v14923_v51  ;;  %v15043_v6 = vmax.f32 %v8327_v28, %v8400_v10  ;;  %v9045_v28 = vmax.f32 %v15049_v44, %v8965_v27  ;;  %v15058_v44 = vld [vmem:[#allocation135_spill] sm:$0xff] }
 0x33d   : > { %v9004_v29 = vmax.f32 %v15035_v52, %v8940_v32  ;;  %v9008_v42 = vmul.f32 %v15036_v49, %v14885_v7  ;;  %15039 = vst [vmem:[#allocation240_spill] sm:$0xff] %v9012_v17  ;;  %v15044_v52 = vld [vmem:[#allocation79_spill] sm:$0xff]  ;;  %v15046_v32 = vld [vmem:[#allocation73_spill] sm:$0xff]  ;;  %v9061_v11 = vmul.f32 %v14931_v2, %v15055_v5  ;;  %v15059_v27 = vmax.f32 %v15057_v59, %v15058_v44  ;;  %v15074_v56 = vld [vmem:[#allocation176_spill] sm:$0xff] }
 0x33e   : > { %15041 = vst [vmem:[#allocation40_spill] sm:$0xff] %v9016_v14  ;;  %v9028_v49 = vmax.f32 %v15043_v6, %v8956_v38  ;;  %v9032_v9 = vmul.f32 %v14881_v45, %v15044_v52  ;;  %v9036_v48 = vmul.f32 %v15046_v32, %v14936_v22  ;;  %15048 = vst [vmem:[#allocation79_spill] sm:$0xff] %v9038_v37  ;;  %v15052_v32 = vld [vmem:[#allocation273_spill] sm:$0xff]  ;;  %v15061_v37 = vld [vmem:[#allocation15_spill] sm:$0xff] }
 0x33f   : > { %15037 = vst [vmem:[#allocation41_spill] sm:$0xff] %v9008_v42  ;;  %v15051_v6 = vmax.f32 %v8436_v16, %v15050_v13  ;;  %v15053_v38 = vld [vmem:[#allocation145_spill] sm:$0xff]  ;;  %15056 = vst [vmem:[#allocation73_spill] sm:$0xff] %v9061_v11  ;;  %v9067_v63 = vmax.f32 %v15059_v27, %v8995_v41  ;;  %v15062_v16 = vld [vmem:[#allocation94_spill] sm:$0xff]  ;;  %v15070_v27 = vmax.f32 %v8708_v33, %v8807_v50 }
 0x340   : > { %15045 = vst [vmem:[#allocation57_spill] sm:$0xff] %v9032_v9  ;;  %15047 = vst [vmem:[#allocation51_spill] sm:$0xff] %v9036_v48  ;;  %v15054_v21 = vmax.f32 %v15052_v32, %v15053_v38  ;;  %v15067_v32 = vld [vmem:[#allocation112_spill] sm:$0xff]  ;;  %v6175_v5 = vld [vmem:[#allocation2 + $0x8] sm:$0xff]  ;;  %v9082_v38 = vpop.permute.xlu0 %2183 }
 0x341   : > { %v9051_v52 = vmax.f32 %v15051_v6, %v8969_v4  ;;  %15060 = vst [vmem:[#allocation273_spill] sm:$0xff] %v9067_v63  ;;  %v9071_v6 = vmul.f32 %v15062_v16, %v15061_v37  ;;  %v15064_v4 = vld [vmem:[#allocation175_spill] sm:$0xff]  ;;  %2905 = vrot.lane.b32.xlu1 %v6175_v5, %s6345_s11  ;;  %v9088_v59 = vmax.f32 %v15070_v27, %v9008_v42  ;;  %v15071_v16 = vld [vmem:[#allocation229_spill] sm:$0xff]  ;;  %v15072_v41 = vld [vmem:[#allocation148_spill] sm:$0xff] }
 0x342   : > { %v9057_v10 = vmax.f32 %v15054_v21, %v8973_v58  ;;  %v9075_v13 = vmul.f32 %v14753_v39, %v15064_v4  ;;  %v15066_v21 = vld [vmem:[#allocation19_spill] sm:$0xff]  ;;  %15069 = vst [vmem:[#allocation175_spill] sm:$0xff] %v9082_v38  ;;  %v15073_v4 = vmax.f32 %v15071_v16, %v15072_v41  ;;  %v15077_v38 = vmax.f32 %v8732_v0, %v8825_v40  ;;  %v15081_v16 = vld [vmem:[#allocation177_spill] sm:$0xff]  ;;  %v9120_v41 = vpop.permute.xlu1 %2181 }
 0x343   : > { %15063 = vst [vmem:[#allocation97_spill] sm:$0xff] %v9071_v6  ;;  %v9079_v58 = vmul.f32 %v15067_v32, %v15066_v21  ;;  %v9097_v32 = vmax.f32 %v2565_v47, %v9016_v14  ;;  %v15075_v21 = vld [vmem:[#allocation13_spill] sm:$0xff]  ;;  %v9110_v27 = vmax.f32 %v2567_v60, %v9036_v48  ;;  %v15080_v42 = vld [vmem:[#allocation23_spill] sm:$0xff]  ;;  %15086 = vst [vmem:[#allocation283_spill] sm:$0xff] %v9120_v41 }
 0x344   : > { %15065 = vst [vmem:[#allocation267_spill] sm:$0xff] %v9075_v13  ;;  %v9094_v44 = vmax.f32 %v15073_v4, %v9012_v17  ;;  %v9101_v5 = vmul.f32 %v15075_v21, %v15074_v56  ;;  %v9107_v33 = vmax.f32 %v15077_v38, %v9032_v9  ;;  %v9114_v4 = vmul.f32 %v15081_v16, %v15080_v42  ;;  %v15083_v17 = vld [vmem:[#allocation178_spill] sm:$0xff]  ;;  %v15084_v47 = vld [vmem:[#allocation17_spill] sm:$0xff]  ;;  %v15089_v60 = vld [vmem:[#allocation27_spill] sm:$0xff] }
 0x345   : > { %15068 = vst [vmem:[#allocation94_spill] sm:$0xff] %v9079_v58  ;;  %15079 = vst [vmem:[#allocation176_spill] sm:$0xff] %v9110_v27  ;;  %v9118_v14 = vmul.f32 %v15084_v47, %v15083_v17  ;;  %v6176_v56 = vld [vmem:[#allocation2 + $0x30] sm:$0xff]  ;;  %v15087_v0 = vmax.f32 %v8867_v57, %v8859_v30  ;;  %v15090_v48 = vld [vmem:[#allocation179_spill] sm:$0xff]  ;;  %v15100_v57 = vmax.f32 %v8851_v15, %v8248_v26 }
 0x346   : > { %15076 = vst [vmem:[#allocation112_spill] sm:$0xff] %v9101_v5  ;;  %15078 = vst [vmem:[#allocation229_spill] sm:$0xff] %v9107_v33  ;;  %2911 = vrot.lane.b32.xlu0 %v6176_v56, %s6345_s11  ;;  %v9131_v9 = vmul.f32 %v15090_v48, %v15089_v60  ;;  %v15092_v16 = vld [vmem:[#allocation180_spill] sm:$0xff]  ;;  %v15093_v40 = vld [vmem:[#allocation21_spill] sm:$0xff] }
 0x347   : > { %15082 = vst [vmem:[#allocation177_spill] sm:$0xff] %v9114_v4  ;;  %15085 = vst [vmem:[#allocation178_spill] sm:$0xff] %v9118_v14  ;;  %v9127_v38 = vmax.f32 %v15087_v0, %v9061_v11  ;;  %v9135_v50 = vmul.f32 %v15093_v40, %v15092_v16  ;;  %v15095_v17 = vld [vmem:[#allocation181_spill] sm:$0xff]  ;;  %v15098_v47 = vld [vmem:[#allocation91_spill] sm:$0xff]  ;;  %v9151_v48 = vmax.f32 %v15100_v57, %v9075_v13 }
 0x348   : > { %15091 = vst [vmem:[#allocation179_spill] sm:$0xff] %v9131_v9  ;;  %v9139_v41 = vmul.f32 %v15095_v17, %v14850_v35  ;;  %v15097_v56 = vld [vmem:[#allocation237_spill] sm:$0xff]  ;;  %v15106_v17 = vld [vmem:[#allocation182_spill] sm:$0xff]  ;;  %v6177_v60 = vld [vmem:[#allocation2 + $0x20] sm:$0xff] }
 0x349   : > { %15088 = vst [vmem:[#allocation284_spill] sm:$0xff] %v9127_v38  ;;  %15094 = vst [vmem:[#allocation180_spill] sm:$0xff] %v9135_v50  ;;  %v15099_v42 = vmax.f32 %v15097_v56, %v15098_v47  ;;  %v15102_v0 = vld [vmem:[#allocation245_spill] sm:$0xff]  ;;  %2909 = vrot.lane.b32.xlu1 %v6177_v60, %s6345_s11  ;;  %v15110_v56 = vld [vmem:[#allocation243_spill] sm:$0xff] }
 0x34a   : > { %15096 = vst [vmem:[#allocation181_spill] sm:$0xff] %v9139_v41  ;;  %15101 = vst [vmem:[#allocation237_spill] sm:$0xff] %v9151_v48  ;;  %v15103_v16 = vld [vmem:[#allocation113_spill] sm:$0xff]  ;;  %v15111_v15 = vld [vmem:[#allocation96_spill] sm:$0xff] }
 0x34b   : > { %v9145_v27 = vmax.f32 %v15099_v42, %v9071_v6  ;;  %v15104_v11 = vmax.f32 %v15102_v0, %v15103_v16  ;;  %v15107_v35 = vld [vmem:[#allocation25_spill] sm:$0xff]  ;;  %v9164_v42 = vpop.permute.xlu0 %2187  ;;  %v15112_v57 = vmax.f32 %v15110_v56, %v15111_v15  ;;  %v15114_v6 = vld [vmem:[#allocation35_spill] sm:$0xff]  ;;  %v15125_v56 = vld [vmem:[#allocation248_spill] sm:$0xff] }
 0x34c   : > { %v9161_v40 = vmul.f32 %v15107_v35, %v15106_v17  ;;  %15109 = vst [vmem:[#allocation285_spill] sm:$0xff] %v9164_v42  ;;  %v15115_v26 = vld [vmem:[#allocation183_spill] sm:$0xff]  ;;  %v15120_v17 = vld [vmem:[#allocation54_spill] sm:$0xff]  ;;  %v15123_v42 = vld [vmem:[#allocation129_spill] sm:$0xff] }
 0x34d   : > { %v9157_v30 = vmax.f32 %v15104_v11, %v9079_v58  ;;  %v9170_v13 = vmax.f32 %v15112_v57, %v9101_v5  ;;  %v9174_v0 = vmul.f32 %v15115_v26, %v15114_v6  ;;  %v15117_v11 = vld [vmem:[#allocation60_spill] sm:$0xff]  ;;  %v15118_v58 = vld [vmem:[#allocation30_spill] sm:$0xff]  ;;  %v9182_v47 = vmul.f32 %v15120_v17, %v14941_v1  ;;  %v15122_v60 = vld [vmem:[#allocation251_spill] sm:$0xff]  ;;  %v9204_v1 = vpop.permute.xlu1 %2185 }
 0x34e   : > { %15108 = vst [vmem:[#allocation182_spill] sm:$0xff] %v9161_v40  ;;  %v9178_v16 = vmul.f32 %v15118_v58, %v15117_v11  ;;  %v15124_v35 = vmax.f32 %v15122_v60, %v15123_v42  ;;  %v15126_v57 = vld [vmem:[#allocation116_spill] sm:$0xff]  ;;  %v15130_v58 = vld [vmem:[#allocation10_spill] sm:$0xff] }
 0x34f   : > { %15105 = vst [vmem:[#allocation245_spill] sm:$0xff] %v9157_v30  ;;  %15113 = vst [vmem:[#allocation243_spill] sm:$0xff] %v9170_v13  ;;  %v15127_v5 = vmax.f32 %v15125_v56, %v15126_v57  ;;  %v15128_v15 = vld [vmem:[#allocation184_spill] sm:$0xff]  ;;  %v6178_v13 = vld [vmem:[#allocation2 + $0x48] sm:$0xff] }
 0x350   : > { %15116 = vst [vmem:[#allocation183_spill] sm:$0xff] %v9174_v0  ;;  %15119 = vst [vmem:[#allocation60_spill] sm:$0xff] %v9178_v16  ;;  %v9188_v30 = vmax.f32 %v15124_v35, %v9114_v4  ;;  %v9198_v11 = vmul.f32 %v14890_v31, %v15128_v15  ;;  %v15131_v6 = vld [vmem:[#allocation76_spill] sm:$0xff]  ;;  %2915 = vrot.lane.b32.xlu0 %v6178_v13, %s6345_s11  ;;  %v15134_v35 = vld [vmem:[#allocation259_spill] sm:$0xff] }
 0x351   : > { %15121 = vst [vmem:[#allocation54_spill] sm:$0xff] %v9182_v47  ;;  %v9194_v26 = vmax.f32 %v15127_v5, %v9118_v14  ;;  %v9202_v17 = vmul.f32 %v15131_v6, %v15130_v58  ;;  %15133 = vst [vmem:[#allocation184_spill] sm:$0xff] %v9204_v1  ;;  %v15135_v60 = vld [vmem:[#allocation134_spill] sm:$0xff]  ;;  %v15137_v5 = vld [vmem:[#allocation253_spill] sm:$0xff] }
 0x352   : > { %15129 = vst [vmem:[#allocation251_spill] sm:$0xff] %v9198_v11  ;;  %v15136_v4 = vmax.f32 %v15134_v35, %v15135_v60  ;;  %v15138_v14 = vld [vmem:[#allocation260_spill] sm:$0xff]  ;;  %v15141_v6 = vld [vmem:[#allocation169_spill] sm:$0xff]  ;;  %v15229_v38 = vld [vmem:[#allocation210_spill] sm:$0xff] }
 0x353   : > { %15132 = vst [vmem:[#allocation248_spill] sm:$0xff] %v9202_v17  ;;  %v15139_v15 = vmax.f32 %v15137_v5, %v15138_v14  ;;  %v15142_v42 = vmax.f32 %v8595_v34, %v15141_v6  ;;  %v15143_v58 = vld [vmem:[#allocation185_spill] sm:$0xff]  ;;  %v15148_v5 = vld [vmem:[#allocation186_spill] sm:$0xff]  ;;  %v15151_v14 = vld [vmem:[#allocation8_spill] sm:$0xff]  ;;  %v9248_v6 = vpop.permute.xlu0 %2191 }
 0x354   : > { %v9211_v56 = vmax.f32 %v15136_v4, %v9131_v9  ;;  %v9227_v13 = vmul.f32 %v14934_v19, %v15143_v58  ;;  %v15145_v35 = vld [vmem:[#allocation269_spill] sm:$0xff]  ;;  %v15153_v34 = vld [vmem:[#allocation18_spill] sm:$0xff]  ;;  %v6179_v58 = vld [vmem:[#allocation2 + $0x38] sm:$0xff]  ;;  %15156 = vst [vmem:[#allocation186_spill] sm:$0xff] %v9248_v6 }
 0x355   : > { %v9217_v57 = vmax.f32 %v15139_v15, %v9135_v50  ;;  %v9223_v1 = vmax.f32 %v15142_v42, %v9139_v41  ;;  %v15146_v4 = vld [vmem:[#allocation137_spill] sm:$0xff]  ;;  %v9237_v15 = vmul.f32 %v15148_v5, %v14676_v54  ;;  %v15150_v50 = vld [vmem:[#allocation187_spill] sm:$0xff]  ;;  %v15154_v42 = vld [vmem:[#allocation188_spill] sm:$0xff]  ;;  %2913 = vrot.lane.b32.xlu1 %v6179_v58, %s6345_s11 }
 0x356   : > { %15144 = vst [vmem:[#allocation259_spill] sm:$0xff] %v9227_v13  ;;  %v15147_v9 = vmax.f32 %v15145_v35, %v15146_v4  ;;  %v9245_v41 = vmul.f32 %v15154_v42, %v15153_v34  ;;  %v15161_v42 = vld [vmem:[#allocation36_spill] sm:$0xff]  ;;  %v15163_v58 = vld [vmem:[#allocation189_spill] sm:$0xff] }
 0x357   : > { %15140 = vst [vmem:[#allocation76_spill] sm:$0xff] %v9217_v57  ;;  %15149 = vst [vmem:[#allocation253_spill] sm:$0xff] %v9237_v15  ;;  %v9241_v57 = vmul.f32 %v15151_v14, %v15150_v50  ;;  %v15160_v50 = vmax.f32 %v8689_v25, %v8884_v46  ;;  %v15162_v4 = vmax.f32 %v8862_v3, %v15161_v42  ;;  %v15169_v3 = vld [vmem:[#allocation190_spill] sm:$0xff]  ;;  %v9288_v42 = vpop.permute.xlu1 %2189  ;;  %v15177_v25 = vld [vmem:[#allocation191_spill] sm:$0xff] }
 0x358   : > { %v9233_v60 = vmax.f32 %v15147_v9, %v9161_v40  ;;  %15155 = vst [vmem:[#allocation269_spill] sm:$0xff] %v9245_v41  ;;  %v15157_v9 = vld [vmem:[#allocation170_spill] sm:$0xff]  ;;  %v9270_v6 = vmul.f32 %v14685_v18, %v15163_v58  ;;  %15172 = vst [vmem:[#allocation190_spill] sm:$0xff] %v9288_v42  ;;  %v6180_v58 = vld [vmem:[#allocation2 + $0x60] sm:$0xff]  ;;  %v9299_v46 = vmul.f32 %v15177_v25, %v14809_v62 }
 0x359   : > { %15152 = vst [vmem:[#allocation185_spill] sm:$0xff] %v9241_v57  ;;  %v15158_v35 = vmax.f32 %v8715_v24, %v15157_v9  ;;  %v9260_v5 = vmax.f32 %v15160_v50, %v9178_v16  ;;  %v9266_v34 = vmax.f32 %v15162_v4, %v9182_v47  ;;  %v15165_v24 = vmax.f32 %v8751_v55, %v8894_v61  ;;  %v15166_v50 = vld [vmem:[#allocation22_spill] sm:$0xff]  ;;  %v15167_v16 = vld [vmem:[#allocation7_spill] sm:$0xff]  ;;  %v15170_v4 = vld [vmem:[#allocation16_spill] sm:$0xff] }
 0x35a   : > { %15164 = vst [vmem:[#allocation188_spill] sm:$0xff] %v9270_v6  ;;  %v9286_v47 = vmul.f32 %v15170_v4, %v15169_v3  ;;  %2919 = vrot.lane.b32.xlu0 %v6180_v58, %s6345_s11  ;;  %v15173_v55 = vld [vmem:[#allocation280_spill] sm:$0xff]  ;;  %15178 = vst [vmem:[#allocation191_spill] sm:$0xff] %v9299_v46  ;;  %v15182_v3 = vld [vmem:[#allocation29_spill] sm:$0xff] }
 0x35b   : > { %v9254_v40 = vmax.f32 %v15158_v35, %v9174_v0  ;;  %v9276_v35 = vmax.f32 %v15165_v24, %v9198_v11  ;;  %v9282_v0 = vmul.f32 %v15167_v16, %v15166_v50  ;;  %v15174_v24 = vld [vmem:[#allocation92_spill] sm:$0xff]  ;;  %v15183_v4 = vld [vmem:[#allocation193_spill] sm:$0xff]  ;;  %v15188_v58 = vld [vmem:[#allocation195_spill] sm:$0xff] }
 0x35c   : > { %15171 = vst [vmem:[#allocation7_spill] sm:$0xff] %v9286_v47  ;;  %v15175_v11 = vmax.f32 %v15173_v55, %v15174_v24  ;;  %v15179_v16 = vld [vmem:[#allocation192_spill] sm:$0xff]  ;;  %v9307_v42 = vmul.f32 %v15183_v4, %v15182_v3  ;;  %v6181_v24 = vld [vmem:[#allocation2 + $0x50] sm:$0xff]  ;;  %v9326_v15 = vmul.f32 %v15188_v58, %v14885_v7  ;;  %v15196_v58 = vld [vmem:[#allocation199_spill] sm:$0xff] }
 0x35d   : > { %15159 = vst [vmem:[#allocation187_spill] sm:$0xff] %v9254_v40  ;;  %15168 = vst [vmem:[#allocation189_spill] sm:$0xff] %v9282_v0  ;;  %v15180_v9 = vld [vmem:[#allocation20_spill] sm:$0xff]  ;;  %2917 = vrot.lane.b32.xlu1 %v6181_v24, %s6345_s11  ;;  %v9346_v7 = vmul.f32 %v15196_v58, %v14936_v22  ;;  %v15205_v46 = vld [vmem:[#allocation19_spill] sm:$0xff] }
 0x35e   : > { %v9295_v61 = vmax.f32 %v15175_v11, %v9227_v13  ;;  %v9303_v50 = vmul.f32 %v15180_v9, %v15179_v16  ;;  %15184 = vst [vmem:[#allocation193_spill] sm:$0xff] %v9307_v42  ;;  %v15185_v13 = vld [vmem:[#allocation194_spill] sm:$0xff]  ;;  %v9320_v16 = vpop.permute.xlu0 %2195  ;;  %15189 = vst [vmem:[#allocation195_spill] sm:$0xff] %v9326_v15  ;;  %v15190_v55 = vld [vmem:[#allocation196_spill] sm:$0xff] }
 0x35f   : > { %v9317_v25 = vmul.f32 %v14824_v8, %v15185_v13  ;;  %15187 = vst [vmem:[#allocation286_spill] sm:$0xff] %v9320_v16  ;;  %v9330_v57 = vmul.f32 %v14862_v53, %v15190_v55  ;;  %v15192_v11 = vld [vmem:[#allocation197_spill] sm:$0xff]  ;;  %v15194_v8 = vld [vmem:[#allocation198_spill] sm:$0xff]  ;;  %15197 = vst [vmem:[#allocation199_spill] sm:$0xff] %v9346_v7  ;;  %v9348_v55 = vpop.permute.xlu1 %2193 }
 0x360   : > { %15176 = vst [vmem:[#allocation280_spill] sm:$0xff] %v9295_v61  ;;  %15181 = vst [vmem:[#allocation192_spill] sm:$0xff] %v9303_v50  ;;  %v9334_v13 = vmul.f32 %v15192_v11, %v14923_v51  ;;  %v9342_v4 = vmul.f32 %v14881_v45, %v15194_v8  ;;  %v6182_v53 = vld [vmem:[#allocation2 + $0x78] sm:$0xff]  ;;  %v15199_v8 = vld [vmem:[#allocation200_spill] sm:$0xff] }
 0x361   : > { %15186 = vst [vmem:[#allocation194_spill] sm:$0xff] %v9317_v25  ;;  %15191 = vst [vmem:[#allocation196_spill] sm:$0xff] %v9330_v57  ;;  %2923 = vrot.lane.b32.xlu0 %v6182_v53, %s6345_s11  ;;  %v9359_v45 = vmul.f32 %v14931_v2, %v15199_v8  ;;  %v15203_v53 = vld [vmem:[#allocation202_spill] sm:$0xff]  ;;  %v15206_v24 = vld [vmem:[#allocation203_spill] sm:$0xff] }
 0x362   : > { %15193 = vst [vmem:[#allocation197_spill] sm:$0xff] %v9334_v13  ;;  %15195 = vst [vmem:[#allocation198_spill] sm:$0xff] %v9342_v4  ;;  %v9369_v11 = vmul.f32 %v14753_v39, %v15203_v53  ;;  %v9373_v50 = vmul.f32 %v15206_v24, %v15205_v46  ;;  %v6183_v16 = vld [vmem:[#allocation2 + $0x68] sm:$0xff]  ;;  %v9376_v8 = vpop.permute.xlu0 %2199  ;;  %v15209_v53 = vld [vmem:[#allocation204_spill] sm:$0xff] }
 0x363   : > { %15198 = vst [vmem:[#allocation287_spill] sm:$0xff] %v9348_v55  ;;  %15200 = vst [vmem:[#allocation200_spill] sm:$0xff] %v9359_v45  ;;  %v15201_v55 = vld [vmem:[#allocation201_spill] sm:$0xff]  ;;  %2921 = vrot.lane.b32.xlu1 %v6183_v16, %s6345_s11  ;;  %v9386_v39 = vmul.f32 %v15075_v21, %v15209_v53  ;;  %v15215_v58 = vld [vmem:[#allocation206_spill] sm:$0xff]  ;;  %v9400_v57 = vpop.permute.xlu1 %2197 }
 0x364   : > { %v9365_v22 = vmul.f32 %v15201_v55, %v15061_v37  ;;  %15204 = vst [vmem:[#allocation202_spill] sm:$0xff] %v9369_v11  ;;  %15207 = vst [vmem:[#allocation203_spill] sm:$0xff] %v9373_v50  ;;  %v15213_v25 = vld [vmem:[#allocation205_spill] sm:$0xff]  ;;  %v6184_v37 = vld [vmem:[#allocation2 + $0x90] sm:$0xff] }
 0x365   : > { %15208 = vst [vmem:[#allocation288_spill] sm:$0xff] %v9376_v8  ;;  %15210 = vst [vmem:[#allocation204_spill] sm:$0xff] %v9386_v39  ;;  %v15212_v8 = vld [vmem:[#allocation23_spill] sm:$0xff]  ;;  %v15216_v15 = vld [vmem:[#allocation17_spill] sm:$0xff]  ;;  %2927 = vrot.lane.b32.xlu0 %v6184_v37, %s6345_s11 }
 0x366   : > { %15202 = vst [vmem:[#allocation201_spill] sm:$0xff] %v9365_v22  ;;  %v9394_v63 = vmul.f32 %v15213_v25, %v15212_v8  ;;  %v9398_v55 = vmul.f32 %v15216_v15, %v15215_v58  ;;  %15218 = vst [vmem:[#allocation289_spill] sm:$0xff] %v9400_v57  ;;  %v15219_v24 = vld [vmem:[#allocation27_spill] sm:$0xff]  ;;  %v15222_v46 = vld [vmem:[#allocation208_spill] sm:$0xff] }
 0x367   : > { %v15220_v4 = vld [vmem:[#allocation207_spill] sm:$0xff]  ;;  %v15223_v7 = vld [vmem:[#allocation21_spill] sm:$0xff]  ;;  %v6185_v15 = vld [vmem:[#allocation2 + $0x80] sm:$0xff] }
 0x368   : > { %15214 = vst [vmem:[#allocation205_spill] sm:$0xff] %v9394_v63  ;;  %15217 = vst [vmem:[#allocation206_spill] sm:$0xff] %v9398_v55  ;;  %v9407_v33 = vmul.f32 %v15220_v4, %v15219_v24  ;;  %v9411_v25 = vmul.f32 %v15223_v7, %v15222_v46  ;;  %v15225_v8 = vld [vmem:[#allocation31_spill] sm:$0xff]  ;;  %v15226_v16 = vld [vmem:[#allocation209_spill] sm:$0xff]  ;;  %2925 = vrot.lane.b32.xlu1 %v6185_v15, %s6345_s11  ;;  %v9428_v46 = vpop.permute.xlu0 %2203 }
 0x369   : > { %v9415_v58 = vmul.f32 %v15226_v16, %v15225_v8  ;;  %v15228_v53 = vld [vmem:[#allocation245_spill] sm:$0xff]  ;;  %15232 = vst [vmem:[#allocation210_spill] sm:$0xff] %v9428_v46  ;;  %v15233_v16 = vld [vmem:[#allocation243_spill] sm:$0xff]  ;;  %v15237_v37 = vld [vmem:[#allocation212_spill] sm:$0xff] }
 0x36a   : > { %15221 = vst [vmem:[#allocation207_spill] sm:$0xff] %v9407_v33  ;;  %15224 = vst [vmem:[#allocation208_spill] sm:$0xff] %v9411_v25  ;;  %v15230_v4 = vld [vmem:[#allocation25_spill] sm:$0xff]  ;;  %v15234_v7 = vld [vmem:[#allocation35_spill] sm:$0xff] }
 0x36b   : > { %15227 = vst [vmem:[#allocation209_spill] sm:$0xff] %v9415_v58  ;;  %v9425_v24 = vmul.f32 %v15230_v4, %v15229_v38  ;;  %v15235_v57 = vld [vmem:[#allocation211_spill] sm:$0xff]  ;;  %v15238_v11 = vld [vmem:[#allocation30_spill] sm:$0xff]  ;;  %v15240_v45 = vld [vmem:[#allocation45_spill] sm:$0xff] }
 0x36c   : > { %v9434_v22 = vmul.f32 %v15235_v57, %v15234_v7  ;;  %v9438_v48 = vmul.f32 %v15238_v11, %v15237_v37  ;;  %v15241_v50 = vld [vmem:[#allocation213_spill] sm:$0xff]  ;;  %v15243_v4 = vld [vmem:[#allocation214_spill] sm:$0xff]  ;;  %v15246_v7 = vld [vmem:[#allocation215_spill] sm:$0xff]  ;;  %v9456_v37 = vpop.permute.xlu1 %2201 }
 0x36d   : > { %15231 = vst [vmem:[#allocation245_spill] sm:$0xff] %v9425_v24  ;;  %v9442_v38 = vmul.f32 %v15241_v50, %v15240_v45  ;;  %v9450_v8 = vmul.f32 %v14890_v31, %v15243_v4  ;;  %v15245_v57 = vld [vmem:[#allocation10_spill] sm:$0xff]  ;;  %15248 = vst [vmem:[#allocation215_spill] sm:$0xff] %v9456_v37  ;;  %v6186_v11 = vld [vmem:[#allocation2 + $0xa8] sm:$0xff] }
 0x36e   : > { %15236 = vst [vmem:[#allocation243_spill] sm:$0xff] %v9434_v22  ;;  %15239 = vst [vmem:[#allocation211_spill] sm:$0xff] %v9438_v48  ;;  %v9454_v39 = vmul.f32 %v15246_v7, %v15245_v57  ;;  %2931 = vrot.lane.b32.xlu0 %v6186_v11, %s6345_s11  ;;  %v15249_v15 = vld [vmem:[#allocation76_spill] sm:$0xff]  ;;  %v15252_v37 = vld [vmem:[#allocation217_spill] sm:$0xff] }
 0x36f   : > { %15242 = vst [vmem:[#allocation212_spill] sm:$0xff] %v9442_v38  ;;  %15244 = vst [vmem:[#allocation213_spill] sm:$0xff] %v9450_v8  ;;  %v15250_v4 = vld [vmem:[#allocation216_spill] sm:$0xff]  ;;  %v9473_v57 = vmul.f32 %v15252_v37, %v14676_v54  ;;  %v15254_v11 = vld [vmem:[#allocation218_spill] sm:$0xff] }
 0x370   : > { %15247 = vst [vmem:[#allocation214_spill] sm:$0xff] %v9454_v39  ;;  %v9467_v31 = vmul.f32 %v14934_v19, %v15250_v4  ;;  %v9477_v50 = vmul.f32 %v15151_v14, %v15254_v11  ;;  %v15256_v33 = vld [vmem:[#allocation18_spill] sm:$0xff]  ;;  %v15257_v63 = vld [vmem:[#allocation219_spill] sm:$0xff]  ;;  %v9484_v4 = vpop.permute.xlu0 %2207  ;;  %v15260_v11 = vld [vmem:[#allocation220_spill] sm:$0xff]  ;;  %v9512_v38 = vpop.permute.xlu1 %2205 }
 0x371   : > { %15253 = vst [vmem:[#allocation216_spill] sm:$0xff] %v9473_v57  ;;  %v9481_v25 = vmul.f32 %v15257_v63, %v15256_v33  ;;  %v6187_v46 = vld [vmem:[#allocation2 + $0x98] sm:$0xff]  ;;  %15259 = vst [vmem:[#allocation18_spill] sm:$0xff] %v9484_v4  ;;  %v9494_v14 = vmul.f32 %v14685_v18, %v15260_v11  ;;  %v15263_v7 = vld [vmem:[#allocation22_spill] sm:$0xff] }
 0x372   : > { %15251 = vst [vmem:[#allocation76_spill] sm:$0xff] %v9467_v31  ;;  %15255 = vst [vmem:[#allocation217_spill] sm:$0xff] %v9477_v50  ;;  %2929 = vrot.lane.b32.xlu1 %v6187_v46, %s6345_s11  ;;  %v15262_v46 = vmax.f32 %v8948_v36, %v9202_v17  ;;  %v15264_v22 = vld [vmem:[#allocation221_spill] sm:$0xff]  ;;  %v15266_v37 = vld [vmem:[#allocation222_spill] sm:$0xff] }
 0x373   : > { %15258 = vst [vmem:[#allocation218_spill] sm:$0xff] %v9481_v25  ;;  %15261 = vst [vmem:[#allocation219_spill] sm:$0xff] %v9494_v14  ;;  %v9506_v40 = vmul.f32 %v15264_v22, %v15263_v7  ;;  %v15267_v48 = vld [vmem:[#allocation16_spill] sm:$0xff]  ;;  %v15270_v36 = vld [vmem:[#allocation225_spill] sm:$0xff] }
 0x374   : > { %v9502_v4 = vmax.f32 %v15262_v46, %v9454_v39  ;;  %v9510_v54 = vmul.f32 %v15267_v48, %v15266_v37  ;;  %15269 = vst [vmem:[#allocation222_spill] sm:$0xff] %v9512_v38  ;;  %v6188_v11 = vld [vmem:[#allocation2 + $0xc0] sm:$0xff]  ;;  %v9519_v46 = vmul.f32 %v15270_v36, %v14809_v62  ;;  %v15272_v17 = vld [vmem:[#allocation226_spill] sm:$0xff]  ;;  %v15276_v38 = vld [vmem:[#allocation253_spill] sm:$0xff] }
 0x375   : > { %15265 = vst [vmem:[#allocation220_spill] sm:$0xff] %v9506_v40  ;;  %2935 = vrot.lane.b32.xlu0 %v6188_v11, %s6345_s11  ;;  %v9523_v22 = vmul.f32 %v15180_v9, %v15272_v17  ;;  %v15274_v39 = vld [vmem:[#allocation12_spill] sm:$0xff]  ;;  %v15277_v48 = vmax.f32 %v8979_v12, %v15276_v38  ;;  %v15278_v63 = vld [vmem:[#allocation185_spill] sm:$0xff]  ;;  %v15280_v17 = vmax.f32 %v8991_v20, %v9245_v41  ;;  %v6189_v61 = vld [vmem:[#allocation2 + $0xb0] sm:$0xff]  ;;  %v9552_v12 = vpop.permute.xlu0 %2211 }
 0x376   : > { %15268 = vst [vmem:[#allocation221_spill] sm:$0xff] %v9510_v54  ;;  %15271 = vst [vmem:[#allocation225_spill] sm:$0xff] %v9519_v46  ;;  %v9527_v37 = vmul.f32 %v15274_v39, %v15182_v3  ;;  %v15279_v31 = vmax.f32 %v8985_v23, %v15278_v63  ;;  %v15281_v39 = vld [vmem:[#allocation232_spill] sm:$0xff]  ;;  %2933 = vrot.lane.b32.xlu1 %v6189_v61, %s6345_s11  ;;  %v15287_v63 = vld [vmem:[#allocation234_spill] sm:$0xff]  ;;  %v15294_v61 = vmax.f32 %v9022_v43, %v9282_v0 }
 0x377   : > { %15273 = vst [vmem:[#allocation226_spill] sm:$0xff] %v9523_v22  ;;  %v9533_v11 = vmax.f32 %v15277_v48, %v9473_v57  ;;  %v9545_v9 = vmax.f32 %v15280_v17, %v9481_v25  ;;  %v15282_v3 = vld [vmem:[#allocation24_spill] sm:$0xff]  ;;  %15284 = vst [vmem:[#allocation290_spill] sm:$0xff] %v9552_v12  ;;  %v15286_v48 = vld [vmem:[#allocation33_spill] sm:$0xff]  ;;  %v9592_v12 = vpop.permute.xlu1 %2209 }
 0x378   : > { %15275 = vst [vmem:[#allocation12_spill] sm:$0xff] %v9527_v37  ;;  %v9539_v36 = vmax.f32 %v15279_v31, %v9477_v50  ;;  %v9549_v62 = vmul.f32 %v15282_v3, %v15281_v39  ;;  %v15285_v31 = vmax.f32 %v9004_v29, %v9270_v6  ;;  %v9562_v20 = vmul.f32 %v15287_v63, %v15286_v48  ;;  %v15289_v17 = vld [vmem:[#allocation238_spill] sm:$0xff]  ;;  %v15290_v41 = vld [vmem:[#allocation28_spill] sm:$0xff]  ;;  %v15292_v39 = vld [vmem:[#allocation241_spill] sm:$0xff] }
 0x379   : > { %v9566_v38 = vmul.f32 %v15290_v41, %v15289_v17  ;;  %v9570_v25 = vmul.f32 %v15292_v39, %v14923_v51  ;;  %v9576_v50 = vmax.f32 %v15294_v61, %v9506_v40  ;;  %v15295_v29 = vmax.f32 %v9028_v49, %v9286_v47  ;;  %v15297_v6 = vld [vmem:[#allocation32_spill] sm:$0xff]  ;;  %15302 = vst [vmem:[#allocation291_spill] sm:$0xff] %v9592_v12  ;;  %v6190_v51 = vld [vmem:[#allocation2 + $0xd8] sm:$0xff] }
 0x37a   : > { %15283 = vst [vmem:[#allocation232_spill] sm:$0xff] %v9549_v62  ;;  %v9558_v23 = vmax.f32 %v15285_v31, %v9494_v14  ;;  %15288 = vst [vmem:[#allocation234_spill] sm:$0xff] %v9562_v20  ;;  %v15296_v31 = vld [vmem:[#allocation242_spill] sm:$0xff]  ;;  %v15299_v14 = vld [vmem:[#allocation11_spill] sm:$0xff]  ;;  %2939 = vrot.lane.b32.xlu0 %v6190_v51, %s6345_s11 }
 0x37b   : > { %15291 = vst [vmem:[#allocation238_spill] sm:$0xff] %v9566_v38  ;;  %15293 = vst [vmem:[#allocation241_spill] sm:$0xff] %v9570_v25  ;;  %v9582_v63 = vmax.f32 %v15295_v29, %v9510_v54  ;;  %v9586_v17 = vmul.f32 %v15297_v6, %v15296_v31  ;;  %v15300_v57 = vld [vmem:[#allocation244_spill] sm:$0xff]  ;;  %v15303_v43 = vld [vmem:[#allocation191_spill] sm:$0xff] }
 0x37c   : > { %v9590_v39 = vmul.f32 %v15300_v57, %v15299_v14  ;;  %v15304_v61 = vmax.f32 %v9045_v28, %v15303_v43  ;;  %v15305_v29 = vld [vmem:[#allocation192_spill] sm:$0xff]  ;;  %v15307_v57 = vmax.f32 %v9057_v10, %v9307_v42  ;;  %v15309_v54 = vld [vmem:[#allocation246_spill] sm:$0xff]  ;;  %v15311_v28 = vld [vmem:[#allocation273_spill] sm:$0xff] }
 0x37d   : > { %15298 = vst [vmem:[#allocation242_spill] sm:$0xff] %v9586_v17  ;;  %v15306_v31 = vmax.f32 %v9051_v52, %v15305_v29  ;;  %v9615_v51 = vmul.f32 %v14931_v2, %v15309_v54  ;;  %v15315_v40 = vld [vmem:[#allocation15_spill] sm:$0xff]  ;;  %v15318_v29 = vld [vmem:[#allocation249_spill] sm:$0xff] }
 0x37e   : > { %15301 = vst [vmem:[#allocation244_spill] sm:$0xff] %v9590_v39  ;;  %v9599_v49 = vmax.f32 %v15304_v61, %v9519_v46  ;;  %v9611_v0 = vmax.f32 %v15307_v57, %v9527_v37  ;;  %v15312_v61 = vld [vmem:[#allocation194_spill] sm:$0xff]  ;;  %v15316_v52 = vld [vmem:[#allocation247_spill] sm:$0xff]  ;;  %v6191_v54 = vld [vmem:[#allocation2 + $0xc8] sm:$0xff]  ;;  %v9636_v37 = vpop.permute.xlu0 %2215 }
 0x37f   : > { %v9605_v47 = vmax.f32 %v15306_v31, %v9523_v22  ;;  %15310 = vst [vmem:[#allocation246_spill] sm:$0xff] %v9615_v51  ;;  %v15313_v43 = vmax.f32 %v15311_v28, %v15312_v61  ;;  %v9625_v31 = vmul.f32 %v15316_v52, %v15315_v40  ;;  %v15319_v22 = vld [vmem:[#allocation9_spill] sm:$0xff]  ;;  %v15321_v10 = vld [vmem:[#allocation19_spill] sm:$0xff]  ;;  %v15322_v57 = vld [vmem:[#allocation250_spill] sm:$0xff]  ;;  %2937 = vrot.lane.b32.xlu1 %v6191_v54, %s6345_s11 }
 0x380   : > { %15308 = vst [vmem:[#allocation292_spill] sm:$0xff] %v9611_v0  ;;  %v9629_v12 = vmul.f32 %v15319_v22, %v15318_v29  ;;  %v9633_v42 = vmul.f32 %v15322_v57, %v15321_v10  ;;  %15324 = vst [vmem:[#allocation293_spill] sm:$0xff] %v9636_v37  ;;  %v15328_v52 = vld [vmem:[#allocation196_spill] sm:$0xff]  ;;  %v15331_v57 = vmax.f32 %v9097_v32, %v9334_v13  ;;  %v15344_v32 = vld [vmem:[#allocation254_spill] sm:$0xff] }
 0x381   : > { %v9621_v46 = vmax.f32 %v15313_v43, %v9549_v62  ;;  %15317 = vst [vmem:[#allocation247_spill] sm:$0xff] %v9625_v31  ;;  %v15325_v43 = vld [vmem:[#allocation195_spill] sm:$0xff]  ;;  %v15329_v29 = vmax.f32 %v9094_v44, %v15328_v52  ;;  %v15333_v54 = vld [vmem:[#allocation252_spill] sm:$0xff] }
 0x382   : > { %15320 = vst [vmem:[#allocation249_spill] sm:$0xff] %v9629_v12  ;;  %15323 = vst [vmem:[#allocation250_spill] sm:$0xff] %v9633_v42  ;;  %v15326_v28 = vmax.f32 %v9088_v59, %v15325_v43  ;;  %v9654_v10 = vmax.f32 %v15331_v57, %v9570_v25  ;;  %v9658_v37 = vmul.f32 %v15075_v21, %v15333_v54  ;;  %v15335_v59 = vld [vmem:[#allocation229_spill] sm:$0xff]  ;;  %v15339_v44 = vld [vmem:[#allocation176_spill] sm:$0xff]  ;;  %v9680_v21 = vpop.permute.xlu1 %2213 }
 0x383   : > { %15314 = vst [vmem:[#allocation273_spill] sm:$0xff] %v9621_v46  ;;  %v9648_v62 = vmax.f32 %v15329_v29, %v9566_v38  ;;  %v15340_v29 = vld [vmem:[#allocation199_spill] sm:$0xff]  ;;  %v15347_v25 = vld [vmem:[#allocation17_spill] sm:$0xff]  ;;  %15349 = vst [vmem:[#allocation297_spill] sm:$0xff] %v9680_v21 }
 0x384   : > { %v9642_v61 = vmax.f32 %v15326_v28, %v9562_v20  ;;  %15332 = vst [vmem:[#allocation296_spill] sm:$0xff] %v9654_v10  ;;  %15334 = vst [vmem:[#allocation252_spill] sm:$0xff] %v9658_v37  ;;  %v15336_v28 = vld [vmem:[#allocation198_spill] sm:$0xff]  ;;  %v15341_v52 = vmax.f32 %v15339_v44, %v15340_v29  ;;  %v15346_v13 = vld [vmem:[#allocation255_spill] sm:$0xff] }
 0x385   : > { %15330 = vst [vmem:[#allocation295_spill] sm:$0xff] %v9648_v62  ;;  %v15337_v43 = vmax.f32 %v15335_v59, %v15336_v28  ;;  %v15343_v62 = vld [vmem:[#allocation23_spill] sm:$0xff]  ;;  %v9678_v54 = vmul.f32 %v15347_v25, %v15346_v13  ;;  %v6192_v10 = vld [vmem:[#allocation2 + $0xf0] sm:$0xff]  ;;  %v15351_v59 = vld [vmem:[#allocation200_spill] sm:$0xff] }
 0x386   : > { %15327 = vst [vmem:[#allocation294_spill] sm:$0xff] %v9642_v61  ;;  %v9670_v38 = vmax.f32 %v15341_v52, %v9590_v39  ;;  %v9674_v57 = vmul.f32 %v15344_v32, %v15343_v62  ;;  %2943 = vrot.lane.b32.xlu0 %v6192_v10, %s6345_s11  ;;  %v15354_v52 = vld [vmem:[#allocation27_spill] sm:$0xff]  ;;  %v15355_v29 = vld [vmem:[#allocation258_spill] sm:$0xff]  ;;  %v15357_v32 = vld [vmem:[#allocation265_spill] sm:$0xff] }
 0x387   : > { %v9664_v20 = vmax.f32 %v15337_v43, %v9586_v17  ;;  %15348 = vst [vmem:[#allocation255_spill] sm:$0xff] %v9678_v54  ;;  %v15350_v43 = vld [vmem:[#allocation284_spill] sm:$0xff]  ;;  %v9691_v39 = vmul.f32 %v15355_v29, %v15354_v52  ;;  %v15358_v17 = vld [vmem:[#allocation21_spill] sm:$0xff]  ;;  %v15360_v13 = vld [vmem:[#allocation31_spill] sm:$0xff] }
 0x388   : > { %15342 = vst [vmem:[#allocation176_spill] sm:$0xff] %v9670_v38  ;;  %15345 = vst [vmem:[#allocation254_spill] sm:$0xff] %v9674_v57  ;;  %v15352_v28 = vmax.f32 %v15350_v43, %v15351_v59  ;;  %v9695_v62 = vmul.f32 %v15358_v17, %v15357_v32  ;;  %v15361_v25 = vld [vmem:[#allocation270_spill] sm:$0xff]  ;;  %v15363_v10 = vld [vmem:[#allocation201_spill] sm:$0xff] }
 0x389   : > { %15338 = vst [vmem:[#allocation229_spill] sm:$0xff] %v9664_v20  ;;  %15356 = vst [vmem:[#allocation258_spill] sm:$0xff] %v9691_v39  ;;  %v9699_v21 = vmul.f32 %v15361_v25, %v15360_v13  ;;  %v15364_v38 = vmax.f32 %v9145_v27, %v15363_v10  ;;  %v15366_v43 = vld [vmem:[#allocation202_spill] sm:$0xff]  ;;  %v15368_v32 = vld [vmem:[#allocation203_spill] sm:$0xff]  ;;  %v9724_v27 = vpop.permute.xlu0 %2219 }
 0x38a   : > { %v9687_v44 = vmax.f32 %v15352_v28, %v9615_v51  ;;  %15359 = vst [vmem:[#allocation265_spill] sm:$0xff] %v9695_v62  ;;  %v15365_v28 = vld [vmem:[#allocation237_spill] sm:$0xff]  ;;  %v15369_v51 = vmax.f32 %v15228_v53, %v15368_v32  ;;  %v15370_v25 = vld [vmem:[#allocation274_spill] sm:$0xff]  ;;  %v15378_v10 = vld [vmem:[#allocation227_spill] sm:$0xff] }
 0x38b   : > { %15362 = vst [vmem:[#allocation270_spill] sm:$0xff] %v9699_v21  ;;  %v9705_v20 = vmax.f32 %v15364_v38, %v9625_v31  ;;  %v15367_v59 = vmax.f32 %v15365_v28, %v15366_v43  ;;  %v15371_v13 = vld [vmem:[#allocation25_spill] sm:$0xff]  ;;  %15373 = vst [vmem:[#allocation274_spill] sm:$0xff] %v9724_v27  ;;  %v15374_v38 = vld [vmem:[#allocation204_spill] sm:$0xff] }
 0x38c   : > { %15353 = vst [vmem:[#allocation284_spill] sm:$0xff] %v9687_v44  ;;  %v9717_v17 = vmax.f32 %v15369_v51, %v9633_v42  ;;  %v9721_v52 = vmul.f32 %v15371_v13, %v15370_v25  ;;  %v6193_v44 = vld [vmem:[#allocation2 + $0xe0] sm:$0xff]  ;;  %v15377_v43 = vld [vmem:[#allocation35_spill] sm:$0xff]  ;;  %v15380_v51 = vld [vmem:[#allocation278_spill] sm:$0xff] }
 0x38d   : > { %v9711_v29 = vmax.f32 %v15367_v59, %v9629_v12  ;;  %2941 = vrot.lane.b32.xlu1 %v6193_v44, %s6345_s11  ;;  %v15375_v59 = vmax.f32 %v15233_v16, %v15374_v38  ;;  %v9734_v53 = vmul.f32 %v15378_v10, %v15377_v43  ;;  %v15381_v32 = vld [vmem:[#allocation30_spill] sm:$0xff]  ;;  %v15383_v25 = vld [vmem:[#allocation228_spill] sm:$0xff]  ;;  %v15385_v44 = vld [vmem:[#allocation205_spill] sm:$0xff]  ;;  %v15387_v16 = vmax.f32 %v9194_v26, %v9398_v55 }
 0x38e   : > { %15372 = vst [vmem:[#allocation237_spill] sm:$0xff] %v9721_v52  ;;  %v9738_v42 = vmul.f32 %v15381_v32, %v15380_v51  ;;  %v9742_v12 = vmul.f32 %v15383_v25, %v15240_v45  ;;  %v15386_v31 = vmax.f32 %v9188_v30, %v15385_v44  ;;  %v15389_v38 = vld [vmem:[#allocation34_spill] sm:$0xff]  ;;  %v15392_v32 = vld [vmem:[#allocation163_spill] sm:$0xff]  ;;  %v9764_v45 = vpop.permute.xlu1 %2217 }
 0x38f   : > { %v9730_v28 = vmax.f32 %v15375_v59, %v9658_v37  ;;  %15379 = vst [vmem:[#allocation227_spill] sm:$0xff] %v9734_v53  ;;  %v9754_v10 = vmax.f32 %v15387_v16, %v9678_v54  ;;  %v15388_v59 = vld [vmem:[#allocation279_spill] sm:$0xff]  ;;  %v15391_v37 = vld [vmem:[#allocation10_spill] sm:$0xff]  ;;  %v15396_v16 = vld [vmem:[#allocation208_spill] sm:$0xff] }
 0x390   : > { %15382 = vst [vmem:[#allocation278_spill] sm:$0xff] %v9738_v42  ;;  %15384 = vst [vmem:[#allocation228_spill] sm:$0xff] %v9742_v12  ;;  %v9748_v27 = vmax.f32 %v15386_v31, %v9674_v57  ;;  %v9758_v51 = vmul.f32 %v15389_v38, %v15388_v59  ;;  %v9762_v25 = vmul.f32 %v15392_v32, %v15391_v37  ;;  %v15394_v30 = vld [vmem:[#allocation207_spill] sm:$0xff]  ;;  %v15400_v54 = vld [vmem:[#allocation165_spill] sm:$0xff] }
 0x391   : > { %15376 = vst [vmem:[#allocation298_spill] sm:$0xff] %v9730_v28  ;;  %v6194_v28 = vld [vmem:[#allocation2 + $0x108] sm:$0xff]  ;;  %v15395_v31 = vmax.f32 %v9211_v56, %v15394_v30  ;;  %v15397_v59 = vmax.f32 %v15249_v15, %v15396_v16  ;;  %v15398_v32 = vmax.f32 %v9223_v1, %v9415_v58  ;;  %v15402_v56 = vmax.f32 %v9233_v60, %v9425_v24  ;;  %v15404_v30 = vld [vmem:[#allocation14_spill] sm:$0xff]  ;;  %v15405_v15 = vld [vmem:[#allocation159_spill] sm:$0xff]  ;;  %v9808_v58 = vpop.permute.xlu0 %2223 }
 0x392   : > { %15390 = vst [vmem:[#allocation279_spill] sm:$0xff] %v9758_v51  ;;  %15393 = vst [vmem:[#allocation10_spill] sm:$0xff] %v9762_v25  ;;  %2947 = vrot.lane.b32.xlu0 %v6194_v28, %s6345_s11  ;;  %v9787_v28 = vmul.f32 %v14934_v19, %v15400_v54  ;;  %v15407_v16 = vld [vmem:[#allocation167_spill] sm:$0xff]  ;;  %v15410_v1 = vld [vmem:[#allocation236_spill] sm:$0xff] }
 0x393   : > { %v9771_v26 = vmax.f32 %v15395_v31, %v9691_v39  ;;  %v9777_v55 = vmax.f32 %v15397_v59, %v9695_v62  ;;  %v9783_v44 = vmax.f32 %v15398_v32, %v9699_v21  ;;  %v9793_v31 = vmax.f32 %v15402_v56, %v9721_v52  ;;  %v15408_v62 = vld [vmem:[#allocation8_spill] sm:$0xff]  ;;  %v6195_v54 = vld [vmem:[#allocation2 + $0xf8] sm:$0xff] }
 0x394   : > { %15401 = vst [vmem:[#allocation165_spill] sm:$0xff] %v9787_v28  ;;  %v9797_v59 = vmul.f32 %v15405_v15, %v15404_v30  ;;  %v9801_v39 = vmul.f32 %v15408_v62, %v15407_v16  ;;  %v9805_v32 = vmul.f32 %v15410_v1, %v15256_v33  ;;  %2945 = vrot.lane.b32.xlu1 %v6195_v54, %s6345_s11  ;;  %v15412_v60 = vld [vmem:[#allocation187_spill] sm:$0xff]  ;;  %v15419_v1 = vld [vmem:[#allocation212_spill] sm:$0xff]  ;;  %v15422_v54 = vld [vmem:[#allocation281_spill] sm:$0xff] }
 0x395   : > { %15399 = vst [vmem:[#allocation163_spill] sm:$0xff] %v9783_v44  ;;  %15403 = vst [vmem:[#allocation299_spill] sm:$0xff] %v9793_v31  ;;  %v15413_v56 = vld [vmem:[#allocation243_spill] sm:$0xff]  ;;  %v15420_v57 = vmax.f32 %v9266_v34, %v15419_v1  ;;  %v9830_v44 = vmul.f32 %v14685_v18, %v15422_v54  ;;  %v15428_v34 = vld [vmem:[#allocation6_spill] sm:$0xff]  ;;  %v9848_v1 = vpop.permute.xlu1 %2221 }
 0x396   : > { %15406 = vst [vmem:[#allocation14_spill] sm:$0xff] %v9797_v59  ;;  %15409 = vst [vmem:[#allocation159_spill] sm:$0xff] %v9801_v39  ;;  %v15414_v24 = vmax.f32 %v15412_v60, %v15413_v56  ;;  %v15416_v15 = vld [vmem:[#allocation211_spill] sm:$0xff]  ;;  %v6196_v54 = vld [vmem:[#allocation2 + $0x120] sm:$0xff] }
 0x397   : > { %15411 = vst [vmem:[#allocation167_spill] sm:$0xff] %v9805_v32  ;;  %v15417_v16 = vmax.f32 %v9260_v5, %v15416_v15  ;;  %v9826_v31 = vmax.f32 %v15420_v57, %v9742_v12  ;;  %15423 = vst [vmem:[#allocation281_spill] sm:$0xff] %v9830_v44  ;;  %v15429_v57 = vld [vmem:[#allocation16_spill] sm:$0xff]  ;;  %2951 = vrot.lane.b32.xlu0 %v6196_v54, %s6345_s11  ;;  %v15435_v5 = vld [vmem:[#allocation26_spill] sm:$0xff] }
 0x398   : > { %v9814_v52 = vmax.f32 %v15414_v24, %v9734_v53  ;;  %v15424_v24 = vmax.f32 %v9276_v35, %v9450_v8  ;;  %v9846_v12 = vmul.f32 %v15429_v57, %v15428_v34  ;;  %v15431_v35 = vld [vmem:[#allocation280_spill] sm:$0xff]  ;;  %v15441_v34 = vld [vmem:[#allocation29_spill] sm:$0xff]  ;;  %v15442_v57 = vld [vmem:[#allocation175_spill] sm:$0xff] }
 0x399   : > { %v9820_v21 = vmax.f32 %v15417_v16, %v9738_v42  ;;  %15421 = vst [vmem:[#allocation187_spill] sm:$0xff] %v9826_v31  ;;  %v15426_v16 = vld [vmem:[#allocation282_spill] sm:$0xff]  ;;  %v15436_v56 = vld [vmem:[#allocation224_spill] sm:$0xff]  ;;  %v15480_v46 = vld [vmem:[#allocation27_spill] sm:$0xff] }
 0x39a   : > { %15415 = vst [vmem:[#allocation8_spill] sm:$0xff] %v9814_v52  ;;  %v9836_v60 = vmax.f32 %v15424_v24, %v9758_v51  ;;  %v9842_v53 = vmul.f32 %v15426_v16, %v15263_v7  ;;  %15430 = vst [vmem:[#allocation6_spill] sm:$0xff] %v9846_v12  ;;  %v15432_v24 = vld [vmem:[#allocation76_spill] sm:$0xff]  ;;  %v9859_v15 = vmul.f32 %v15436_v56, %v15435_v5  ;;  %v15438_v16 = vld [vmem:[#allocation79_spill] sm:$0xff] }
 0x39b   : > { %15418 = vst [vmem:[#allocation236_spill] sm:$0xff] %v9820_v21  ;;  %v15433_v51 = vmax.f32 %v15431_v35, %v15432_v24  ;;  %v15439_v42 = vld [vmem:[#allocation20_spill] sm:$0xff]  ;;  %v6197_v24 = vld [vmem:[#allocation2 + $0x110] sm:$0xff] }
 0x39c   : > { %15425 = vst [vmem:[#allocation300_spill] sm:$0xff] %v9836_v60  ;;  %15427 = vst [vmem:[#allocation282_spill] sm:$0xff] %v9842_v53  ;;  %v9863_v7 = vmul.f32 %v15439_v42, %v15438_v16  ;;  %v9867_v60 = vmul.f32 %v15442_v57, %v15441_v34  ;;  %2949 = vrot.lane.b32.xlu1 %v6197_v24, %s6345_s11  ;;  %v2360_v16 = vpop.permute.xlu0 %2359  ;;  %v15446_v34 = vld [vmem:[#allocation285_spill] sm:$0xff]  ;;  %v15448_v42 = vld [vmem:[#allocation184_spill] sm:$0xff] }
 0x39d   : > { %v9855_v8 = vmax.f32 %v15433_v51, %v9787_v28  ;;  %15437 = vst [vmem:[#allocation224_spill] sm:$0xff] %v9859_v15  ;;  %v15444_v28 = vld [vmem:[#allocation283_spill] sm:$0xff]  ;;  %v9884_v54 = vmul.f32 %v15446_v34, %v15286_v48  ;;  %v9888_v35 = vmul.f32 %v15290_v41, %v15448_v42  ;;  %v15451_v5 = vld [vmem:[#allocation186_spill] sm:$0xff]  ;;  %v2226_v42 = vpop.permute.xlu1 %2225  ;;  %v6199_v24 = vld [vmem:[#allocation2 + $0x128] sm:$0xff] }
 0x39e   : > { %15440 = vst [vmem:[#allocation79_spill] sm:$0xff] %v9863_v7  ;;  %15443 = vst [vmem:[#allocation175_spill] sm:$0xff] %v9867_v60  ;;  %v9877_v56 = vmul.f32 %v15282_v3, %v15444_v28  ;;  %v15450_v51 = vld [vmem:[#allocation39_spill] sm:$0xff]  ;;  %v15453_v3 = vld [vmem:[#allocation190_spill] sm:$0xff] }
 0x39f   : > { %15434 = vst [vmem:[#allocation280_spill] sm:$0xff] %v9855_v8  ;;  %15447 = vst [vmem:[#allocation285_spill] sm:$0xff] %v9884_v54  ;;  %v9892_v32 = vmul.f32 %v15451_v5, %v15450_v51  ;;  %v9900_v57 = vmul.f32 %v15297_v6, %v15453_v3  ;;  %v15455_v34 = vld [vmem:[#allocation286_spill] sm:$0xff]  ;;  %v6198_v41 = vld [vmem:[#allocation2 + $0x138] sm:$0xff] }
 0x3a0   : > { %15445 = vst [vmem:[#allocation283_spill] sm:$0xff] %v9877_v56  ;;  %15449 = vst [vmem:[#allocation184_spill] sm:$0xff] %v9888_v35  ;;  %v9904_v48 = vmul.f32 %v15455_v34, %v15299_v14  ;;  %2955 = vrot.lane.b32.xlu0 %v6198_v41, %s6345_s11  ;;  %v15457_v51 = vld [vmem:[#allocation287_spill] sm:$0xff]  ;;  %v15459_v14 = vld [vmem:[#allocation288_spill] sm:$0xff]  ;;  %2953 = vrot.lane.b32.xlu1 %v6199_v24, %s6345_s11 }
 0x3a1   : > { %15452 = vst [vmem:[#allocation186_spill] sm:$0xff] %v9892_v32  ;;  %15454 = vst [vmem:[#allocation190_spill] sm:$0xff] %v9900_v57  ;;  %v9915_v3 = vmul.f32 %v14931_v2, %v15457_v51  ;;  %v9921_v6 = vmul.f32 %v15459_v14, %v15315_v40  ;;  %v15461_v41 = vld [vmem:[#allocation289_spill] sm:$0xff]  ;;  %v15463_v15 = vld [vmem:[#allocation19_spill] sm:$0xff]  ;;  %v2364_v51 = vpop.permute.xlu0 %2363  ;;  %v2362_v56 = vpop.permute.xlu1 %2361 }
 0x3a2   : > { %15456 = vst [vmem:[#allocation286_spill] sm:$0xff] %v9904_v48  ;;  %v9925_v5 = vmul.f32 %v15319_v22, %v15461_v41  ;;  %v15464_v28 = vld [vmem:[#allocation210_spill] sm:$0xff]  ;;  %v15466_v34 = vld [vmem:[#allocation295_spill] sm:$0xff]  ;;  %v15467_v14 = vld [vmem:[#allocation296_spill] sm:$0xff]  ;;  %v9939_v41 = vmul.f32 %v2360_v16, %v15391_v37 }
 0x3a3   : > { %15458 = vst [vmem:[#allocation287_spill] sm:$0xff] %v9915_v3  ;;  %15460 = vst [vmem:[#allocation288_spill] sm:$0xff] %v9921_v6  ;;  %v9929_v7 = vmul.f32 %v15464_v28, %v15463_v15  ;;  %v15470_v24 = vld [vmem:[#allocation215_spill] sm:$0xff]  ;;  %v15471_v60 = vld [vmem:[#allocation13_spill] sm:$0xff] }
 0x3a4   : > { %15462 = vst [vmem:[#allocation289_spill] sm:$0xff] %v9925_v5  ;;  %v9947_v0 = vmul.f32 %v15471_v60, %v15470_v24  ;;  %v15473_v2 = vld [vmem:[#allocation23_spill] sm:$0xff]  ;;  %v15474_v54 = vld [vmem:[#allocation18_spill] sm:$0xff]  ;;  %v15476_v37 = vld [vmem:[#allocation284_spill] sm:$0xff] }
 0x3a5   : > { %15465 = vst [vmem:[#allocation210_spill] sm:$0xff] %v9929_v7  ;;  %v9951_v61 = vmul.f32 %v15474_v54, %v15473_v2  ;;  %v6200_v35 = vld [vmem:[#allocation2 + $0x150] sm:$0xff]  ;;  %v15478_v28 = vld [vmem:[#allocation17_spill] sm:$0xff]  ;;  %v15483_v24 = vld [vmem:[#allocation291_spill] sm:$0xff] }
 0x3a6   : > { %15472 = vst [vmem:[#allocation295_spill] sm:$0xff] %v9947_v0  ;;  %2959 = vrot.lane.b32.xlu0 %v6200_v35, %s6345_s11  ;;  %v15477_v40 = vld [vmem:[#allocation222_spill] sm:$0xff]  ;;  %v15484_v60 = vld [vmem:[#allocation21_spill] sm:$0xff]  ;;  %v15517_v21 = vld [vmem:[#allocation64_spill] sm:$0xff] }
 0x3a7   : > { %15475 = vst [vmem:[#allocation296_spill] sm:$0xff] %v9951_v61  ;;  %v9958_v57 = vmul.f32 %v15478_v28, %v15477_v40  ;;  %v15481_v48 = vld [vmem:[#allocation290_spill] sm:$0xff]  ;;  %v9966_v22 = vmul.f32 %v15484_v60, %v15483_v24  ;;  %v9975_v40 = vmul.f32 %v2364_v51, %v15404_v30  ;;  %v6201_v28 = vld [vmem:[#allocation2 + $0x140] sm:$0xff]  ;;  %v15487_v2 = vld [vmem:[#allocation293_spill] sm:$0xff]  ;;  %v15493_v30 = vmax.f32 %v9502_v4, %v9762_v25 }
 0x3a8   : > { %v9962_v15 = vmul.f32 %v15481_v48, %v15480_v46  ;;  %2957 = vrot.lane.b32.xlu1 %v6201_v28, %s6345_s11  ;;  %v2368_v48 = vpop.permute.xlu0 %2367  ;;  %v15486_v46 = vld [vmem:[#allocation31_spill] sm:$0xff]  ;;  %v15489_v60 = vld [vmem:[#allocation297_spill] sm:$0xff]  ;;  %v15491_v35 = vld [vmem:[#allocation274_spill] sm:$0xff] }
 0x3a9   : > { %15479 = vst [vmem:[#allocation215_spill] sm:$0xff] %v9958_v57  ;;  %15485 = vst [vmem:[#allocation284_spill] sm:$0xff] %v9966_v22  ;;  %v9980_v24 = vmul.f32 %v15487_v2, %v15486_v46  ;;  %v9984_v54 = vmul.f32 %v15371_v13, %v15489_v60  ;;  %v9988_v5 = vmul.f32 %v15491_v35, %v15377_v43  ;;  %v15495_v28 = vld [vmem:[#allocation298_spill] sm:$0xff]  ;;  %v2366_v35 = vpop.permute.xlu1 %2365  ;;  %v6202_v43 = vld [vmem:[#allocation2 + $0x168] sm:$0xff] }
 0x3aa   : > { %15482 = vst [vmem:[#allocation18_spill] sm:$0xff] %v9962_v15  ;;  %v9994_v51 = vmax.f32 %v15493_v30, %v9939_v41  ;;  %v15496_v46 = vld [vmem:[#allocation30_spill] sm:$0xff]  ;;  %v10005_v13 = vmul.f32 %v15408_v62, %v2362_v56  ;;  %2963 = vrot.lane.b32.xlu0 %v6202_v43, %s6345_s11  ;;  %v15498_v16 = vld [vmem:[#allocation45_spill] sm:$0xff]  ;;  %v10020_v62 = vmul.f32 %v15389_v38, %v9848_v1  ;;  %v6203_v2 = vld [vmem:[#allocation2 + $0x158] sm:$0xff] }
 0x3ab   : > { %15488 = vst [vmem:[#allocation222_spill] sm:$0xff] %v9980_v24  ;;  %15490 = vst [vmem:[#allocation290_spill] sm:$0xff] %v9984_v54  ;;  %v10002_v60 = vmul.f32 %v15496_v46, %v9764_v45  ;;  %v10016_v45 = vmul.f32 %v9808_v58, %v15498_v16  ;;  %v10023_v56 = vmul.f32 %v14934_v19, %v2226_v42  ;;  %v15504_v16 = vld [vmem:[#allocation163_spill] sm:$0xff]  ;;  %v6204_v42 = vld [vmem:[#allocation2 + $0x1] sm:$0xff] }
 0x3ac   : > { %15492 = vst [vmem:[#allocation291_spill] sm:$0xff] %v9988_v5  ;;  %15494 = vst [vmem:[#allocation293_spill] sm:$0xff] %v9994_v51  ;;  %v15502_v43 = vmax.f32 %v9533_v11, %v9797_v59  ;;  %v10032_v30 = vmul.f32 %v2368_v48, %v15256_v33  ;;  %2961 = vrot.lane.b32.xlu1 %v6203_v2, %s6345_s11  ;;  %v2372_v58 = vpop.permute.xlu0 %2371  ;;  %v15505_v38 = vld [vmem:[#allocation299_spill] sm:$0xff]  ;;  %v4703_v11 = vsub.f32 %v9939_v41, %v9994_v51  ;;  %v15508_v19 = vld [vmem:[#allocation42_spill] sm:$0xff] }
 0x3ad   : > { %15497 = vst [vmem:[#allocation297_spill] sm:$0xff] %v10002_v60  ;;  %15499 = vst [vmem:[#allocation274_spill] sm:$0xff] %v10016_v45  ;;  %v15506_v48 = vmax.f32 %v9539_v36, %v9801_v39  ;;  %v2370_v1 = vpop.permute.xlu1 %2369  ;;  %v2743_v59 = vsub.f32 %v15508_v19, %v9994_v51  ;;  %v15509_v33 = vld [vmem:[#allocation67_spill] sm:$0xff]  ;;  %v15510_v36 = vld [vmem:[#allocation214_spill] sm:$0xff] }
 0x3ae   : > { %15500 = vst [vmem:[#allocation298_spill] sm:$0xff] %v10020_v62  ;;  %15501 = vst [vmem:[#allocation30_spill] sm:$0xff] %v10023_v56  ;;  %v10029_v4 = vmax.f32 %v15502_v43, %v9975_v40  ;;  %v10052_v43 = vmul.f32 %v14685_v18, %v2366_v35  ;;  %3223 = vrot.lane.b32.xlu0 %v6204_v42, %s6345_s11  ;;  %v3703_v60 = vsub.f32 %v15509_v33, %v9994_v51  ;;  %v15511_v39 = vld [vmem:[#allocation47_spill] sm:$0xff]  ;;  %v6205_v31 = vld [vmem:[#allocation2 + $0x170] sm:$0xff] }
 0x3af   : > { %v10049_v2 = vmax.f32 %v15506_v48, %v10005_v13  ;;  %v4303_v48 = vsub.f32 %v15510_v36, %v9994_v51  ;;  %v3063_v18 = vsub.f32 %v15511_v39, %v9994_v51  ;;  %v15513_v41 = vld [vmem:[#allocation167_spill] sm:$0xff]  ;;  %v4735_v39 = vmul.f32 1.442695, %v4703_v11  ;;  %v15516_v5 = vld [vmem:[#allocation22_spill] sm:$0xff] }
 0x3b0   : > { %15503 = vst [vmem:[#allocation301_spill] sm:$0xff] %v10029_v4  ;;  %v4705_v19 = vsub.f32 %v9975_v40, %v10029_v4  ;;  %v15514_v45 = vmax.f32 %v9545_v9, %v15513_v41  ;;  %2965 = vrot.lane.b32.xlu1 %v6205_v31, %s6345_s11  ;;  %v2376_v36 = vpop.permute.xlu0 %2375  ;;  %v10079_v52 = vmul.f32 %v2372_v58, %v15516_v5  ;;  %v15521_v31 = vld [vmem:[#allocation16_spill] sm:$0xff]  ;;  %v3735_v41 = vmul.f32 1.442695, %v3703_v60 }
 0x3b1   : > { %15507 = vst [vmem:[#allocation163_spill] sm:$0xff] %v10049_v2  ;;  %v2745_v42 = vsub.f32 %v15517_v21, %v10029_v4  ;;  %v4704_v8 = vsub.f32 %v10005_v13, %v10049_v2  ;;  %v15519_v9 = vmax.f32 %v9558_v23, %v9830_v44  ;;  %v10094_v11 = vmul.f32 %v15521_v31, %v2370_v1  ;;  %v2374_v5 = vpop.permute.xlu1 %2373  ;;  %v6206_v58 = vld [vmem:[#allocation2 + $0x19] sm:$0xff]  ;;  %v6207_v31 = vld [vmem:[#allocation2 + $0x9] sm:$0xff] }
 0x3b2   : > { %v10075_v33 = vmax.f32 %v15514_v45, %v10032_v30  ;;  %3227 = vrot.lane.b32.xlu0 %v6206_v58, %s6345_s11  ;;  %v2775_v21 = vmul.f32 1.442695, %v2743_v59  ;;  %v15522_v40 = vld [vmem:[#allocation44_spill] sm:$0xff]  ;;  %v10099_v62 = vmul.f32 1.442695, %v4303_v48  ;;  %5476 = vpow2.f32 %v4735_v39  ;;  %v6208_v59 = vld [vmem:[#allocation2 + $0x31] sm:$0xff] }
 0x3b3   : > { %v10091_v45 = vmax.f32 %v15519_v9, %v10052_v43  ;;  %v2744_v56 = vsub.f32 %v15522_v40, %v10049_v2  ;;  %v10101_v13 = vmul.f32 1.442695, %v3063_v18  ;;  %v4739_v35 = vmul.f32 1.442695, %v4705_v19  ;;  %v15524_v9 = vld [vmem:[#allocation26_spill] sm:$0xff] }
 0x3b4   : > { %15515 = vst [vmem:[#allocation299_spill] sm:$0xff] %v10075_v33  ;;  %v4707_v23 = vsub.f32 %v10032_v30, %v10075_v33  ;;  %v10106_v1 = vmul.f32 %v2376_v36, %v15524_v9  ;;  %3225 = vrot.lane.b32.xlu1 %v6207_v31, %s6345_s11  ;;  %v2380_v58 = vpop.permute.xlu0 %2379  ;;  %v15525_v60 = vmax.f32 %v9576_v50, %v9842_v53  ;;  %v2779_v18 = vmul.f32 1.442695, %v2745_v42  ;;  %v15527_v30 = vld [vmem:[#allocation74_spill] sm:$0xff]  ;;  %v15530_v50 = vld [vmem:[#allocation20_spill] sm:$0xff] }
 0x3b5   : > { %15520 = vst [vmem:[#allocation42_spill] sm:$0xff] %v10091_v45  ;;  %15523 = vst [vmem:[#allocation67_spill] sm:$0xff] %v10101_v13  ;;  %v2747_v19 = vsub.f32 %v15527_v30, %v10075_v33  ;;  %v4737_v36 = vmul.f32 1.442695, %v4704_v8  ;;  %v4706_v40 = vsub.f32 %v10052_v43, %v10091_v45  ;;  %v15528_v9 = vmax.f32 %v9582_v63, %v9846_v12  ;;  %v2378_v39 = vpop.permute.xlu1 %2377  ;;  %v15531_v8 = vld [vmem:[#allocation88_spill] sm:$0xff] }
 0x3b6   : > { %v10115_v48 = vmax.f32 %v15525_v60, %v10079_v52  ;;  %3231 = vrot.lane.b32.xlu0 %v6208_v59, %s6345_s11  ;;  %5478 = vpow2.f32 %v2775_v21  ;;  %v10129_v42 = vmul.f32 %v15530_v50, %v2374_v5  ;;  %v2777_v60 = vmul.f32 1.442695, %v2744_v56  ;;  %v15532_v63 = vld [vmem:[#allocation224_spill] sm:$0xff] }
 0x3b7   : > { %v10125_v31 = vmax.f32 %v15528_v9, %v10094_v11  ;;  %5480 = vpow2.f32 %v3735_v41  ;;  %v3705_v30 = vsub.f32 %v15531_v8, %v10029_v4  ;;  %v4743_v43 = vmul.f32 1.442695, %v4707_v23  ;;  %v6209_v53 = vld [vmem:[#allocation2 + $0x21] sm:$0xff] }
 0x3b8   : > { %15526 = vst [vmem:[#allocation214_spill] sm:$0xff] %v10115_v48  ;;  %5482 = vpow2.f32 %v4739_v35  ;;  %v15533_v9 = vmax.f32 %v9599_v49, %v15532_v63  ;;  %3229 = vrot.lane.b32.xlu1 %v6209_v53, %s6345_s11  ;;  %v2384_v21 = vpop.permute.xlu0 %2383  ;;  %v15535_v5 = vld [vmem:[#allocation216_spill] sm:$0xff]  ;;  %v4709_v56 = vsub.f32 %v10079_v52, %v10115_v48  ;;  %v15536_v41 = vld [vmem:[#allocation29_spill] sm:$0xff]  ;;  %v2783_v35 = vmul.f32 1.442695, %v2747_v19  ;;  %v15537_v53 = vld [vmem:[#allocation66_spill] sm:$0xff] }
 0x3b9   : > { %15529 = vst [vmem:[#allocation47_spill] sm:$0xff] %v10125_v31  ;;  %v4305_v59 = vsub.f32 %v15535_v5, %v10029_v4  ;;  %v10145_v50 = vmul.f32 %v2380_v58, %v15536_v41  ;;  %5484 = vpow2.f32 %v2779_v18  ;;  %v4741_v23 = vmul.f32 1.442695, %v4706_v40  ;;  %v2382_v8 = vpop.permute.xlu1 %2381  ;;  %v15538_v52 = vld [vmem:[#allocation79_spill] sm:$0xff]  ;;  %v15541_v18 = vld [vmem:[#allocation24_spill] sm:$0xff]  ;;  %v15542_v40 = vld [vmem:[#allocation33_spill] sm:$0xff] }
 0x3ba   : > { %v10137_v12 = vmax.f32 %v15533_v9, %v10106_v1  ;;  %5486 = vpow2.f32 %v4737_v36  ;;  %v4708_v49 = vsub.f32 %v10094_v11, %v10125_v31  ;;  %v6210_v9 = vld [vmem:[#allocation2 + $0x49] sm:$0xff]  ;;  %v2746_v5 = vsub.f32 %v15537_v53, %v10091_v45  ;;  %v6212_v13 = vld [vmem:[#allocation2 + $0x61] sm:$0xff] }
 0x3bb   : > { %3235 = vrot.lane.b32.xlu0 %v6210_v9, %s6345_s11  ;;  %v15539_v63 = vmax.f32 %v9605_v47, %v15538_v52  ;;  %v10159_v19 = vmul.f32 %v15541_v18, %v2378_v39  ;;  %5488 = vpow2.f32 %v2777_v60  ;;  %v3739_v36 = vmul.f32 1.442695, %v3705_v30  ;;  %v6211_v9 = vld [vmem:[#allocation2 + $0x39] sm:$0xff] }
 0x3bc   : > { %15534 = vst [vmem:[#allocation22_spill] sm:$0xff] %v10137_v12  ;;  %5490 = vpow2.f32 %v4743_v43  ;;  %v4711_v11 = vsub.f32 %v10106_v1, %v10137_v12  ;;  %v10164_v41 = vmul.f32 %v2384_v21, %v15542_v40  ;;  %3233 = vrot.lane.b32.xlu1 %v6211_v9, %s6345_s11  ;;  %v2388_v53 = vpop.permute.xlu0 %2387  ;;  %v15543_v47 = vld [vmem:[#allocation72_spill] sm:$0xff]  ;;  %v4747_v52 = vmul.f32 1.442695, %v4709_v56  ;;  %v15545_v18 = vld [vmem:[#allocation175_spill] sm:$0xff] }
 0x3bd   : > { %v10156_v58 = vmax.f32 %v15539_v63, %v10129_v42  ;;  %v3704_v63 = vsub.f32 %v15543_v47, %v10049_v2  ;;  %v15544_v39 = vld [vmem:[#allocation292_spill] sm:$0xff]  ;;  %5492 = vpow2.f32 %v2783_v35  ;;  %v15548_v1 = vld [vmem:[#allocation95_spill] sm:$0xff]  ;;  %v4745_v21 = vmul.f32 1.442695, %v4708_v49  ;;  %v2386_v9 = vpop.permute.xlu1 %2385 }
 0x3be   : > { %v15546_v60 = vmax.f32 %v15544_v39, %v15545_v18  ;;  %v2749_v43 = vsub.f32 %v15548_v1, %v10115_v48  ;;  %5494 = vpow2.f32 %v4741_v23  ;;  %v15549_v40 = vld [vmem:[#allocation28_spill] sm:$0xff]  ;;  %v2781_v56 = vmul.f32 1.442695, %v2746_v5  ;;  %v15550_v39 = vld [vmem:[#allocation273_spill] sm:$0xff]  ;;  %v15555_v1 = vld [vmem:[#allocation294_spill] sm:$0xff] }
 0x3bf   : > { %15540 = vst [vmem:[#allocation64_spill] sm:$0xff] %v10156_v58  ;;  %v10178_v44 = vmul.f32 %v15549_v40, %v2382_v8  ;;  %3239 = vrot.lane.b32.xlu0 %v6212_v13, %s6345_s11  ;;  %v4710_v47 = vsub.f32 %v10129_v42, %v10156_v58  ;;  %5496 = vpow2.f32 %v3739_v36  ;;  %v15554_v23 = vld [vmem:[#allocation109_spill] sm:$0xff]  ;;  %v4751_v8 = vmul.f32 1.442695, %v4711_v11  ;;  %v15559_v5 = vld [vmem:[#allocation39_spill] sm:$0xff] }
 0x3c0   : > { %v10173_v30 = vmax.f32 %v15546_v60, %v10145_v50  ;;  %v15551_v60 = vld [vmem:[#allocation283_spill] sm:$0xff]  ;;  %v3707_v49 = vsub.f32 %v15554_v23, %v10075_v33  ;;  %v15556_v40 = vld [vmem:[#allocation285_spill] sm:$0xff]  ;;  %v10198_v51 = vmul.f32 %v2388_v53, %v15559_v5  ;;  %5498 = vpow2.f32 %v4747_v52  ;;  %v15564_v5 = vld [vmem:[#allocation32_spill] sm:$0xff] }
 0x3c1   : > { %v15552_v35 = vmax.f32 %v15550_v39, %v15551_v60  ;;  %v15557_v25 = vmax.f32 %v15555_v1, %v15556_v40  ;;  %v6213_v42 = vld [vmem:[#allocation2 + $0x51] sm:$0xff]  ;;  %v2392_v39 = vpop.permute.xlu0 %2391  ;;  %v2787_v23 = vmul.f32 1.442695, %v2749_v43  ;;  %v10203_v11 = vmul.f32 1.442695, %v4305_v59  ;;  %v10205_v60 = vpop.eup %5476  ;;  %v6214_v52 = vld [vmem:[#allocation2 + $0x79] sm:$0xff] }
 0x3c2   : > { %15547 = vst [vmem:[#allocation16_spill] sm:$0xff] %v10173_v30  ;;  %3237 = vrot.lane.b32.xlu1 %v6213_v42, %s6345_s11  ;;  %v4713_v36 = vsub.f32 %v10145_v50, %v10173_v30  ;;  %15560 = vst [vmem:[#allocation74_spill] sm:$0xff] %v10205_v60  ;;  %5500 = vpow2.f32 %v4745_v21  ;;  %v10214_v42 = vmul.f32 %v15564_v5, %v2386_v9  ;;  %v15565_v50 = vld [vmem:[#allocation87_spill] sm:$0xff]  ;;  %v4749_v60 = vmul.f32 1.442695, %v4710_v47 }
 0x3c3   : > { %v10187_v18 = vmax.f32 %v15552_v35, %v10159_v19  ;;  %v10195_v13 = vmax.f32 %v15557_v25, %v10164_v41  ;;  %v3737_v35 = vmul.f32 1.442695, %v3704_v63  ;;  %v15561_v25 = vld [vmem:[#allocation184_spill] sm:$0xff]  ;;  %v2390_v63 = vpop.permute.xlu1 %2389  ;;  %3243 = vrot.lane.b32.xlu0 %v6214_v52, %s6345_s11  ;;  %v2748_v59 = vsub.f32 %v15565_v50, %v10125_v31  ;;  %v10219_v43 = vpop.eup %5478  ;;  %v15570_v47 = vld [vmem:[#allocation11_spill] sm:$0xff] }
 0x3c4   : > { %v15562_v53 = vmax.f32 %v15466_v34, %v15561_v25  ;;  %15566 = vst [vmem:[#allocation88_spill] sm:$0xff] %v10219_v43  ;;  %5502 = vpow2.f32 %v10099_v62  ;;  %v10224_v34 = vmul.f32 1.442695, %v3707_v49  ;;  %v15568_v5 = vmax.f32 %v15467_v14, %v9892_v32 }
 0x3c5   : > { %15553 = vst [vmem:[#allocation44_spill] sm:$0xff] %v10187_v18  ;;  %15558 = vst [vmem:[#allocation26_spill] sm:$0xff] %v10195_v13  ;;  %v4712_v21 = vsub.f32 %v10159_v19, %v10187_v18  ;;  %5504 = vpow2.f32 %v4751_v8  ;;  %v4715_v9 = vsub.f32 %v10164_v41, %v10195_v13  ;;  %v10237_v50 = vmul.f32 %v2392_v39, %v15570_v47  ;;  %v6215_v19 = vld [vmem:[#allocation2 + $0x69] sm:$0xff]  ;;  %v2396_v62 = vpop.permute.xlu0 %2395 }
 0x3c6   : > { %v10211_v1 = vmax.f32 %v15562_v53, %v10178_v44  ;;  %v10226_v53 = vpop.eup %5480  ;;  %v10234_v52 = vmax.f32 %v15568_v5, %v10198_v51  ;;  %3241 = vrot.lane.b32.xlu1 %v6215_v19, %s6345_s11  ;;  %v4755_v25 = vmul.f32 1.442695, %v4713_v36  ;;  %v15572_v8 = vld [vmem:[#allocation37_spill] sm:$0xff]  ;;  %5506 = vpow2.f32 %v2781_v56  ;;  %v15576_v47 = vld [vmem:[#allocation190_spill] sm:$0xff] }
 0x3c7   : > { %15567 = vst [vmem:[#allocation216_spill] sm:$0xff] %v10226_v53  ;;  %v10240_v49 = vpop.eup %5482  ;;  %v10243_v40 = vmul.f32 %v15572_v8, %v2390_v63  ;;  %v15573_v41 = vld [vmem:[#allocation93_spill] sm:$0xff]  ;;  %v6216_v36 = vld [vmem:[#allocation2 + $0x91] sm:$0xff]  ;;  %v10258_v63 = vmul.f32 1.442695, %v2748_v59  ;;  %5508 = vpow2.f32 %v4749_v60 }
 0x3c8   : > { %15563 = vst [vmem:[#allocation20_spill] sm:$0xff] %v10211_v1  ;;  %15569 = vst [vmem:[#allocation29_spill] sm:$0xff] %v10234_v52  ;;  %v3706_v4 = vsub.f32 %v15573_v41, %v10091_v45  ;;  %v10247_v14 = vpop.eup %5484  ;;  %v4714_v39 = vsub.f32 %v10178_v44, %v10211_v1  ;;  %v15575_v5 = vld [vmem:[#allocation229_spill] sm:$0xff]  ;;  %3247 = vrot.lane.b32.xlu0 %v6216_v36, %s6345_s11  ;;  %v4753_v53 = vmul.f32 1.442695, %v4712_v21  ;;  %v15581_v44 = vld [vmem:[#allocation15_spill] sm:$0xff]  ;;  %5510 = vpow2.f32 %v3737_v35 }
 0x3c9   : > { %15571 = vst [vmem:[#allocation66_spill] sm:$0xff] %v10240_v49  ;;  %15574 = vst [vmem:[#allocation24_spill] sm:$0xff] %v10247_v14  ;;  %v15577_v19 = vmax.f32 %v15575_v5, %v15576_v47  ;;  %v2394_v49 = vpop.permute.xlu1 %2393  ;;  %v15579_v56 = vld [vmem:[#allocation217_spill] sm:$0xff]  ;;  %v10262_v41 = vpop.eup %5486  ;;  %v10265_v14 = vmul.f32 %v2396_v62, %v15581_v44  ;;  %v15582_v5 = vld [vmem:[#allocation115_spill] sm:$0xff]  ;;  %v4759_v43 = vmul.f32 1.442695, %v4715_v9  ;;  %v4717_v59 = vsub.f32 %v10198_v51, %v10234_v52 }
 0x3ca   : > { %v4304_v8 = vsub.f32 %v15579_v56, %v10049_v2  ;;  %15580 = vst [vmem:[#allocation72_spill] sm:$0xff] %v10262_v41  ;;  %v10269_v47 = vpop.eup %5488  ;;  %v15584_v36 = vld [vmem:[#allocation176_spill] sm:$0xff]  ;;  %v15585_v1 = vld [vmem:[#allocation286_spill] sm:$0xff]  ;;  %v2400_v21 = vpop.permute.xlu0 %2399  ;;  %5512 = vpow2.f32 %v4755_v25  ;;  %v15589_v9 = vmax.f32 %v15476_v37, %v9915_v3  ;;  %v15591_v51 = vld [vmem:[#allocation9_spill] sm:$0xff]  ;;  %v4757_v41 = vmul.f32 1.442695, %v4714_v39 }
 0x3cb   : > { %v10255_v32 = vmax.f32 %v15577_v19, %v10214_v42  ;;  %v2751_v19 = vsub.f32 %v15582_v5, %v10137_v12  ;;  %15583 = vst [vmem:[#allocation292_spill] sm:$0xff] %v10269_v47  ;;  %v15586_v56 = vmax.f32 %v15584_v36, %v15585_v1  ;;  %v6217_v60 = vld [vmem:[#allocation2 + $0x81] sm:$0xff]  ;;  %v10280_v62 = vpop.eup %5490  ;;  %v10289_v5 = vmul.f32 %v15591_v51, %v2394_v49  ;;  %v6218_v1 = vld [vmem:[#allocation2 + $0xa9] sm:$0xff]  ;;  %v15596_v39 = vld [vmem:[#allocation19_spill] sm:$0xff] }
 0x3cc   : > { %3245 = vrot.lane.b32.xlu1 %v6217_v60, %s6345_s11  ;;  %15588 = vst [vmem:[#allocation28_spill] sm:$0xff] %v10280_v62  ;;  %v10286_v44 = vmax.f32 %v15589_v9, %v10243_v40  ;;  %v3741_v36 = vmul.f32 1.442695, %v3706_v4  ;;  %3251 = vrot.lane.b32.xlu0 %v6218_v1, %s6345_s11  ;;  %5514 = vpow2.f32 %v2787_v23  ;;  %v10296_v25 = vmul.f32 1.442695, %v4304_v8  ;;  %v6219_v8 = vld [vmem:[#allocation2 + $0x99] sm:$0xff] }
 0x3cd   : > { %15578 = vst [vmem:[#allocation33_spill] sm:$0xff] %v10255_v32  ;;  %v10277_v2 = vmax.f32 %v15586_v56, %v10237_v50  ;;  %v10291_v56 = vpop.eup %5492  ;;  %v4716_v60 = vsub.f32 %v10214_v42, %v10255_v32  ;;  %v2398_v35 = vpop.permute.xlu1 %2397  ;;  %5516 = vpow2.f32 %v4753_v53  ;;  %v15594_v4 = vmax.f32 %v9705_v20, %v9921_v6  ;;  %v15598_v20 = vld [vmem:[#allocation127_spill] sm:$0xff]  ;;  %v15670_v3 = vld [vmem:[#allocation136_spill] sm:$0xff] }
 0x3ce   : > { %15590 = vst [vmem:[#allocation273_spill] sm:$0xff] %v10286_v44  ;;  %15592 = vst [vmem:[#allocation109_spill] sm:$0xff] %v10291_v56  ;;  %v10298_v37 = vpop.eup %5494  ;;  %v10307_v9 = vmul.f32 %v2400_v21, %v15596_v39  ;;  %v10309_v42 = vmul.f32 1.442695, %v2751_v19  ;;  %5518 = vpow2.f32 %v4759_v43  ;;  %v4763_v23 = vmul.f32 1.442695, %v4717_v59  ;;  %v2404_v53 = vpop.permute.xlu0 %2403 }
 0x3cf   : > { %15587 = vst [vmem:[#allocation95_spill] sm:$0xff] %v10277_v2  ;;  %15593 = vst [vmem:[#allocation294_spill] sm:$0xff] %v10298_v37  ;;  %v10304_v49 = vmax.f32 %v15594_v4, %v10265_v14  ;;  %v10311_v51 = vpop.eup %5496  ;;  %v4719_v1 = vsub.f32 %v10237_v50, %v10277_v2  ;;  %v3709_v4 = vsub.f32 %v15598_v20, %v10115_v48  ;;  %v15599_v19 = vld [vmem:[#allocation289_spill] sm:$0xff]  ;;  %5520 = vpow2.f32 %v10224_v34  ;;  %v15604_v62 = vld [vmem:[#allocation23_spill] sm:$0xff] }
 0x3d0   : > { %15597 = vst [vmem:[#allocation32_spill] sm:$0xff] %v10311_v51  ;;  %3249 = vrot.lane.b32.xlu1 %v6219_v8, %s6345_s11  ;;  %v4718_v21 = vsub.f32 %v10243_v40, %v10286_v44  ;;  %v15600_v39 = vmax.f32 %v9711_v29, %v15599_v19  ;;  %v15602_v43 = vld [vmem:[#allocation13_spill] sm:$0xff]  ;;  %v10330_v50 = vpop.eup %5498  ;;  %5522 = vpow2.f32 %v4757_v41  ;;  %v4761_v8 = vmul.f32 1.442695, %v4716_v60  ;;  %v15605_v29 = vld [vmem:[#allocation218_spill] sm:$0xff] }
 0x3d1   : > { %15595 = vst [vmem:[#allocation39_spill] sm:$0xff] %v10304_v49  ;;  %v10327_v59 = vmul.f32 %v15602_v43, %v2398_v35  ;;  %15603 = vst [vmem:[#allocation11_spill] sm:$0xff] %v10330_v50  ;;  %v10333_v20 = vmul.f32 %v2404_v53, %v15604_v62  ;;  %v2402_v6 = vpop.permute.xlu1 %2401  ;;  %v6220_v40 = vld [vmem:[#allocation2 + $0xc1] sm:$0xff]  ;;  %v10338_v19 = vpop.eup %5500  ;;  %v4721_v35 = vsub.f32 %v10265_v14, %v10304_v49  ;;  %5524 = vpow2.f32 %v10203_v11  ;;  %v15609_v62 = vld [vmem:[#allocation107_spill] sm:$0xff] }
 0x3d2   : > { %v10324_v37 = vmax.f32 %v15600_v39, %v10289_v5  ;;  %3255 = vrot.lane.b32.xlu0 %v6220_v40, %s6345_s11  ;;  %v4307_v39 = vsub.f32 %v15605_v29, %v10075_v33  ;;  %15606 = vst [vmem:[#allocation37_spill] sm:$0xff] %v10338_v19  ;;  %v15607_v34 = vmax.f32 %v9717_v17, %v9929_v7  ;;  %v10351_v53 = vpop.eup %5502  ;;  %5526 = vpow2.f32 %v4763_v23  ;;  %v15611_v40 = vld [vmem:[#allocation17_spill] sm:$0xff]  ;;  %v6221_v19 = vld [vmem:[#allocation2 + $0xb1] sm:$0xff]  ;;  %v2408_v14 = vpop.permute.xlu0 %2407 }
 0x3d3   : > { %v2750_v60 = vsub.f32 %v15609_v62, %v10156_v58  ;;  %15610 = vst [vmem:[#allocation229_spill] sm:$0xff] %v10351_v53  ;;  %v4767_v43 = vmul.f32 1.442695, %v4719_v1  ;;  %v10354_v29 = vmul.f32 %v15611_v40, %v2402_v6  ;;  %v15612_v17 = vld [vmem:[#allocation114_spill] sm:$0xff]  ;;  %v10359_v50 = vpop.eup %5504  ;;  %v4765_v11 = vmul.f32 1.442695, %v4718_v21 }
 0x3d4   : > { %15601 = vst [vmem:[#allocation87_spill] sm:$0xff] %v10324_v37  ;;  %v10346_v41 = vmax.f32 %v15607_v34, %v10307_v9  ;;  %3253 = vrot.lane.b32.xlu1 %v6221_v19, %s6345_s11  ;;  %v3708_v34 = vsub.f32 %v15612_v17, %v10125_v31  ;;  %15613 = vst [vmem:[#allocation217_spill] sm:$0xff] %v10359_v50  ;;  %v4720_v62 = vsub.f32 %v10289_v5, %v10324_v37  ;;  %v10370_v6 = vpop.eup %5506  ;;  %v15619_v21 = vld [vmem:[#allocation27_spill] sm:$0xff] }
 0x3d5   : > { %v15614_v23 = vmax.f32 %v15495_v28, %v9947_v0  ;;  %5528 = vpow2.f32 %v10258_v63  ;;  %15616 = vst [vmem:[#allocation115_spill] sm:$0xff] %v10370_v6  ;;  %v15617_v19 = vmax.f32 %v9748_v27, %v9951_v61  ;;  %v10379_v17 = vmul.f32 %v2408_v14, %v15619_v21  ;;  %v2406_v5 = vpop.permute.xlu1 %2405  ;;  %v6222_v50 = vld [vmem:[#allocation2 + $0xd9] sm:$0xff]  ;;  %v10384_v0 = vpop.eup %5508 }
 0x3d6   : > { %15608 = vst [vmem:[#allocation93_spill] sm:$0xff] %v10346_v41  ;;  %5530 = vpow2.f32 %v4761_v8  ;;  %3259 = vrot.lane.b32.xlu0 %v6222_v50, %s6345_s11  ;;  %v3747_v28 = vmul.f32 1.442695, %v3709_v4  ;;  %v4723_v63 = vsub.f32 %v10307_v9, %v10346_v41  ;;  %v4343_v8 = vmul.f32 1.442695, %v4307_v39  ;;  %15620 = vst [vmem:[#allocation9_spill] sm:$0xff] %v10384_v0  ;;  %v2412_v4 = vpop.permute.xlu0 %2411 }
 0x3d7   : > { %v10367_v1 = vmax.f32 %v15614_v23, %v10327_v59  ;;  %v10376_v40 = vmax.f32 %v15617_v19, %v10333_v20  ;;  %v4771_v23 = vmul.f32 1.442695, %v4721_v35  ;;  %5532 = vpow2.f32 %v3741_v36  ;;  %v15623_v19 = vld [vmem:[#allocation21_spill] sm:$0xff]  ;;  %v10398_v36 = vpop.eup %5510 }
 0x3d8   : > { %5534 = vpow2.f32 %v4767_v43  ;;  %v15621_v27 = vmax.f32 %v9754_v10, %v9958_v57  ;;  %v10393_v21 = vmul.f32 %v15623_v19, %v2406_v5  ;;  %v6223_v50 = vld [vmem:[#allocation2 + $0xc9] sm:$0xff]  ;;  %v10396_v35 = vmul.f32 1.442695, %v2750_v60  ;;  %15624 = vst [vmem:[#allocation127_spill] sm:$0xff] %v10398_v36  ;;  %v10404_v10 = vpop.eup %5512  ;;  %v15628_v19 = vld [vmem:[#allocation31_spill] sm:$0xff] }
 0x3d9   : > { %15615 = vst [vmem:[#allocation15_spill] sm:$0xff] %v10367_v1  ;;  %15618 = vst [vmem:[#allocation176_spill] sm:$0xff] %v10376_v40  ;;  %3257 = vrot.lane.b32.xlu1 %v6223_v50, %s6345_s11  ;;  %5536 = vpow2.f32 %v4765_v11  ;;  %v4769_v9 = vmul.f32 1.442695, %v4720_v62  ;;  %v4722_v39 = vsub.f32 %v10327_v59, %v10367_v1  ;;  %v10402_v43 = vmul.f32 1.442695, %v3708_v34  ;;  %v2410_v11 = vpop.permute.xlu1 %2409  ;;  %v10419_v59 = vpop.eup %5514 }
 0x3da   : > { %v10390_v14 = vmax.f32 %v15621_v27, %v10354_v29  ;;  %15625 = vst [vmem:[#allocation13_spill] sm:$0xff] %v10404_v10  ;;  %v4725_v5 = vsub.f32 %v10333_v20, %v10376_v40  ;;  %v15626_v27 = vmax.f32 %v9771_v26, %v9962_v15  ;;  %v10415_v50 = vmul.f32 %v2412_v4, %v15628_v19  ;;  %v6224_v62 = vld [vmem:[#allocation2 + $0xf1] sm:$0xff]  ;;  %v15630_v20 = vld [vmem:[#allocation25_spill] sm:$0xff]  ;;  %v10426_v0 = vpop.eup %5516 }
 0x3db   : > { %3263 = vrot.lane.b32.xlu0 %v6224_v62, %s6345_s11  ;;  %5538 = vpow2.f32 %v10296_v25  ;;  %15629 = vst [vmem:[#allocation218_spill] sm:$0xff] %v10419_v59  ;;  %v4775_v34 = vmul.f32 1.442695, %v4723_v63  ;;  %v10422_v10 = vmul.f32 %v15630_v20, %v2410_v11  ;;  %v15631_v26 = vld [vmem:[#allocation219_spill] sm:$0xff]  ;;  %15632 = vst [vmem:[#allocation107_spill] sm:$0xff] %v10426_v0  ;;  %v15633_v19 = vmax.f32 %v9777_v55, %v9966_v22  ;;  %v6225_v62 = vld [vmem:[#allocation2 + $0xe1] sm:$0xff]  ;;  %v10440_v20 = vpop.eup %5518 }
 0x3dc   : > { %15622 = vst [vmem:[#allocation19_spill] sm:$0xff] %v10390_v14  ;;  %v10412_v60 = vmax.f32 %v15626_v27, %v10379_v17  ;;  %5540 = vpow2.f32 %v4771_v23  ;;  %v4306_v27 = vsub.f32 %v15631_v26, %v10091_v45  ;;  %v4724_v4 = vsub.f32 %v10354_v29, %v10390_v14  ;;  %v2416_v23 = vpop.permute.xlu0 %2415  ;;  %v15635_v63 = vld [vmem:[#allocation131_spill] sm:$0xff]  ;;  %15636 = vst [vmem:[#allocation114_spill] sm:$0xff] %v10440_v20  ;;  %v15638_v55 = vld [vmem:[#allocation133_spill] sm:$0xff]  ;;  %v10447_v22 = vpop.eup %5520 }
 0x3dd   : > { %v10434_v25 = vmax.f32 %v15633_v19, %v10393_v21  ;;  %3261 = vrot.lane.b32.xlu1 %v6225_v62, %s6345_s11  ;;  %5542 = vpow2.f32 %v10309_v42  ;;  %v2753_v11 = vsub.f32 %v15635_v63, %v10173_v30  ;;  %v4773_v26 = vmul.f32 1.442695, %v4722_v39  ;;  %v15637_v29 = vld [vmem:[#allocation35_spill] sm:$0xff]  ;;  %15639 = vst [vmem:[#allocation27_spill] sm:$0xff] %v10447_v22  ;;  %v6226_v39 = vld [vmem:[#allocation2 + $0x109] sm:$0xff] }
 0x3de   : > { %15627 = vst [vmem:[#allocation23_spill] sm:$0xff] %v10412_v60  ;;  %5544 = vpow2.f32 %v4769_v9  ;;  %v10443_v0 = vmul.f32 %v2416_v23, %v15637_v29  ;;  %v3711_v19 = vsub.f32 %v15638_v55, %v10137_v12  ;;  %v4779_v15 = vmul.f32 1.442695, %v4725_v5  ;;  %v2414_v9 = vpop.permute.xlu1 %2413  ;;  %v10458_v23 = vpop.eup %5522  ;;  %v6229_v57 = vld [vmem:[#allocation2 + $0x111] sm:$0xff] }
 0x3df   : > { %15634 = vst [vmem:[#allocation17_spill] sm:$0xff] %v10434_v25  ;;  %v4727_v62 = vsub.f32 %v10379_v17, %v10412_v60  ;;  %v15640_v42 = vmax.f32 %v15504_v16, %v9980_v24  ;;  %3267 = vrot.lane.b32.xlu0 %v6226_v39, %s6345_s11  ;;  %5546 = vpow2.f32 %v3747_v28  ;;  %15642 = vst [vmem:[#allocation31_spill] sm:$0xff] %v10458_v23  ;;  %v4341_v16 = vmul.f32 1.442695, %v4306_v27  ;;  %v10469_v55 = vpop.eup %5524  ;;  %v6227_v28 = vld [vmem:[#allocation2 + $0xf9] sm:$0xff] }
 0x3e0   : > { %5548 = vpow2.f32 %v4775_v34  ;;  %v15643_v5 = vmax.f32 %v15505_v38, %v9984_v54  ;;  %v10467_v17 = vmul.f32 %v15496_v46, %v2414_v9  ;;  %15645 = vst [vmem:[#allocation219_spill] sm:$0xff] %v10469_v55  ;;  %v4726_v39 = vsub.f32 %v10393_v21, %v10434_v25  ;;  %v2420_v34 = vpop.permute.xlu0 %2419  ;;  %v10474_v20 = vpop.eup %5526  ;;  %v15647_v38 = vld [vmem:[#allocation8_spill] sm:$0xff]  ;;  %v15648_v46 = vld [vmem:[#allocation291_spill] sm:$0xff] }
 0x3e1   : > { %v10455_v63 = vmax.f32 %v15640_v42, %v10415_v50  ;;  %v4777_v42 = vmul.f32 1.442695, %v4724_v4  ;;  %3265 = vrot.lane.b32.xlu1 %v6227_v28, %s6345_s11  ;;  %5550 = vpow2.f32 %v4343_v8  ;;  %v2795_v23 = vmul.f32 1.442695, %v2753_v11  ;;  %15646 = vst [vmem:[#allocation131_spill] sm:$0xff] %v10474_v20  ;;  %v15652_v21 = vld [vmem:[#allocation220_spill] sm:$0xff] }
 0x3e2   : > { %v10464_v29 = vmax.f32 %v15643_v5, %v10422_v10  ;;  %5552 = vpow2.f32 %v4773_v26  ;;  %v15649_v9 = vmax.f32 %v15647_v38, %v15648_v46  ;;  %v15651_v5 = vld [vmem:[#allocation45_spill] sm:$0xff]  ;;  %v4309_v54 = vsub.f32 %v15652_v21, %v10115_v48  ;;  %v10487_v24 = vpop.eup %5528  ;;  %v2418_v26 = vpop.permute.xlu1 %2417 }
 0x3e3   : > { %15641 = vst [vmem:[#allocation21_spill] sm:$0xff] %v10455_v63  ;;  %v10483_v4 = vmul.f32 %v2420_v34, %v15651_v5  ;;  %15653 = vst [vmem:[#allocation133_spill] sm:$0xff] %v10487_v24  ;;  %5554 = vpow2.f32 %v4779_v15  ;;  %v4783_v8 = vmul.f32 1.442695, %v4727_v62  ;;  %v4729_v11 = vsub.f32 %v10415_v50, %v10455_v63  ;;  %v6228_v28 = vld [vmem:[#allocation2 + $0x121] sm:$0xff]  ;;  %v15659_v15 = vld [vmem:[#allocation126_spill] sm:$0xff] }
 0x3e4   : > { %15644 = vst [vmem:[#allocation25_spill] sm:$0xff] %v10464_v29  ;;  %v10480_v27 = vmax.f32 %v15649_v9, %v10443_v0  ;;  %3271 = vrot.lane.b32.xlu0 %v6228_v28, %s6345_s11  ;;  %v3751_v38 = vmul.f32 1.442695, %v3711_v19  ;;  %v10492_v9 = vpop.eup %5530  ;;  %v4728_v34 = vsub.f32 %v10422_v10, %v10464_v29  ;;  %v15655_v5 = vld [vmem:[#allocation236_spill] sm:$0xff]  ;;  %v15656_v21 = vld [vmem:[#allocation297_spill] sm:$0xff]  ;;  %5556 = vpow2.f32 %v10396_v35  ;;  %v15661_v28 = vld [vmem:[#allocation34_spill] sm:$0xff]  ;;  %v10511_v10 = vpop.permute.xlu0 %2903 }
 0x3e5   : > { %15654 = vst [vmem:[#allocation8_spill] sm:$0xff] %v10492_v9  ;;  %v15657_v46 = vmax.f32 %v15655_v5, %v15656_v21  ;;  %v2752_v50 = vsub.f32 %v15659_v15, %v10187_v18  ;;  %v10505_v62 = vpop.eup %5532  ;;  %5558 = vpow2.f32 %v4777_v42  ;;  %v4781_v19 = vmul.f32 1.442695, %v4726_v39  ;;  %3269 = vrot.lane.b32.xlu1 %v6229_v57, %s6345_s11  ;;  %v15664_v15 = vld [vmem:[#allocation187_spill] sm:$0xff]  ;;  %v15665_v42 = vld [vmem:[#allocation274_spill] sm:$0xff] }
 0x3e6   : > { %15650 = vst [vmem:[#allocation35_spill] sm:$0xff] %v10480_v27  ;;  %15660 = vst [vmem:[#allocation220_spill] sm:$0xff] %v10505_v62  ;;  %v10508_v9 = vmul.f32 %v15661_v28, %v2418_v26  ;;  %v10515_v21 = vpop.eup %5534  ;;  %v4731_v35 = vsub.f32 %v10443_v0, %v10480_v27  ;;  %v15666_v39 = vmax.f32 %v15664_v15, %v15665_v42  ;;  %5560 = vpow2.f32 %v10402_v43  ;;  %v2422_v7 = vpop.permute.xlu1 %2421 }
 0x3e7   : > { %v10500_v20 = vmax.f32 %v15657_v46, %v10467_v17  ;;  %v15662_v46 = vld [vmem:[#allocation130_spill] sm:$0xff]  ;;  %15663 = vst [vmem:[#allocation236_spill] sm:$0xff] %v10515_v21  ;;  %v4347_v26 = vmul.f32 1.442695, %v4309_v54  ;;  %v10526_v57 = vpop.eup %5536  ;;  %5562 = vpow2.f32 %v4783_v8  ;;  %v4787_v28 = vmul.f32 1.442695, %v4729_v11 }
 0x3e8   : > { %v3710_v5 = vsub.f32 %v15662_v46, %v10156_v58  ;;  %v10523_v61 = vmax.f32 %v15666_v39, %v10483_v4  ;;  %15668 = vst [vmem:[#allocation34_spill] sm:$0xff] %v10526_v57  ;;  %v6230_v46 = vld [vmem:[#allocation2 + $0x139] sm:$0xff]  ;;  %v15669_v21 = vld [vmem:[#allocation221_spill] sm:$0xff]  ;;  %v2755_v48 = vsub.f32 %v15670_v3, %v10195_v13  ;;  %v10533_v15 = vpop.eup %5538  ;;  %v4785_v39 = vmul.f32 1.442695, %v4728_v34  ;;  %v10546_v3 = vpop.permute.xlu0 %2907 }
 0x3e9   : > { %15658 = vst [vmem:[#allocation45_spill] sm:$0xff] %v10500_v20  ;;  %3275 = vrot.lane.b32.xlu0 %v6230_v46, %s6345_s11  ;;  %v4308_v0 = vsub.f32 %v15669_v21, %v10125_v31  ;;  %15671 = vst [vmem:[#allocation130_spill] sm:$0xff] %v10533_v15  ;;  %v4730_v54 = vsub.f32 %v10467_v17, %v10500_v20  ;;  %5564 = vpow2.f32 %v4341_v16  ;;  %v2793_v43 = vmul.f32 1.442695, %v2752_v50  ;;  %v10537_v8 = vpop.eup %5540  ;;  %v15673_v11 = vld [vmem:[#allocation300_spill] sm:$0xff]  ;;  %v15674_v46 = vld [vmem:[#allocation298_spill] sm:$0xff] }
 0x3ea   : > { %15667 = vst [vmem:[#allocation126_spill] sm:$0xff] %v10523_v61  ;;  %15672 = vst [vmem:[#allocation187_spill] sm:$0xff] %v10537_v8  ;;  %5566 = vpow2.f32 %v4781_v19  ;;  %v15675_v42 = vmax.f32 %v15673_v11, %v15674_v46  ;;  %v6231_v21 = vld [vmem:[#allocation2 + $0x129] sm:$0xff]  ;;  %v10548_v34 = vmul.f32 1.442695, %v3710_v5  ;;  %v10552_v50 = vpop.eup %5542  ;;  %v4733_v19 = vsub.f32 %v10483_v4, %v10523_v61  ;;  %v15679_v31 = vld [vmem:[#allocation43_spill] sm:$0xff] }
 0x3eb   : > { %3273 = vrot.lane.b32.xlu1 %v6231_v21, %s6345_s11  ;;  %v15677_v17 = vld [vmem:[#allocation145_spill] sm:$0xff]  ;;  %15678 = vst [vmem:[#allocation136_spill] sm:$0xff] %v10552_v50  ;;  %v4791_v8 = vmul.f32 1.442695, %v4731_v35  ;;  %v10557_v11 = vmul.f32 %v15679_v31, %v2422_v7  ;;  %5568 = vpow2.f32 %v2795_v23  ;;  %v10561_v21 = vpop.permute.xlu1 %2905  ;;  %v6232_v5 = vld [vmem:[#allocation2 + $0x151] sm:$0xff]  ;;  %v15683_v31 = vld [vmem:[#allocation20_spill] sm:$0xff] }
 0x3ec   : > { %v10543_v57 = vmax.f32 %v15675_v42, %v10508_v9  ;;  %v3713_v16 = vsub.f32 %v15677_v17, %v10173_v30  ;;  %v10559_v42 = vpop.eup %5544  ;;  %5570 = vpow2.f32 %v4787_v28  ;;  %v4345_v46 = vmul.f32 1.442695, %v4308_v0  ;;  %v15681_v35 = vld [vmem:[#allocation225_spill] sm:$0xff]  ;;  %v15684_v23 = vld [vmem:[#allocation264_spill] sm:$0xff]  ;;  %v15685_v28 = vld [vmem:[#allocation135_spill] sm:$0xff] }
 0x3ed   : > { %15680 = vst [vmem:[#allocation300_spill] sm:$0xff] %v10559_v42  ;;  %3279 = vrot.lane.b32.xlu0 %v6232_v5, %s6345_s11  ;;  %v10564_v17 = vmul.f32 1.442695, %v2755_v48  ;;  %v4311_v45 = vsub.f32 %v15681_v35, %v10137_v12  ;;  %v10568_v33 = vpop.eup %5546  ;;  %5572 = vpow2.f32 %v4785_v39  ;;  %v4789_v7 = vmul.f32 1.442695, %v4730_v54  ;;  %v6233_v48 = vld [vmem:[#allocation2 + $0x141] sm:$0xff]  ;;  %v10579_v5 = vpop.permute.xlu0 %2911 }
 0x3ee   : > { %15676 = vst [vmem:[#allocation221_spill] sm:$0xff] %v10543_v57  ;;  %15682 = vst [vmem:[#allocation145_spill] sm:$0xff] %v10568_v33  ;;  %v2754_v4 = vsub.f32 %v15684_v23, %v15683_v31  ;;  %v3712_v42 = vsub.f32 %v15685_v28, %v10187_v18  ;;  %v10574_v61 = vpop.eup %5548  ;;  %v4732_v0 = vsub.f32 %v10508_v9, %v10543_v57  ;;  %5574 = vpow2.f32 %v3751_v38  ;;  %v15687_v39 = vld [vmem:[#allocation226_spill] sm:$0xff] }
 0x3ef   : > { %15686 = vst [vmem:[#allocation43_spill] sm:$0xff] %v10574_v61  ;;  %3277 = vrot.lane.b32.xlu1 %v6233_v48, %s6345_s11  ;;  %v10581_v35 = vmul.f32 1.442695, %v3713_v16  ;;  %v4310_v54 = vsub.f32 %v15687_v39, %v10156_v58  ;;  %v10585_v23 = vpop.eup %5550  ;;  %5576 = vpow2.f32 %v4791_v8  ;;  %v4795_v28 = vmul.f32 1.442695, %v4733_v19  ;;  %v15689_v61 = vld [vmem:[#allocation280_spill] sm:$0xff]  ;;  %v10597_v38 = vpop.permute.xlu1 %2909 }
 0x3f0   : > { %15688 = vst [vmem:[#allocation225_spill] sm:$0xff] %v10585_v23  ;;  %v15690_v12 = vld [vmem:[#allocation30_spill] sm:$0xff]  ;;  %v15693_v48 = vld [vmem:[#allocation231_spill] sm:$0xff]  ;;  %v10595_v27 = vpop.eup %5552  ;;  %5578 = vpow2.f32 %v4347_v26  ;;  %v4351_v39 = vmul.f32 1.442695, %v4311_v45  ;;  %v15695_v8 = vld [vmem:[#allocation157_spill] sm:$0xff] }
 0x3f1   : > { %v15691_v20 = vmax.f32 %v15689_v61, %v15690_v12  ;;  %v2757_v57 = vsub.f32 %v15693_v48, %v10234_v52  ;;  %15694 = vst [vmem:[#allocation135_spill] sm:$0xff] %v10595_v27  ;;  %v6234_v16 = vld [vmem:[#allocation2 + $0x169] sm:$0xff]  ;;  %v3715_v19 = vsub.f32 %v15695_v8, %v10195_v13  ;;  %v15696_v58 = vld [vmem:[#allocation12_spill] sm:$0xff]  ;;  %5580 = vpow2.f32 %v4789_v7  ;;  %v15698_v27 = vld [vmem:[#allocation275_spill] sm:$0xff]  ;;  %v10613_v45 = vpop.permute.xlu0 %2915 }
 0x3f2   : > { %3283 = vrot.lane.b32.xlu0 %v6234_v16, %s6345_s11  ;;  %v4313_v61 = vsub.f32 %v15696_v58, %v10173_v30  ;;  %v2797_v12 = vmul.f32 1.442695, %v2754_v4  ;;  %v10606_v48 = vmul.f32 1.442695, %v3712_v42  ;;  %v2756_v29 = vsub.f32 %v15698_v27, %v10255_v32  ;;  %v6235_v26 = vld [vmem:[#allocation2 + $0x159] sm:$0xff] }
 0x3f3   : > { %v10591_v9 = vmax.f32 %v15691_v20, %v10557_v11  ;;  %v10604_v20 = vpop.eup %5554  ;;  %v4793_v16 = vmul.f32 1.442695, %v4732_v0  ;;  %3281 = vrot.lane.b32.xlu1 %v6235_v26, %s6345_s11  ;;  %5582 = vpow2.f32 %v2793_v43  ;;  %v10615_v8 = vmul.f32 1.442695, %v4310_v54  ;;  %v15700_v58 = vld [vmem:[#allocation148_spill] sm:$0xff]  ;;  %v10633_v30 = vpop.permute.xlu1 %2913 }
 0x3f4   : > { %15697 = vst [vmem:[#allocation226_spill] sm:$0xff] %v10604_v20  ;;  %v10610_v63 = vpop.eup %5556  ;;  %v3714_v7 = vsub.f32 %v15700_v58, %v15683_v31  ;;  %5584 = vpow2.f32 %v4795_v28  ;;  %v15702_v42 = vld [vmem:[#allocation88_spill] sm:$0xff]  ;;  %v2803_v20 = vmul.f32 1.442695, %v2757_v57  ;;  %v3759_v28 = vmul.f32 1.442695, %v3715_v19 }
 0x3f5   : > { %15692 = vst [vmem:[#allocation264_spill] sm:$0xff] %v10591_v9  ;;  %15699 = vst [vmem:[#allocation280_spill] sm:$0xff] %v10610_v63  ;;  %v10619_v4 = vpop.eup %5558  ;;  %v10623_v27 = vmul.f32 %v15702_v42, %v10511_v10  ;;  %v4734_v0 = vsub.f32 %v10557_v11, %v10591_v9  ;;  %v15705_v43 = vld [vmem:[#allocation24_spill] sm:$0xff]  ;;  %5586 = vpow2.f32 %v10548_v34  ;;  %v10637_v10 = vmul.f32 1.442695, %v4313_v61  ;;  %v10652_v34 = vpop.permute.xlu0 %2919 }
 0x3f6   : > { %15701 = vst [vmem:[#allocation231_spill] sm:$0xff] %v10619_v4  ;;  %v10627_v26 = vpop.eup %5560  ;;  %v10631_v54 = vmul.f32 %v15705_v43, %v10546_v3  ;;  %v6236_v58 = vld [vmem:[#allocation2 + $0x2] sm:$0xff]  ;;  %5588 = vpow2.f32 %v4345_v46  ;;  %v10645_v42 = vmul.f32 1.442695, %v2756_v29  ;;  %v10654_v19 = vmul.f32 1.442695, %v3714_v7 }
 0x3f7   : > { %15703 = vst [vmem:[#allocation157_spill] sm:$0xff] %v10623_v27  ;;  %15704 = vst [vmem:[#allocation12_spill] sm:$0xff] %v10627_v26  ;;  %3543 = vrot.lane.b32.xlu0 %v6236_v58, %s6345_s11  ;;  %v10639_v4 = vpop.eup %5562  ;;  %v15708_v57 = vld [vmem:[#allocation216_spill] sm:$0xff]  ;;  %5590 = vpow2.f32 %v4793_v16  ;;  %v6237_v58 = vld [vmem:[#allocation2 + $0x171] sm:$0xff]  ;;  %v10666_v16 = vmul.f32 %v10269_v47, %v10561_v21  ;;  %v10685_v21 = vpop.permute.xlu1 %2917 }
 0x3f8   : > { %15706 = vst [vmem:[#allocation275_spill] sm:$0xff] %v10631_v54  ;;  %15707 = vst [vmem:[#allocation148_spill] sm:$0xff] %v10639_v4  ;;  %v10643_v11 = vmul.f32 %v15708_v57, %v10546_v3  ;;  %v15710_v43 = vld [vmem:[#allocation232_spill] sm:$0xff]  ;;  %v10649_v27 = vpop.eup %5564  ;;  %3285 = vrot.lane.b32.xlu1 %v6237_v58, %s6345_s11  ;;  %v10662_v57 = vmul.f32 1.442695, %v4734_v0  ;;  %5592 = vpow2.f32 %v10564_v17  ;;  %v10683_v0 = vmul.f32 %v10351_v53, %v10579_v5 }
 0x3f9   : > { %v4312_v54 = vsub.f32 %v15710_v43, %v10187_v18  ;;  %15711 = vst [vmem:[#allocation232_spill] sm:$0xff] %v10649_v27  ;;  %v15712_v61 = vld [vmem:[#allocation152_spill] sm:$0xff]  ;;  %v10660_v4 = vpop.eup %5566  ;;  %v15716_v43 = vld [vmem:[#allocation234_spill] sm:$0xff]  ;;  %5594 = vpow2.f32 %v10581_v35  ;;  %v10698_v53 = vpop.permute.xlu0 %2923 }
 0x3fa   : > { %15709 = vst [vmem:[#allocation302_spill] sm:$0xff] %v10643_v11  ;;  %v2759_v3 = vsub.f32 %v15712_v61, %v10277_v2  ;;  %v15713_v46 = vld [vmem:[#allocation156_spill] sm:$0xff]  ;;  %15714 = vst [vmem:[#allocation152_spill] sm:$0xff] %v10660_v4  ;;  %v4315_v7 = vsub.f32 %v15716_v43, %v10195_v13  ;;  %v10671_v58 = vpop.eup %5568  ;;  %v10675_v61 = vmul.f32 %v10291_v56, %v10579_v5  ;;  %5596 = vpow2.f32 %v4351_v39  ;;  %v15725_v39 = vld [vmem:[#allocation238_spill] sm:$0xff] }
 0x3fb   : > { %v3717_v29 = vsub.f32 %v15713_v46, %v10234_v52  ;;  %15715 = vst [vmem:[#allocation156_spill] sm:$0xff] %v10662_v57  ;;  %15717 = vst [vmem:[#allocation234_spill] sm:$0xff] %v10671_v58  ;;  %v10679_v46 = vmul.f32 %v10311_v51, %v10579_v5  ;;  %v6238_v17 = vld [vmem:[#allocation2 + $0x1a] sm:$0xff]  ;;  %v10689_v43 = vpop.eup %5570  ;;  %v4353_v57 = vmul.f32 1.442695, %v4312_v54  ;;  %v15723_v51 = vld [vmem:[#allocation154_spill] sm:$0xff]  ;;  %5598 = vpow2.f32 %v2797_v12 }
 0x3fc   : > { %15718 = vst [vmem:[#allocation303_spill] sm:$0xff] %v10675_v61  ;;  %15720 = vst [vmem:[#allocation305_spill] sm:$0xff] %v10683_v0  ;;  %3547 = vrot.lane.b32.xlu0 %v6238_v17, %s6345_s11  ;;  %v15722_v4 = vld [vmem:[#allocation168_spill] sm:$0xff]  ;;  %v3716_v47 = vsub.f32 %v15723_v51, %v10255_v32  ;;  %v6239_v5 = vld [vmem:[#allocation2 + $0xa] sm:$0xff]  ;;  %v2807_v17 = vmul.f32 1.442695, %v2759_v3  ;;  %v4314_v54 = vsub.f32 %v15725_v39, %v15683_v31  ;;  %5600 = vpow2.f32 %v10606_v48 }
 0x3fd   : > { %15719 = vst [vmem:[#allocation304_spill] sm:$0xff] %v10679_v46  ;;  %15721 = vst [vmem:[#allocation306_spill] sm:$0xff] %v10689_v43  ;;  %v2758_v56 = vsub.f32 %v15722_v4, %v10286_v44  ;;  %v10695_v46 = vpop.eup %5572  ;;  %3545 = vrot.lane.b32.xlu1 %v6239_v5, %s6345_s11  ;;  %v10700_v35 = vmul.f32 1.442695, %v3717_v29  ;;  %v10708_v4 = vmul.f32 %v10370_v6, %v10597_v38  ;;  %v4359_v5 = vmul.f32 1.442695, %v4315_v7 }
 0x3fe   : > { %15724 = vst [vmem:[#allocation168_spill] sm:$0xff] %v10695_v46  ;;  %v10704_v43 = vpop.eup %5574  ;;  %v10712_v51 = vmul.f32 %v10398_v36, %v10597_v38  ;;  %v10719_v3 = vmul.f32 %v10419_v59, %v10613_v45  ;;  %v10723_v29 = vmul.f32 %v10447_v22, %v10613_v45  ;;  %v10727_v39 = vmul.f32 %v10469_v55, %v10613_v45  ;;  %v10729_v46 = vpop.permute.xlu1 %2921  ;;  %v6240_v38 = vld [vmem:[#allocation2 + $0x32] sm:$0xff]  ;;  %v6241_v45 = vld [vmem:[#allocation2 + $0x22] sm:$0xff] }
 0x3ff   : > { %15726 = vst [vmem:[#allocation154_spill] sm:$0xff] %v10704_v43  ;;  %v10715_v12 = vpop.eup %5576  ;;  %5602 = vpow2.f32 %v10615_v8  ;;  %v2805_v7 = vmul.f32 1.442695, %v2758_v56  ;;  %v15733_v59 = vld [vmem:[#allocation55_spill] sm:$0xff]  ;;  %v10742_v55 = vpop.permute.xlu0 %2927  ;;  %v15735_v8 = vld [vmem:[#allocation70_spill] sm:$0xff]  ;;  %v15736_v56 = vld [vmem:[#allocation241_spill] sm:$0xff] }
 0x400   : > { %15727 = vst [vmem:[#allocation238_spill] sm:$0xff] %v10712_v51  ;;  %15728 = vst [vmem:[#allocation307_spill] sm:$0xff] %v10715_v12  ;;  %3551 = vrot.lane.b32.xlu0 %v6240_v38, %s6345_s11  ;;  %v10733_v48 = vpop.eup %5578  ;;  %5604 = vpow2.f32 %v2803_v20  ;;  %v10735_v12 = vmul.f32 1.442695, %v3716_v47  ;;  %v2761_v6 = vsub.f32 %v15733_v59, %v10304_v49  ;;  %v10744_v38 = vmul.f32 1.442695, %v4314_v54 }
 0x401   : > { %15729 = vst [vmem:[#allocation308_spill] sm:$0xff] %v10719_v3  ;;  %15730 = vst [vmem:[#allocation309_spill] sm:$0xff] %v10723_v29  ;;  %v10739_v22 = vpop.eup %5580  ;;  %3549 = vrot.lane.b32.xlu1 %v6241_v45, %s6345_s11  ;;  %5606 = vpow2.f32 %v3759_v28  ;;  %v3719_v36 = vsub.f32 %v15735_v8, %v10277_v2  ;;  %v4317_v47 = vsub.f32 %v15736_v56, %v10234_v52  ;;  %v15797_v0 = vld [vmem:[#allocation111_spill] sm:$0xff]  ;;  %v15835_v11 = vld [vmem:[#allocation45_spill] sm:$0xff] }
 0x402   : > { %15731 = vst [vmem:[#allocation310_spill] sm:$0xff] %v10727_v39  ;;  %15732 = vst [vmem:[#allocation311_spill] sm:$0xff] %v10733_v48  ;;  %v10750_v20 = vpop.eup %5582  ;;  %v10754_v59 = vmul.f32 %v10487_v24, %v10633_v30  ;;  %v10758_v45 = vmul.f32 %v10505_v62, %v10633_v30  ;;  %v10762_v28 = vmul.f32 %v10533_v15, %v10633_v30  ;;  %5608 = vpow2.f32 %v10637_v10  ;;  %v10779_v24 = vpop.permute.xlu1 %2925  ;;  %v6242_v30 = vld [vmem:[#allocation2 + $0x4a] sm:$0xff]  ;;  %v15822_v51 = vld [vmem:[#allocation255_spill] sm:$0xff] }
 0x403   : > { %15734 = vst [vmem:[#allocation55_spill] sm:$0xff] %v10739_v22  ;;  %15737 = vst [vmem:[#allocation70_spill] sm:$0xff] %v10750_v20  ;;  %v10765_v54 = vpop.eup %5584  ;;  %v10769_v8 = vmul.f32 %v10552_v50, %v10652_v34  ;;  %v10773_v56 = vmul.f32 %v10568_v33, %v10652_v34  ;;  %v10777_v22 = vmul.f32 %v10585_v23, %v10652_v34  ;;  %5610 = vpow2.f32 %v10645_v42  ;;  %v15746_v50 = vld [vmem:[#allocation151_spill] sm:$0xff]  ;;  %v15747_v62 = vld [vmem:[#allocation38_spill] sm:$0xff] }
 0x404   : > { %15738 = vst [vmem:[#allocation241_spill] sm:$0xff] %v10754_v59  ;;  %15739 = vst [vmem:[#allocation312_spill] sm:$0xff] %v10758_v45  ;;  %3555 = vrot.lane.b32.xlu0 %v6242_v30, %s6345_s11  ;;  %v10783_v10 = vpop.eup %5586  ;;  %5612 = vpow2.f32 %v10654_v19  ;;  %v2760_v33 = vsub.f32 %v15746_v50, %v10324_v37  ;;  %v3718_v15 = vsub.f32 %v15747_v62, %v10286_v44  ;;  %v6243_v23 = vld [vmem:[#allocation2 + $0x3a] sm:$0xff]  ;;  %v3767_v42 = vmul.f32 1.442695, %v3719_v36 }
 0x405   : > { %15740 = vst [vmem:[#allocation313_spill] sm:$0xff] %v10762_v28  ;;  %15741 = vst [vmem:[#allocation314_spill] sm:$0xff] %v10765_v54  ;;  %v2811_v54 = vmul.f32 1.442695, %v2761_v6  ;;  %v10790_v34 = vpop.eup %5588  ;;  %3553 = vrot.lane.b32.xlu1 %v6243_v23, %s6345_s11  ;;  %5614 = vpow2.f32 %v4353_v57  ;;  %v4363_v30 = vmul.f32 1.442695, %v4317_v47  ;;  %v10801_v50 = vmul.f32 %v10610_v63, %v10685_v21 }
 0x406   : > { %15742 = vst [vmem:[#allocation315_spill] sm:$0xff] %v10769_v8  ;;  %15743 = vst [vmem:[#allocation316_spill] sm:$0xff] %v10773_v56  ;;  %v15749_v8 = vld [vmem:[#allocation242_spill] sm:$0xff]  ;;  %v10797_v6 = vpop.eup %5590  ;;  %v10805_v62 = vmul.f32 %v10627_v26, %v10685_v21  ;;  %v10809_v23 = vmul.f32 %v10649_v27, %v10685_v21  ;;  %5616 = vpow2.f32 %v2807_v17  ;;  %v10815_v57 = vmul.f32 %v10671_v58, %v10698_v53  ;;  %v6244_v63 = vld [vmem:[#allocation2 + $0x62] sm:$0xff] }
 0x407   : > { %15744 = vst [vmem:[#allocation317_spill] sm:$0xff] %v10777_v22  ;;  %15745 = vst [vmem:[#allocation318_spill] sm:$0xff] %v10783_v10  ;;  %v10793_v22 = vpop.permute.xlu0 %2931  ;;  %v4316_v19 = vsub.f32 %v15749_v8, %v10255_v32  ;;  %v10811_v36 = vpop.eup %5592  ;;  %v10819_v47 = vmul.f32 %v10704_v43, %v10698_v53  ;;  %v10823_v8 = vmul.f32 %v10733_v48, %v10698_v53  ;;  %5618 = vpow2.f32 %v10700_v35  ;;  %v15758_v26 = vld [vmem:[#allocation77_spill] sm:$0xff] }
 0x408   : > { %15748 = vst [vmem:[#allocation151_spill] sm:$0xff] %v10790_v34  ;;  %15750 = vst [vmem:[#allocation38_spill] sm:$0xff] %v10797_v6  ;;  %v10825_v6 = vpop.permute.xlu1 %2929  ;;  %3559 = vrot.lane.b32.xlu0 %v6244_v63, %s6345_s11  ;;  %v10829_v21 = vpop.eup %5594  ;;  %5620 = vpow2.f32 %v4359_v5  ;;  %v2809_v17 = vmul.f32 1.442695, %v2760_v33  ;;  %v3765_v58 = vmul.f32 1.442695, %v3718_v15  ;;  %v2763_v43 = vsub.f32 %v15758_v26, %v10346_v41 }
 0x409   : > { %15751 = vst [vmem:[#allocation242_spill] sm:$0xff] %v10801_v50  ;;  %15752 = vst [vmem:[#allocation319_spill] sm:$0xff] %v10805_v62  ;;  %v10833_v27 = vpop.eup %5596  ;;  %5622 = vpow2.f32 %v2805_v7  ;;  %v4361_v48 = vmul.f32 1.442695, %v4316_v19  ;;  %v15760_v63 = vld [vmem:[#allocation91_spill] sm:$0xff]  ;;  %v10846_v15 = vmul.f32 %v10750_v20, %v10729_v46  ;;  %v10850_v26 = vmul.f32 %v10783_v10, %v10729_v46  ;;  %v15765_v7 = vld [vmem:[#allocation68_spill] sm:$0xff] }
 0x40a   : > { %15753 = vst [vmem:[#allocation320_spill] sm:$0xff] %v10809_v23  ;;  %15754 = vst [vmem:[#allocation321_spill] sm:$0xff] %v10811_v36  ;;  %v3721_v35 = vsub.f32 %v15760_v63, %v10304_v49  ;;  %v10842_v33 = vpop.eup %5598  ;;  %5624 = vpow2.f32 %v10735_v12  ;;  %v2762_v19 = vsub.f32 %v15765_v7, %v10367_v1  ;;  %v10863_v63 = vmul.f32 %v10811_v36, %v10742_v55  ;;  %v6246_v10 = vld [vmem:[#allocation2 + $0x7a] sm:$0xff]  ;;  %v15771_v36 = vld [vmem:[#allocation246_spill] sm:$0xff] }
 0x40b   : > { %15755 = vst [vmem:[#allocation322_spill] sm:$0xff] %v10819_v47  ;;  %15756 = vst [vmem:[#allocation323_spill] sm:$0xff] %v10823_v8  ;;  %v6245_v47 = vld [vmem:[#allocation2 + $0x52] sm:$0xff]  ;;  %v10836_v53 = vpop.permute.xlu0 %2935  ;;  %v15761_v8 = vld [vmem:[#allocation244_spill] sm:$0xff]  ;;  %5626 = vpow2.f32 %v10744_v38  ;;  %v2766_v56 = vsub.f32 %v15797_v0, %v10434_v25  ;;  %v4324_v3 = vsub.f32 %v15822_v51, %v10390_v14 }
 0x40c   : > { %15757 = vst [vmem:[#allocation324_spill] sm:$0xff] %v10829_v21  ;;  %15759 = vst [vmem:[#allocation77_spill] sm:$0xff] %v10833_v27  ;;  %3557 = vrot.lane.b32.xlu1 %v6245_v47, %s6345_s11  ;;  %v4319_v5 = vsub.f32 %v15761_v8, %v10277_v2  ;;  %v10855_v47 = vpop.eup %5600  ;;  %v10859_v8 = vmul.f32 %v10790_v34, %v10729_v46  ;;  %v10866_v20 = vpop.permute.xlu1 %2933  ;;  %3563 = vrot.lane.b32.xlu0 %v6246_v10, %s6345_s11  ;;  %v15768_v12 = vld [vmem:[#allocation75_spill] sm:$0xff]  ;;  %5628 = vpow2.f32 %v2811_v54  ;;  %v6247_v10 = vld [vmem:[#allocation2 + $0x6a] sm:$0xff] }
 0x40d   : > { %15762 = vst [vmem:[#allocation91_spill] sm:$0xff] %v10842_v33  ;;  %15763 = vst [vmem:[#allocation244_spill] sm:$0xff] %v10846_v15  ;;  %v3720_v7 = vsub.f32 %v15768_v12, %v10324_v37  ;;  %v10875_v46 = vmul.f32 %v10829_v21, %v10742_v55  ;;  %v2815_v34 = vmul.f32 1.442695, %v2763_v43  ;;  %v10883_v15 = vmul.f32 %v10833_v27, %v10742_v55  ;;  %v15775_v54 = vld [vmem:[#allocation98_spill] sm:$0xff]  ;;  %v15776_v50 = vld [vmem:[#allocation113_spill] sm:$0xff] }
 0x40e   : > { %15764 = vst [vmem:[#allocation325_spill] sm:$0xff] %v10850_v26  ;;  %15766 = vst [vmem:[#allocation68_spill] sm:$0xff] %v10855_v47  ;;  %v10871_v26 = vpop.eup %5602  ;;  %5630 = vpow2.f32 %v3767_v42  ;;  %v3771_v23 = vmul.f32 1.442695, %v3721_v35  ;;  %v4367_v21 = vmul.f32 1.442695, %v4319_v5  ;;  %v3723_v62 = vsub.f32 %v15776_v50, %v10346_v41 }
 0x40f   : > { %15767 = vst [vmem:[#allocation326_spill] sm:$0xff] %v10859_v8  ;;  %15769 = vst [vmem:[#allocation75_spill] sm:$0xff] %v10871_v26  ;;  %v4318_v8 = vsub.f32 %v15771_v36, %v10286_v44  ;;  %v10879_v38 = vpop.eup %5604  ;;  %v10886_v12 = vpop.permute.xlu0 %2939  ;;  %5632 = vpow2.f32 %v4363_v30  ;;  %v2813_v43 = vmul.f32 1.442695, %v2762_v19  ;;  %v2765_v36 = vsub.f32 %v15775_v54, %v10376_v40  ;;  %v6248_v35 = vld [vmem:[#allocation2 + $0x92] sm:$0xff] }
 0x410   : > { %15770 = vst [vmem:[#allocation327_spill] sm:$0xff] %v10875_v46  ;;  %15772 = vst [vmem:[#allocation246_spill] sm:$0xff] %v10879_v38  ;;  %3561 = vrot.lane.b32.xlu1 %v6247_v10, %s6345_s11  ;;  %v10888_v46 = vpop.eup %5606  ;;  %v10898_v10 = vmul.f32 %v10842_v33, %v10779_v24  ;;  %5634 = vpow2.f32 %v2809_v17  ;;  %v10900_v42 = vpop.permute.xlu1 %2937  ;;  %3567 = vrot.lane.b32.xlu0 %v6248_v35, %s6345_s11  ;;  %v3769_v30 = vmul.f32 1.442695, %v3720_v7  ;;  %v15778_v5 = vld [vmem:[#allocation247_spill] sm:$0xff]  ;;  %v6249_v35 = vld [vmem:[#allocation2 + $0x82] sm:$0xff] }
 0x411   : > { %15773 = vst [vmem:[#allocation328_spill] sm:$0xff] %v10883_v15  ;;  %15774 = vst [vmem:[#allocation329_spill] sm:$0xff] %v10888_v46  ;;  %v10894_v55 = vpop.eup %5608  ;;  %v4321_v19 = vsub.f32 %v15778_v5, %v10304_v49  ;;  %v10909_v50 = vmul.f32 %v10855_v47, %v10779_v24  ;;  %v10913_v33 = vmul.f32 %v10871_v26, %v10779_v24  ;;  %5636 = vpow2.f32 %v3765_v58  ;;  %v15783_v47 = vld [vmem:[#allocation89_spill] sm:$0xff]  ;;  %v15784_v24 = vld [vmem:[#allocation96_spill] sm:$0xff] }
 0x412   : > { %15777 = vst [vmem:[#allocation98_spill] sm:$0xff] %v10894_v55  ;;  %v10905_v54 = vpop.eup %5610  ;;  %v4365_v17 = vmul.f32 1.442695, %v4318_v8  ;;  %v10919_v7 = vmul.f32 %v10879_v38, %v10793_v22  ;;  %5638 = vpow2.f32 %v4361_v48  ;;  %v2819_v8 = vmul.f32 1.442695, %v2765_v36  ;;  %v15786_v38 = vld [vmem:[#allocation249_spill] sm:$0xff] }
 0x413   : > { %15779 = vst [vmem:[#allocation113_spill] sm:$0xff] %v10905_v54  ;;  %15780 = vst [vmem:[#allocation247_spill] sm:$0xff] %v10909_v50  ;;  %v10915_v27 = vpop.eup %5612  ;;  %v10922_v5 = vpop.permute.xlu0 %2943  ;;  %v2764_v50 = vsub.f32 %v15783_v47, %v10390_v14  ;;  %5640 = vpow2.f32 %v2815_v34  ;;  %v3775_v26 = vmul.f32 1.442695, %v3723_v62  ;;  %v4320_v15 = vsub.f32 %v15786_v38, %v10324_v37  ;;  %v6250_v47 = vld [vmem:[#allocation2 + $0xaa] sm:$0xff] }
 0x414   : > { %15781 = vst [vmem:[#allocation330_spill] sm:$0xff] %v10913_v33  ;;  %15782 = vst [vmem:[#allocation331_spill] sm:$0xff] %v10915_v27  ;;  %3565 = vrot.lane.b32.xlu1 %v6249_v35, %s6345_s11  ;;  %v3722_v33 = vsub.f32 %v15784_v24, %v10367_v1  ;;  %v10928_v58 = vpop.eup %5614  ;;  %v10936_v35 = vmul.f32 %v10888_v46, %v10793_v22  ;;  %5642 = vpow2.f32 %v3771_v23  ;;  %v10938_v28 = vpop.permute.xlu1 %2941  ;;  %3571 = vrot.lane.b32.xlu0 %v6250_v47, %s6345_s11  ;;  %v15789_v34 = vld [vmem:[#allocation117_spill] sm:$0xff]  ;;  %v6251_v47 = vld [vmem:[#allocation2 + $0x9a] sm:$0xff] }
 0x415   : > { %15785 = vst [vmem:[#allocation89_spill] sm:$0xff] %v10928_v58  ;;  %v10932_v48 = vpop.eup %5616  ;;  %v4371_v24 = vmul.f32 1.442695, %v4321_v19  ;;  %v2767_v36 = vsub.f32 %v15789_v34, %v10412_v60  ;;  %v10947_v38 = vmul.f32 %v10894_v55, %v10793_v22  ;;  %v10951_v46 = vmul.f32 %v10905_v54, %v10825_v6  ;;  %v15792_v23 = vld [vmem:[#allocation129_spill] sm:$0xff] }
 0x416   : > { %15787 = vst [vmem:[#allocation96_spill] sm:$0xff] %v10932_v48  ;;  %15788 = vst [vmem:[#allocation249_spill] sm:$0xff] %v10936_v35  ;;  %v10943_v62 = vpop.eup %5618  ;;  %5644 = vpow2.f32 %v4367_v21  ;;  %v3725_v35 = vsub.f32 %v15792_v23, %v10376_v40  ;;  %v10959_v19 = vmul.f32 %v10915_v27, %v10825_v6  ;;  %v2817_v34 = vmul.f32 1.442695, %v2764_v50  ;;  %v15796_v23 = vld [vmem:[#allocation250_spill] sm:$0xff] }
 0x417   : > { %15790 = vst [vmem:[#allocation117_spill] sm:$0xff] %v10943_v62  ;;  %15791 = vst [vmem:[#allocation332_spill] sm:$0xff] %v10947_v38  ;;  %v10955_v39 = vpop.eup %5620  ;;  %5646 = vpow2.f32 %v2813_v43  ;;  %v10962_v22 = vpop.permute.xlu0 %2947  ;;  %v3773_v55 = vmul.f32 1.442695, %v3722_v33  ;;  %v4369_v21 = vmul.f32 1.442695, %v4320_v15  ;;  %v4323_v38 = vsub.f32 %v15796_v23, %v10346_v41 }
 0x418   : > { %15793 = vst [vmem:[#allocation129_spill] sm:$0xff] %v10955_v39  ;;  %15794 = vst [vmem:[#allocation333_spill] sm:$0xff] %v10959_v19  ;;  %3569 = vrot.lane.b32.xlu1 %v6251_v47, %s6345_s11  ;;  %v10964_v54 = vpop.eup %5622  ;;  %5648 = vpow2.f32 %v3769_v30  ;;  %v10974_v43 = vmul.f32 %v10928_v58, %v10825_v6  ;;  %v10976_v47 = vpop.permute.xlu1 %2945  ;;  %v6252_v33 = vld [vmem:[#allocation2 + $0xc2] sm:$0xff]  ;;  %v2823_v30 = vmul.f32 1.442695, %v2767_v36  ;;  %v10985_v0 = vmul.f32 %v10932_v48, %v10836_v53 }
 0x419   : > { %15795 = vst [vmem:[#allocation334_spill] sm:$0xff] %v10964_v54  ;;  %v10970_v27 = vpop.eup %5624  ;;  %5650 = vpow2.f32 %v4365_v17  ;;  %3575 = vrot.lane.b32.xlu0 %v6252_v33, %s6345_s11  ;;  %v15800_v15 = vld [vmem:[#allocation116_spill] sm:$0xff]  ;;  %v10989_v6 = vmul.f32 %v10943_v62, %v10836_v53  ;;  %v3779_v17 = vmul.f32 1.442695, %v3725_v35  ;;  %v10995_v36 = vmul.f32 %v10955_v39, %v10836_v53  ;;  %v6253_v33 = vld [vmem:[#allocation2 + $0xb2] sm:$0xff]  ;;  %v15806_v19 = vld [vmem:[#allocation21_spill] sm:$0xff] }
 0x41a   : > { %15798 = vst [vmem:[#allocation250_spill] sm:$0xff] %v10970_v27  ;;  %15799 = vst [vmem:[#allocation111_spill] sm:$0xff] %v10974_v43  ;;  %v3724_v50 = vsub.f32 %v15800_v15, %v10390_v14  ;;  %v10981_v23 = vpop.eup %5626  ;;  %5652 = vpow2.f32 %v2819_v8  ;;  %v15805_v48 = vld [vmem:[#allocation252_spill] sm:$0xff]  ;;  %v15807_v62 = vld [vmem:[#allocation261_spill] sm:$0xff]  ;;  %v4375_v35 = vmul.f32 1.442695, %v4323_v38 }
 0x41b   : > { %15801 = vst [vmem:[#allocation116_spill] sm:$0xff] %v10981_v23  ;;  %15802 = vst [vmem:[#allocation335_spill] sm:$0xff] %v10989_v6  ;;  %v10991_v58 = vpop.eup %5628  ;;  %5654 = vpow2.f32 %v3775_v26  ;;  %v10998_v15 = vpop.permute.xlu0 %2951  ;;  %v4322_v43 = vsub.f32 %v15805_v48, %v10367_v1  ;;  %v2769_v6 = vsub.f32 %v15807_v62, %v15806_v19  ;;  %v2821_v59 = vmul.f32 1.442695, %v2766_v56  ;;  %v15809_v53 = vld [vmem:[#allocation134_spill] sm:$0xff]  ;;  %v6254_v48 = vld [vmem:[#allocation2 + $0xda] sm:$0xff] }
 0x41c   : > { %15803 = vst [vmem:[#allocation336_spill] sm:$0xff] %v10991_v58  ;;  %15804 = vst [vmem:[#allocation337_spill] sm:$0xff] %v10995_v36  ;;  %3573 = vrot.lane.b32.xlu1 %v6253_v33, %s6345_s11  ;;  %v11004_v8 = vpop.eup %5630  ;;  %5656 = vpow2.f32 %v4371_v24  ;;  %v3727_v39 = vsub.f32 %v15809_v53, %v10412_v60  ;;  %v11012_v33 = vmul.f32 %v10964_v54, %v10866_v20  ;;  %v3777_v36 = vmul.f32 1.442695, %v3724_v50  ;;  %v15812_v62 = vld [vmem:[#allocation254_spill] sm:$0xff]  ;;  %v11027_v53 = vpop.permute.xlu1 %2949  ;;  %v15817_v50 = vld [vmem:[#allocation128_spill] sm:$0xff] }
 0x41d   : > { %15808 = vst [vmem:[#allocation252_spill] sm:$0xff] %v11004_v8  ;;  %v11008_v26 = vpop.eup %5632  ;;  %5658 = vpow2.f32 %v2817_v34  ;;  %3579 = vrot.lane.b32.xlu0 %v6254_v48, %s6345_s11  ;;  %v4325_v45 = vsub.f32 %v15812_v62, %v10376_v40  ;;  %v11021_v56 = vmul.f32 %v10970_v27, %v10866_v20  ;;  %v11025_v38 = vmul.f32 %v10981_v23, %v10866_v20  ;;  %v15816_v34 = vld [vmem:[#allocation25_spill] sm:$0xff] }
 0x41e   : > { %15810 = vst [vmem:[#allocation261_spill] sm:$0xff] %v11008_v26  ;;  %15811 = vst [vmem:[#allocation134_spill] sm:$0xff] %v11012_v33  ;;  %v11017_v24 = vpop.eup %5634  ;;  %5660 = vpow2.f32 %v3773_v55  ;;  %v2768_v54 = vsub.f32 %v15817_v50, %v15816_v34  ;;  %v11035_v62 = vmul.f32 %v10991_v58, %v10886_v12  ;;  %v4373_v29 = vmul.f32 1.442695, %v4322_v43  ;;  %v6255_v27 = vld [vmem:[#allocation2 + $0xca] sm:$0xff]  ;;  %v15821_v50 = vld [vmem:[#allocation260_spill] sm:$0xff] }
 0x41f   : > { %15813 = vst [vmem:[#allocation254_spill] sm:$0xff] %v11017_v24  ;;  %15814 = vst [vmem:[#allocation338_spill] sm:$0xff] %v11021_v56  ;;  %v11031_v48 = vpop.eup %5636  ;;  %5662 = vpow2.f32 %v4369_v21  ;;  %v2827_v56 = vmul.f32 1.442695, %v2769_v6  ;;  %v3783_v55 = vmul.f32 1.442695, %v3727_v39  ;;  %v11040_v23 = vpop.permute.xlu0 %2955  ;;  %v11050_v21 = vmul.f32 %v11004_v8, %v10886_v12 }
 0x420   : > { %15815 = vst [vmem:[#allocation339_spill] sm:$0xff] %v11025_v38  ;;  %15818 = vst [vmem:[#allocation128_spill] sm:$0xff] %v11031_v48  ;;  %3577 = vrot.lane.b32.xlu1 %v6255_v27, %s6345_s11  ;;  %v11038_v20 = vpop.eup %5638  ;;  %5664 = vpow2.f32 %v2823_v30  ;;  %v3726_v38 = vsub.f32 %v15821_v50, %v10434_v25  ;;  %v4379_v27 = vmul.f32 1.442695, %v4325_v45  ;;  %v6256_v43 = vld [vmem:[#allocation2 + $0xf2] sm:$0xff]  ;;  %v11059_v50 = vmul.f32 %v11008_v26, %v10886_v12 }
 0x421   : > { %15819 = vst [vmem:[#allocation340_spill] sm:$0xff] %v11035_v62  ;;  %15820 = vst [vmem:[#allocation341_spill] sm:$0xff] %v11038_v20  ;;  %v11046_v58 = vpop.eup %5640  ;;  %5666 = vpow2.f32 %v3779_v17  ;;  %3583 = vrot.lane.b32.xlu0 %v6256_v43, %s6345_s11  ;;  %v15825_v39 = vld [vmem:[#allocation35_spill] sm:$0xff]  ;;  %v15826_v30 = vld [vmem:[#allocation138_spill] sm:$0xff]  ;;  %v11063_v51 = vmul.f32 %v11017_v24, %v10900_v42  ;;  %v2825_v8 = vmul.f32 1.442695, %v2768_v54  ;;  %v11069_v45 = vmul.f32 %v11031_v48, %v10900_v42 }
 0x422   : > { %15823 = vst [vmem:[#allocation260_spill] sm:$0xff] %v11046_v58  ;;  %15824 = vst [vmem:[#allocation255_spill] sm:$0xff] %v11050_v21  ;;  %v2771_v6 = vsub.f32 %v15826_v30, %v15825_v39  ;;  %v11055_v61 = vpop.eup %5642  ;;  %5668 = vpow2.f32 %v4375_v35  ;;  %v6257_v43 = vld [vmem:[#allocation2 + $0xe2] sm:$0xff]  ;;  %v15833_v26 = vld [vmem:[#allocation258_spill] sm:$0xff]  ;;  %v3781_v54 = vmul.f32 1.442695, %v3726_v38  ;;  %v11078_v21 = vpop.permute.xlu1 %2953 }
 0x423   : > { %15827 = vst [vmem:[#allocation138_spill] sm:$0xff] %v11055_v61  ;;  %15828 = vst [vmem:[#allocation342_spill] sm:$0xff] %v11059_v50  ;;  %v11065_v17 = vpop.eup %5644  ;;  %5670 = vpow2.f32 %v2821_v59  ;;  %v15832_v30 = vld [vmem:[#allocation169_spill] sm:$0xff]  ;;  %v4327_v50 = vsub.f32 %v15833_v26, %v10412_v60  ;;  %v4377_v35 = vmul.f32 1.442695, %v4324_v3  ;;  %v15836_v48 = vld [vmem:[#allocation266_spill] sm:$0xff]  ;;  %v11099_v38 = vmul.f32 %v11055_v61, %v10922_v5 }
 0x424   : > { %15829 = vst [vmem:[#allocation343_spill] sm:$0xff] %v11063_v51  ;;  %15830 = vst [vmem:[#allocation344_spill] sm:$0xff] %v11065_v17  ;;  %3581 = vrot.lane.b32.xlu1 %v6257_v43, %s6345_s11  ;;  %v3729_v12 = vsub.f32 %v15832_v30, %v15806_v19  ;;  %v11076_v24 = vpop.eup %5646  ;;  %5672 = vpow2.f32 %v3777_v36  ;;  %v11086_v43 = vmul.f32 %v11038_v20, %v10900_v42  ;;  %v2831_v30 = vmul.f32 1.442695, %v2771_v6  ;;  %v15839_v26 = vld [vmem:[#allocation137_spill] sm:$0xff]  ;;  %v11101_v42 = vpop.permute.xlu0 %2959  ;;  %v6259_v20 = vld [vmem:[#allocation2 + $0xfa] sm:$0xff] }
 0x425   : > { %15831 = vst [vmem:[#allocation345_spill] sm:$0xff] %v11069_v45  ;;  %15834 = vst [vmem:[#allocation169_spill] sm:$0xff] %v11076_v24  ;;  %v2770_v45 = vsub.f32 %v15836_v48, %v15835_v11  ;;  %v11082_v59 = vpop.eup %5648  ;;  %5674 = vpow2.f32 %v4373_v29  ;;  %v3728_v51 = vsub.f32 %v15839_v26, %v15816_v34  ;;  %v6258_v62 = vld [vmem:[#allocation2 + $0x10a] sm:$0xff]  ;;  %v11095_v36 = vmul.f32 %v11046_v58, %v10922_v5 }
 0x426   : > { %15837 = vst [vmem:[#allocation258_spill] sm:$0xff] %v11082_v59  ;;  %15838 = vst [vmem:[#allocation266_spill] sm:$0xff] %v11086_v43  ;;  %3587 = vrot.lane.b32.xlu0 %v6258_v62, %s6345_s11  ;;  %v11091_v3 = vpop.eup %5650  ;;  %5676 = vpow2.f32 %v2827_v56  ;;  %v15843_v29 = vld [vmem:[#allocation265_spill] sm:$0xff]  ;;  %v11109_v62 = vmul.f32 %v11065_v17, %v10922_v5  ;;  %v3787_v26 = vmul.f32 1.442695, %v3729_v12  ;;  %v15848_v43 = vld [vmem:[#allocation230_spill] sm:$0xff]  ;;  %v11122_v5 = vmul.f32 %v11076_v24, %v10938_v28 }
 0x427   : > { %15840 = vst [vmem:[#allocation137_spill] sm:$0xff] %v11091_v3  ;;  %15841 = vst [vmem:[#allocation346_spill] sm:$0xff] %v11095_v36  ;;  %v4326_v48 = vsub.f32 %v15843_v29, %v10434_v25  ;;  %v11105_v6 = vpop.eup %5652  ;;  %5678 = vpow2.f32 %v3783_v55  ;;  %v4383_v58 = vmul.f32 1.442695, %v4327_v50  ;;  %v2829_v56 = vmul.f32 1.442695, %v2770_v45 }
 0x428   : > { %15842 = vst [vmem:[#allocation347_spill] sm:$0xff] %v11099_v38  ;;  %15844 = vst [vmem:[#allocation265_spill] sm:$0xff] %v11105_v6  ;;  %3585 = vrot.lane.b32.xlu1 %v6259_v20, %s6345_s11  ;;  %v11112_v61 = vpop.eup %5654  ;;  %5680 = vpow2.f32 %v4379_v27  ;;  %v15847_v38 = vld [vmem:[#allocation126_spill] sm:$0xff]  ;;  %v3785_v55 = vmul.f32 1.442695, %v3728_v51  ;;  %v6260_v12 = vld [vmem:[#allocation2 + $0x122] sm:$0xff]  ;;  %v11131_v45 = vmul.f32 %v11082_v59, %v10938_v28 }
 0x429   : > { %15845 = vst [vmem:[#allocation348_spill] sm:$0xff] %v11109_v62  ;;  %15846 = vst [vmem:[#allocation349_spill] sm:$0xff] %v11112_v61  ;;  %v2773_v36 = vsub.f32 %v15848_v43, %v15847_v38  ;;  %v15849_v29 = vld [vmem:[#allocation170_spill] sm:$0xff]  ;;  %v11118_v25 = vpop.eup %5656  ;;  %5682 = vpow2.f32 %v2825_v8  ;;  %v11135_v43 = vmul.f32 %v11091_v3, %v10938_v28  ;;  %v11137_v8 = vpop.permute.xlu1 %2957  ;;  %v15860_v59 = vld [vmem:[#allocation49_spill] sm:$0xff] }
 0x42a   : > { %v3731_v33 = vsub.f32 %v15849_v29, %v15825_v39  ;;  %15850 = vst [vmem:[#allocation230_spill] sm:$0xff] %v11118_v25  ;;  %15851 = vst [vmem:[#allocation170_spill] sm:$0xff] %v11122_v5  ;;  %v15852_v20 = vld [vmem:[#allocation270_spill] sm:$0xff]  ;;  %3591 = vrot.lane.b32.xlu0 %v6260_v12, %s6345_s11  ;;  %v11127_v27 = vpop.eup %5658  ;;  %5684 = vpow2.f32 %v3781_v54  ;;  %v4381_v29 = vmul.f32 1.442695, %v4326_v48  ;;  %v15858_v12 = vld [vmem:[#allocation221_spill] sm:$0xff]  ;;  %v11152_v3 = vpop.permute.xlu0 %2963 }
 0x42b   : > { %v4329_v50 = vsub.f32 %v15852_v20, %v15806_v19  ;;  %15853 = vst [vmem:[#allocation270_spill] sm:$0xff] %v11127_v27  ;;  %15854 = vst [vmem:[#allocation350_spill] sm:$0xff] %v11131_v45  ;;  %v11139_v51 = vpop.eup %5660  ;;  %v11143_v20 = vmul.f32 %v11105_v6, %v10962_v22  ;;  %5686 = vpow2.f32 %v4377_v35  ;;  %v15859_v24 = vld [vmem:[#allocation146_spill] sm:$0xff]  ;;  %v3730_v45 = vsub.f32 %v15860_v59, %v15835_v11  ;;  %v15863_v6 = vld [vmem:[#allocation237_spill] sm:$0xff] }
 0x42c   : > { %15855 = vst [vmem:[#allocation351_spill] sm:$0xff] %v11135_v43  ;;  %15856 = vst [vmem:[#allocation352_spill] sm:$0xff] %v11139_v51  ;;  %v2772_v17 = vsub.f32 %v15859_v24, %v15858_v12  ;;  %v6261_v62 = vld [vmem:[#allocation2 + $0x112] sm:$0xff]  ;;  %v11150_v28 = vpop.eup %5662  ;;  %5688 = vpow2.f32 %v2831_v30  ;;  %v2835_v54 = vmul.f32 1.442695, %v2773_v36  ;;  %v4328_v43 = vsub.f32 %v15863_v6, %v15816_v34  ;;  %v6262_v5 = vld [vmem:[#allocation2 + $0x13a] sm:$0xff] }
 0x42d   : > { %15857 = vst [vmem:[#allocation353_spill] sm:$0xff] %v11143_v20  ;;  %3589 = vrot.lane.b32.xlu1 %v6261_v62, %s6345_s11  ;;  %15861 = vst [vmem:[#allocation146_spill] sm:$0xff] %v11150_v28  ;;  %v3791_v48 = vmul.f32 1.442695, %v3731_v33  ;;  %v11156_v35 = vpop.eup %5664  ;;  %v11160_v24 = vmul.f32 %v11112_v61, %v10962_v22  ;;  %5690 = vpow2.f32 %v3787_v26  ;;  %v4387_v59 = vmul.f32 1.442695, %v4329_v50 }
 0x42e   : > { %15862 = vst [vmem:[#allocation49_spill] sm:$0xff] %v11152_v3  ;;  %15864 = vst [vmem:[#allocation237_spill] sm:$0xff] %v11156_v35  ;;  %v15866_v62 = vld [vmem:[#allocation158_spill] sm:$0xff]  ;;  %3595 = vrot.lane.b32.xlu0 %v6262_v5, %s6345_s11  ;;  %v11165_v33 = vpop.eup %5666  ;;  %v11169_v30 = vmul.f32 %v11118_v25, %v10962_v22  ;;  %v11173_v36 = vmul.f32 %v11127_v27, %v10976_v47  ;;  %5692 = vpow2.f32 %v4383_v58  ;;  %v15870_v6 = vld [vmem:[#allocation71_spill] sm:$0xff]  ;;  %v2833_v5 = vmul.f32 1.442695, %v2772_v17  ;;  %v11186_v58 = vpop.permute.xlu1 %2961 }
 0x42f   : > { %15865 = vst [vmem:[#allocation354_spill] sm:$0xff] %v11160_v24  ;;  %v2774_v20 = vsub.f32 %v15866_v62, %v10591_v9  ;;  %15867 = vst [vmem:[#allocation158_spill] sm:$0xff] %v11165_v33  ;;  %v3732_v26 = vsub.f32 %v15870_v6, %v15858_v12  ;;  %v11177_v50 = vpop.eup %5668  ;;  %v11181_v62 = vmul.f32 %v11139_v51, %v10976_v47  ;;  %5694 = vpow2.f32 %v2829_v56  ;;  %v6263_v24 = vld [vmem:[#allocation2 + $0x12a] sm:$0xff]  ;;  %v6267_v39 = vld [vmem:[#allocation2 + $0x15a] sm:$0xff] }
 0x430   : > { %15868 = vst [vmem:[#allocation355_spill] sm:$0xff] %v11169_v30  ;;  %15869 = vst [vmem:[#allocation356_spill] sm:$0xff] %v11173_v36  ;;  %v3789_v61 = vmul.f32 1.442695, %v3730_v45  ;;  %v11184_v22 = vpop.eup %5670  ;;  %5696 = vpow2.f32 %v3785_v55  ;;  %v4385_v27 = vmul.f32 1.442695, %v4328_v43  ;;  %v11196_v17 = vmul.f32 %v11150_v28, %v10976_v47 }
 0x431   : > { %15871 = vst [vmem:[#allocation71_spill] sm:$0xff] %v11177_v50  ;;  %15872 = vst [vmem:[#allocation357_spill] sm:$0xff] %v11181_v62  ;;  %3593 = vrot.lane.b32.xlu1 %v6263_v24, %s6345_s11  ;;  %v15874_v6 = vld [vmem:[#allocation278_spill] sm:$0xff]  ;;  %v15875_v30 = vld [vmem:[#allocation301_spill] sm:$0xff]  ;;  %v11192_v51 = vpop.eup %5672  ;;  %v11200_v56 = vmul.f32 %v11156_v35, %v10998_v15  ;;  %5698 = vpow2.f32 %v4381_v29  ;;  %v2837_v55 = vmul.f32 1.442695, %v2774_v20  ;;  %v11209_v24 = vpop.permute.xlu0 %3223  ;;  %v11220_v20 = vmul.f32 %v11177_v50, %v10998_v15 }
 0x432   : > { %15873 = vst [vmem:[#allocation358_spill] sm:$0xff] %v11184_v22  ;;  %v4330_v25 = vsub.f32 %v15874_v6, %v15835_v11  ;;  %v15876_v9 = vld [vmem:[#allocation58_spill] sm:$0xff]  ;;  %15877 = vst [vmem:[#allocation278_spill] sm:$0xff] %v11192_v51  ;;  %v11203_v43 = vpop.eup %5674  ;;  %5700 = vpow2.f32 %v2835_v54  ;;  %v3793_v47 = vmul.f32 1.442695, %v3732_v26  ;;  %v15882_v6 = vld [vmem:[#allocation48_spill] sm:$0xff] }
 0x433   : > { %v3065_v36 = vsub.f32 %v15876_v9, %v15875_v30  ;;  %15878 = vst [vmem:[#allocation58_spill] sm:$0xff] %v11196_v17  ;;  %15879 = vst [vmem:[#allocation359_spill] sm:$0xff] %v11200_v56  ;;  %v6264_v45 = vld [vmem:[#allocation2 + $0x152] sm:$0xff]  ;;  %v11207_v9 = vmul.f32 %v11165_v33, %v10998_v15  ;;  %v15883_v28 = vld [vmem:[#allocation293_spill] sm:$0xff]  ;;  %v11216_v29 = vpop.eup %5676  ;;  %5702 = vpow2.f32 %v3791_v48  ;;  %v11235_v48 = vmul.f32 %v11184_v22, %v11027_v53 }
 0x434   : > { %3599 = vrot.lane.b32.xlu0 %v6264_v45, %s6345_s11  ;;  %15880 = vst [vmem:[#allocation360_spill] sm:$0xff] %v11203_v43  ;;  %v15884_v17 = vsub.f32 %v15882_v6, %v15883_v28  ;;  %15885 = vst [vmem:[#allocation48_spill] sm:$0xff] %v11216_v29  ;;  %v15887_v45 = vld [vmem:[#allocation163_spill] sm:$0xff]  ;;  %v15888_v62 = vld [vmem:[#allocation46_spill] sm:$0xff]  ;;  %v11227_v12 = vpop.eup %5678  ;;  %5704 = vpow2.f32 %v4387_v59 }
 0x435   : > { %15881 = vst [vmem:[#allocation361_spill] sm:$0xff] %v11207_v9  ;;  %15886 = vst [vmem:[#allocation362_spill] sm:$0xff] %v11220_v20  ;;  %v3064_v33 = vsub.f32 %v15888_v62, %v15887_v45  ;;  %v6265_v9 = vld [vmem:[#allocation2 + $0x142] sm:$0xff]  ;;  %v15889_v54 = vld [vmem:[#allocation299_spill] sm:$0xff]  ;;  %v3099_v6 = vmul.f32 1.442695, %v3065_v36  ;;  %v11231_v15 = vpop.eup %5680  ;;  %v11239_v62 = vmul.f32 %v11192_v51, %v11027_v53  ;;  %5706 = vpow2.f32 %v2833_v5  ;;  %v11250_v36 = vpop.permute.xlu1 %2965 }
 0x436   : > { %v11214_v35 = vmul.f32 1.442695, %v15884_v17  ;;  %3597 = vrot.lane.b32.xlu1 %v6265_v9, %s6345_s11  ;;  %v15890_v26 = vld [vmem:[#allocation80_spill] sm:$0xff]  ;;  %15891 = vst [vmem:[#allocation46_spill] sm:$0xff] %v11227_v12  ;;  %v4389_v17 = vmul.f32 1.442695, %v4330_v25  ;;  %v11244_v25 = vpop.eup %5682  ;;  %5708 = vpow2.f32 %v3789_v61 }
 0x437   : > { %v3067_v56 = vsub.f32 %v15890_v26, %v15889_v54  ;;  %v15892_v38 = vld [vmem:[#allocation69_spill] sm:$0xff]  ;;  %15893 = vst [vmem:[#allocation80_spill] sm:$0xff] %v11231_v15  ;;  %15895 = vst [vmem:[#allocation363_spill] sm:$0xff] %v11239_v62  ;;  %v15896_v9 = vld [vmem:[#allocation42_spill] sm:$0xff]  ;;  %v11259_v20 = vpop.eup %5684  ;;  %5710 = vpow2.f32 %v4385_v27 }
 0x438   : > { %v3905_v11 = vsub.f32 %v15892_v38, %v15875_v30  ;;  %15894 = vst [vmem:[#allocation69_spill] sm:$0xff] %v11235_v48  ;;  %v15897_v26 = vld [vmem:[#allocation53_spill] sm:$0xff]  ;;  %15898 = vst [vmem:[#allocation42_spill] sm:$0xff] %v11244_v25  ;;  %v11248_v38 = vmul.f32 %v11203_v43, %v11027_v53  ;;  %v15901_v22 = vld [vmem:[#allocation10_spill] sm:$0xff] }
 0x439   : > { %v3066_v50 = vsub.f32 %v15897_v26, %v15896_v9  ;;  %v6266_v59 = vld [vmem:[#allocation2 + $0x16a] sm:$0xff]  ;;  %15900 = vst [vmem:[#allocation364_spill] sm:$0xff] %v11250_v36  ;;  %v15902_v51 = vsub.f32 %v15901_v22, %v15883_v28  ;;  %15904 = vst [vmem:[#allocation10_spill] sm:$0xff] %v11259_v20  ;;  %v3103_v48 = vmul.f32 1.442695, %v3067_v56  ;;  %v15906_v61 = vld [vmem:[#allocation100_spill] sm:$0xff] }
 0x43a   : > { %3603 = vrot.lane.b32.xlu0 %v6266_v59, %s6345_s11  ;;  %15899 = vst [vmem:[#allocation53_spill] sm:$0xff] %v11248_v38  ;;  %v15903_v5 = vld [vmem:[#allocation110_spill] sm:$0xff]  ;;  %v3097_v59 = vmul.f32 1.442695, %v3064_v33  ;;  %3601 = vrot.lane.b32.xlu1 %v6267_v39, %s6345_s11  ;;  %v11264_v38 = vpop.eup %5686  ;;  %v15909_v22 = vld [vmem:[#allocation67_spill] sm:$0xff]  ;;  %v11279_v39 = vmul.f32 %v11227_v12, %v11040_v23 }
 0x43b   : > { %v11255_v62 = vmul.f32 1.442695, %v15902_v51  ;;  %v3904_v26 = vsub.f32 %v15903_v5, %v15887_v45  ;;  %v15905_v53 = vld [vmem:[#allocation214_spill] sm:$0xff]  ;;  %15907 = vst [vmem:[#allocation110_spill] sm:$0xff] %v11264_v38  ;;  %v11268_v51 = vmul.f32 %v11216_v29, %v11040_v23  ;;  %5712 = vpow2.f32 %v15909_v22  ;;  %v11271_v5 = vpop.permute.xlu0 %3227  ;;  %v11275_v56 = vpop.eup %5688 }
 0x43c   : > { %v3069_v43 = vsub.f32 %v15906_v61, %v15905_v53  ;;  %v3939_v28 = vmul.f32 1.442695, %v3905_v11  ;;  %v15910_v27 = vld [vmem:[#allocation90_spill] sm:$0xff]  ;;  %15911 = vst [vmem:[#allocation100_spill] sm:$0xff] %v11275_v56  ;;  %15912 = vst [vmem:[#allocation67_spill] sm:$0xff] %v11279_v39  ;;  %v11283_v61 = vmul.f32 %v11231_v15, %v11040_v23  ;;  %5714 = vpow2.f32 %v2837_v55  ;;  %v11286_v22 = vpop.eup %5690  ;;  %v15918_v55 = vld [vmem:[#allocation47_spill] sm:$0xff] }
 0x43d   : > { %15908 = vst [vmem:[#allocation214_spill] sm:$0xff] %v11268_v51  ;;  %v3907_v33 = vsub.f32 %v15910_v27, %v15889_v54  ;;  %v3101_v29 = vmul.f32 1.442695, %v3066_v50  ;;  %v6268_v51 = vld [vmem:[#allocation2 + $0x180] sm:$0xff]  ;;  %15914 = vst [vmem:[#allocation365_spill] sm:$0xff] %v11286_v22  ;;  %v11290_v11 = vmul.f32 %v11244_v25, %v11078_v21  ;;  %5716 = vpow2.f32 %v3793_v47  ;;  %v15916_v12 = vld [vmem:[#allocation14_spill] sm:$0xff]  ;;  %v11294_v34 = vpop.eup %5692 }
 0x43e   : > { %15913 = vst [vmem:[#allocation90_spill] sm:$0xff] %v11283_v61  ;;  %3833 = vrot.lane.b32.xlu0 %v6268_v51, %s6345_s11  ;;  %v3937_v27 = vmul.f32 1.442695, %v3904_v26  ;;  %v4505_v39 = vsub.f32 %v15916_v12, %v15875_v30  ;;  %15917 = vst [vmem:[#allocation14_spill] sm:$0xff] %v11294_v34  ;;  %5718 = vpow2.f32 %v4389_v17  ;;  %v3107_v23 = vmul.f32 1.442695, %v3069_v43  ;;  %v11301_v25 = vpop.eup %5694  ;;  %v11307_v12 = vpop.permute.xlu1 %3225 }
 0x43f   : > { %15915 = vst [vmem:[#allocation366_spill] sm:$0xff] %v11290_v11  ;;  %v15919_v50 = vld [vmem:[#allocation78_spill] sm:$0xff]  ;;  %v15920_v51 = vld [vmem:[#allocation171_spill] sm:$0xff]  ;;  %v11305_v47 = vmul.f32 %v11259_v20, %v11078_v21  ;;  %5720 = vpow2.f32 %v3099_v6  ;;  %v3943_v17 = vmul.f32 1.442695, %v3907_v33  ;;  %v6270_v11 = vld [vmem:[#allocation2 + $0x181] sm:$0xff] }
 0x440   : > { %v3068_v15 = vsub.f32 %v15919_v50, %v15918_v55  ;;  %v3906_v61 = vsub.f32 %v15920_v51, %v15896_v9  ;;  %v6269_v19 = vld [vmem:[#allocation2 + $0x172] sm:$0xff]  ;;  %15921 = vst [vmem:[#allocation78_spill] sm:$0xff] %v11301_v25  ;;  %v11311_v50 = vpop.eup %5696  ;;  %v11315_v51 = vmul.f32 %v11264_v38, %v11078_v21  ;;  %5722 = vpow2.f32 %v11214_v35  ;;  %v11331_v21 = vpop.permute.xlu0 %3231  ;;  %v6271_v30 = vld [vmem:[#allocation2 + $0x188] sm:$0xff] }
 0x441   : > { %3605 = vrot.lane.b32.xlu1 %v6269_v19, %s6345_s11  ;;  %15922 = vst [vmem:[#allocation171_spill] sm:$0xff] %v11305_v47  ;;  %v15923_v43 = vld [vmem:[#allocation159_spill] sm:$0xff]  ;;  %v11319_v19 = vmul.f32 %v11275_v56, %v11101_v42  ;;  %v15927_v20 = vld [vmem:[#allocation22_spill] sm:$0xff]  ;;  %v11325_v33 = vpop.eup %5698  ;;  %5724 = vpow2.f32 %v3097_v59  ;;  %v4539_v38 = vmul.f32 1.442695, %v4505_v39  ;;  %v11344_v59 = vmul.f32 %v11294_v34, %v11101_v42 }
 0x442   : > { %v4504_v26 = vsub.f32 %v15923_v43, %v15887_v45  ;;  %15924 = vst [vmem:[#allocation159_spill] sm:$0xff] %v11311_v50  ;;  %15925 = vst [vmem:[#allocation367_spill] sm:$0xff] %v11315_v51  ;;  %v15928_v6 = vld [vmem:[#allocation119_spill] sm:$0xff]  ;;  %4033 = vrot.lane.b32.xlu0 %v6270_v11, %s6345_s11  ;;  %v11329_v43 = vmul.f32 %v11286_v22, %v11101_v42  ;;  %v11335_v35 = vpop.eup %5700  ;;  %5726 = vpow2.f32 %v3103_v48  ;;  %v6272_v42 = vld [vmem:[#allocation2 + $0x182] sm:$0xff] }
 0x443   : > { %15926 = vst [vmem:[#allocation368_spill] sm:$0xff] %v11319_v19  ;;  %v3071_v47 = vsub.f32 %v15928_v6, %v15927_v20  ;;  %15929 = vst [vmem:[#allocation22_spill] sm:$0xff] %v11325_v33  ;;  %v15931_v56 = vld [vmem:[#allocation223_spill] sm:$0xff]  ;;  %v3105_v6 = vmul.f32 1.442695, %v3068_v15  ;;  %v11340_v22 = vpop.eup %5702  ;;  %5728 = vpow2.f32 %v3939_v28  ;;  %v11352_v15 = vmul.f32 %v11301_v25, %v11137_v8  ;;  %v15943_v25 = vld [vmem:[#allocation108_spill] sm:$0xff] }
 0x444   : > { %15930 = vst [vmem:[#allocation119_spill] sm:$0xff] %v11329_v43  ;;  %v3909_v51 = vsub.f32 %v15931_v56, %v15905_v53  ;;  %15932 = vst [vmem:[#allocation223_spill] sm:$0xff] %v11335_v35  ;;  %v3941_v19 = vmul.f32 1.442695, %v3906_v61  ;;  %v15933_v11 = vld [vmem:[#allocation167_spill] sm:$0xff]  ;;  %v15936_v56 = vld [vmem:[#allocation64_spill] sm:$0xff]  ;;  %v11348_v48 = vpop.eup %5704  ;;  %5730 = vpow2.f32 %v11255_v62 }
 0x445   : > { %v4507_v45 = vsub.f32 %v15933_v11, %v15889_v54  ;;  %3835 = vrot.lane.b32.xlu1 %v6271_v30, %s6345_s11  ;;  %15934 = vst [vmem:[#allocation167_spill] sm:$0xff] %v11340_v22  ;;  %15935 = vst [vmem:[#allocation369_spill] sm:$0xff] %v11344_v59  ;;  %v4537_v39 = vmul.f32 1.442695, %v4504_v26  ;;  %v15937_v43 = vld [vmem:[#allocation99_spill] sm:$0xff]  ;;  %v11356_v30 = vmul.f32 %v11311_v50, %v11137_v8  ;;  %v11360_v28 = vpop.eup %5706  ;;  %5732 = vpow2.f32 %v3101_v29  ;;  %v6273_v54 = vld [vmem:[#allocation2 + $0x189] sm:$0xff] }
 0x446   : > { %v3070_v35 = vsub.f32 %v15937_v43, %v15936_v56  ;;  %15938 = vst [vmem:[#allocation64_spill] sm:$0xff] %v11348_v48  ;;  %15939 = vst [vmem:[#allocation99_spill] sm:$0xff] %v11352_v15  ;;  %v3111_v61 = vmul.f32 1.442695, %v3071_v47  ;;  %4233 = vrot.lane.b32.xlu0 %v6272_v42, %s6345_s11  ;;  %v11364_v26 = vmul.f32 %v11325_v33, %v11137_v8  ;;  %v11366_v43 = vpop.permute.xlu1 %3229  ;;  %v3947_v11 = vmul.f32 1.442695, %v3909_v51  ;;  %v11370_v34 = vpop.eup %5708 }
 0x447   : > { %15940 = vst [vmem:[#allocation370_spill] sm:$0xff] %v11356_v30  ;;  %15941 = vst [vmem:[#allocation371_spill] sm:$0xff] %v11360_v28  ;;  %v3908_v50 = vsub.f32 %v15943_v25, %v15918_v55  ;;  %5734 = vpow2.f32 %v3937_v27  ;;  %v4543_v62 = vmul.f32 1.442695, %v4507_v45  ;;  %v15945_v47 = vld [vmem:[#allocation281_spill] sm:$0xff]  ;;  %v15946_v30 = vld [vmem:[#allocation16_spill] sm:$0xff]  ;;  %v11377_v8 = vpop.eup %5710  ;;  %v11381_v29 = vmul.f32 %v11340_v22, %v11152_v3  ;;  %v11383_v25 = vpop.permute.xlu0 %3235 }
 0x448   : > { %15942 = vst [vmem:[#allocation372_spill] sm:$0xff] %v11364_v26  ;;  %15944 = vst [vmem:[#allocation108_spill] sm:$0xff] %v11370_v34  ;;  %v4506_v42 = vsub.f32 %v15945_v47, %v15896_v9  ;;  %v15947_v15 = vld [vmem:[#allocation256_spill] sm:$0xff]  ;;  %5736 = vpow2.f32 %v3107_v23  ;;  %v3109_v27 = vmul.f32 1.442695, %v3070_v35  ;;  %v11387_v47 = vpop.eup %5712  ;;  %v15954_v22 = vld [vmem:[#allocation118_spill] sm:$0xff] }
 0x449   : > { %v3073_v59 = vsub.f32 %v15947_v15, %v15946_v30  ;;  %4035 = vrot.lane.b32.xlu1 %v6273_v54, %s6345_s11  ;;  %15948 = vst [vmem:[#allocation281_spill] sm:$0xff] %v11377_v8  ;;  %15949 = vst [vmem:[#allocation16_spill] sm:$0xff] %v11381_v29  ;;  %v15950_v45 = vld [vmem:[#allocation172_spill] sm:$0xff]  ;;  %v11391_v15 = vmul.f32 %v11348_v48, %v11152_v3  ;;  %5738 = vpow2.f32 %v3943_v17  ;;  %v15953_v54 = vld [vmem:[#allocation282_spill] sm:$0xff]  ;;  %v11398_v35 = vpop.eup %5714  ;;  %v3945_v26 = vmul.f32 1.442695, %v3908_v50 }
 0x44a   : > { %v3911_v51 = vsub.f32 %v15950_v45, %v15927_v20  ;;  %15951 = vst [vmem:[#allocation256_spill] sm:$0xff] %v11387_v47  ;;  %v4509_v33 = vsub.f32 %v15953_v54, %v15905_v53  ;;  %v3072_v29 = vsub.f32 %v15954_v22, %v10187_v18  ;;  %v6274_v23 = vld [vmem:[#allocation2 + $0x198] sm:$0xff]  ;;  %15955 = vst [vmem:[#allocation282_spill] sm:$0xff] %v11398_v35  ;;  %5740 = vpow2.f32 %v4539_v38  ;;  %v15957_v3 = vld [vmem:[#allocation173_spill] sm:$0xff]  ;;  %v11406_v48 = vpop.eup %5716  ;;  %v11417_v50 = vpop.permute.xlu1 %3233 }
 0x44b   : > { %15952 = vst [vmem:[#allocation172_spill] sm:$0xff] %v11391_v15  ;;  %4433 = vrot.lane.b32.xlu0 %v6274_v23, %s6345_s11  ;;  %v11402_v45 = vmul.f32 %v11360_v28, %v11186_v58  ;;  %v3910_v17 = vsub.f32 %v15957_v3, %v15936_v56  ;;  %15958 = vst [vmem:[#allocation173_spill] sm:$0xff] %v11406_v48  ;;  %v3319_v54 = vmul.f32 %v11387_v47, %v11209_v24  ;;  %v6275_v23 = vld [vmem:[#allocation2 + $0x18a] sm:$0xff]  ;;  %v11411_v35 = vpop.eup %5718 }
 0x44c   : > { %5742 = vpow2.f32 %v3105_v6  ;;  %v4541_v22 = vmul.f32 1.442695, %v4506_v42  ;;  %v3115_v15 = vmul.f32 1.442695, %v3073_v59  ;;  %15959 = vst [vmem:[#allocation373_spill] sm:$0xff] %v11411_v35  ;;  %v11415_v38 = vmul.f32 %v11370_v34, %v11186_v58  ;;  %v15961_v28 = vld [vmem:[#allocation6_spill] sm:$0xff]  ;;  %v11421_v24 = vpop.eup %5720 }
 0x44d   : > { %15956 = vst [vmem:[#allocation118_spill] sm:$0xff] %v11402_v45  ;;  %4235 = vrot.lane.b32.xlu1 %v6275_v23, %s6345_s11  ;;  %5744 = vpow2.f32 %v3941_v19  ;;  %v3951_v3 = vmul.f32 1.442695, %v3911_v51  ;;  %v4508_v45 = vsub.f32 %v15961_v28, %v15918_v55  ;;  %15962 = vst [vmem:[#allocation6_spill] sm:$0xff] %v11421_v24  ;;  %v11425_v6 = vmul.f32 %v11377_v8, %v11186_v58  ;;  %v6276_v23 = vld [vmem:[#allocation2 + $0x199] sm:$0xff]  ;;  %v11428_v34 = vpop.eup %5722  ;;  %v11430_v19 = vpop.permute.xlu0 %3239  ;;  %v15966_v47 = vld [vmem:[#allocation174_spill] sm:$0xff] }
 0x44e   : > { %15960 = vst [vmem:[#allocation374_spill] sm:$0xff] %v11415_v38  ;;  %5746 = vpow2.f32 %v4537_v39  ;;  %v4547_v59 = vmul.f32 1.442695, %v4509_v33  ;;  %v3113_v42 = vmul.f32 1.442695, %v3072_v29  ;;  %15964 = vst [vmem:[#allocation376_spill] sm:$0xff] %v11428_v34  ;;  %v3913_v55 = vsub.f32 %v15966_v47, %v15946_v30  ;;  %v11436_v58 = vpop.eup %5724 }
 0x44f   : > { %15963 = vst [vmem:[#allocation375_spill] sm:$0xff] %v11425_v6  ;;  %4633 = vrot.lane.b32.xlu0 %v6276_v23, %s6345_s11  ;;  %5748 = vpow2.f32 %v3111_v61  ;;  %v3949_v51 = vmul.f32 1.442695, %v3910_v17  ;;  %v15965_v28 = vld [vmem:[#allocation276_spill] sm:$0xff]  ;;  %v15968_v39 = vld [vmem:[#allocation157_spill] sm:$0xff]  ;;  %v3321_v29 = vmul.f32 %v11421_v24, %v11271_v5  ;;  %v11446_v17 = vpop.eup %5726  ;;  %v11450_v47 = vmul.f32 %v11406_v48, %v11250_v36 }
 0x450   : > { %v3075_v38 = vsub.f32 %v15965_v28, %v10195_v13  ;;  %15967 = vst [vmem:[#allocation276_spill] sm:$0xff] %v11436_v58  ;;  %v11439_v33 = vadd.f32 %v3319_v54, %v15968_v39  ;;  %5750 = vpow2.f32 %v3947_v11  ;;  %v15969_v61 = vld [vmem:[#allocation224_spill] sm:$0xff]  ;;  %15970 = vst [vmem:[#allocation174_spill] sm:$0xff] %v11446_v17  ;;  %v11454_v54 = vmul.f32 %v11411_v35, %v11250_v36  ;;  %v11456_v39 = vpop.eup %5728 }
 0x451   : > { %v4511_v23 = vsub.f32 %v15969_v61, %v15927_v20  ;;  %v6277_v8 = vld [vmem:[#allocation2 + $0x1a0] sm:$0xff]  ;;  %15971 = vst [vmem:[#allocation157_spill] sm:$0xff] %v11450_v47  ;;  %5752 = vpow2.f32 %v4543_v62  ;;  %v4545_v28 = vmul.f32 1.442695, %v4508_v45  ;;  %15973 = vst [vmem:[#allocation377_spill] sm:$0xff] %v11456_v39  ;;  %v11460_v11 = vmul.f32 %v11428_v34, %v11271_v5  ;;  %v11467_v36 = vpop.eup %5730  ;;  %v11469_v62 = vpop.permute.xlu1 %3237  ;;  %v15977_v5 = vld [vmem:[#allocation239_spill] sm:$0xff] }
 0x452   : > { %4435 = vrot.lane.b32.xlu1 %v6277_v8, %s6345_s11  ;;  %15972 = vst [vmem:[#allocation224_spill] sm:$0xff] %v11454_v54  ;;  %v3320_v8 = vmul.f32 %v11436_v58, %v11307_v12  ;;  %5754 = vpow2.f32 %v3109_v27  ;;  %v15975_v61 = vld [vmem:[#allocation268_spill] sm:$0xff]  ;;  %v3119_v45 = vmul.f32 1.442695, %v3075_v38  ;;  %v3955_v35 = vmul.f32 1.442695, %v3913_v55  ;;  %v11473_v6 = vpop.eup %5732 }
 0x453   : > { %15974 = vst [vmem:[#allocation378_spill] sm:$0xff] %v11460_v11  ;;  %v3074_v48 = vsub.f32 %v15975_v61, %v15683_v31  ;;  %v6278_v47 = vld [vmem:[#allocation2 + $0x19a] sm:$0xff]  ;;  %15976 = vst [vmem:[#allocation268_spill] sm:$0xff] %v11467_v36  ;;  %5756 = vpow2.f32 %v3945_v26  ;;  %v3912_v54 = vsub.f32 %v15977_v5, %v10187_v18  ;;  %v4551_v61 = vmul.f32 1.442695, %v4511_v23 }
 0x454   : > { %4833 = vrot.lane.b32.xlu0 %v6278_v47, %s6345_s11  ;;  %15978 = vst [vmem:[#allocation239_spill] sm:$0xff] %v11473_v6  ;;  %v15979_v12 = vld [vmem:[#allocation275_spill] sm:$0xff]  ;;  %5758 = vpow2.f32 %v4541_v22  ;;  %v6279_v24 = vld [vmem:[#allocation2 + $0x1a1] sm:$0xff]  ;;  %v11481_v26 = vpop.eup %5734  ;;  %v11485_v55 = vmul.f32 %v11446_v17, %v11331_v21  ;;  %v3322_v38 = vmul.f32 %v11473_v6, %v11366_v43 }
 0x455   : > { %v11476_v27 = vadd.f32 %v3321_v29, %v15979_v12  ;;  %v15980_v58 = vld [vmem:[#allocation79_spill] sm:$0xff]  ;;  %15981 = vst [vmem:[#allocation275_spill] sm:$0xff] %v11481_v26  ;;  %5760 = vpow2.f32 %v3115_v15  ;;  %v11489_v29 = vpop.permute.xlu0 %3243  ;;  %v11493_v5 = vpop.eup %5736  ;;  %v3117_v12 = vmul.f32 1.442695, %v3074_v48  ;;  %v11506_v15 = vmul.f32 %v11467_v36, %v11331_v21 }
 0x456   : > { %v4510_v47 = vsub.f32 %v15980_v58, %v15936_v56  ;;  %4635 = vrot.lane.b32.xlu1 %v6279_v24, %s6345_s11  ;;  %v15982_v22 = vld [vmem:[#allocation147_spill] sm:$0xff]  ;;  %15983 = vst [vmem:[#allocation79_spill] sm:$0xff] %v11493_v5  ;;  %v11496_v58 = vadd.f32 %v3320_v8, %v10666_v16  ;;  %v11500_v24 = vmul.f32 %v11456_v39, %v11331_v21  ;;  %5762 = vpow2.f32 %v3951_v3  ;;  %v11502_v17 = vpop.eup %5738  ;;  %v6280_v39 = vld [vmem:[#allocation2 + $0x1a2] sm:$0xff] }
 0x457   : > { %v3077_v23 = vsub.f32 %v15982_v22, %v10234_v52  ;;  %15984 = vst [vmem:[#allocation147_spill] sm:$0xff] %v11502_v17  ;;  %15985 = vst [vmem:[#allocation379_spill] sm:$0xff] %v11506_v15  ;;  %5764 = vpow2.f32 %v4547_v59  ;;  %v3953_v6 = vmul.f32 1.442695, %v3912_v54  ;;  %v15986_v22 = vld [vmem:[#allocation41_spill] sm:$0xff]  ;;  %v11510_v11 = vpop.eup %5740  ;;  %v11514_v16 = vmul.f32 %v11481_v26, %v11366_v43  ;;  %v15988_v48 = vld [vmem:[#allocation175_spill] sm:$0xff]  ;;  %v11524_v54 = vpop.permute.xlu1 %3241 }
 0x458   : > { %v3915_v34 = vsub.f32 %v15986_v22, %v10195_v13  ;;  %15987 = vst [vmem:[#allocation41_spill] sm:$0xff] %v11510_v11  ;;  %5766 = vpow2.f32 %v3113_v42  ;;  %v4549_v3 = vmul.f32 1.442695, %v4510_v47  ;;  %v4513_v8 = vsub.f32 %v15988_v48, %v15946_v30  ;;  %v15991_v43 = vld [vmem:[#allocation139_spill] sm:$0xff] }
 0x459   : > { %v11519_v21 = vpop.eup %5742  ;;  %v11522_v59 = vadd.f32 %v3322_v38, %v10708_v4  ;;  %5768 = vpow2.f32 %v3949_v51  ;;  %v3123_v22 = vmul.f32 1.442695, %v3077_v23  ;;  %v3076_v26 = vsub.f32 %v15991_v43, %v10255_v32  ;;  %v15994_v4 = vld [vmem:[#allocation283_spill] sm:$0xff]  ;;  %v11544_v43 = vpop.permute.xlu0 %3247 }
 0x45a   : > { %4835 = vrot.lane.b32.xlu1 %v6280_v39, %s6345_s11  ;;  %15989 = vst [vmem:[#allocation175_spill] sm:$0xff] %v11519_v21  ;;  %v11528_v42 = vpop.eup %5744  ;;  %v11532_v47 = vmul.f32 %v11493_v5, %v11383_v25  ;;  %5770 = vpow2.f32 %v4545_v28  ;;  %v15993_v39 = vld [vmem:[#allocation240_spill] sm:$0xff]  ;;  %v4512_v38 = vsub.f32 %v15994_v4, %v10187_v18  ;;  %v11542_v23 = vmul.f32 %v11502_v17, %v11383_v25 }
 0x45b   : > { %15990 = vst [vmem:[#allocation380_spill] sm:$0xff] %v11522_v59  ;;  %15992 = vst [vmem:[#allocation139_spill] sm:$0xff] %v11528_v42  ;;  %v3914_v48 = vsub.f32 %v15993_v39, %v15683_v31  ;;  %v11538_v51 = vpop.eup %5746  ;;  %5772 = vpow2.f32 %v3119_v45  ;;  %v3959_v15 = vmul.f32 1.442695, %v3915_v34  ;;  %v15997_v5 = vld [vmem:[#allocation160_spill] sm:$0xff]  ;;  %v11552_v39 = vmul.f32 %v11510_v11, %v11383_v25 }
 0x45c   : > { %15995 = vst [vmem:[#allocation240_spill] sm:$0xff] %v11538_v51  ;;  %15996 = vst [vmem:[#allocation283_spill] sm:$0xff] %v11542_v23  ;;  %v3079_v36 = vsub.f32 %v15997_v5, %v10277_v2  ;;  %v11548_v28 = vpop.eup %5748  ;;  %v11556_v4 = vmul.f32 %v11519_v21, %v11417_v50  ;;  %5774 = vpow2.f32 %v3955_v35  ;;  %v4555_v17 = vmul.f32 1.442695, %v4513_v8  ;;  %v16002_v5 = vld [vmem:[#allocation40_spill] sm:$0xff]  ;;  %v16004_v21 = vld [vmem:[#allocation285_spill] sm:$0xff] }
 0x45d   : > { %15998 = vst [vmem:[#allocation160_spill] sm:$0xff] %v11548_v28  ;;  %15999 = vst [vmem:[#allocation381_spill] sm:$0xff] %v11552_v39  ;;  %v11558_v18 = vpop.eup %5750  ;;  %v11562_v34 = vmul.f32 %v11528_v42, %v11417_v50  ;;  %5776 = vpow2.f32 %v4551_v61  ;;  %v3121_v45 = vmul.f32 1.442695, %v3076_v26  ;;  %v3917_v23 = vsub.f32 %v16002_v5, %v10234_v52  ;;  %v11576_v61 = vpop.permute.xlu1 %3245  ;;  %v16007_v5 = vld [vmem:[#allocation164_spill] sm:$0xff] }
 0x45e   : > { %16000 = vst [vmem:[#allocation382_spill] sm:$0xff] %v11558_v18  ;;  %v11566_v59 = vpop.eup %5752  ;;  %5778 = vpow2.f32 %v3117_v12  ;;  %v3957_v25 = vmul.f32 1.442695, %v3914_v48  ;;  %v4553_v11 = vmul.f32 1.442695, %v4512_v38  ;;  %v4515_v35 = vsub.f32 %v16004_v21, %v10195_v13 }
 0x45f   : > { %16001 = vst [vmem:[#allocation383_spill] sm:$0xff] %v11562_v34  ;;  %16003 = vst [vmem:[#allocation40_spill] sm:$0xff] %v11566_v59  ;;  %v11570_v8 = vpop.eup %5754  ;;  %v11574_v39 = vmul.f32 %v11538_v51, %v11417_v50  ;;  %5780 = vpow2.f32 %v3953_v6  ;;  %v3127_v26 = vmul.f32 1.442695, %v3079_v36  ;;  %v3078_v42 = vsub.f32 %v16007_v5, %v10286_v44  ;;  %v16011_v50 = vld [vmem:[#allocation57_spill] sm:$0xff]  ;;  %v11594_v36 = vpop.permute.xlu0 %3251  ;;  %v16013_v5 = vld [vmem:[#allocation184_spill] sm:$0xff] }
 0x460   : > { %16005 = vst [vmem:[#allocation285_spill] sm:$0xff] %v11570_v8  ;;  %v11580_v34 = vpop.eup %5756  ;;  %v11584_v12 = vmul.f32 %v11548_v28, %v11430_v19  ;;  %v11588_v21 = vmul.f32 %v11558_v18, %v11430_v19  ;;  %5782 = vpow2.f32 %v4549_v3  ;;  %v3916_v6 = vsub.f32 %v16011_v50, %v10255_v32  ;;  %v16014_v28 = vld [vmem:[#allocation61_spill] sm:$0xff]  ;;  %v16016_v18 = vld [vmem:[#allocation51_spill] sm:$0xff] }
 0x461   : > { %16006 = vst [vmem:[#allocation384_spill] sm:$0xff] %v11574_v39  ;;  %16008 = vst [vmem:[#allocation164_spill] sm:$0xff] %v11580_v34  ;;  %v11592_v48 = vpop.eup %5758  ;;  %5784 = vpow2.f32 %v3123_v22  ;;  %v3963_v38 = vmul.f32 1.442695, %v3917_v23  ;;  %v4514_v51 = vsub.f32 %v16013_v5, %v15683_v31  ;;  %v3081_v13 = vsub.f32 %v16014_v28, %v10304_v49  ;;  %v16018_v28 = vld [vmem:[#allocation186_spill] sm:$0xff] }
 0x462   : > { %16009 = vst [vmem:[#allocation385_spill] sm:$0xff] %v11584_v12  ;;  %16010 = vst [vmem:[#allocation386_spill] sm:$0xff] %v11588_v21  ;;  %v11600_v39 = vpop.eup %5760  ;;  %v11604_v3 = vmul.f32 %v11566_v59, %v11430_v19  ;;  %5786 = vpow2.f32 %v3959_v15  ;;  %v4559_v50 = vmul.f32 1.442695, %v4515_v35  ;;  %v3919_v22 = vsub.f32 %v16016_v18, %v10277_v2 }
 0x463   : > { %16012 = vst [vmem:[#allocation57_spill] sm:$0xff] %v11592_v48  ;;  %16015 = vst [vmem:[#allocation184_spill] sm:$0xff] %v11600_v39  ;;  %v11608_v21 = vpop.eup %5762  ;;  %v3329_v23 = vmul.f32 %v11600_v39, %v11489_v29  ;;  %5788 = vpow2.f32 %v4555_v17  ;;  %v3125_v5 = vmul.f32 1.442695, %v3078_v42  ;;  %v4517_v31 = vsub.f32 %v16018_v28, %v10234_v52  ;;  %v11630_v42 = vpop.permute.xlu1 %3249 }
 0x464   : > { %16017 = vst [vmem:[#allocation61_spill] sm:$0xff] %v11608_v21  ;;  %v11614_v12 = vpop.eup %5764  ;;  %v11618_v19 = vmul.f32 %v11570_v8, %v11469_v62  ;;  %v11622_v15 = vmul.f32 %v11580_v34, %v11469_v62  ;;  %5790 = vpow2.f32 %v3121_v45  ;;  %v3961_v18 = vmul.f32 1.442695, %v3916_v6  ;;  %v16023_v34 = vld [vmem:[#allocation153_spill] sm:$0xff] }
 0x465   : > { %16019 = vst [vmem:[#allocation51_spill] sm:$0xff] %v11614_v12  ;;  %v11624_v35 = vpop.eup %5766  ;;  %v11628_v17 = vmul.f32 %v11592_v48, %v11469_v62  ;;  %5792 = vpow2.f32 %v3957_v25  ;;  %v4557_v28 = vmul.f32 1.442695, %v4514_v51  ;;  %v3131_v39 = vmul.f32 1.442695, %v3081_v13  ;;  %v16024_v45 = vld [vmem:[#allocation73_spill] sm:$0xff]  ;;  %v11647_v13 = vpop.permute.xlu0 %3255 }
 0x466   : > { %16020 = vst [vmem:[#allocation186_spill] sm:$0xff] %v11622_v15  ;;  %16021 = vst [vmem:[#allocation387_spill] sm:$0xff] %v11624_v35  ;;  %v11632_v59 = vpop.eup %5768  ;;  %5794 = vpow2.f32 %v4553_v11  ;;  %v3967_v8 = vmul.f32 1.442695, %v3919_v22  ;;  %v3080_v52 = vsub.f32 %v16023_v34, %v10324_v37  ;;  %v3918_v6 = vsub.f32 %v16024_v45, %v10286_v44  ;;  %v16029_v22 = vld [vmem:[#allocation190_spill] sm:$0xff] }
 0x467   : > { %16022 = vst [vmem:[#allocation388_spill] sm:$0xff] %v11632_v59  ;;  %v11638_v15 = vpop.eup %5770  ;;  %v11641_v62 = vadd.f32 %v3329_v23, %v10815_v57  ;;  %v11645_v25 = vmul.f32 %v11608_v21, %v11489_v29  ;;  %5796 = vpow2.f32 %v3127_v26  ;;  %v4563_v11 = vmul.f32 1.442695, %v4517_v31  ;;  %v16030_v57 = vld [vmem:[#allocation82_spill] sm:$0xff] }
 0x468   : > { %16025 = vst [vmem:[#allocation153_spill] sm:$0xff] %v11638_v15  ;;  %v11649_v51 = vpop.eup %5772  ;;  %v11653_v34 = vmul.f32 %v11614_v12, %v11489_v29  ;;  %5798 = vpow2.f32 %v3963_v38  ;;  %v4516_v45 = vsub.f32 %v16029_v22, %v10255_v32  ;;  %v3083_v23 = vsub.f32 %v16030_v57, %v10346_v41  ;;  %v16032_v29 = vld [vmem:[#allocation97_spill] sm:$0xff] }
 0x469   : > { %16026 = vst [vmem:[#allocation73_spill] sm:$0xff] %v11641_v62  ;;  %16027 = vst [vmem:[#allocation389_spill] sm:$0xff] %v11649_v51  ;;  %v11659_v48 = vpop.eup %5774  ;;  %v11663_v26 = vmul.f32 %v11624_v35, %v11524_v54  ;;  %v3331_v31 = vmul.f32 %v11649_v51, %v11544_v43  ;;  %5800 = vpow2.f32 %v4559_v50  ;;  %v3921_v21 = vsub.f32 %v16032_v29, %v10304_v49  ;;  %v11681_v50 = vpop.permute.xlu1 %3253  ;;  %v16037_v29 = vld [vmem:[#allocation286_spill] sm:$0xff] }
 0x46a   : > { %16028 = vst [vmem:[#allocation390_spill] sm:$0xff] %v11653_v34  ;;  %16031 = vst [vmem:[#allocation190_spill] sm:$0xff] %v11659_v48  ;;  %v11669_v38 = vpop.eup %5776  ;;  %v11673_v22 = vmul.f32 %v11632_v59, %v11524_v54  ;;  %5802 = vpow2.f32 %v3125_v5  ;;  %v3129_v57 = vmul.f32 1.442695, %v3080_v52  ;;  %v3965_v12 = vmul.f32 1.442695, %v3918_v6 }
 0x46b   : > { %16033 = vst [vmem:[#allocation82_spill] sm:$0xff] %v11669_v38  ;;  %v11675_v32 = vpop.eup %5778  ;;  %v11679_v35 = vmul.f32 %v11638_v15, %v11524_v54  ;;  %5804 = vpow2.f32 %v3961_v18  ;;  %v4519_v51 = vsub.f32 %v16037_v29, %v10277_v2  ;;  %v16038_v34 = vld [vmem:[#allocation56_spill] sm:$0xff]  ;;  %v4561_v5 = vmul.f32 1.442695, %v4516_v45  ;;  %v11700_v29 = vpop.permute.xlu0 %3259  ;;  %v16042_v45 = vld [vmem:[#allocation267_spill] sm:$0xff] }
 0x46c   : > { %16034 = vst [vmem:[#allocation97_spill] sm:$0xff] %v11673_v22  ;;  %16035 = vst [vmem:[#allocation391_spill] sm:$0xff] %v11675_v32  ;;  %v3082_v62 = vsub.f32 %v16038_v34, %v10367_v1  ;;  %v11687_v59 = vpop.eup %5780  ;;  %v3330_v52 = vmul.f32 %v11675_v32, %v11576_v61  ;;  %5806 = vpow2.f32 %v4557_v28  ;;  %v3135_v6 = vmul.f32 1.442695, %v3083_v23 }
 0x46d   : > { %16036 = vst [vmem:[#allocation392_spill] sm:$0xff] %v11679_v35  ;;  %16039 = vst [vmem:[#allocation286_spill] sm:$0xff] %v11687_v59  ;;  %v11691_v22 = vpop.eup %5782  ;;  %v11694_v54 = vadd.f32 %v3331_v31, %v10863_v63  ;;  %v11698_v18 = vmul.f32 %v11659_v48, %v11544_v43  ;;  %5808 = vpow2.f32 %v3131_v39  ;;  %v3971_v34 = vmul.f32 1.442695, %v3921_v21  ;;  %v16043_v63 = vld [vmem:[#allocation287_spill] sm:$0xff]  ;;  %v16045_v21 = vld [vmem:[#allocation102_spill] sm:$0xff] }
 0x46e   : > { %16040 = vst [vmem:[#allocation56_spill] sm:$0xff] %v11691_v22  ;;  %v11702_v15 = vpop.eup %5784  ;;  %v11706_v28 = vmul.f32 %v11669_v38, %v11544_v43  ;;  %5810 = vpow2.f32 %v3967_v8  ;;  %v3920_v23 = vsub.f32 %v16042_v45, %v10324_v37  ;;  %v4518_v31 = vsub.f32 %v16043_v63, %v10286_v44  ;;  %v16053_v38 = vld [vmem:[#allocation81_spill] sm:$0xff] }
 0x46f   : > { %16041 = vst [vmem:[#allocation393_spill] sm:$0xff] %v11702_v15  ;;  %v11712_v32 = vpop.eup %5786  ;;  %5812 = vpow2.f32 %v4563_v11  ;;  %v4567_v39 = vmul.f32 1.442695, %v4519_v51  ;;  %v3133_v48 = vmul.f32 1.442695, %v3082_v62  ;;  %v3085_v35 = vsub.f32 %v16045_v21, %v10376_v40  ;;  %v11733_v11 = vpop.permute.xlu1 %3257 }
 0x470   : > { %16044 = vst [vmem:[#allocation267_spill] sm:$0xff] %v11712_v32  ;;  %v11716_v2 = vpop.eup %5788  ;;  %v11719_v43 = vadd.f32 %v3330_v52, %v10898_v10  ;;  %v11723_v8 = vmul.f32 %v11687_v59, %v11576_v61  ;;  %v3333_v45 = vmul.f32 %v11702_v15, %v11594_v36  ;;  %5814 = vpow2.f32 %v3129_v57  ;;  %v16050_v10 = vld [vmem:[#allocation94_spill] sm:$0xff]  ;;  %v16051_v52 = vld [vmem:[#allocation288_spill] sm:$0xff] }
 0x471   : > { %16046 = vst [vmem:[#allocation287_spill] sm:$0xff] %v11716_v2  ;;  %v11727_v63 = vpop.eup %5790  ;;  %v11731_v62 = vmul.f32 %v11691_v22, %v11576_v61  ;;  %5816 = vpow2.f32 %v3965_v12  ;;  %v3923_v51 = vsub.f32 %v16050_v10, %v10346_v41  ;;  %v4521_v21 = vsub.f32 %v16051_v52, %v10304_v49  ;;  %v11751_v10 = vpop.permute.xlu0 %3263 }
 0x472   : > { %16047 = vst [vmem:[#allocation102_spill] sm:$0xff] %v11719_v43  ;;  %16048 = vst [vmem:[#allocation394_spill] sm:$0xff] %v11727_v63  ;;  %v11739_v59 = vpop.eup %5792  ;;  %5818 = vpow2.f32 %v4561_v5  ;;  %v3969_v15 = vmul.f32 1.442695, %v3920_v23  ;;  %v4565_v57 = vmul.f32 1.442695, %v4518_v31  ;;  %v3084_v44 = vsub.f32 %v16053_v38, %v10390_v14 }
 0x473   : > { %16049 = vst [vmem:[#allocation395_spill] sm:$0xff] %v11731_v62  ;;  %16052 = vst [vmem:[#allocation94_spill] sm:$0xff] %v11739_v59  ;;  %v11743_v43 = vpop.eup %5794  ;;  %v11747_v61 = vmul.f32 %v11712_v32, %v11594_v36  ;;  %v3332_v12 = vmul.f32 %v11727_v63, %v11630_v42  ;;  %5820 = vpow2.f32 %v3135_v6  ;;  %v3139_v52 = vmul.f32 1.442695, %v3085_v35  ;;  %v16057_v23 = vld [vmem:[#allocation112_spill] sm:$0xff]  ;;  %v16059_v35 = vld [vmem:[#allocation289_spill] sm:$0xff] }
 0x474   : > { %16054 = vst [vmem:[#allocation288_spill] sm:$0xff] %v11743_v43  ;;  %v11753_v62 = vpop.eup %5796  ;;  %v11756_v5 = vadd.f32 %v3333_v45, %v10919_v7  ;;  %v11760_v38 = vmul.f32 %v11716_v2, %v11594_v36  ;;  %5822 = vpow2.f32 %v3971_v34  ;;  %v3922_v31 = vsub.f32 %v16057_v23, %v10367_v1 }
 0x475   : > { %16055 = vst [vmem:[#allocation81_spill] sm:$0xff] %v11753_v62  ;;  %v11764_v32 = vpop.eup %5798  ;;  %5824 = vpow2.f32 %v4567_v39  ;;  %v3975_v6 = vmul.f32 1.442695, %v3923_v51  ;;  %v4571_v63 = vmul.f32 1.442695, %v4521_v21  ;;  %v4520_v22 = vsub.f32 %v16059_v35, %v10324_v37  ;;  %v11781_v51 = vpop.permute.xlu1 %3261  ;;  %v16064_v21 = vld [vmem:[#allocation121_spill] sm:$0xff] }
 0x476   : > { %16056 = vst [vmem:[#allocation396_spill] sm:$0xff] %v11756_v5  ;;  %16058 = vst [vmem:[#allocation112_spill] sm:$0xff] %v11764_v32  ;;  %v11768_v49 = vpop.eup %5800  ;;  %v11772_v7 = vmul.f32 %v11739_v59, %v11630_v42  ;;  %v3335_v36 = vmul.f32 %v11753_v62, %v11647_v13  ;;  %5826 = vpow2.f32 %v3133_v48  ;;  %v3137_v34 = vmul.f32 1.442695, %v3084_v44  ;;  %v16065_v35 = vld [vmem:[#allocation177_spill] sm:$0xff]  ;;  %v16070_v62 = vld [vmem:[#allocation210_spill] sm:$0xff] }
 0x477   : > { %16060 = vst [vmem:[#allocation289_spill] sm:$0xff] %v11768_v49  ;;  %v11776_v45 = vpop.eup %5802  ;;  %v11779_v39 = vadd.f32 %v3332_v12, %v10951_v46  ;;  %5828 = vpow2.f32 %v3969_v15  ;;  %v3087_v23 = vsub.f32 %v16064_v21, %v10412_v60  ;;  %v3925_v59 = vsub.f32 %v16065_v35, %v10376_v40  ;;  %v11801_v21 = vpop.permute.xlu0 %3267 }
 0x478   : > { %16061 = vst [vmem:[#allocation397_spill] sm:$0xff] %v11772_v7  ;;  %16062 = vst [vmem:[#allocation398_spill] sm:$0xff] %v11776_v45  ;;  %v11787_v2 = vpop.eup %5804  ;;  %v11791_v48 = vmul.f32 %v11743_v43, %v11630_v42  ;;  %v11795_v44 = vmul.f32 %v11764_v32, %v11647_v13  ;;  %5830 = vpow2.f32 %v4565_v57  ;;  %v3973_v46 = vmul.f32 1.442695, %v3922_v31  ;;  %v16074_v31 = vld [vmem:[#allocation17_spill] sm:$0xff] }
 0x479   : > { %16063 = vst [vmem:[#allocation399_spill] sm:$0xff] %v11779_v39  ;;  %16066 = vst [vmem:[#allocation121_spill] sm:$0xff] %v11787_v2  ;;  %v11797_v15 = vpop.eup %5806  ;;  %v3334_v12 = vmul.f32 %v11776_v45, %v11681_v50  ;;  %5832 = vpow2.f32 %v3139_v52  ;;  %v4569_v35 = vmul.f32 1.442695, %v4520_v22  ;;  %v4523_v37 = vsub.f32 %v16070_v62, %v10346_v41  ;;  %v16075_v32 = vld [vmem:[#allocation101_spill] sm:$0xff]  ;;  %v16077_v62 = vld [vmem:[#allocation178_spill] sm:$0xff] }
 0x47a   : > { %16067 = vst [vmem:[#allocation177_spill] sm:$0xff] %v11791_v48  ;;  %16068 = vst [vmem:[#allocation400_spill] sm:$0xff] %v11795_v44  ;;  %v11805_v42 = vpop.eup %5808  ;;  %v11808_v43 = vadd.f32 %v3335_v36, %v10985_v0  ;;  %v11812_v57 = vmul.f32 %v11768_v49, %v11647_v13  ;;  %5834 = vpow2.f32 %v3975_v6  ;;  %v3086_v45 = vsub.f32 %v16075_v32, %v16074_v31  ;;  %v16080_v32 = vld [vmem:[#allocation295_spill] sm:$0xff]  ;;  %v16084_v49 = vld [vmem:[#allocation21_spill] sm:$0xff] }
 0x47b   : > { %16069 = vst [vmem:[#allocation401_spill] sm:$0xff] %v11797_v15  ;;  %16071 = vst [vmem:[#allocation210_spill] sm:$0xff] %v11805_v42  ;;  %v11816_v52 = vpop.eup %5810  ;;  %5836 = vpow2.f32 %v4571_v63  ;;  %v3143_v22 = vmul.f32 1.442695, %v3087_v23  ;;  %v3979_v39 = vmul.f32 1.442695, %v3925_v59  ;;  %v3924_v41 = vsub.f32 %v16077_v62, %v10390_v14  ;;  %v11835_v23 = vpop.permute.xlu1 %3265 }
 0x47c   : > { %16072 = vst [vmem:[#allocation402_spill] sm:$0xff] %v11808_v43  ;;  %16073 = vst [vmem:[#allocation403_spill] sm:$0xff] %v11812_v57  ;;  %v11820_v44 = vpop.eup %5812  ;;  %v11824_v0 = vmul.f32 %v11787_v2, %v11681_v50  ;;  %v3337_v13 = vmul.f32 %v11805_v42, %v11700_v29  ;;  %5838 = vpow2.f32 %v3137_v34  ;;  %v4522_v6 = vsub.f32 %v16080_v32, %v10367_v1  ;;  %v16082_v63 = vld [vmem:[#allocation134_spill] sm:$0xff]  ;;  %v16085_v43 = vld [vmem:[#allocation257_spill] sm:$0xff] }
 0x47d   : > { %16076 = vst [vmem:[#allocation101_spill] sm:$0xff] %v11816_v52  ;;  %16078 = vst [vmem:[#allocation178_spill] sm:$0xff] %v11820_v44  ;;  %v11830_v36 = vpop.eup %5814  ;;  %v11833_v59 = vadd.f32 %v3334_v12, %v16082_v63  ;;  %5840 = vpow2.f32 %v3973_v46  ;;  %v4575_v62 = vmul.f32 1.442695, %v4523_v37  ;;  %v3089_v2 = vsub.f32 %v16085_v43, %v16084_v49  ;;  %v16088_v42 = vld [vmem:[#allocation179_spill] sm:$0xff]  ;;  %v11853_v37 = vpop.permute.xlu0 %3271  ;;  %v16091_v63 = vld [vmem:[#allocation296_spill] sm:$0xff] }
 0x47e   : > { %16079 = vst [vmem:[#allocation404_spill] sm:$0xff] %v11824_v0  ;;  %16081 = vst [vmem:[#allocation295_spill] sm:$0xff] %v11830_v36  ;;  %v11839_v0 = vpop.eup %5816  ;;  %v11843_v34 = vmul.f32 %v11797_v15, %v11681_v50  ;;  %5842 = vpow2.f32 %v4569_v35  ;;  %v3141_v32 = vmul.f32 1.442695, %v3086_v45  ;;  %v3927_v1 = vsub.f32 %v16088_v42, %v10412_v60  ;;  %v16093_v35 = vld [vmem:[#allocation340_spill] sm:$0xff]  ;;  %v16095_v15 = vld [vmem:[#allocation25_spill] sm:$0xff] }
 0x47f   : > { %16083 = vst [vmem:[#allocation134_spill] sm:$0xff] %v11833_v59  ;;  %16086 = vst [vmem:[#allocation257_spill] sm:$0xff] %v11839_v0  ;;  %v11847_v12 = vpop.eup %5818  ;;  %v11851_v46 = vmul.f32 %v11816_v52, %v11700_v29  ;;  %5844 = vpow2.f32 %v3143_v22  ;;  %v3977_v43 = vmul.f32 1.442695, %v3924_v41  ;;  %v4525_v59 = vsub.f32 %v16091_v63, %v10376_v40  ;;  %v16098_v52 = vld [vmem:[#allocation180_spill] sm:$0xff] }
 0x480   : > { %16087 = vst [vmem:[#allocation405_spill] sm:$0xff] %v11843_v34  ;;  %16089 = vst [vmem:[#allocation179_spill] sm:$0xff] %v11847_v12  ;;  %v11857_v50 = vpop.eup %5820  ;;  %v11860_v45 = vadd.f32 %v3337_v13, %v16093_v35  ;;  %5846 = vpow2.f32 %v3979_v39  ;;  %v4573_v42 = vmul.f32 1.442695, %v4522_v6  ;;  %v16096_v34 = vld [vmem:[#allocation120_spill] sm:$0xff]  ;;  %v3336_v22 = vmul.f32 %v11830_v36, %v11733_v11  ;;  %v16101_v6 = vld [vmem:[#allocation215_spill] sm:$0xff] }
 0x481   : > { %16090 = vst [vmem:[#allocation406_spill] sm:$0xff] %v11851_v46  ;;  %16092 = vst [vmem:[#allocation296_spill] sm:$0xff] %v11857_v50  ;;  %v3088_v57 = vsub.f32 %v16096_v34, %v16095_v15  ;;  %v11864_v48 = vpop.eup %5822  ;;  %5848 = vpow2.f32 %v4575_v62  ;;  %v3147_v41 = vmul.f32 1.442695, %v3089_v2  ;;  %v3926_v63 = vsub.f32 %v16098_v52, %v16074_v31  ;;  %v11884_v2 = vpop.permute.xlu1 %3269  ;;  %v16104_v36 = vld [vmem:[#allocation35_spill] sm:$0xff] }
 0x482   : > { %16094 = vst [vmem:[#allocation340_spill] sm:$0xff] %v11860_v45  ;;  %16097 = vst [vmem:[#allocation120_spill] sm:$0xff] %v11864_v48  ;;  %v11870_v40 = vpop.eup %5824  ;;  %v11874_v13 = vmul.f32 %v11820_v44, %v11700_v29  ;;  %5850 = vpow2.f32 %v3141_v32  ;;  %v3983_v39 = vmul.f32 1.442695, %v3927_v1  ;;  %v4524_v34 = vsub.f32 %v16101_v6, %v10390_v14  ;;  %v16105_v45 = vld [vmem:[#allocation277_spill] sm:$0xff] }
 0x483   : > { %16099 = vst [vmem:[#allocation180_spill] sm:$0xff] %v11870_v40  ;;  %v11878_v35 = vpop.eup %5826  ;;  %v11882_v62 = vmul.f32 %v11839_v0, %v11733_v11  ;;  %5852 = vpow2.f32 %v3977_v43  ;;  %v4579_v52 = vmul.f32 1.442695, %v4525_v59  ;;  %v3091_v46 = vsub.f32 %v16105_v45, %v16104_v36  ;;  %v16107_v6 = vld [vmem:[#allocation181_spill] sm:$0xff]  ;;  %v16109_v0 = vld [vmem:[#allocation343_spill] sm:$0xff]  ;;  %v11899_v59 = vpop.permute.xlu0 %3275  ;;  %v16111_v45 = vld [vmem:[#allocation18_spill] sm:$0xff] }
 0x484   : > { %16100 = vst [vmem:[#allocation407_spill] sm:$0xff] %v11874_v13  ;;  %16102 = vst [vmem:[#allocation215_spill] sm:$0xff] %v11878_v35  ;;  %v11888_v29 = vpop.eup %5828  ;;  %v3339_v1 = vmul.f32 %v11857_v50, %v11751_v10  ;;  %5854 = vpow2.f32 %v4573_v42  ;;  %v3145_v32 = vmul.f32 1.442695, %v3088_v57  ;;  %v3929_v44 = vsub.f32 %v16107_v6, %v16084_v49  ;;  %v16114_v6 = vld [vmem:[#allocation45_spill] sm:$0xff]  ;;  %v16115_v50 = vld [vmem:[#allocation271_spill] sm:$0xff] }
 0x485   : > { %16103 = vst [vmem:[#allocation408_spill] sm:$0xff] %v11882_v62  ;;  %16106 = vst [vmem:[#allocation277_spill] sm:$0xff] %v11888_v29  ;;  %v11894_v14 = vpop.eup %5830  ;;  %v11897_v43 = vadd.f32 %v3336_v22, %v16109_v0  ;;  %5856 = vpow2.f32 %v3147_v41  ;;  %v3981_v62 = vmul.f32 1.442695, %v3926_v63  ;;  %v4527_v13 = vsub.f32 %v16111_v45, %v10412_v60  ;;  %v16118_v63 = vld [vmem:[#allocation182_spill] sm:$0xff] }
 0x486   : > { %16108 = vst [vmem:[#allocation181_spill] sm:$0xff] %v11894_v14  ;;  %v11903_v7 = vpop.eup %5832  ;;  %v11907_v57 = vmul.f32 %v11847_v12, %v11733_v11  ;;  %5858 = vpow2.f32 %v3983_v39  ;;  %v4577_v42 = vmul.f32 1.442695, %v4524_v34  ;;  %v3090_v5 = vsub.f32 %v16115_v50, %v16114_v6  ;;  %v16120_v11 = vld [vmem:[#allocation346_spill] sm:$0xff]  ;;  %v16122_v50 = vld [vmem:[#allocation284_spill] sm:$0xff] }
 0x487   : > { %16110 = vst [vmem:[#allocation343_spill] sm:$0xff] %v11897_v43  ;;  %16112 = vst [vmem:[#allocation18_spill] sm:$0xff] %v11903_v7  ;;  %v11911_v0 = vpop.eup %5834  ;;  %v11915_v22 = vmul.f32 %v11864_v48, %v11751_v10  ;;  %5860 = vpow2.f32 %v4579_v52  ;;  %v3151_v41 = vmul.f32 1.442695, %v3091_v46  ;;  %v3928_v45 = vsub.f32 %v16118_v63, %v16095_v15  ;;  %v11934_v52 = vpop.permute.xlu1 %3273 }
 0x488   : > { %16113 = vst [vmem:[#allocation409_spill] sm:$0xff] %v11907_v57  ;;  %16116 = vst [vmem:[#allocation271_spill] sm:$0xff] %v11911_v0  ;;  %v11919_v60 = vpop.eup %5836  ;;  %v11922_v12 = vadd.f32 %v3339_v1, %v16120_v11  ;;  %5862 = vpow2.f32 %v3145_v32  ;;  %v3987_v39 = vmul.f32 1.442695, %v3929_v44  ;;  %v4526_v34 = vsub.f32 %v16122_v50, %v16074_v31  ;;  %v16126_v11 = vld [vmem:[#allocation126_spill] sm:$0xff]  ;;  %v16127_v50 = vld [vmem:[#allocation149_spill] sm:$0xff] }
 0x489   : > { %16117 = vst [vmem:[#allocation410_spill] sm:$0xff] %v11915_v22  ;;  %16119 = vst [vmem:[#allocation182_spill] sm:$0xff] %v11919_v60  ;;  %v11926_v43 = vpop.eup %5838  ;;  %v11930_v48 = vmul.f32 %v11870_v40, %v11751_v10  ;;  %v3338_v46 = vmul.f32 %v11878_v35, %v11781_v51  ;;  %5864 = vpow2.f32 %v3981_v62  ;;  %v4583_v63 = vmul.f32 1.442695, %v4527_v13  ;;  %v11944_v10 = vpop.permute.xlu0 %3279  ;;  %v16129_v62 = vld [vmem:[#allocation183_spill] sm:$0xff]  ;;  %v16130_v13 = vld [vmem:[#allocation293_spill] sm:$0xff] }
 0x48a   : > { %16121 = vst [vmem:[#allocation346_spill] sm:$0xff] %v11922_v12  ;;  %16123 = vst [vmem:[#allocation284_spill] sm:$0xff] %v11926_v43  ;;  %v11936_v1 = vpop.eup %5840  ;;  %v3341_v44 = vmul.f32 %v11903_v7, %v11801_v21  ;;  %5866 = vpow2.f32 %v4577_v42  ;;  %v3149_v32 = vmul.f32 1.442695, %v3090_v5  ;;  %v3093_v31 = vsub.f32 %v16127_v50, %v16126_v11  ;;  %v16134_v50 = vld [vmem:[#allocation222_spill] sm:$0xff] }
 0x48b   : > { %16124 = vst [vmem:[#allocation411_spill] sm:$0xff] %v11930_v48  ;;  %16125 = vst [vmem:[#allocation412_spill] sm:$0xff] %v11936_v1  ;;  %v11942_v12 = vpop.eup %5842  ;;  %5868 = vpow2.f32 %v3151_v41  ;;  %v3985_v35 = vmul.f32 1.442695, %v3928_v45  ;;  %v3931_v40 = vsub.f32 %v16129_v62, %v16104_v36  ;;  %v16131_v48 = vld [vmem:[#allocation52_spill] sm:$0xff]  ;;  %v11954_v5 = vmul.f32 %v11888_v29, %v11781_v51  ;;  %v16136_v45 = vld [vmem:[#allocation170_spill] sm:$0xff] }
 0x48c   : > { %16128 = vst [vmem:[#allocation149_spill] sm:$0xff] %v11942_v12  ;;  %v3383_v22 = vsub.f32 %v16131_v48, %v16130_v13  ;;  %v11950_v57 = vpop.eup %5844  ;;  %5870 = vpow2.f32 %v3987_v39  ;;  %v4581_v42 = vmul.f32 1.442695, %v4526_v34  ;;  %v4529_v41 = vsub.f32 %v16134_v50, %v16084_v49  ;;  %v16140_v29 = vld [vmem:[#allocation221_spill] sm:$0xff]  ;;  %v16141_v50 = vld [vmem:[#allocation140_spill] sm:$0xff] }
 0x48d   : > { %16132 = vst [vmem:[#allocation183_spill] sm:$0xff] %v11950_v57  ;;  %16133 = vst [vmem:[#allocation293_spill] sm:$0xff] %v11954_v5  ;;  %v11958_v11 = vpop.eup %5846  ;;  %v11961_v7 = vadd.f32 %v3338_v46, %v16136_v45  ;;  %v11965_v62 = vmul.f32 %v11894_v14, %v11781_v51  ;;  %5872 = vpow2.f32 %v4583_v63  ;;  %v3340_v39 = vmul.f32 %v11926_v43, %v11835_v23  ;;  %v16143_v46 = vld [vmem:[#allocation353_spill] sm:$0xff] }
 0x48e   : > { %16135 = vst [vmem:[#allocation52_spill] sm:$0xff] %v11958_v11  ;;  %v3415_v48 = vmul.f32 1.442695, %v3383_v22  ;;  %v11967_v36 = vpop.eup %5848  ;;  %5874 = vpow2.f32 %v3149_v32  ;;  %v3155_v34 = vmul.f32 1.442695, %v3093_v31  ;;  %v3092_v49 = vsub.f32 %v16141_v50, %v16140_v29  ;;  %v11982_v22 = vpop.permute.xlu1 %3277  ;;  %v16149_v50 = vld [vmem:[#allocation60_spill] sm:$0xff] }
 0x48f   : > { %16137 = vst [vmem:[#allocation222_spill] sm:$0xff] %v11961_v7  ;;  %16138 = vst [vmem:[#allocation170_spill] sm:$0xff] %v11965_v62  ;;  %v11973_v5 = vpop.eup %5850  ;;  %v11976_v45 = vadd.f32 %v3341_v44, %v16143_v46  ;;  %v11980_v51 = vmul.f32 %v11911_v0, %v11801_v21  ;;  %5876 = vpow2.f32 %v3985_v35  ;;  %v3991_v63 = vmul.f32 1.442695, %v3931_v40  ;;  %v12000_v35 = vpop.permute.xlu0 %3283  ;;  %v16153_v0 = vld [vmem:[#allocation301_spill] sm:$0xff]  ;;  %v16158_v7 = vld [vmem:[#allocation248_spill] sm:$0xff] }
 0x490   : > { %16139 = vst [vmem:[#allocation413_spill] sm:$0xff] %v11967_v36  ;;  %16142 = vst [vmem:[#allocation140_spill] sm:$0xff] %v11973_v5  ;;  %v11984_v14 = vpop.eup %5852  ;;  %v11988_v31 = vmul.f32 %v11919_v60, %v11801_v21  ;;  %5878 = vpow2.f32 %v4581_v42  ;;  %v4587_v32 = vmul.f32 1.442695, %v4529_v41  ;;  %v3930_v44 = vsub.f32 %v16149_v50, %v16114_v6  ;;  %v16154_v21 = vld [vmem:[#allocation63_spill] sm:$0xff]  ;;  %v16156_v41 = vld [vmem:[#allocation356_spill] sm:$0xff] }
 0x491   : > { %16144 = vst [vmem:[#allocation353_spill] sm:$0xff] %v11976_v45  ;;  %16145 = vst [vmem:[#allocation414_spill] sm:$0xff] %v11980_v51  ;;  %v11992_v46 = vpop.eup %5854  ;;  %v11996_v43 = vmul.f32 %v11936_v1, %v11835_v23  ;;  %v3343_v40 = vmul.f32 %v11950_v57, %v11853_v37  ;;  %5880 = vpow2.f32 %v3415_v48  ;;  %v3385_v60 = vsub.f32 %v16154_v21, %v16153_v0  ;;  %v16162_v21 = vld [vmem:[#allocation50_spill] sm:$0xff] }
 0x492   : > { %16146 = vst [vmem:[#allocation415_spill] sm:$0xff] %v11982_v22  ;;  %16147 = vst [vmem:[#allocation416_spill] sm:$0xff] %v11984_v14  ;;  %v12004_v42 = vpop.eup %5856  ;;  %v12007_v45 = vadd.f32 %v3340_v39, %v16156_v41  ;;  %5882 = vpow2.f32 %v3155_v34  ;;  %v3153_v50 = vmul.f32 1.442695, %v3092_v49  ;;  %v4103_v1 = vsub.f32 %v16158_v7, %v16130_v13 }
 0x493   : > { %16148 = vst [vmem:[#allocation417_spill] sm:$0xff] %v11988_v31  ;;  %16150 = vst [vmem:[#allocation60_spill] sm:$0xff] %v11992_v46  ;;  %v12015_v57 = vmul.f32 %v11942_v12, %v11835_v23  ;;  %5884 = vpow2.f32 %v3991_v63  ;;  %v3419_v48 = vmul.f32 1.442695, %v3385_v60  ;;  %v12023_v39 = vmul.f32 %v11958_v11, %v11853_v37  ;;  %v16166_v23 = vld [vmem:[#allocation359_spill] sm:$0xff]  ;;  %v12032_v60 = vpop.permute.xlu1 %3281  ;;  %v16173_v12 = vld [vmem:[#allocation253_spill] sm:$0xff] }
 0x494   : > { %16151 = vst [vmem:[#allocation418_spill] sm:$0xff] %v11996_v43  ;;  %16152 = vst [vmem:[#allocation419_spill] sm:$0xff] %v12000_v35  ;;  %v12011_v43 = vpop.eup %5858  ;;  %v16161_v35 = vld [vmem:[#allocation163_spill] sm:$0xff]  ;;  %v3342_v49 = vmul.f32 %v11973_v5, %v11884_v2  ;;  %5886 = vpow2.f32 %v4587_v32  ;;  %v3989_v7 = vmul.f32 1.442695, %v3930_v44  ;;  %v12030_v34 = vadd.f32 %v3343_v40, %v16166_v23  ;;  %v16172_v32 = vld [vmem:[#allocation84_spill] sm:$0xff]  ;;  %v3544_v23 = vpop.permute.xlu0 %3543 }
 0x495   : > { %16155 = vst [vmem:[#allocation301_spill] sm:$0xff] %v12004_v42  ;;  %16157 = vst [vmem:[#allocation63_spill] sm:$0xff] %v12007_v45  ;;  %v3384_v31 = vsub.f32 %v16162_v21, %v16161_v35  ;;  %v12019_v51 = vpop.eup %5860  ;;  %5888 = vpow2.f32 %v3419_v48  ;;  %v4135_v63 = vmul.f32 1.442695, %v4103_v1  ;;  %v12038_v11 = vmul.f32 %v11967_v36, %v11853_v37  ;;  %v16171_v5 = vld [vmem:[#allocation299_spill] sm:$0xff]  ;;  %v16176_v1 = vld [vmem:[#allocation290_spill] sm:$0xff] }
 0x496   : > { %16159 = vst [vmem:[#allocation356_spill] sm:$0xff] %v12011_v43  ;;  %16160 = vst [vmem:[#allocation248_spill] sm:$0xff] %v12015_v57  ;;  %v12027_v13 = vpop.eup %5862  ;;  %5890 = vpow2.f32 %v3153_v50  ;;  %v3387_v44 = vsub.f32 %v16172_v32, %v16171_v5  ;;  %v4105_v45 = vsub.f32 %v16173_v12, %v16153_v0  ;;  %v12048_v48 = vmul.f32 %v11984_v14, %v11884_v2  ;;  %v16177_v37 = vld [vmem:[#allocation59_spill] sm:$0xff]  ;;  %v16179_v32 = vld [vmem:[#allocation69_spill] sm:$0xff] }
 0x497   : > { %16163 = vst [vmem:[#allocation163_spill] sm:$0xff] %v12019_v51  ;;  %16164 = vst [vmem:[#allocation50_spill] sm:$0xff] %v12023_v39  ;;  %v3417_v41 = vmul.f32 1.442695, %v3384_v31  ;;  %v12034_v21 = vpop.eup %5864  ;;  %v4528_v31 = vsub.f32 %v16176_v1, %v16095_v15  ;;  %v3386_v50 = vsub.f32 %v16177_v37, %v15896_v9  ;;  %v16182_v14 = vld [vmem:[#allocation264_spill] sm:$0xff]  ;;  %v3345_v37 = vmul.f32 %v12004_v42, %v11899_v59 }
 0x498   : > { %16165 = vst [vmem:[#allocation420_spill] sm:$0xff] %v12027_v13  ;;  %16167 = vst [vmem:[#allocation359_spill] sm:$0xff] %v12030_v34  ;;  %v12044_v40 = vpop.eup %5866  ;;  %v3423_v12 = vmul.f32 1.442695, %v3387_v44  ;;  %v4139_v0 = vmul.f32 1.442695, %v4105_v45 }
 0x499   : > { %16168 = vst [vmem:[#allocation421_spill] sm:$0xff] %v12032_v60  ;;  %16169 = vst [vmem:[#allocation422_spill] sm:$0xff] %v12034_v21  ;;  %5892 = vpow2.f32 %v3417_v41  ;;  %v12054_v36 = vpop.eup %5868  ;;  %v12057_v60 = vadd.f32 %v3342_v49, %v16179_v32  ;;  %v3421_v1 = vmul.f32 1.442695, %v3386_v50  ;;  %v16184_v41 = vld [vmem:[#allocation185_spill] sm:$0xff]  ;;  %v16186_v49 = vld [vmem:[#allocation104_spill] sm:$0xff] }
 0x49a   : > { %16170 = vst [vmem:[#allocation423_spill] sm:$0xff] %v12038_v11  ;;  %16174 = vst [vmem:[#allocation299_spill] sm:$0xff] %v12044_v40  ;;  %5894 = vpow2.f32 %v3989_v7  ;;  %v12059_v34 = vpop.eup %5870  ;;  %v4104_v15 = vsub.f32 %v16184_v41, %v16161_v35  ;;  %v3389_v7 = vsub.f32 %v16186_v49, %v15905_v53  ;;  %v16187_v45 = vld [vmem:[#allocation269_spill] sm:$0xff] }
 0x49b   : > { %16175 = vst [vmem:[#allocation84_spill] sm:$0xff] %v12048_v48  ;;  %16178 = vst [vmem:[#allocation253_spill] sm:$0xff] %v12054_v36  ;;  %v16183_v48 = vld [vmem:[#allocation150_spill] sm:$0xff]  ;;  %5896 = vpow2.f32 %v4135_v63  ;;  %v12065_v39 = vpop.eup %5872  ;;  %v4107_v44 = vsub.f32 %v16187_v45, %v16171_v5  ;;  %v16189_v63 = vld [vmem:[#allocation251_spill] sm:$0xff]  ;;  %v12087_v5 = vmul.f32 %v11992_v46, %v11884_v2 }
 0x49c   : > { %16180 = vst [vmem:[#allocation290_spill] sm:$0xff] %v12057_v60  ;;  %16181 = vst [vmem:[#allocation59_spill] sm:$0xff] %v12059_v34  ;;  %v3094_v11 = vsub.f32 %v16183_v48, %v16182_v14  ;;  %5898 = vpow2.f32 %v3423_v12  ;;  %v12073_v32 = vpop.eup %5874  ;;  %v4585_v48 = vmul.f32 1.442695, %v4528_v31  ;;  %v3932_v50 = vsub.f32 %v16189_v63, %v16140_v29  ;;  %v12077_v14 = vpop.permute.xlu1 %3285  ;;  %v16192_v12 = vld [vmem:[#allocation297_spill] sm:$0xff]  ;;  %v16196_v63 = vld [vmem:[#allocation214_spill] sm:$0xff] }
 0x49d   : > { %16185 = vst [vmem:[#allocation69_spill] sm:$0xff] %v12065_v39  ;;  %16188 = vst [vmem:[#allocation150_spill] sm:$0xff] %v12073_v32  ;;  %5900 = vpow2.f32 %v4139_v0  ;;  %v4137_v35 = vmul.f32 1.442695, %v4104_v15  ;;  %v12079_v41 = vpop.eup %5876  ;;  %v4530_v42 = vsub.f32 %v16192_v12, %v16114_v6  ;;  %v3427_v49 = vmul.f32 1.442695, %v3389_v7  ;;  %v12093_v15 = vpop.permute.xlu0 %3547 }
 0x49e   : > { %16190 = vst [vmem:[#allocation185_spill] sm:$0xff] %v12077_v14  ;;  %16191 = vst [vmem:[#allocation104_spill] sm:$0xff] %v12079_v41  ;;  %5902 = vpow2.f32 %v3421_v1  ;;  %v4143_v60 = vmul.f32 1.442695, %v4107_v44  ;;  %v12083_v57 = vpop.eup %5878  ;;  %v12091_v31 = vmul.f32 %v12011_v43, %v11899_v59  ;;  %v3157_v0 = vmul.f32 1.442695, %v3094_v11 }
 0x49f   : > { %16193 = vst [vmem:[#allocation269_spill] sm:$0xff] %v12083_v57  ;;  %16194 = vst [vmem:[#allocation251_spill] sm:$0xff] %v12087_v5  ;;  %5904 = vpow2.f32 %v4137_v35  ;;  %v5881_v45 = vpop.eup %5880  ;;  %v12096_v12 = vadd.f32 %v3345_v37, %v16196_v63  ;;  %v3344_v1 = vmul.f32 %v12027_v13, %v11934_v52  ;;  %v16198_v7 = vld [vmem:[#allocation47_spill] sm:$0xff]  ;;  %v3993_v43 = vmul.f32 1.442695, %v3932_v50  ;;  %v16201_v11 = vld [vmem:[#allocation188_spill] sm:$0xff] }
 0x4a0   : > { %16195 = vst [vmem:[#allocation297_spill] sm:$0xff] %v12091_v31  ;;  %5906 = vpow2.f32 %v3427_v49  ;;  %v16199_v44 = vld [vmem:[#allocation83_spill] sm:$0xff]  ;;  %v12102_v46 = vpop.eup %5882  ;;  %v3639_v14 = vmul.f32 %v5881_v45, %v3544_v23  ;;  %v4106_v29 = vsub.f32 %v16201_v11, %v15896_v9  ;;  %v4589_v37 = vmul.f32 1.442695, %v4530_v42  ;;  %v16206_v9 = vld [vmem:[#allocation189_spill] sm:$0xff] }
 0x4a1   : > { %16197 = vst [vmem:[#allocation214_spill] sm:$0xff] %v12096_v12  ;;  %v3388_v2 = vsub.f32 %v16199_v44, %v16198_v7  ;;  %16200 = vst [vmem:[#allocation47_spill] sm:$0xff] %v12102_v46  ;;  %5908 = vpow2.f32 %v4143_v60  ;;  %v12106_v35 = vpop.eup %5884  ;;  %v16203_v57 = vld [vmem:[#allocation123_spill] sm:$0xff]  ;;  %v12114_v44 = vmul.f32 %v12019_v51, %v11899_v59  ;;  %v3546_v60 = vpop.permute.xlu1 %3545  ;;  %v4109_v50 = vsub.f32 %v16206_v9, %v15905_v53  ;;  %v16208_v46 = vld [vmem:[#allocation366_spill] sm:$0xff] }
 0x4a2   : > { %16202 = vst [vmem:[#allocation83_spill] sm:$0xff] %v12106_v35  ;;  %5910 = vpow2.f32 %v4585_v48  ;;  %v3391_v13 = vsub.f32 %v16203_v57, %v15927_v20  ;;  %v12110_v49 = vpop.eup %5886  ;;  %v3671_v23 = vadd.f32 %v3639_v14, %v11439_v33  ;;  %v3347_v42 = vmul.f32 %v12054_v36, %v11944_v10  ;;  %v3552_v33 = vpop.permute.xlu0 %3551  ;;  %v16215_v51 = vld [vmem:[#allocation368_spill] sm:$0xff]  ;;  %v16234_v41 = vld [vmem:[#allocation283_spill] sm:$0xff] }
 0x4a3   : > { %v3425_v63 = vmul.f32 1.442695, %v3388_v2  ;;  %16204 = vst [vmem:[#allocation188_spill] sm:$0xff] %v12110_v49  ;;  %16205 = vst [vmem:[#allocation123_spill] sm:$0xff] %v12114_v44  ;;  %5912 = vpow2.f32 %v3157_v0  ;;  %v12119_v11 = vpop.eup %5888  ;;  %v4141_v57 = vmul.f32 1.442695, %v4106_v29  ;;  %v12126_v59 = vadd.f32 %v3344_v1, %v16208_v46 }
 0x4a4   : > { %v3431_v48 = vmul.f32 1.442695, %v3391_v13  ;;  %v12123_v2 = vpop.eup %5890  ;;  %v12130_v14 = vmul.f32 %v12034_v21, %v11934_v52  ;;  %v3641_v53 = vmul.f32 %v12119_v11, %v12093_v15  ;;  %v12138_v29 = vmul.f32 %v12044_v40, %v11934_v52  ;;  %v16213_v46 = vld [vmem:[#allocation302_spill] sm:$0xff]  ;;  %v16217_v52 = vld [vmem:[#allocation303_spill] sm:$0xff]  ;;  %v16219_v49 = vld [vmem:[#allocation256_spill] sm:$0xff] }
 0x4a5   : > { %5914 = vpow2.f32 %v3425_v63  ;;  %16207 = vst [vmem:[#allocation189_spill] sm:$0xff] %v12123_v2  ;;  %16209 = vst [vmem:[#allocation366_spill] sm:$0xff] %v12126_v59  ;;  %v12142_v13 = vmul.f32 %v12059_v34, %v11944_v10  ;;  %v3871_v1 = vadd.f32 %v16213_v46, %v3671_v23  ;;  %v4147_v21 = vmul.f32 1.442695, %v4109_v50  ;;  %v16218_v34 = vld [vmem:[#allocation88_spill] sm:$0xff] }
 0x4a6   : > { %16210 = vst [vmem:[#allocation424_spill] sm:$0xff] %v12130_v14  ;;  %5916 = vpow2.f32 %v3993_v43  ;;  %v12134_v0 = vpop.eup %5892  ;;  %16211 = vst [vmem:[#allocation425_spill] sm:$0xff] %v12138_v29  ;;  %v3673_v43 = vadd.f32 %v3641_v53, %v11476_v27  ;;  %v12150_v2 = vadd.f32 %v3347_v42, %v16215_v51  ;;  %v3355_v40 = vadd.f32 %v11485_v55, %v16217_v52  ;;  %v16222_v50 = vld [vmem:[#allocation304_spill] sm:$0xff]  ;;  %v16224_v53 = vld [vmem:[#allocation103_spill] sm:$0xff] }
 0x4a7   : > { %16212 = vst [vmem:[#allocation426_spill] sm:$0xff] %v12142_v13  ;;  %5918 = vpow2.f32 %v4589_v37  ;;  %v12145_v63 = vpop.eup %5894  ;;  %v3640_v9 = vmul.f32 %v12134_v0, %v3546_v60  ;;  %v3159_v23 = vadd.f32 %v16219_v49, %v16218_v34  ;;  %v12160_v27 = vmul.f32 %v12065_v39, %v11944_v10  ;;  %v16223_v34 = vld [vmem:[#allocation308_spill] sm:$0xff]  ;;  %v16251_v14 = vld [vmem:[#allocation229_spill] sm:$0xff] }
 0x4a8   : > { %16214 = vst [vmem:[#allocation302_spill] sm:$0xff] %v12145_v63  ;;  %5920 = vpow2.f32 %v3431_v48  ;;  %v5897_v36 = vpop.eup %5896  ;;  %16216 = vst [vmem:[#allocation368_spill] sm:$0xff] %v12150_v2  ;;  %v12164_v60 = vmul.f32 %v12073_v32, %v11982_v22  ;;  %v3873_v51 = vadd.f32 %v16222_v50, %v3673_v43  ;;  %v3550_v48 = vpop.permute.xlu1 %3549  ;;  %v3357_v49 = vadd.f32 %v11532_v47, %v16223_v34  ;;  %v16225_v32 = vld [vmem:[#allocation378_spill] sm:$0xff]  ;;  %v16227_v34 = vld [vmem:[#allocation216_spill] sm:$0xff] }
 0x4a9   : > { %5922 = vpow2.f32 %v4141_v57  ;;  %v12156_v37 = vpop.eup %5898  ;;  %16220 = vst [vmem:[#allocation303_spill] sm:$0xff] %v12160_v27  ;;  %v3672_v42 = vadd.f32 %v3640_v9, %v11496_v58  ;;  %v3390_v10 = vsub.f32 %v16224_v53, %v15936_v56  ;;  %v3479_v46 = vadd.f32 %v5881_v45, %v3159_v23  ;;  %v16226_v63 = vld [vmem:[#allocation238_spill] sm:$0xff]  ;;  %v3556_v9 = vpop.permute.xlu0 %3555 }
 0x4aa   : > { %16221 = vst [vmem:[#allocation88_spill] sm:$0xff] %v12164_v60  ;;  %v12168_v55 = vpop.eup %5900  ;;  %v3643_v57 = vmul.f32 %v12156_v37, %v3552_v33  ;;  %v4071_v39 = vadd.f32 %v16225_v32, %v3871_v1  ;;  %v4073_v58 = vadd.f32 %v11500_v24, %v3873_v51  ;;  %5924 = vpow2.f32 %v4147_v21  ;;  %v16228_v24 = vld [vmem:[#allocation262_spill] sm:$0xff]  ;;  %v16229_v51 = vld [vmem:[#allocation309_spill] sm:$0xff] }
 0x4ab   : > { %v12175_v52 = vpop.eup %5902  ;;  %v3872_v43 = vadd.f32 %v16226_v63, %v3672_v42  ;;  %v4239_v2 = vmul.f32 %v5897_v36, %v12093_v15  ;;  %v3799_v53 = vadd.f32 %v16227_v34, %v3479_v46  ;;  %v4241_v23 = vmul.f32 %v12168_v55, %v3552_v33 }
 0x4ac   : > { %v12180_v50 = vpop.eup %5904  ;;  %v3675_v35 = vadd.f32 %v3643_v57, %v3355_v40  ;;  %v3642_v47 = vmul.f32 %v12175_v52, %v3550_v48  ;;  %v3393_v21 = vsub.f32 %v16228_v24, %v15946_v30  ;;  %v16230_v40 = vld [vmem:[#allocation380_spill] sm:$0xff]  ;;  %v3429_v46 = vmul.f32 1.442695, %v3390_v10  ;;  %v16236_v10 = vld [vmem:[#allocation74_spill] sm:$0xff] }
 0x4ad   : > { %v12185_v45 = vpop.eup %5906  ;;  %v4072_v32 = vadd.f32 %v11514_v16, %v3872_v43  ;;  %v4240_v1 = vmul.f32 %v12180_v50, %v3550_v48  ;;  %v4271_v59 = vadd.f32 %v4239_v2, %v4071_v39  ;;  %v4273_v27 = vadd.f32 %v4241_v23, %v4073_v58  ;;  %v3554_v48 = vpop.permute.xlu1 %3553  ;;  %v16233_v24 = vld [vmem:[#allocation312_spill] sm:$0xff]  ;;  %v16238_v2 = vld [vmem:[#allocation241_spill] sm:$0xff]  ;;  %v16239_v23 = vld [vmem:[#allocation7_spill] sm:$0xff] }
 0x4ae   : > { %v12192_v63 = vpop.eup %5908  ;;  %v3875_v15 = vadd.f32 %v16229_v51, %v3675_v35  ;;  %v3674_v42 = vadd.f32 %v3642_v47, %v16230_v40  ;;  %v3645_v57 = vmul.f32 %v12185_v45, %v3556_v9  ;;  %v16235_v51 = vld [vmem:[#allocation376_spill] sm:$0xff]  ;;  %v4839_v6 = vmul.f32 %v16236_v10, %v3552_v33 }
 0x4af   : > { %v12197_v34 = vpop.eup %5910  ;;  %v4272_v60 = vadd.f32 %v4240_v1, %v4072_v32  ;;  %v4243_v16 = vmul.f32 %v12192_v63, %v3556_v9  ;;  %v3999_v47 = vadd.f32 %v16235_v51, %v3799_v53  ;;  %v3356_v58 = vadd.f32 %v11556_v4, %v16238_v2  ;;  %v16244_v4 = vld [vmem:[#allocation191_spill] sm:$0xff] }
 0x4b0   : > { %16231 = vst [vmem:[#allocation256_spill] sm:$0xff] %v12197_v34  ;;  %v12200_v43 = vpop.eup %5912  ;;  %v3874_v13 = vadd.f32 %v16233_v24, %v3674_v42  ;;  %v4075_v22 = vadd.f32 %v16234_v41, %v3875_v15  ;;  %v3677_v35 = vadd.f32 %v3645_v57, %v3357_v49  ;;  %v16237_v34 = vld [vmem:[#allocation66_spill] sm:$0xff]  ;;  %v4108_v32 = vsub.f32 %v16239_v23, %v16198_v7  ;;  %v3560_v49 = vpop.permute.xlu0 %3559  ;;  %v16242_v57 = vld [vmem:[#allocation316_spill] sm:$0xff]  ;;  %v16245_v7 = vld [vmem:[#allocation305_spill] sm:$0xff] }
 0x4b1   : > { %16232 = vst [vmem:[#allocation304_spill] sm:$0xff] %v12200_v43  ;;  %v4841_v39 = vmul.f32 %v16237_v34, %v3556_v9  ;;  %5926 = vpow2.f32 %v3429_v46  ;;  %v3435_v53 = vmul.f32 1.442695, %v3393_v21  ;;  %v16243_v24 = vld [vmem:[#allocation72_spill] sm:$0xff]  ;;  %v4199_v51 = vadd.f32 %v5897_v36, %v3999_v47  ;;  %v16248_v46 = vld [vmem:[#allocation383_spill] sm:$0xff] }
 0x4b2   : > { %v12205_v40 = vpop.eup %5914  ;;  %v4275_v42 = vadd.f32 %v4243_v16, %v4075_v22  ;;  %v3877_v33 = vadd.f32 %v16242_v57, %v3677_v35  ;;  %v4840_v9 = vmul.f32 %v16243_v24, %v3554_v48  ;;  %v4111_v2 = vsub.f32 %v16244_v4, %v15927_v20  ;;  %v16246_v22 = vld [vmem:[#allocation310_spill] sm:$0xff]  ;;  %v16250_v35 = vld [vmem:[#allocation385_spill] sm:$0xff] }
 0x4b3   : > { %v12213_v1 = vpop.eup %5916  ;;  %v3644_v41 = vmul.f32 %v12205_v40, %v3554_v48  ;;  %v4471_v23 = vadd.f32 %v16245_v7, %v4271_v59  ;;  %v4473_v16 = vadd.f32 %v16246_v22, %v4273_v27  ;;  %v4074_v21 = vadd.f32 %v16248_v46, %v3874_v13  ;;  %v16252_v4 = vld [vmem:[#allocation317_spill] sm:$0xff]  ;;  %v16253_v27 = vld [vmem:[#allocation386_spill] sm:$0xff]  ;;  %v16255_v7 = vld [vmem:[#allocation268_spill] sm:$0xff] }
 0x4b4   : > { %16240 = vst [vmem:[#allocation308_spill] sm:$0xff] %v12213_v1  ;;  %v12216_v15 = vpop.eup %5918  ;;  %v16247_v1 = vld [vmem:[#allocation313_spill] sm:$0xff]  ;;  %v4145_v47 = vmul.f32 1.442695, %v4108_v32  ;;  %v4399_v20 = vadd.f32 %v16251_v14, %v4199_v51  ;;  %v4475_v44 = vadd.f32 %v16252_v4, %v4275_v42  ;;  %5928 = vpow2.f32 %v3435_v53  ;;  %v16258_v14 = vld [vmem:[#allocation384_spill] sm:$0xff]  ;;  %v16261_v4 = vld [vmem:[#allocation122_spill] sm:$0xff] }
 0x4b5   : > { %16241 = vst [vmem:[#allocation103_spill] sm:$0xff] %v12216_v15  ;;  %v12222_v43 = vpop.eup %5920  ;;  %v4472_v29 = vadd.f32 %v16247_v1, %v4272_v60  ;;  %v16249_v15 = vld [vmem:[#allocation315_spill] sm:$0xff]  ;;  %v3676_v31 = vadd.f32 %v3644_v41, %v3356_v58  ;;  %v4077_v60 = vadd.f32 %v16253_v27, %v3877_v33  ;;  %v16254_v1 = vld [vmem:[#allocation28_spill] sm:$0xff]  ;;  %v4151_v46 = vmul.f32 1.442695, %v4111_v2  ;;  %v16257_v32 = vld [vmem:[#allocation381_spill] sm:$0xff]  ;;  %v12244_v58 = vpop.permute.xlu1 %3557 }
 0x4b6   : > { %v12228_v12 = vpop.eup %5922  ;;  %v3359_v57 = vadd.f32 %v16250_v35, %v16249_v15  ;;  %v3647_v36 = vmul.f32 %v12222_v43, %v3560_v49  ;;  %v4843_v13 = vmul.f32 %v16254_v1, %v3560_v49  ;;  %v4599_v22 = vadd.f32 %v16255_v7, %v4399_v20  ;;  %v16256_v15 = vld [vmem:[#allocation379_spill] sm:$0xff] }
 0x4b7   : > { %v4242_v59 = vmul.f32 %v12228_v12, %v3554_v48  ;;  %v12239_v5 = vpop.eup %5924  ;;  %v4671_v35 = vadd.f32 %v16256_v15, %v4471_v23  ;;  %v4673_v62 = vadd.f32 %v16257_v32, %v4473_v16  ;;  %v4672_v51 = vadd.f32 %v16258_v14, %v4472_v29  ;;  %v16259_v33 = vld [vmem:[#allocation319_spill] sm:$0xff]  ;;  %v16260_v23 = vld [vmem:[#allocation44_spill] sm:$0xff]  ;;  %v16262_v29 = vld [vmem:[#allocation242_spill] sm:$0xff] }
 0x4b8   : > { %v3679_v48 = vadd.f32 %v3647_v36, %v3359_v57  ;;  %v4245_v41 = vmul.f32 %v12239_v5, %v3560_v49  ;;  %v12248_v53 = vadd.f32 %v16236_v10, %v4599_v22  ;;  %5930 = vpow2.f32 %v4151_v46  ;;  %v16263_v57 = vld [vmem:[#allocation294_spill] sm:$0xff]  ;;  %v16266_v22 = vld [vmem:[#allocation24_spill] sm:$0xff] }
 0x4b9   : > { %v4274_v42 = vadd.f32 %v4242_v59, %v4074_v21  ;;  %v3876_v2 = vadd.f32 %v16259_v33, %v3676_v31  ;;  %v4675_v20 = vadd.f32 %v11604_v3, %v4475_v44  ;;  %5932 = vpow2.f32 %v4145_v47  ;;  %v16264_v31 = vld [vmem:[#allocation320_spill] sm:$0xff]  ;;  %v3564_v44 = vpop.permute.xlu0 %3563  ;;  %v16268_v15 = vld [vmem:[#allocation26_spill] sm:$0xff] }
 0x4ba   : > { %v3392_v16 = vsub.f32 %v16261_v4, %v16260_v23  ;;  %v4277_v27 = vadd.f32 %v4245_v41, %v4077_v60  ;;  %v12256_v21 = vadd.f32 %v11618_v19, %v16262_v29  ;;  %v4842_v49 = vmul.f32 %v16263_v57, %v12244_v58  ;;  %v16265_v60 = vld [vmem:[#allocation322_spill] sm:$0xff]  ;;  %v16274_v29 = vld [vmem:[#allocation292_spill] sm:$0xff] }
 0x4bb   : > { %5934 = vrcp.f32 %v12248_v53  ;;  %v12261_v10 = vadd.f32 %v4839_v6, %v4671_v35  ;;  %v12263_v36 = vadd.f32 %v4841_v39, %v4673_v62  ;;  %v4474_v3 = vadd.f32 %v16264_v31, %v4274_v42  ;;  %v16267_v19 = vld [vmem:[#allocation6_spill] sm:$0xff]  ;;  %v16271_v62 = vld [vmem:[#allocation193_spill] sm:$0xff]  ;;  %v16275_v31 = vld [vmem:[#allocation276_spill] sm:$0xff] }
 0x4bc   : > { %v3433_v47 = vmul.f32 1.442695, %v3392_v16  ;;  %v12266_v59 = vadd.f32 %v4840_v9, %v4672_v51  ;;  %v3879_v7 = vadd.f32 %v16265_v60, %v3679_v48  ;;  %v3161_v46 = vadd.f32 %v16267_v19, %v16266_v22  ;;  %v16269_v32 = vld [vmem:[#allocation142_spill] sm:$0xff]  ;;  %v16272_v9 = vld [vmem:[#allocation323_spill] sm:$0xff]  ;;  %v16278_v22 = vld [vmem:[#allocation272_spill] sm:$0xff] }
 0x4bd   : > { %v3395_v14 = vsub.f32 %v16269_v32, %v16268_v15  ;;  %v12273_v41 = vadd.f32 %v4843_v13, %v4675_v20  ;;  %v16270_v6 = vld [vmem:[#allocation186_spill] sm:$0xff]  ;;  %v4113_v39 = vsub.f32 %v16271_v62, %v15946_v30  ;;  %v4477_v51 = vadd.f32 %v16272_v9, %v4277_v27  ;;  %v16273_v48 = vld [vmem:[#allocation11_spill] sm:$0xff]  ;;  %v16277_v27 = vld [vmem:[#allocation20_spill] sm:$0xff] }
 0x4be   : > { %v12276_v35 = vadd.f32 %v16270_v6, %v3876_v2  ;;  %5936 = vpow2.f32 %v3433_v47  ;;  %v12280_v42 = vpop.eup %5926  ;;  %v12284_v33 = vmul.f32 %v16273_v48, %v3564_v44  ;;  %v3481_v4 = vadd.f32 %v12119_v11, %v3161_v46  ;;  %v16276_v47 = vld [vmem:[#allocation32_spill] sm:$0xff]  ;;  %v16279_v32 = vld [vmem:[#allocation194_spill] sm:$0xff]  ;;  %v16281_v62 = vld [vmem:[#allocation377_spill] sm:$0xff] }
 0x4bf   : > { %v3439_v16 = vmul.f32 1.442695, %v3395_v14  ;;  %v4674_v13 = vadd.f32 %v11628_v17, %v4474_v3  ;;  %v12290_v2 = vmul.f32 %v12280_v42, %v12244_v58  ;;  %v4155_v20 = vmul.f32 1.442695, %v4113_v39  ;;  %v16280_v17 = vld [vmem:[#allocation244_spill] sm:$0xff] }
 0x4c0   : > { %v3160_v30 = vadd.f32 %v16275_v31, %v16274_v29  ;;  %v3801_v60 = vadd.f32 %v16276_v47, %v3481_v4  ;;  %v3394_v19 = vsub.f32 %v16278_v22, %v16277_v27  ;;  %v4112_v11 = vsub.f32 %v16279_v32, %v16260_v23  ;;  %v16283_v29 = vld [vmem:[#allocation174_spill] sm:$0xff]  ;;  %v16285_v22 = vld [vmem:[#allocation29_spill] sm:$0xff] }
 0x4c1   : > { %5938 = vpow2.f32 %v3439_v16  ;;  %v4079_v46 = vadd.f32 %v11645_v25, %v3879_v7  ;;  %v3360_v3 = vadd.f32 %v11663_v26, %v16280_v17  ;;  %v12303_v6 = vpop.eup %5928  ;;  %v16282_v16 = vld [vmem:[#allocation109_spill] sm:$0xff]  ;;  %v12308_v47 = vadd.f32 %v4842_v49, %v4674_v13  ;;  %v16284_v25 = vld [vmem:[#allocation127_spill] sm:$0xff] }
 0x4c2   : > { %5940 = vpow2.f32 %v4155_v20  ;;  %v3480_v14 = vadd.f32 %v12134_v0, %v3160_v30  ;;  %v4001_v39 = vadd.f32 %v16281_v62, %v3801_v60  ;;  %v3437_v9 = vmul.f32 1.442695, %v3394_v19  ;;  %v16286_v26 = vld [vmem:[#allocation235_spill] sm:$0xff] }
 0x4c3   : > { %v4153_v4 = vmul.f32 1.442695, %v4112_v11  ;;  %v3163_v31 = vadd.f32 %v16283_v29, %v16282_v16  ;;  %v3649_v23 = vmul.f32 %v12303_v6, %v3564_v44  ;;  %v3397_v20 = vsub.f32 %v16286_v26, %v16285_v22  ;;  %v16287_v60 = vld [vmem:[#allocation195_spill] sm:$0xff]  ;;  %v16288_v11 = vld [vmem:[#allocation73_spill] sm:$0xff] }
 0x4c4   : > { %v3800_v7 = vadd.f32 %v16284_v25, %v3480_v14  ;;  %v4201_v0 = vadd.f32 %v12168_v55, %v4001_v39  ;;  %5942 = vpow2.f32 %v3437_v9  ;;  %v4115_v19 = vsub.f32 %v16287_v60, %v16268_v15  ;;  %v16289_v13 = vld [vmem:[#allocation275_spill] sm:$0xff]  ;;  %v16292_v25 = vld [vmem:[#allocation390_spill] sm:$0xff] }
 0x4c5   : > { %v3483_v30 = vadd.f32 %v12156_v37, %v3163_v31  ;;  %v12318_v32 = vpop.eup %5930  ;;  %v3681_v49 = vadd.f32 %v3649_v23, %v16288_v11  ;;  %5944 = vpow2.f32 %v4153_v4  ;;  %v3443_v62 = vmul.f32 1.442695, %v3397_v20  ;;  %v16290_v29 = vld [vmem:[#allocation219_spill] sm:$0xff]  ;;  %v12331_v20 = vpop.permute.xlu1 %3561  ;;  %v16294_v11 = vld [vmem:[#allocation41_spill] sm:$0xff] }
 0x4c6   : > { %v4000_v17 = vadd.f32 %v16289_v13, %v3800_v7  ;;  %v12322_v14 = vpop.eup %5932  ;;  %v4247_v16 = vmul.f32 %v12318_v32, %v3564_v44  ;;  %v4401_v55 = vadd.f32 %v16290_v29, %v4201_v0  ;;  %v16291_v39 = vld [vmem:[#allocation27_spill] sm:$0xff]  ;;  %v4159_v37 = vmul.f32 1.442695, %v4115_v19  ;;  %v16296_v19 = vld [vmem:[#allocation130_spill] sm:$0xff] }
 0x4c7   : > { %v3803_v9 = vadd.f32 %v16291_v39, %v3483_v30  ;;  %v4677_v15 = vadd.f32 %v16292_v25, %v4477_v51  ;;  %v16293_v26 = vld [vmem:[#allocation327_spill] sm:$0xff]  ;;  %5946 = vpow2.f32 %v3443_v62 }
 0x4c8   : > { %v5935_v31 = vpop.eup %5934  ;;  %v3881_v60 = vadd.f32 %v16293_v26, %v3681_v49  ;;  %v4200_v23 = vadd.f32 %v12180_v50, %v4000_v17  ;;  %v4279_v7 = vadd.f32 %v4247_v16, %v4079_v46  ;;  %v4601_v44 = vadd.f32 %v16294_v11, %v4401_v55  ;;  %v16295_v13 = vld [vmem:[#allocation147_spill] sm:$0xff]  ;;  %v16299_v17 = vld [vmem:[#allocation328_spill] sm:$0xff] }
 0x4c9   : > { %v4935_v4 = vmul.f32 %v5935_v31, %v12248_v53  ;;  %v4003_v0 = vadd.f32 %v16295_v13, %v3803_v9  ;;  %5948 = vpow2.f32 %v4159_v37  ;;  %v16297_v51 = vld [vmem:[#allocation115_spill] sm:$0xff]  ;;  %v16300_v16 = vld [vmem:[#allocation192_spill] sm:$0xff]  ;;  %v12350_v9 = vpop.permute.xlu0 %3567  ;;  %v16304_v13 = vld [vmem:[#allocation225_spill] sm:$0xff] }
 0x4ca   : > { %v4081_v30 = vadd.f32 %v11698_v18, %v3881_v60  ;;  %v4400_v29 = vadd.f32 %v16296_v19, %v4200_v23  ;;  %v16298_v39 = vld [vmem:[#allocation239_spill] sm:$0xff]  ;;  %v4479_v53 = vadd.f32 %v16299_v17, %v4279_v7  ;;  %v12343_v46 = vadd.f32 %v16237_v34, %v4601_v44  ;;  %v16301_v37 = vld [vmem:[#allocation240_spill] sm:$0xff] }
 0x4cb   : > { %v3162_v49 = vadd.f32 %v16298_v39, %v16297_v51  ;;  %v12339_v25 = vpop.eup %5936  ;;  %v4967_v50 = vsub.f32 2.0, %v4935_v4  ;;  %v4203_v62 = vadd.f32 %v12192_v63, %v4003_v0  ;;  %v4110_v55 = vsub.f32 %v16300_v16, %v15936_v56  ;;  %v16302_v4 = vld [vmem:[#allocation33_spill] sm:$0xff]  ;;  %v16305_v19 = vld [vmem:[#allocation220_spill] sm:$0xff]  ;;  %v16306_v39 = vld [vmem:[#allocation247_spill] sm:$0xff] }
 0x4cc   : > { %v3648_v18 = vmul.f32 %v12339_v25, %v12331_v20  ;;  %v4600_v26 = vadd.f32 %v16301_v37, %v4400_v29  ;;  %5950 = vrcp.f32 %v12343_v46  ;;  %v12356_v34 = vadd.f32 %v11706_v28, %v4479_v53  ;;  %v16303_v63 = vld [vmem:[#allocation141_spill] sm:$0xff]  ;;  %v16307_v17 = vld [vmem:[#allocation40_spill] sm:$0xff] }
 0x4cd   : > { %v3482_v60 = vadd.f32 %v12175_v52, %v3162_v49  ;;  %v4999_v23 = vmul.f32 %v5935_v31, %v4967_v50  ;;  %v3396_v7 = vsub.f32 %v16303_v63, %v16302_v4  ;;  %v4403_v0 = vadd.f32 %v16304_v13, %v4203_v62  ;;  %v12380_v50 = vpop.permute.xlu1 %3565 }
 0x4ce   : > { %v12360_v11 = vpop.eup %5938  ;;  %v3680_v56 = vadd.f32 %v3648_v18, %v3360_v3  ;;  %v12363_v44 = vadd.f32 %v16243_v24, %v4600_v26  ;;  %v3678_v31 = vadd.f32 %v12290_v2, %v12256_v21  ;;  %v4244_v28 = vmul.f32 %v12322_v14, %v12244_v58  ;;  %v16308_v58 = vld [vmem:[#allocation37_spill] sm:$0xff]  ;;  %v16309_v2 = vld [vmem:[#allocation139_spill] sm:$0xff] }
 0x4cf   : > { %v3802_v29 = vadd.f32 %v16305_v19, %v3482_v60  ;;  %v12367_v52 = vpop.eup %5940  ;;  %v5031_v51 = vmul.f32 %v4999_v23, %v12261_v10  ;;  %v3651_v3 = vmul.f32 %v12360_v11, %v12350_v9  ;;  %v4603_v53 = vadd.f32 %v16307_v17, %v4403_v0  ;;  %v16310_v23 = vld [vmem:[#allocation196_spill] sm:$0xff]  ;;  %v12406_v19 = vpop.permute.xlu0 %3571 }
 0x4d0   : > { %v3880_v24 = vadd.f32 %v16306_v39, %v3680_v56  ;;  %v4249_v49 = vmul.f32 %v12367_v52, %v12350_v9  ;;  %5952 = vrcp.f32 %v12363_v44  ;;  %v12386_v21 = vmul.f32 %v16308_v58, %v12331_v20 }
 0x4d1   : > { %5095 = vrot.lane.b32.xlu0 %v5031_v51, %s6346_s17  ;;  %v3683_v10 = vadd.f32 %v3651_v3, %v11694_v54  ;;  %v4002_v62 = vadd.f32 %v16309_v2, %v3802_v29  ;;  %v3441_v16 = vmul.f32 1.442695, %v3396_v7  ;;  %v12390_v18 = vpop.eup %5942  ;;  %v12394_v60 = vadd.f32 %v16254_v1, %v4603_v53  ;;  %v16311_v54 = vld [vmem:[#allocation249_spill] sm:$0xff] }
 0x4d2   : > { %v4281_v37 = vadd.f32 %v4249_v49, %v4081_v30  ;;  %v4080_v26 = vadd.f32 %v11723_v8, %v3880_v24  ;;  %v4114_v63 = vsub.f32 %v16310_v23, %v16277_v27  ;;  %v12398_v56 = vpop.eup %5944  ;;  %v12401_v13 = vadd.f32 %v12284_v33, %v4677_v15  ;;  %v16312_v30 = vld [vmem:[#allocation332_spill] sm:$0xff]  ;;  %v16313_v15 = vld [vmem:[#allocation102_spill] sm:$0xff]  ;;  %v16315_v2 = vld [vmem:[#allocation325_spill] sm:$0xff] }
 0x4d3   : > { %v3883_v0 = vadd.f32 %v16311_v54, %v3683_v10  ;;  %v3650_v7 = vmul.f32 %v12390_v18, %v12380_v50  ;;  %v4202_v8 = vadd.f32 %v12228_v12, %v4002_v62  ;;  %v4248_v29 = vmul.f32 %v12398_v56, %v12380_v50  ;;  %v16314_v24 = vld [vmem:[#allocation232_spill] sm:$0xff]  ;;  %v16317_v23 = vld [vmem:[#allocation57_spill] sm:$0xff]  ;;  %v16318_v54 = vld [vmem:[#allocation111_spill] sm:$0xff] }
 0x4d4   : > { %v4481_v1 = vadd.f32 %v16312_v30, %v4281_v37  ;;  %5954 = vrcp.f32 %v12394_v60  ;;  %v4157_v27 = vmul.f32 1.442695, %v4114_v63  ;;  %v12413_v51 = vpop.eup %5946  ;;  %v4149_v33 = vmul.f32 1.442695, %v4110_v55  ;;  %v16316_v37 = vld [vmem:[#allocation333_spill] sm:$0xff] }
 0x4d5   : > { %v3682_v3 = vadd.f32 %v3650_v7, %v16313_v15  ;;  %v4083_v39 = vadd.f32 %v11747_v61, %v3883_v0  ;;  %v4402_v49 = vadd.f32 %v16314_v24, %v4202_v8  ;;  %v4280_v17 = vadd.f32 %v4248_v29, %v4080_v26  ;;  %v16319_v0 = vld [vmem:[#allocation396_spill] sm:$0xff]  ;;  %v16320_v8 = vld [vmem:[#allocation397_spill] sm:$0xff]  ;;  %v16323_v15 = vld [vmem:[#allocation95_spill] sm:$0xff] }
 0x4d6   : > { %v12419_v12 = vadd.f32 %v11760_v38, %v4481_v1  ;;  %v3653_v53 = vmul.f32 %v12413_v51, %v12406_v19  ;;  %5956 = vpow2.f32 %v3441_v16  ;;  %v12423_v10 = vpop.eup %5948  ;;  %v3878_v62 = vadd.f32 %v16315_v2, %v3678_v31  ;;  %v16321_v31 = vld [vmem:[#allocation218_spill] sm:$0xff]  ;;  %v16322_v1 = vld [vmem:[#allocation79_spill] sm:$0xff]  ;;  %v16327_v2 = vld [vmem:[#allocation197_spill] sm:$0xff] }
 0x4d7   : > { %v3882_v55 = vadd.f32 %v16316_v37, %v3682_v3  ;;  %v4602_v63 = vadd.f32 %v16317_v23, %v4402_v49  ;;  %5958 = vpow2.f32 %v4157_v27  ;;  %v4276_v61 = vadd.f32 %v4244_v28, %v12276_v35  ;;  %v16324_v27 = vld [vmem:[#allocation161_spill] sm:$0xff]  ;;  %v16325_v28 = vld [vmem:[#allocation335_spill] sm:$0xff] }
 0x4d8   : > { %v4480_v26 = vadd.f32 %v16318_v54, %v4280_v17  ;;  %v3685_v38 = vadd.f32 %v3653_v53, %v16319_v0  ;;  %v4251_v7 = vmul.f32 %v12423_v10, %v12406_v19  ;;  %v3165_v29 = vadd.f32 %v16322_v1, %v16321_v31  ;;  %v16326_v17 = vld [vmem:[#allocation177_spill] sm:$0xff]  ;;  %v16329_v0 = vld [vmem:[#allocation400_spill] sm:$0xff] }
 0x4d9   : > { %v12434_v16 = vadd.f32 %v16263_v57, %v4602_v63  ;;  %v12437_v30 = vadd.f32 %v16320_v8, %v3882_v55  ;;  %v3399_v3 = vsub.f32 %v16324_v27, %v16323_v15  ;;  %v5951_v35 = vpop.eup %5950  ;;  %v4117_v57 = vsub.f32 %v16327_v2, %v16285_v22  ;;  %v16328_v63 = vld [vmem:[#allocation337_spill] sm:$0xff]  ;;  %v16334_v27 = vld [vmem:[#allocation175_spill] sm:$0xff] }
 0x4da   : > { %v3885_v24 = vadd.f32 %v16325_v28, %v3685_v38  ;;  %v4283_v49 = vadd.f32 %v4251_v7, %v4083_v39  ;;  %v12445_v53 = vadd.f32 %v16326_v17, %v4480_v26  ;;  %v4937_v37 = vmul.f32 %v5951_v35, %v12343_v46  ;;  %v16330_v7 = vld [vmem:[#allocation217_spill] sm:$0xff] }
 0x4db   : > { %5960 = vrcp.f32 %v12434_v16  ;;  %v3485_v55 = vadd.f32 %v12185_v45, %v3165_v29  ;;  %v3447_v23 = vmul.f32 1.442695, %v3399_v3  ;;  %v4163_v39 = vmul.f32 1.442695, %v4117_v57  ;;  %v16331_v22 = vld [vmem:[#allocation145_spill] sm:$0xff]  ;;  %v16332_v45 = vld [vmem:[#allocation403_spill] sm:$0xff] }
 0x4dc   : > { %5962 = vpow2.f32 %v4149_v33  ;;  %v4483_v54 = vadd.f32 %v16328_v63, %v4283_v49  ;;  %v12454_v8 = vadd.f32 %v16329_v0, %v3885_v24  ;;  %v4969_v26 = vsub.f32 2.0, %v4937_v37  ;;  %v16333_v29 = vld [vmem:[#allocation133_spill] sm:$0xff]  ;;  %v16335_v24 = vld [vmem:[#allocation382_spill] sm:$0xff] }
 0x4dd   : > { %v5953_v38 = vpop.eup %5952  ;;  %v12458_v31 = vmul.f32 %v16330_v7, %v12350_v9  ;;  %v3805_v46 = vadd.f32 %v16331_v22, %v3485_v55  ;;  %5964 = vpow2.f32 %v3447_v23  ;;  %v3164_v3 = vadd.f32 %v16334_v27, %v16333_v29  ;;  %v16336_v17 = vld [vmem:[#allocation273_spill] sm:$0xff]  ;;  %v16338_v9 = vld [vmem:[#allocation198_spill] sm:$0xff]  ;;  %v16341_v27 = vld [vmem:[#allocation12_spill] sm:$0xff] }
 0x4de   : > { %v4936_v1 = vmul.f32 %v5953_v38, %v12363_v44  ;;  %5966 = vpow2.f32 %v4163_v39  ;;  %v12463_v33 = vadd.f32 %v16332_v45, %v4483_v54  ;;  %v5001_v28 = vmul.f32 %v5951_v35, %v4969_v26  ;;  %v16337_v2 = vld [vmem:[#allocation233_spill] sm:$0xff]  ;;  %v16339_v55 = vld [vmem:[#allocation326_spill] sm:$0xff]  ;;  %v12478_v35 = vpop.permute.xlu1 %3569 }
 0x4df   : > { %v4005_v49 = vadd.f32 %v16335_v24, %v3805_v46  ;;  %v3398_v57 = vsub.f32 %v16337_v2, %v16336_v17  ;;  %v4116_v37 = vsub.f32 %v16338_v9, %v16302_v4  ;;  %v4476_v23 = vadd.f32 %v16339_v55, %v4276_v61  ;;  %v16340_v63 = vld [vmem:[#allocation97_spill] sm:$0xff]  ;;  %v16342_v24 = vld [vmem:[#allocation136_spill] sm:$0xff] }
 0x4e0   : > { %v12474_v44 = vadd.f32 %v16340_v63, %v3878_v62  ;;  %v4968_v0 = vsub.f32 2.0, %v4936_v1  ;;  %v3484_v54 = vadd.f32 %v12205_v40, %v3164_v3  ;;  %v5033_v22 = vmul.f32 %v5001_v28, %v12263_v36  ;;  %v16343_v62 = vld [vmem:[#allocation160_spill] sm:$0xff]  ;;  %v16344_v40 = vld [vmem:[#allocation311_spill] sm:$0xff]  ;;  %v16346_v28 = vld [vmem:[#allocation65_spill] sm:$0xff] }
 0x4e1   : > { %v5955_v39 = vpop.eup %5954  ;;  %v4205_v26 = vadd.f32 %v12239_v5, %v4005_v49  ;;  %v3445_v46 = vmul.f32 1.442695, %v3398_v57  ;;  %v4161_v45 = vmul.f32 1.442695, %v4116_v37  ;;  %v3167_v2 = vadd.f32 %v16343_v62, %v16342_v24  ;;  %v16345_v3 = vld [vmem:[#allocation39_spill] sm:$0xff]  ;;  %v16348_v55 = vld [vmem:[#allocation164_spill] sm:$0xff] }
 0x4e2   : > { %v5000_v29 = vmul.f32 %v5953_v38, %v4968_v0  ;;  %v4939_v4 = vmul.f32 %v5955_v39, %v12394_v60  ;;  %v3804_v61 = vadd.f32 %v16341_v27, %v3484_v54  ;;  %5099 = vrot.lane.b32.xlu0 %v5033_v22, %s6346_s17  ;;  %v3401_v5 = vsub.f32 %v16346_v28, %v16345_v3  ;;  %v16347_v49 = vld [vmem:[#allocation199_spill] sm:$0xff]  ;;  %v16351_v24 = vld [vmem:[#allocation154_spill] sm:$0xff]  ;;  %v12513_v28 = vpop.permute.xlu0 %3575 }
 0x4e3   : > { %v12485_v1 = vpop.eup %5956  ;;  %v4405_v36 = vadd.f32 %v16344_v40, %v4205_v26  ;;  %5968 = vpow2.f32 %v3445_v46  ;;  %v4119_v38 = vsub.f32 %v16347_v49, %v16323_v15  ;;  %v16349_v54 = vld [vmem:[#allocation51_spill] sm:$0xff]  ;;  %v3487_v26 = vadd.f32 %v12222_v43, %v3167_v2  ;;  %v16352_v43 = vld [vmem:[#allocation338_spill] sm:$0xff] }
 0x4e4   : > { %v12493_v57 = vpop.eup %5958  ;;  %v5032_v60 = vmul.f32 %v5000_v29, %v12266_v59  ;;  %v4971_v9 = vsub.f32 2.0, %v4939_v4  ;;  %v3652_v37 = vmul.f32 %v12485_v1, %v12478_v35  ;;  %v4004_v63 = vadd.f32 %v16348_v55, %v3804_v61  ;;  %v16350_v46 = vld [vmem:[#allocation399_spill] sm:$0xff]  ;;  %v16357_v55 = vld [vmem:[#allocation153_spill] sm:$0xff] }
 0x4e5   : > { %v4250_v0 = vmul.f32 %v12493_v57, %v12478_v35  ;;  %v4605_v22 = vadd.f32 %v16349_v54, %v4405_v36  ;;  %5970 = vpow2.f32 %v4161_v45  ;;  %v3451_v29 = vmul.f32 1.442695, %v3401_v5  ;;  %v16354_v5 = vld [vmem:[#allocation339_spill] sm:$0xff] }
 0x4e6   : > { %5097 = vrot.lane.b32.xlu1 %v5032_v60, %s6346_s17  ;;  %v5003_v15 = vmul.f32 %v5955_v39, %v4971_v9  ;;  %v3684_v27 = vadd.f32 %v3652_v37, %v16350_v46  ;;  %v4204_v59 = vadd.f32 %v12322_v14, %v4004_v63  ;;  %v3807_v62 = vadd.f32 %v16351_v24, %v3487_v26  ;;  %v16353_v39 = vld [vmem:[#allocation151_spill] sm:$0xff]  ;;  %v16355_v60 = vld [vmem:[#allocation61_spill] sm:$0xff] }
 0x4e7   : > { %v4282_v4 = vadd.f32 %v4250_v0, %v12437_v30  ;;  %v12508_v61 = vadd.f32 %v16273_v48, %v4605_v22  ;;  %v4167_v40 = vmul.f32 1.442695, %v4119_v38  ;;  %5972 = vpow2.f32 %v3451_v29  ;;  %v16358_v0 = vld [vmem:[#allocation404_spill] sm:$0xff] }
 0x4e8   : > { %v5961_v36 = vpop.eup %5960  ;;  %v5035_v45 = vmul.f32 %v5003_v15, %v12273_v41  ;;  %v3884_v2 = vadd.f32 %v16352_v43, %v3684_v27  ;;  %v4404_v49 = vadd.f32 %v16353_v39, %v4204_v59  ;;  %v4007_v38 = vadd.f32 %v16355_v60, %v3807_v62  ;;  %v16356_v41 = vld [vmem:[#allocation392_spill] sm:$0xff]  ;;  %v16359_v15 = vld [vmem:[#allocation405_spill] sm:$0xff]  ;;  %v16362_v62 = vld [vmem:[#allocation87_spill] sm:$0xff] }
 0x4e9   : > { %v12516_v14 = vpop.eup %5962  ;;  %v4938_v30 = vmul.f32 %v5961_v36, %v12434_v16  ;;  %v4482_v48 = vadd.f32 %v16354_v5, %v4282_v4  ;;  %5974 = vrcp.f32 %v12508_v61  ;;  %v4676_v37 = vadd.f32 %v16356_v41, %v4476_v23  ;;  %v16360_v29 = vld [vmem:[#allocation280_spill] sm:$0xff]  ;;  %v16361_v4 = vld [vmem:[#allocation285_spill] sm:$0xff] }
 0x4ea   : > { %v12522_v9 = vpop.eup %5964  ;;  %5103 = vrot.lane.b32.xlu0 %v5035_v45, %s6346_s17  ;;  %v4604_v63 = vadd.f32 %v16357_v55, %v4404_v49  ;;  %v4084_v54 = vadd.f32 %v16358_v0, %v3884_v2  ;;  %5976 = vpow2.f32 %v4167_v40  ;;  %v4207_v27 = vadd.f32 %v12318_v32, %v4007_v38  ;;  %v16363_v40 = vld [vmem:[#allocation162_spill] sm:$0xff]  ;;  %v16364_v43 = vld [vmem:[#allocation9_spill] sm:$0xff]  ;;  %v16367_v55 = vld [vmem:[#allocation255_spill] sm:$0xff] }
 0x4eb   : > { %v12528_v22 = vpop.eup %5966  ;;  %v4970_v16 = vsub.f32 2.0, %v4938_v30  ;;  %v3655_v26 = vmul.f32 %v12522_v9, %v12513_v28  ;;  %v12533_v46 = vadd.f32 %v16359_v15, %v4482_v48  ;;  %v3166_v24 = vadd.f32 %v16361_v4, %v16360_v29  ;;  %v16365_v49 = vld [vmem:[#allocation402_spill] sm:$0xff]  ;;  %v16366_v32 = vld [vmem:[#allocation77_spill] sm:$0xff] }
 0x4ec   : > { %v4253_v23 = vmul.f32 %v12528_v22, %v12513_v28  ;;  %v12539_v59 = vadd.f32 %v16308_v58, %v4604_v63  ;;  %v3400_v45 = vsub.f32 %v16363_v40, %v16362_v62  ;;  %v12547_v2 = vmul.f32 %v16364_v43, %v12380_v50  ;;  %v12553_v58 = vpop.permute.xlu1 %3573  ;;  %v16368_v50 = vld [vmem:[#allocation82_spill] sm:$0xff] }
 0x4ed   : > { %v5002_v39 = vmul.f32 %v5961_v36, %v4970_v16  ;;  %v3687_v30 = vadd.f32 %v3655_v26, %v16365_v49  ;;  %v4407_v5 = vadd.f32 %v16366_v32, %v4207_v27  ;;  %v3486_v60 = vadd.f32 %v12280_v42, %v3166_v24  ;;  %v16369_v36 = vld [vmem:[#allocation200_spill] sm:$0xff]  ;;  %v16370_v15 = vld [vmem:[#allocation342_spill] sm:$0xff] }
 0x4ee   : > { %v4285_v48 = vadd.f32 %v4253_v23, %v12454_v8  ;;  %5978 = vrcp.f32 %v12539_v59  ;;  %v3449_v38 = vmul.f32 1.442695, %v3400_v45  ;;  %v4118_v16 = vsub.f32 %v16369_v36, %v16336_v17  ;;  %v16371_v23 = vld [vmem:[#allocation318_spill] sm:$0xff]  ;;  %v16374_v45 = vld [vmem:[#allocation388_spill] sm:$0xff] }
 0x4ef   : > { %v5034_v41 = vmul.f32 %v5002_v39, %v12308_v47  ;;  %v3887_v63 = vadd.f32 %v16367_v55, %v3687_v30  ;;  %v4607_v0 = vadd.f32 %v16368_v50, %v4407_v5  ;;  %v12564_v8 = vadd.f32 %v12386_v21, %v4676_v37  ;;  %v16372_v4 = vld [vmem:[#allocation406_spill] sm:$0xff]  ;;  %v16373_v21 = vld [vmem:[#allocation407_spill] sm:$0xff]  ;;  %v16376_v30 = vld [vmem:[#allocation184_spill] sm:$0xff]  ;;  %v12589_v55 = vpop.permute.xlu0 %3579 }
 0x4f0   : > { %v12561_v26 = vpop.eup %5968  ;;  %v4485_v27 = vadd.f32 %v16370_v15, %v4285_v48  ;;  %v3806_v29 = vadd.f32 %v16371_v23, %v3486_v60  ;;  %5980 = vpow2.f32 %v3449_v38  ;;  %v4165_v24 = vmul.f32 1.442695, %v4118_v16  ;;  %v16375_v49 = vld [vmem:[#allocation234_spill] sm:$0xff]  ;;  %v16377_v5 = vld [vmem:[#allocation93_spill] sm:$0xff] }
 0x4f1   : > { %5101 = vrot.lane.b32.xlu1 %v5034_v41, %s6346_s17  ;;  %v3654_v42 = vmul.f32 %v12561_v26, %v12553_v58  ;;  %v12572_v47 = vadd.f32 %v16330_v7, %v4607_v0  ;;  %v4087_v17 = vadd.f32 %v16372_v4, %v3887_v63  ;;  %v3169_v32 = vadd.f32 %v16376_v30, %v16375_v49  ;;  %v16378_v48 = vld [vmem:[#allocation86_spill] sm:$0xff]  ;;  %v16380_v63 = vld [vmem:[#allocation201_spill] sm:$0xff]  ;;  %v16383_v49 = vld [vmem:[#allocation75_spill] sm:$0xff] }
 0x4f2   : > { %v12575_v40 = vpop.eup %5970  ;;  %v12578_v37 = vadd.f32 %v16373_v21, %v4485_v27  ;;  %v4006_v39 = vadd.f32 %v16374_v45, %v3806_v29  ;;  %v3403_v60 = vsub.f32 %v16378_v48, %v16377_v5  ;;  %v16379_v38 = vld [vmem:[#allocation134_spill] sm:$0xff]  ;;  %v4121_v50 = vsub.f32 %v16380_v63, %v16345_v3  ;;  %v16381_v0 = vld [vmem:[#allocation13_spill] sm:$0xff] }
 0x4f3   : > { %v3686_v41 = vadd.f32 %v3654_v42, %v16379_v38  ;;  %v4252_v7 = vmul.f32 %v12575_v40, %v12553_v58  ;;  %5982 = vrcp.f32 %v12572_v47  ;;  %v12595_v36 = vmul.f32 %v16381_v0, %v12406_v19  ;;  %v16382_v23 = vld [vmem:[#allocation345_spill] sm:$0xff] }
 0x4f4   : > { %v4206_v16 = vadd.f32 %v12516_v14, %v4006_v39  ;;  %5984 = vpow2.f32 %v4165_v24  ;;  %v3489_v15 = vadd.f32 %v12303_v6, %v3169_v32  ;;  %v12599_v27 = vpop.eup %5972  ;;  %v3455_v4 = vmul.f32 1.442695, %v3403_v60  ;;  %v16384_v39 = vld [vmem:[#allocation324_spill] sm:$0xff]  ;;  %v16385_v32 = vld [vmem:[#allocation266_spill] sm:$0xff] }
 0x4f5   : > { %v3886_v29 = vadd.f32 %v16382_v23, %v3686_v41  ;;  %v4284_v42 = vadd.f32 %v4252_v7, %v4084_v54  ;;  %v4171_v21 = vmul.f32 1.442695, %v4121_v50  ;;  %v4246_v3 = vmul.f32 %v12516_v14, %v12331_v20  ;;  %v16386_v54 = vld [vmem:[#allocation408_spill] sm:$0xff]  ;;  %v16389_v50 = vld [vmem:[#allocation190_spill] sm:$0xff] }
 0x4f6   : > { %v5975_v45 = vpop.eup %5974  ;;  %v3657_v19 = vmul.f32 %v12599_v27, %v12589_v55  ;;  %v4406_v30 = vadd.f32 %v16383_v49, %v4206_v16  ;;  %v3809_v24 = vadd.f32 %v16384_v39, %v3489_v15  ;;  %5986 = vpow2.f32 %v3455_v4  ;;  %v16387_v41 = vld [vmem:[#allocation340_spill] sm:$0xff]  ;;  %v16390_v15 = vld [vmem:[#allocation409_spill] sm:$0xff]  ;;  %v16392_v39 = vld [vmem:[#allocation387_spill] sm:$0xff] }
 0x4f7   : > { %v12608_v48 = vpop.eup %5976  ;;  %v4941_v6 = vmul.f32 %v5975_v45, %v12508_v61  ;;  %v4484_v38 = vadd.f32 %v16385_v32, %v4284_v42  ;;  %v4086_v60 = vadd.f32 %v16386_v54, %v3886_v29  ;;  %v16388_v14 = vld [vmem:[#allocation56_spill] sm:$0xff]  ;;  %5988 = vpow2.f32 %v4171_v21  ;;  %v16391_v61 = vld [vmem:[#allocation70_spill] sm:$0xff]  ;;  %v16393_v32 = vld [vmem:[#allocation347_spill] sm:$0xff] }
 0x4f8   : > { %v3689_v7 = vadd.f32 %v3657_v19, %v16387_v41  ;;  %v4255_v20 = vmul.f32 %v12608_v48, %v12589_v55  ;;  %v4606_v63 = vadd.f32 %v16388_v14, %v4406_v30  ;;  %v4009_v16 = vadd.f32 %v16389_v50, %v3809_v24  ;;  %v16394_v21 = vld [vmem:[#allocation15_spill] sm:$0xff]  ;;  %v16395_v14 = vld [vmem:[#allocation62_spill] sm:$0xff] }
 0x4f9   : > { %v4973_v23 = vsub.f32 2.0, %v4941_v6  ;;  %v12619_v49 = vadd.f32 %v16390_v15, %v4484_v38  ;;  %v3168_v42 = vadd.f32 %v16392_v39, %v16391_v61  ;;  %v4278_v30 = vadd.f32 %v4246_v3, %v12474_v44  ;;  %v12629_v6 = vpop.permute.xlu1 %3577 }
 0x4fa   : > { %v3889_v29 = vadd.f32 %v16393_v32, %v3689_v7  ;;  %v4287_v4 = vadd.f32 %v4255_v20, %v4087_v17  ;;  %v12625_v19 = vadd.f32 %v16364_v43, %v4606_v63  ;;  %v4209_v54 = vadd.f32 %v12367_v52, %v4009_v16  ;;  %v16396_v7 = vld [vmem:[#allocation348_spill] sm:$0xff]  ;;  %v16397_v43 = vld [vmem:[#allocation98_spill] sm:$0xff] }
 0x4fb   : > { %v5979_v41 = vpop.eup %5978  ;;  %v5005_v24 = vmul.f32 %v5975_v45, %v4973_v23  ;;  %v3488_v38 = vadd.f32 %v12339_v25, %v3168_v42  ;;  %v3402_v50 = vsub.f32 %v16395_v14, %v16394_v21  ;;  %v16398_v45 = vld [vmem:[#allocation410_spill] sm:$0xff]  ;;  %v16399_v63 = vld [vmem:[#allocation68_spill] sm:$0xff]  ;;  %v16401_v42 = vld [vmem:[#allocation411_spill] sm:$0xff] }
 0x4fc   : > { %v4940_v15 = vmul.f32 %v5979_v41, %v12539_v59  ;;  %v4487_v17 = vadd.f32 %v16396_v7, %v4287_v4  ;;  %5990 = vrcp.f32 %v12625_v19  ;;  %v4409_v20 = vadd.f32 %v16397_v43, %v4209_v54  ;;  %v16400_v59 = vld [vmem:[#allocation287_spill] sm:$0xff]  ;;  %v16404_v14 = vld [vmem:[#allocation330_spill] sm:$0xff] }
 0x4fd   : > { %v12638_v52 = vpop.eup %5980  ;;  %v5037_v44 = vmul.f32 %v5005_v24, %v12401_v13  ;;  %v4089_v3 = vadd.f32 %v16398_v45, %v3889_v29  ;;  %v3808_v16 = vadd.f32 %v16399_v63, %v3488_v38  ;;  %v3453_v25 = vmul.f32 1.442695, %v3402_v50  ;;  %v16402_v13 = vld [vmem:[#allocation286_spill] sm:$0xff]  ;;  %v16405_v7 = vld [vmem:[#allocation343_spill] sm:$0xff]  ;;  %v16406_v45 = vld [vmem:[#allocation321_spill] sm:$0xff] }
 0x4fe   : > { %v4972_v23 = vsub.f32 2.0, %v4940_v15  ;;  %v3656_v61 = vmul.f32 %v12638_v52, %v12629_v6  ;;  %v4609_v39 = vadd.f32 %v16400_v59, %v4409_v20  ;;  %v12647_v32 = vadd.f32 %v16401_v42, %v4487_v17  ;;  %v16403_v29 = vld [vmem:[#allocation202_spill] sm:$0xff]  ;;  %v16407_v63 = vld [vmem:[#allocation389_spill] sm:$0xff] }
 0x4ff   : > { %v4879_v4 = vadd.f32 %v12458_v31, %v12356_v34  ;;  %5107 = vrot.lane.b32.xlu0 %v5037_v44, %s6346_s17  ;;  %v4008_v54 = vadd.f32 %v16402_v13, %v3808_v16  ;;  %5992 = vpow2.f32 %v3453_v25  ;;  %v4120_v24 = vsub.f32 %v16403_v29, %v16362_v62  ;;  %v16408_v25 = vld [vmem:[#allocation350_spill] sm:$0xff]  ;;  %v16411_v13 = vld [vmem:[#allocation176_spill] sm:$0xff] }
 0x500   : > { %v5983_v38 = vpop.eup %5982  ;;  %v4478_v50 = vadd.f32 %v16404_v14, %v4278_v30  ;;  %v5004_v15 = vmul.f32 %v5979_v41, %v4972_v23  ;;  %v3688_v43 = vadd.f32 %v3656_v61, %v16405_v7  ;;  %v12658_v17 = vadd.f32 %v16381_v0, %v4609_v39  ;;  %v12671_v0 = vpop.permute.xlu0 %3583  ;;  %v16409_v61 = vld [vmem:[#allocation89_spill] sm:$0xff] }
 0x501   : > { %v12660_v20 = vpop.eup %5984  ;;  %v4943_v34 = vmul.f32 %v5983_v38, %v12572_v47  ;;  %v4208_v31 = vadd.f32 %v12398_v56, %v4008_v54  ;;  %v4169_v44 = vmul.f32 1.442695, %v4120_v24  ;;  %v3171_v16 = vadd.f32 %v16407_v63, %v16406_v45  ;;  %v16410_v39 = vld [vmem:[#allocation293_spill] sm:$0xff]  ;;  %v16412_v54 = vld [vmem:[#allocation106_spill] sm:$0xff]  ;;  %v16413_v24 = vld [vmem:[#allocation203_spill] sm:$0xff] }
 0x502   : > { %v5036_v62 = vmul.f32 %v5004_v15, %v12564_v8  ;;  %v3888_v30 = vadd.f32 %v16408_v25, %v3688_v43  ;;  %v4254_v41 = vmul.f32 %v12660_v20, %v12629_v6  ;;  %5994 = vrcp.f32 %v12658_v17  ;;  %v16414_v43 = vld [vmem:[#allocation288_spill] sm:$0xff]  ;;  %v16417_v63 = vld [vmem:[#allocation351_spill] sm:$0xff] }
 0x503   : > { %v4975_v23 = vsub.f32 2.0, %v4943_v34  ;;  %v4408_v47 = vadd.f32 %v16409_v61, %v4208_v31  ;;  %5996 = vpow2.f32 %v4169_v44  ;;  %v3491_v56 = vadd.f32 %v12360_v11, %v3171_v16  ;;  %v12675_v59 = vpop.eup %5986  ;;  %v16415_v34 = vld [vmem:[#allocation329_spill] sm:$0xff] }
 0x504   : > { %5105 = vrot.lane.b32.xlu1 %v5036_v62, %s6346_s17  ;;  %v4286_v8 = vadd.f32 %v4254_v41, %v4086_v60  ;;  %v12679_v42 = vadd.f32 %v16410_v39, %v3888_v30  ;;  %v3405_v29 = vsub.f32 %v16412_v54, %v16411_v13  ;;  %v4123_v14 = vsub.f32 %v16413_v24, %v16377_v5  ;;  %v12689_v44 = vpop.eup %5988  ;;  %v16416_v60 = vld [vmem:[#allocation395_spill] sm:$0xff]  ;;  %v16418_v41 = vld [vmem:[#allocation346_spill] sm:$0xff] }
 0x505   : > { %v5007_v15 = vmul.f32 %v5983_v38, %v4975_v23  ;;  %v3659_v7 = vmul.f32 %v12675_v59, %v12671_v0  ;;  %v4608_v11 = vadd.f32 %v16414_v43, %v4408_v47  ;;  %v3811_v31 = vadd.f32 %v16415_v34, %v3491_v56  ;;  %v16419_v38 = vld [vmem:[#allocation107_spill] sm:$0xff]  ;;  %v16420_v47 = vld [vmem:[#allocation170_spill] sm:$0xff]  ;;  %v16426_v43 = vld [vmem:[#allocation85_spill] sm:$0xff] }
 0x506   : > { %v4678_v45 = vadd.f32 %v16416_v60, %v4478_v50  ;;  %v4486_v16 = vadd.f32 %v16417_v63, %v4286_v8  ;;  %v3459_v62 = vmul.f32 1.442695, %v3405_v29  ;;  %v4175_v25 = vmul.f32 1.442695, %v4123_v14  ;;  %v16421_v56 = vld [vmem:[#allocation267_spill] sm:$0xff] }
 0x507   : > { %v5039_v30 = vmul.f32 %v5007_v15, %v4879_v4  ;;  %v3691_v61 = vadd.f32 %v3659_v7, %v16418_v41  ;;  %v4257_v5 = vmul.f32 %v12689_v44, %v12671_v0  ;;  %v12697_v23 = vadd.f32 %v16419_v38, %v4608_v11  ;;  %v16422_v50 = vld [vmem:[#allocation91_spill] sm:$0xff]  ;;  %v16424_v4 = vld [vmem:[#allocation354_spill] sm:$0xff] }
 0x508   : > { %v12700_v39 = vadd.f32 %v16420_v47, %v4486_v16  ;;  %v4011_v54 = vadd.f32 %v16421_v56, %v3811_v31  ;;  %5998 = vpow2.f32 %v3459_v62  ;;  %v16423_v24 = vld [vmem:[#allocation391_spill] sm:$0xff]  ;;  %v4878_v34 = vadd.f32 %v12547_v2, %v4678_v45  ;;  %v12712_v31 = vpop.permute.xlu1 %3581  ;;  %v16430_v56 = vld [vmem:[#allocation204_spill] sm:$0xff] }
 0x509   : > { %v3170_v8 = vadd.f32 %v16423_v24, %v16422_v50  ;;  %v5991_v29 = vpop.eup %5990  ;;  %5111 = vrot.lane.b32.xlu0 %v5039_v30, %s6346_s17  ;;  %v3891_v14 = vadd.f32 %v16424_v4, %v3691_v61  ;;  %v4289_v15 = vadd.f32 %v4257_v5, %v4089_v3  ;;  %6000 = vrcp.f32 %v12697_v23  ;;  %v16425_v7 = vld [vmem:[#allocation19_spill] sm:$0xff]  ;;  %v16428_v30 = vld [vmem:[#allocation414_spill] sm:$0xff]  ;;  %v16433_v4 = vld [vmem:[#allocation289_spill] sm:$0xff] }
 0x50a   : > { %v3404_v11 = vsub.f32 %v16426_v43, %v16425_v7  ;;  %v4942_v60 = vmul.f32 %v5991_v29, %v12625_v19  ;;  %v4211_v63 = vadd.f32 %v12423_v10, %v4011_v54  ;;  %6002 = vpow2.f32 %v4175_v25  ;;  %v16427_v16 = vld [vmem:[#allocation355_spill] sm:$0xff]  ;;  %v16429_v19 = vld [vmem:[#allocation129_spill] sm:$0xff] }
 0x50b   : > { %v4489_v62 = vadd.f32 %v16427_v16, %v4289_v15  ;;  %v12717_v41 = vadd.f32 %v16428_v30, %v3891_v14  ;;  %v3490_v3 = vadd.f32 %v12390_v18, %v3170_v8  ;;  %v4848_v2 = vmul.f32 %v16419_v38, %v12478_v35  ;;  %v16431_v54 = vld [vmem:[#allocation417_spill] sm:$0xff]  ;;  %v16432_v24 = vld [vmem:[#allocation331_spill] sm:$0xff]  ;;  %v16434_v35 = vld [vmem:[#allocation246_spill] sm:$0xff] }
 0x50c   : > { %v3457_v61 = vmul.f32 1.442695, %v3404_v11  ;;  %v12720_v5 = vpop.eup %5992  ;;  %v4974_v45 = vsub.f32 2.0, %v4942_v60  ;;  %v4411_v47 = vadd.f32 %v16429_v19, %v4211_v63  ;;  %v4122_v10 = vsub.f32 %v16430_v56, %v16394_v21  ;;  %v16435_v38 = vld [vmem:[#allocation393_spill] sm:$0xff]  ;;  %v16436_v60 = vld [vmem:[#allocation222_spill] sm:$0xff] }
 0x50d   : > { %v3658_v25 = vmul.f32 %v12720_v5, %v12712_v31  ;;  %v12730_v50 = vadd.f32 %v16431_v54, %v4489_v62  ;;  %v3810_v18 = vadd.f32 %v16432_v24, %v3490_v3  ;;  %v3173_v43 = vadd.f32 %v16435_v38, %v16434_v35  ;;  %v16437_v16 = vld [vmem:[#allocation94_spill] sm:$0xff]  ;;  %v16438_v62 = vld [vmem:[#allocation23_spill] sm:$0xff]  ;;  %v16439_v19 = vld [vmem:[#allocation125_spill] sm:$0xff] }
 0x50e   : > { %6004 = vpow2.f32 %v3457_v61  ;;  %v5006_v8 = vmul.f32 %v5991_v29, %v4974_v45  ;;  %v4611_v14 = vadd.f32 %v16433_v4, %v4411_v47  ;;  %v4173_v15 = vmul.f32 1.442695, %v4122_v10  ;;  %v16440_v45 = vld [vmem:[#allocation114_spill] sm:$0xff]  ;;  %v16441_v10 = vld [vmem:[#allocation357_spill] sm:$0xff]  ;;  %v12758_v4 = vpop.permute.xlu0 %3587 }
 0x50f   : > { %v5995_v11 = vpop.eup %5994  ;;  %v4881_v21 = vadd.f32 %v12595_v36, %v12419_v12  ;;  %v3690_v63 = vadd.f32 %v3658_v25, %v16436_v60  ;;  %v4010_v30 = vadd.f32 %v16437_v16, %v3810_v18  ;;  %v3407_v56 = vsub.f32 %v16439_v19, %v16438_v62  ;;  %v16444_v35 = vld [vmem:[#allocation418_spill] sm:$0xff] }
 0x510   : > { %v12742_v3 = vpop.eup %5996  ;;  %v5038_v29 = vmul.f32 %v5006_v8, %v4878_v34  ;;  %v4945_v61 = vmul.f32 %v5995_v11, %v12658_v17  ;;  %v12746_v47 = vadd.f32 %v16440_v45, %v4611_v14  ;;  %6006 = vpow2.f32 %v4173_v15  ;;  %v16442_v17 = vld [vmem:[#allocation205_spill] sm:$0xff]  ;;  %v16443_v14 = vld [vmem:[#allocation116_spill] sm:$0xff] }
 0x511   : > { %v3890_v54 = vadd.f32 %v16441_v10, %v3690_v63  ;;  %v4256_v12 = vmul.f32 %v12742_v3, %v12712_v31  ;;  %v4210_v36 = vadd.f32 %v12493_v57, %v4010_v30  ;;  %v3493_v25 = vadd.f32 %v12413_v51, %v3173_v43  ;;  %v16445_v57 = vld [vmem:[#allocation117_spill] sm:$0xff]  ;;  %v16446_v30 = vld [vmem:[#allocation58_spill] sm:$0xff] }
 0x512   : > { %5109 = vrot.lane.b32.xlu1 %v5038_v29, %s6346_s17  ;;  %v4977_v24 = vsub.f32 2.0, %v4945_v61  ;;  %6008 = vrcp.f32 %v12746_v47  ;;  %v3463_v34 = vmul.f32 1.442695, %v3407_v56  ;;  %v4125_v18 = vsub.f32 %v16442_v17, %v16411_v13  ;;  %v16447_v13 = vld [vmem:[#allocation401_spill] sm:$0xff]  ;;  %v16450_v10 = vld [vmem:[#allocation394_spill] sm:$0xff]  ;;  %v16453_v17 = vld [vmem:[#allocation31_spill] sm:$0xff] }
 0x513   : > { %v4288_v8 = vadd.f32 %v4256_v12, %v12679_v42  ;;  %v4410_v15 = vadd.f32 %v16443_v14, %v4210_v36  ;;  %v4090_v38 = vadd.f32 %v16444_v35, %v3890_v54  ;;  %v3813_v60 = vadd.f32 %v16445_v57, %v3493_v25  ;;  %v16448_v42 = vld [vmem:[#allocation112_spill] sm:$0xff]  ;;  %v16449_v61 = vld [vmem:[#allocation113_spill] sm:$0xff] }
 0x514   : > { %v4880_v51 = vadd.f32 %v4848_v2, %v12445_v53  ;;  %v5009_v43 = vmul.f32 %v5995_v11, %v4977_v24  ;;  %6010 = vpow2.f32 %v3463_v34  ;;  %v4179_v63 = vmul.f32 1.442695, %v4125_v18  ;;  %v16451_v53 = vld [vmem:[#allocation17_spill] sm:$0xff] }
 0x515   : > { %v12764_v16 = vpop.eup %5998  ;;  %v4488_v19 = vadd.f32 %v16446_v30, %v4288_v8  ;;  %v4610_v56 = vadd.f32 %v16447_v13, %v4410_v15  ;;  %v4013_v29 = vadd.f32 %v16448_v42, %v3813_v60  ;;  %v3172_v12 = vadd.f32 %v16450_v10, %v16449_v61  ;;  %v16452_v2 = vld [vmem:[#allocation105_spill] sm:$0xff]  ;;  %v16454_v8 = vld [vmem:[#allocation248_spill] sm:$0xff]  ;;  %v12789_v60 = vpop.permute.xlu1 %3585  ;;  %v16458_v61 = vld [vmem:[#allocation250_spill] sm:$0xff] }
 0x516   : > { %v6001_v36 = vpop.eup %6000  ;;  %v5041_v54 = vmul.f32 %v5009_v43, %v4881_v21  ;;  %v3661_v25 = vmul.f32 %v12764_v16, %v12758_v4  ;;  %6012 = vpow2.f32 %v4179_v63  ;;  %v3406_v11 = vsub.f32 %v16452_v2, %v16451_v53  ;;  %v16455_v21 = vld [vmem:[#allocation353_spill] sm:$0xff] }
 0x517   : > { %v12775_v24 = vpop.eup %6002  ;;  %v4944_v34 = vmul.f32 %v6001_v36, %v12697_v23  ;;  %v12779_v18 = vadd.f32 %v16453_v17, %v4610_v56  ;;  %v12782_v14 = vadd.f32 %v16454_v8, %v4488_v19  ;;  %v4213_v15 = vadd.f32 %v12528_v22, %v4013_v29  ;;  %v16456_v19 = vld [vmem:[#allocation261_spill] sm:$0xff]  ;;  %v16462_v8 = vld [vmem:[#allocation50_spill] sm:$0xff] }
 0x518   : > { %5115 = vrot.lane.b32.xlu0 %v5041_v54, %s6346_s17  ;;  %v3693_v35 = vadd.f32 %v3661_v25, %v16455_v21  ;;  %v4259_v57 = vmul.f32 %v12775_v24, %v12758_v4  ;;  %v3492_v43 = vadd.f32 %v12485_v1, %v3172_v12  ;;  %v3461_v23 = vmul.f32 1.442695, %v3406_v11  ;;  %v16457_v56 = vld [vmem:[#allocation361_spill] sm:$0xff]  ;;  %v16459_v12 = vld [vmem:[#allocation178_spill] sm:$0xff] }
 0x519   : > { %v4851_v63 = vmul.f32 %v16440_v45, %v12513_v28  ;;  %v4976_v30 = vsub.f32 2.0, %v4944_v34  ;;  %6014 = vrcp.f32 %v12779_v18  ;;  %v4413_v22 = vadd.f32 %v16456_v19, %v4213_v15  ;;  %v16460_v45 = vld [vmem:[#allocation206_spill] sm:$0xff]  ;;  %v16463_v21 = vld [vmem:[#allocation121_spill] sm:$0xff] }
 0x51a   : > { %v3893_v42 = vadd.f32 %v16457_v56, %v3693_v35  ;;  %v4291_v29 = vadd.f32 %v4259_v57, %v12717_v41  ;;  %v3812_v10 = vadd.f32 %v16458_v61, %v3492_v43  ;;  %6016 = vpow2.f32 %v3461_v23  ;;  %v16461_v11 = vld [vmem:[#allocation362_spill] sm:$0xff]  ;;  %v16465_v23 = vld [vmem:[#allocation131_spill] sm:$0xff]  ;;  %v16467_v56 = vld [vmem:[#allocation96_spill] sm:$0xff] }
 0x51b   : > { %v12796_v13 = vpop.eup %6004  ;;  %v5008_v54 = vmul.f32 %v6001_v36, %v4976_v30  ;;  %v4613_v28 = vadd.f32 %v16459_v12, %v4413_v22  ;;  %v4124_v25 = vsub.f32 %v16460_v45, %v16425_v7  ;;  %v4883_v2 = vadd.f32 %v4851_v63, %v12463_v33  ;;  %v16464_v36 = vld [vmem:[#allocation63_spill] sm:$0xff] }
 0x51c   : > { %v3660_v1 = vmul.f32 %v12796_v13, %v12789_v60  ;;  %v4491_v34 = vadd.f32 %v16461_v11, %v4291_v29  ;;  %v4093_v15 = vadd.f32 %v16462_v8, %v3893_v42  ;;  %v4012_v41 = vadd.f32 %v16463_v21, %v3812_v10  ;;  %v16466_v22 = vld [vmem:[#allocation423_spill] sm:$0xff]  ;;  %v16468_v42 = vld [vmem:[#allocation81_spill] sm:$0xff] }
 0x51d   : > { %v12810_v35 = vpop.eup %6006  ;;  %v5040_v57 = vmul.f32 %v5008_v54, %v4880_v51  ;;  %v12814_v30 = vadd.f32 %v16465_v23, %v4613_v28  ;;  %v4177_v19 = vmul.f32 1.442695, %v4124_v25  ;;  %v3175_v29 = vadd.f32 %v16468_v42, %v16467_v56  ;;  %v16469_v51 = vld [vmem:[#allocation363_spill] sm:$0xff]  ;;  %v12827_v54 = vpop.permute.xlu0 %3591  ;;  %v16473_v8 = vld [vmem:[#allocation341_spill] sm:$0xff] }
 0x51e   : > { %v3692_v43 = vadd.f32 %v3660_v1, %v16464_v36  ;;  %v4258_v7 = vmul.f32 %v12810_v35, %v12789_v60  ;;  %v12819_v33 = vadd.f32 %v16466_v22, %v4491_v34  ;;  %v4212_v63 = vadd.f32 %v12575_v40, %v4012_v41  ;;  %v16470_v1 = vld [vmem:[#allocation21_spill] sm:$0xff]  ;;  %v16471_v12 = vld [vmem:[#allocation263_spill] sm:$0xff] }
 0x51f   : > { %v6009_v61 = vpop.eup %6008  ;;  %5113 = vrot.lane.b32.xlu1 %v5040_v57, %s6346_s17  ;;  %6018 = vrcp.f32 %v12814_v30  ;;  %v3409_v28 = vsub.f32 %v16471_v12, %v16470_v1  ;;  %v16472_v45 = vld [vmem:[#allocation207_spill] sm:$0xff]  ;;  %v4850_v40 = vmul.f32 %v16453_v17, %v12553_v58  ;;  %v16474_v57 = vld [vmem:[#allocation84_spill] sm:$0xff]  ;;  %v16475_v42 = vld [vmem:[#allocation53_spill] sm:$0xff] }
 0x520   : > { %v3892_v10 = vadd.f32 %v16469_v51, %v3692_v43  ;;  %v4127_v25 = vsub.f32 %v16472_v45, %v16438_v62  ;;  %v4947_v11 = vmul.f32 %v6009_v61, %v12746_v47  ;;  %v4290_v34 = vadd.f32 %v4258_v7, %v4090_v38  ;;  %v16476_v17 = vld [vmem:[#allocation179_spill] sm:$0xff] }
 0x521   : > { %v4412_v21 = vadd.f32 %v16473_v8, %v4212_v63  ;;  %v12837_v41 = vpop.eup %6010  ;;  %6020 = vpow2.f32 %v4177_v19  ;;  %v3495_v43 = vadd.f32 %v12522_v9, %v3175_v29  ;;  %v3467_v22 = vmul.f32 1.442695, %v3409_v28  ;;  %v16477_v63 = vld [vmem:[#allocation252_spill] sm:$0xff]  ;;  %v16478_v9 = vld [vmem:[#allocation359_spill] sm:$0xff]  ;;  %v12861_v8 = vpop.permute.xlu1 %3589 }
 0x522   : > { %v12840_v36 = vadd.f32 %v16474_v57, %v3892_v10  ;;  %v4979_v56 = vsub.f32 2.0, %v4947_v11  ;;  %v4490_v62 = vadd.f32 %v16475_v42, %v4290_v34  ;;  %v3663_v58 = vmul.f32 %v12837_v41, %v12827_v54  ;;  %v16479_v28 = vld [vmem:[#allocation8_spill] sm:$0xff]  ;;  %v16480_v11 = vld [vmem:[#allocation251_spill] sm:$0xff]  ;;  %v16483_v57 = vld [vmem:[#allocation398_spill] sm:$0xff] }
 0x523   : > { %v4612_v47 = vadd.f32 %v16476_v17, %v4412_v21  ;;  %v12847_v38 = vpop.eup %6012  ;;  %v4853_v7 = vmul.f32 %v16465_v23, %v12589_v55  ;;  %v3815_v51 = vadd.f32 %v16477_v63, %v3495_v43  ;;  %6022 = vpow2.f32 %v3467_v22  ;;  %v16481_v21 = vld [vmem:[#allocation101_spill] sm:$0xff]  ;;  %v16482_v23 = vld [vmem:[#allocation334_spill] sm:$0xff]  ;;  %v16484_v22 = vld [vmem:[#allocation67_spill] sm:$0xff] }
 0x524   : > { %v4183_v19 = vmul.f32 1.442695, %v4127_v25  ;;  %v5011_v10 = vmul.f32 %v6009_v61, %v4979_v56  ;;  %v3695_v29 = vadd.f32 %v3663_v58, %v16478_v9  ;;  %v4261_v12 = vmul.f32 %v12847_v38, %v12827_v54  ;;  %v16487_v9 = vld [vmem:[#allocation25_spill] sm:$0xff] }
 0x525   : > { %v12856_v45 = vadd.f32 %v16479_v28, %v4612_v47  ;;  %v12859_v34 = vadd.f32 %v16480_v11, %v4490_v62  ;;  %v4015_v55 = vadd.f32 %v16481_v21, %v3815_v51  ;;  %v3174_v25 = vadd.f32 %v16483_v57, %v16482_v23  ;;  %v16485_v51 = vld [vmem:[#allocation90_spill] sm:$0xff] }
 0x526   : > { %6024 = vpow2.f32 %v4183_v19  ;;  %v6015_v61 = vpop.eup %6014  ;;  %v5043_v43 = vmul.f32 %v5011_v10, %v4883_v2  ;;  %v3895_v56 = vadd.f32 %v16484_v22, %v3695_v29  ;;  %v4293_v42 = vadd.f32 %v4261_v12, %v4093_v15  ;;  %v16486_v15 = vld [vmem:[#allocation297_spill] sm:$0xff]  ;;  %v16488_v29 = vld [vmem:[#allocation124_spill] sm:$0xff]  ;;  %v16492_v23 = vld [vmem:[#allocation290_spill] sm:$0xff] }
 0x527   : > { %6026 = vrcp.f32 %v12856_v45  ;;  %v12868_v58 = vpop.eup %6016  ;;  %v4882_v62 = vadd.f32 %v4850_v40, %v12533_v46  ;;  %v4946_v17 = vmul.f32 %v6015_v61, %v12779_v18  ;;  %v4215_v47 = vadd.f32 %v12608_v48, %v4015_v55  ;;  %v16489_v46 = vld [vmem:[#allocation344_spill] sm:$0xff] }
 0x528   : > { %v3494_v63 = vadd.f32 %v12561_v26, %v3174_v25  ;;  %5119 = vrot.lane.b32.xlu0 %v5043_v43, %s6346_s17  ;;  %v4493_v19 = vadd.f32 %v16485_v51, %v4293_v42  ;;  %v3662_v2 = vmul.f32 %v12868_v58, %v12861_v8  ;;  %v4095_v10 = vadd.f32 %v16486_v15, %v3895_v56  ;;  %v16490_v18 = vld [vmem:[#allocation128_spill] sm:$0xff]  ;;  %v16493_v25 = vld [vmem:[#allocation123_spill] sm:$0xff] }
 0x529   : > { %v3408_v12 = vsub.f32 %v16488_v29, %v16487_v9  ;;  %v4978_v11 = vsub.f32 2.0, %v4946_v17  ;;  %v4415_v40 = vadd.f32 %v16489_v46, %v4215_v47  ;;  %v16491_v48 = vld [vmem:[#allocation208_spill] sm:$0xff]  ;;  %v4852_v55 = vmul.f32 %v16479_v28, %v12629_v6  ;;  %v16495_v17 = vld [vmem:[#allocation257_spill] sm:$0xff]  ;;  %v16496_v46 = vld [vmem:[#allocation171_spill] sm:$0xff] }
 0x52a   : > { %v3814_v21 = vadd.f32 %v16490_v18, %v3494_v63  ;;  %v4126_v26 = vsub.f32 %v16491_v48, %v16451_v53  ;;  %v3694_v57 = vadd.f32 %v3662_v2, %v16492_v23  ;;  %v12889_v43 = vadd.f32 %v16493_v25, %v4493_v19  ;;  %v16494_v42 = vld [vmem:[#allocation180_spill] sm:$0xff]  ;;  %v16498_v6 = vld [vmem:[#allocation210_spill] sm:$0xff] }
 0x52b   : > { %v3465_v22 = vmul.f32 1.442695, %v3408_v12  ;;  %v5010_v56 = vmul.f32 %v6015_v61, %v4978_v11  ;;  %v4615_v51 = vadd.f32 %v16494_v42, %v4415_v40  ;;  %v4885_v63 = vadd.f32 %v4853_v7, %v12578_v37  ;;  %v16497_v18 = vld [vmem:[#allocation336_spill] sm:$0xff]  ;;  %v12904_v40 = vpop.permute.xlu0 %3595  ;;  %v16505_v42 = vld [vmem:[#allocation138_spill] sm:$0xff] }
 0x52c   : > { %v4014_v15 = vadd.f32 %v16495_v17, %v3814_v21  ;;  %v4181_v47 = vmul.f32 1.442695, %v4126_v26  ;;  %v6019_v29 = vpop.eup %6018  ;;  %v3894_v53 = vadd.f32 %v16496_v46, %v3694_v57  ;;  %v3177_v28 = vadd.f32 %v16498_v6, %v16497_v18  ;;  %v16499_v48 = vld [vmem:[#allocation236_spill] sm:$0xff]  ;;  %v16501_v26 = vld [vmem:[#allocation35_spill] sm:$0xff]  ;;  %v16506_v17 = vld [vmem:[#allocation209_spill] sm:$0xff] }
 0x52d   : > { %6028 = vpow2.f32 %v3465_v22  ;;  %v5042_v2 = vmul.f32 %v5010_v56, %v4882_v62  ;;  %v4949_v19 = vmul.f32 %v6019_v29, %v12814_v30  ;;  %v12899_v12 = vadd.f32 %v16499_v48, %v4615_v51  ;;  %v16500_v21 = vld [vmem:[#allocation424_spill] sm:$0xff]  ;;  %v16507_v18 = vld [vmem:[#allocation181_spill] sm:$0xff] }
 0x52e   : > { %v4214_v61 = vadd.f32 %v12660_v20, %v4014_v15  ;;  %v12902_v11 = vpop.eup %6020  ;;  %v12907_v37 = vadd.f32 %v16500_v21, %v3894_v53  ;;  %6030 = vpow2.f32 %v4181_v47  ;;  %v3497_v7 = vadd.f32 %v12599_v27, %v3177_v28  ;;  %v16502_v23 = vld [vmem:[#allocation144_spill] sm:$0xff]  ;;  %v16503_v20 = vld [vmem:[#allocation137_spill] sm:$0xff] }
 0x52f   : > { %v3411_v62 = vsub.f32 %v16502_v23, %v16501_v26  ;;  %5117 = vrot.lane.b32.xlu1 %v5042_v2, %s6346_s17  ;;  %v4981_v30 = vsub.f32 2.0, %v4949_v19  ;;  %v4260_v57 = vmul.f32 %v12902_v11, %v12861_v8  ;;  %6032 = vrcp.f32 %v12899_v12  ;;  %v16508_v2 = vld [vmem:[#allocation120_spill] sm:$0xff] }
 0x530   : > { %v4414_v25 = vadd.f32 %v16503_v20, %v4214_v61  ;;  %v12917_v22 = vpop.eup %6022  ;;  %v4884_v56 = vadd.f32 %v4852_v55, %v12619_v49  ;;  %v3817_v51 = vadd.f32 %v16505_v42, %v3497_v7  ;;  %v4129_v15 = vsub.f32 %v16506_v17, %v16470_v1  ;;  %v16509_v55 = vld [vmem:[#allocation254_spill] sm:$0xff]  ;;  %v16510_v61 = vld [vmem:[#allocation295_spill] sm:$0xff]  ;;  %v16515_v17 = vld [vmem:[#allocation425_spill] sm:$0xff] }
 0x531   : > { %16504 = vst [vmem:[#allocation378_spill] sm:$0xff] %v12917_v22  ;;  %v3471_v27 = vmul.f32 1.442695, %v3411_v62  ;;  %v5013_v47 = vmul.f32 %v6019_v29, %v4981_v30  ;;  %v4292_v46 = vadd.f32 %v4260_v57, %v12840_v36  ;;  %v3665_v53 = vmul.f32 %v12917_v22, %v12904_v40  ;;  %v16511_v1 = vld [vmem:[#allocation367_spill] sm:$0xff]  ;;  %v16512_v62 = vld [vmem:[#allocation214_spill] sm:$0xff] }
 0x532   : > { %v4614_v6 = vadd.f32 %v16507_v18, %v4414_v25  ;;  %v4017_v19 = vadd.f32 %v16508_v2, %v3817_v51  ;;  %v4187_v49 = vmul.f32 1.442695, %v4129_v15  ;;  %v3176_v21 = vadd.f32 %v16510_v61, %v16509_v55  ;;  %v16513_v20 = vld [vmem:[#allocation34_spill] sm:$0xff]  ;;  %v16514_v51 = vld [vmem:[#allocation119_spill] sm:$0xff]  ;;  %v16518_v2 = vld [vmem:[#allocation132_spill] sm:$0xff] }
 0x533   : > { %v12927_v28 = vpop.eup %6024  ;;  %6034 = vpow2.f32 %v3471_v27  ;;  %v5045_v23 = vmul.f32 %v5013_v47, %v4885_v63  ;;  %v4492_v29 = vadd.f32 %v16511_v1, %v4292_v46  ;;  %v3697_v36 = vadd.f32 %v3665_v53, %v16512_v62  ;;  %v16516_v53 = vld [vmem:[#allocation230_spill] sm:$0xff]  ;;  %v16520_v55 = vld [vmem:[#allocation104_spill] sm:$0xff]  ;;  %v16521_v61 = vld [vmem:[#allocation369_spill] sm:$0xff] }
 0x534   : > { %v6027_v7 = vpop.eup %6026  ;;  %v4263_v30 = vmul.f32 %v12927_v28, %v12904_v40  ;;  %v12938_v25 = vadd.f32 %v16513_v20, %v4614_v6  ;;  %v4217_v42 = vadd.f32 %v12689_v44, %v4017_v19  ;;  %6036 = vpow2.f32 %v4187_v49  ;;  %v12951_v6 = vpop.permute.xlu0 %3599  ;;  %v16517_v44 = vld [vmem:[#allocation45_spill] sm:$0xff]  ;;  %v16519_v49 = vld [vmem:[#allocation415_spill] sm:$0xff]  ;;  %v16522_v1 = vld [vmem:[#allocation426_spill] sm:$0xff] }
 0x535   : > { %v4948_v57 = vmul.f32 %v6027_v7, %v12856_v45  ;;  %5123 = vrot.lane.b32.xlu0 %v5045_v23, %s6346_s17  ;;  %v3897_v27 = vadd.f32 %v16514_v51, %v3697_v36  ;;  %v12944_v15 = vadd.f32 %v16515_v17, %v4492_v29  ;;  %v3496_v47 = vadd.f32 %v12638_v52, %v3176_v21  ;;  %v12948_v45 = vpop.permute.xlu1 %3593  ;;  %v16523_v52 = vld [vmem:[#allocation258_spill] sm:$0xff] }
 0x536   : > { %v4295_v63 = vadd.f32 %v4263_v30, %v4095_v10  ;;  %6038 = vrcp.f32 %v12938_v25  ;;  %v4417_v18 = vadd.f32 %v16516_v53, %v4217_v42  ;;  %v3410_v19 = vsub.f32 %v16518_v2, %v16517_v44  ;;  %v16524_v36 = vld [vmem:[#allocation182_spill] sm:$0xff]  ;;  %v16525_v42 = vld [vmem:[#allocation245_spill] sm:$0xff]  ;;  %v16527_v53 = vld [vmem:[#allocation99_spill] sm:$0xff] }
 0x537   : > { %v4980_v46 = vsub.f32 2.0, %v4948_v57  ;;  %v4064_v10 = vmul.f32 %v16520_v55, %v16519_v49  ;;  %v12959_v29 = vadd.f32 %v16522_v1, %v3897_v27  ;;  %v3816_v21 = vadd.f32 %v16523_v52, %v3496_v47  ;;  %v16528_v2 = vld [vmem:[#allocation88_spill] sm:$0xff]  ;;  %v16529_v55 = vld [vmem:[#allocation303_spill] sm:$0xff]  ;;  %v16531_v27 = vld [vmem:[#allocation277_spill] sm:$0xff] }
 0x538   : > { %v4495_v23 = vadd.f32 %v16521_v61, %v4295_v63  ;;  %v4617_v30 = vadd.f32 %v16524_v36, %v4417_v18  ;;  %v3469_v57 = vmul.f32 1.442695, %v3410_v19  ;;  %v4128_v51 = vsub.f32 %v16525_v42, %v16487_v9  ;;  %v16532_v1 = vld [vmem:[#allocation260_spill] sm:$0xff]  ;;  %v16534_v19 = vld [vmem:[#allocation187_spill] sm:$0xff]  ;;  %v16536_v36 = vld [vmem:[#allocation269_spill] sm:$0xff] }
 0x539   : > { %v5012_v62 = vmul.f32 %v6027_v7, %v4980_v46  ;;  %v12969_v22 = vadd.f32 %v16528_v2, %v16527_v53  ;;  %v4016_v61 = vadd.f32 %v16531_v27, %v3816_v21  ;;  %v16533_v47 = vld [vmem:[#allocation296_spill] sm:$0xff]  ;;  %v4662_v42 = vmul.f32 %v16536_v36, %v16519_v49  ;;  %v12995_v2 = vpop.permute.xlu1 %3597  ;;  %v12997_v49 = vpop.permute.xlu0 %3603  ;;  %v16540_v27 = vld [vmem:[#allocation349_spill] sm:$0xff] }
 0x53a   : > { %v12965_v17 = vpop.eup %6028  ;;  %v12972_v63 = vadd.f32 %v16529_v55, %v4495_v23  ;;  %v3179_v7 = vadd.f32 %v16533_v47, %v16532_v1  ;;  %v12980_v9 = vadd.f32 %v16534_v19, %v4617_v30  ;;  %6040 = vpow2.f32 %v3469_v57  ;;  %16538 = vst [vmem:[#allocation309_spill] sm:$0xff] %v12997_v49  ;;  %v16543_v47 = vld [vmem:[#allocation188_spill] sm:$0xff]  ;;  %v16545_v49 = vld [vmem:[#allocation149_spill] sm:$0xff] }
 0x53b   : > { %16526 = vst [vmem:[#allocation238_spill] sm:$0xff] %v12965_v17  ;;  %v5044_v46 = vmul.f32 %v5012_v62, %v4884_v56  ;;  %v3664_v18 = vmul.f32 %v12965_v17, %v12948_v45  ;;  %v12982_v52 = vpop.eup %6030  ;;  %v4216_v55 = vadd.f32 %v12742_v3, %v4016_v61  ;;  %v4185_v23 = vmul.f32 1.442695, %v4128_v51  ;;  %v16537_v62 = vld [vmem:[#allocation366_spill] sm:$0xff]  ;;  %v16542_v61 = vld [vmem:[#allocation83_spill] sm:$0xff] }
 0x53c   : > { %16530 = vst [vmem:[#allocation216_spill] sm:$0xff] %v12972_v63  ;;  %16535 = vst [vmem:[#allocation262_spill] sm:$0xff] %v12982_v52  ;;  %v3499_v21 = vadd.f32 %v12675_v59, %v3179_v7  ;;  %v6033_v53 = vpop.eup %6032  ;;  %v4855_v56 = vmul.f32 %v16499_v48, %v12671_v0  ;;  %v4262_v57 = vmul.f32 %v12982_v52, %v12948_v45  ;;  %6042 = vrcp.f32 %v12980_v9  ;;  %v16539_v59 = vld [vmem:[#allocation146_spill] sm:$0xff]  ;;  %v16541_v48 = vld [vmem:[#allocation419_spill] sm:$0xff] }
 0x53d   : > { %5121 = vrot.lane.b32.xlu1 %v5044_v46, %s6346_s17  ;;  %v3696_v30 = vadd.f32 %v3664_v18, %v16537_v62  ;;  %v4951_v3 = vmul.f32 %v6033_v53, %v12899_v12  ;;  %v4416_v51 = vadd.f32 %v16539_v59, %v4216_v55  ;;  %6044 = vpow2.f32 %v4185_v23  ;;  %v16544_v46 = vld [vmem:[#allocation370_spill] sm:$0xff]  ;;  %v16546_v23 = vld [vmem:[#allocation271_spill] sm:$0xff] }
 0x53e   : > { %v3819_v0 = vadd.f32 %v16540_v27, %v3499_v21  ;;  %v4067_v1 = vmul.f32 %v16542_v61, %v16541_v48  ;;  %v4665_v7 = vmul.f32 %v16543_v47, %v16541_v48  ;;  %v4294_v62 = vadd.f32 %v4262_v57, %v12907_v37  ;;  %v16547_v21 = vld [vmem:[#allocation421_spill] sm:$0xff]  ;;  %v16549_v61 = vld [vmem:[#allocation372_spill] sm:$0xff] }
 0x53f   : > { %v3896_v18 = vadd.f32 %v16544_v46, %v3696_v30  ;;  %v4887_v36 = vadd.f32 %v4855_v56, %v12647_v32  ;;  %v4983_v12 = vsub.f32 2.0, %v4951_v3  ;;  %v4616_v55 = vadd.f32 %v16545_v49, %v4416_v51  ;;  %v16548_v27 = vld [vmem:[#allocation189_spill] sm:$0xff]  ;;  %v16551_v56 = vld [vmem:[#allocation300_spill] sm:$0xff] }
 0x540   : > { %v13008_v17 = vpop.eup %6034  ;;  %v4019_v59 = vadd.f32 %v16546_v23, %v3819_v0  ;;  %v3348_v52 = vmul.f32 %v16548_v27, %v16547_v21  ;;  %v4494_v63 = vadd.f32 %v16549_v61, %v4294_v62  ;;  %v4854_v37 = vmul.f32 %v16513_v20, %v12712_v31  ;;  %v16552_v3 = vld [vmem:[#allocation368_spill] sm:$0xff]  ;;  %v16554_v62 = vld [vmem:[#allocation169_spill] sm:$0xff]  ;;  %v13033_v23 = vpop.permute.xlu1 %3601 }
 0x541   : > { %v3667_v48 = vmul.f32 %v13008_v17, %v12951_v6  ;;  %v4096_v30 = vadd.f32 %v4064_v10, %v3896_v18  ;;  %v13018_v46 = vpop.eup %6036  ;;  %v5015_v32 = vmul.f32 %v6033_v53, %v4983_v12  ;;  %v13023_v57 = vadd.f32 %v16551_v56, %v4616_v55  ;;  %v16555_v10 = vld [vmem:[#allocation215_spill] sm:$0xff]  ;;  %v13035_v27 = vpop.permute.xlu0 %3833  ;;  %v16558_v12 = vld [vmem:[#allocation221_spill] sm:$0xff] }
 0x542   : > { %16550 = vst [vmem:[#allocation380_spill] sm:$0xff] %v13018_v46  ;;  %v4219_v49 = vadd.f32 %v12775_v24, %v4019_v59  ;;  %v4265_v0 = vmul.f32 %v13018_v46, %v12951_v6  ;;  %v13029_v61 = vadd.f32 %v4662_v42, %v4494_v63  ;;  %v3178_v18 = vadd.f32 %v16555_v10, %v16554_v62  ;;  %v16557_v53 = vld [vmem:[#allocation71_spill] sm:$0xff]  ;;  %v16560_v59 = vld [vmem:[#allocation302_spill] sm:$0xff] }
 0x543   : > { %v3699_v51 = vadd.f32 %v3667_v48, %v16552_v3  ;;  %16556 = vst [vmem:[#allocation283_spill] sm:$0xff] %v13035_v27  ;;  %v6039_v31 = vpop.eup %6038  ;;  %v5047_v20 = vmul.f32 %v5015_v32, %v4887_v36  ;;  %6046 = vrcp.f32 %v13023_v57  ;;  %v16559_v48 = vld [vmem:[#allocation143_spill] sm:$0xff]  ;;  %v4066_v63 = vmul.f32 %v16560_v59, %v16547_v21  ;;  %v16561_v3 = vld [vmem:[#allocation16_spill] sm:$0xff]  ;;  %v16562_v36 = vld [vmem:[#allocation413_spill] sm:$0xff] }
 0x544   : > { %16553 = vst [vmem:[#allocation312_spill] sm:$0xff] %v13029_v61  ;;  %v4419_v24 = vadd.f32 %v16557_v53, %v4219_v49  ;;  %v3412_v55 = vsub.f32 %v16559_v48, %v16558_v12  ;;  %v4950_v42 = vmul.f32 %v6039_v31, %v12938_v25  ;;  %v4297_v10 = vadd.f32 %v4265_v0, %v12959_v29  ;;  %v16563_v48 = vld [vmem:[#allocation172_spill] sm:$0xff]  ;;  %v16564_v25 = vld [vmem:[#allocation211_spill] sm:$0xff]  ;;  %v16565_v29 = vld [vmem:[#allocation118_spill] sm:$0xff] }
 0x545   : > { %v3899_v62 = vadd.f32 %v16561_v3, %v3699_v51  ;;  %v4886_v61 = vadd.f32 %v4854_v37, %v12700_v39  ;;  %5127 = vrot.lane.b32.xlu0 %v5047_v20, %s6346_s17  ;;  %v3498_v49 = vadd.f32 %v12720_v5, %v3178_v18  ;;  %v4130_v59 = vsub.f32 %v16564_v25, %v16517_v44  ;;  %v16566_v39 = vld [vmem:[#allocation43_spill] sm:$0xff]  ;;  %v16567_v20 = vld [vmem:[#allocation352_spill] sm:$0xff]  ;;  %v13070_v44 = vpop.permute.xlu0 %4033 }
 0x546   : > { %v4619_v32 = vadd.f32 %v16562_v36, %v4419_v24  ;;  %v3473_v53 = vmul.f32 1.442695, %v3412_v55  ;;  %v4982_v27 = vsub.f32 2.0, %v4950_v42  ;;  %v4497_v47 = vadd.f32 %v16563_v48, %v4297_v10  ;;  %v13068_v42 = vpop.permute.xlu1 %3605  ;;  %v16569_v10 = vld [vmem:[#allocation412_spill] sm:$0xff] }
 0x547   : > { %v13051_v46 = vadd.f32 %v4067_v1, %v3899_v62  ;;  %v13055_v51 = vpop.eup %6040  ;;  %v13058_v0 = vadd.f32 %v3348_v52, %v16565_v29  ;;  %v3818_v24 = vadd.f32 %v16567_v20, %v3498_v49  ;;  %v4189_v55 = vmul.f32 1.442695, %v4130_v59  ;;  %v16568_v52 = vld [vmem:[#allocation256_spill] sm:$0xff]  ;;  %v16572_v29 = vld [vmem:[#allocation185_spill] sm:$0xff] }
 0x548   : > { %v13061_v37 = vadd.f32 %v16566_v39, %v4619_v32  ;;  %6048 = vpow2.f32 %v3473_v53  ;;  %v5014_v5 = vmul.f32 %v6039_v31, %v4982_v27  ;;  %v3666_v18 = vmul.f32 %v13055_v51, %v12995_v2  ;;  %v16570_v32 = vld [vmem:[#allocation265_spill] sm:$0xff]  ;;  %v16571_v27 = vld [vmem:[#allocation18_spill] sm:$0xff]  ;;  %v16573_v20 = vld [vmem:[#allocation308_spill] sm:$0xff] }
 0x549   : > { %v13066_v1 = vadd.f32 %v4665_v7, %v4497_v47  ;;  %v6043_v3 = vpop.eup %6042  ;;  %v4664_v62 = vmul.f32 %v16568_v52, %v16547_v21  ;;  %v4018_v36 = vadd.f32 %v16569_v10, %v3818_v24  ;;  %v3181_v31 = vadd.f32 %v16571_v27, %v16570_v32 }
 0x54a   : > { %6050 = vrcp.f32 %v13061_v37  ;;  %v13078_v49 = vpop.eup %6044  ;;  %v4857_v47 = vmul.f32 %v16534_v19, %v12758_v4  ;;  %v5046_v7 = vmul.f32 %v5014_v5, %v4886_v61  ;;  %v4953_v59 = vmul.f32 %v6043_v3, %v12980_v9  ;;  %v16574_v19 = vld [vmem:[#allocation374_spill] sm:$0xff]  ;;  %v16575_v61 = vld [vmem:[#allocation360_spill] sm:$0xff] }
 0x54b   : > { %v3698_v53 = vadd.f32 %v3666_v18, %v12969_v22  ;;  %v4264_v21 = vmul.f32 %v13078_v49, %v12995_v2  ;;  %v4218_v48 = vadd.f32 %v12810_v35, %v4018_v36  ;;  %6052 = vpow2.f32 %v4189_v55  ;;  %v16576_v18 = vld [vmem:[#allocation158_spill] sm:$0xff]  ;;  %v16578_v55 = vld [vmem:[#allocation284_spill] sm:$0xff] }
 0x54c   : > { %v3501_v25 = vadd.f32 %v12764_v16, %v3181_v31  ;;  %v13090_v24 = vmul.f32 %v16573_v20, %v16572_v29  ;;  %v4889_v10 = vadd.f32 %v4857_v47, %v12730_v50  ;;  %5125 = vrot.lane.b32.xlu1 %v5046_v7, %s6346_s17  ;;  %v4985_v4 = vsub.f32 2.0, %v4953_v59  ;;  %v16577_v35 = vld [vmem:[#allocation270_spill] sm:$0xff]  ;;  %v16579_v16 = vld [vmem:[#allocation103_spill] sm:$0xff]  ;;  %v13105_v59 = vpop.permute.xlu1 %3835 }
 0x54d   : > { %v3898_v9 = vadd.f32 %v16574_v19, %v3698_v53  ;;  %v4296_v22 = vadd.f32 %v4264_v21, %v4096_v30  ;;  %v4418_v5 = vadd.f32 %v16575_v61, %v4218_v48  ;;  %v3180_v36 = vadd.f32 %v16578_v55, %v16577_v35  ;;  %v16580_v50 = vld [vmem:[#allocation243_spill] sm:$0xff]  ;;  %v13107_v53 = vpop.permute.xlu0 %4233  ;;  %v16583_v61 = vld [vmem:[#allocation52_spill] sm:$0xff] }
 0x54e   : > { %v3821_v32 = vadd.f32 %v16576_v18, %v3501_v25  ;;  %v13101_v27 = vmul.f32 %v16579_v16, %v16572_v29  ;;  %v5017_v31 = vmul.f32 %v6043_v3, %v4985_v4  ;;  %v4131_v47 = vsub.f32 %v16580_v50, %v16501_v26  ;;  %v16581_v21 = vld [vmem:[#allocation375_spill] sm:$0xff]  ;;  %v16582_v25 = vld [vmem:[#allocation60_spill] sm:$0xff] }
 0x54f   : > { %v4098_v7 = vadd.f32 %v4066_v63, %v3898_v9  ;;  %v4856_v30 = vmul.f32 %v16551_v56, %v12789_v60  ;;  %v4496_v48 = vadd.f32 %v16581_v21, %v4296_v22  ;;  %v4618_v19 = vadd.f32 %v16582_v25, %v4418_v5  ;;  %v16584_v4 = vld [vmem:[#allocation135_spill] sm:$0xff]  ;;  %v16590_v25 = vld [vmem:[#allocation126_spill] sm:$0xff] }
 0x550   : > { %v4021_v18 = vadd.f32 %v16583_v61, %v3821_v32  ;;  %v6047_v35 = vpop.eup %6046  ;;  %v4859_v3 = vmul.f32 %v16566_v39, %v12827_v54  ;;  %v4858_v63 = vmul.f32 %v16584_v4, %v12861_v8  ;;  %v5049_v9 = vmul.f32 %v5017_v31, %v4889_v10  ;;  %v16585_v32 = vld [vmem:[#allocation226_spill] sm:$0xff]  ;;  %v16588_v31 = vld [vmem:[#allocation80_spill] sm:$0xff] }
 0x551   : > { %v3500_v55 = vadd.f32 %v12796_v13, %v3180_v36  ;;  %v4952_v50 = vmul.f32 %v6047_v35, %v13023_v57  ;;  %v13121_v60 = vadd.f32 %v16584_v4, %v4618_v19  ;;  %v13123_v56 = vadd.f32 %v4664_v62, %v4496_v48  ;;  %v16586_v39 = vld [vmem:[#allocation278_spill] sm:$0xff]  ;;  %v13145_v48 = vpop.permute.xlu1 %4035  ;;  %v16591_v19 = vld [vmem:[#allocation155_spill] sm:$0xff] }
 0x552   : > { %v4221_v22 = vadd.f32 %v12847_v38, %v4021_v18  ;;  %v4888_v5 = vadd.f32 %v4856_v30, %v12782_v14  ;;  %v4861_v54 = vmul.f32 %v16585_v32, %v12904_v40  ;;  %5131 = vrot.lane.b32.xlu0 %v5049_v9, %s6346_s17  ;;  %v4191_v8 = vmul.f32 1.442695, %v4131_v47  ;;  %v16587_v38 = vld [vmem:[#allocation231_spill] sm:$0xff]  ;;  %v16589_v30 = vld [vmem:[#allocation416_spill] sm:$0xff] }
 0x553   : > { %v3820_v10 = vadd.f32 %v16586_v39, %v3500_v55  ;;  %v4891_v13 = vadd.f32 %v4859_v3, %v12819_v33  ;;  %v13133_v57 = vadd.f32 %v4858_v63, %v12859_v34  ;;  %v4984_v36 = vsub.f32 2.0, %v4952_v50  ;;  %v13147_v33 = vpop.permute.xlu0 %4433  ;;  %v16594_v55 = vld [vmem:[#allocation237_spill] sm:$0xff]  ;;  %v16595_v50 = vld [vmem:[#allocation183_spill] sm:$0xff] }
 0x554   : > { %6054 = vrcp.f32 %v13121_v60  ;;  %v13139_v14 = vadd.f32 %v4861_v54, %v12889_v43  ;;  %v4860_v40 = vmul.f32 %v16587_v38, %v12948_v45  ;;  %v4421_v47 = vadd.f32 %v16588_v31, %v4221_v22  ;;  %v16592_v43 = vld [vmem:[#allocation227_spill] sm:$0xff] }
 0x555   : > { %v13136_v62 = vpop.eup %6048  ;;  %v4020_v21 = vadd.f32 %v16589_v30, %v3820_v10  ;;  %v5016_v34 = vmul.f32 %v6047_v35, %v4984_v36  ;;  %v3413_v61 = vsub.f32 %v16591_v19, %v16590_v25  ;;  %v4331_v3 = vsub.f32 %v16592_v43, %v16501_v26  ;;  %v16593_v45 = vld [vmem:[#allocation163_spill] sm:$0xff]  ;;  %v16596_v10 = vld [vmem:[#allocation36_spill] sm:$0xff] }
 0x556   : > { %v3668_v18 = vmul.f32 %v13136_v62, %v13033_v23  ;;  %6056 = vpow2.f32 %v4191_v8  ;;  %v4621_v63 = vadd.f32 %v16593_v45, %v4421_v47  ;;  %v3183_v22 = vadd.f32 %v16595_v50, %v16594_v55  ;;  %v16597_v8 = vld [vmem:[#allocation110_spill] sm:$0xff]  ;;  %v16601_v45 = vld [vmem:[#allocation264_spill] sm:$0xff]  ;;  %v13181_v50 = vpop.permute.xlu1 %4235 }
 0x557   : > { %v6051_v4 = vpop.eup %6050  ;;  %v4220_v9 = vadd.f32 %v12902_v11, %v4020_v21  ;;  %v5048_v54 = vmul.f32 %v5016_v34, %v4888_v5  ;;  %v3733_v36 = vsub.f32 %v16596_v10, %v16590_v25  ;;  %v16598_v21 = vld [vmem:[#allocation291_spill] sm:$0xff]  ;;  %v16599_v5 = vld [vmem:[#allocation157_spill] sm:$0xff] }
 0x558   : > { %v4955_v35 = vmul.f32 %v6051_v4, %v13061_v37  ;;  %v3700_v39 = vadd.f32 %v3668_v18, %v13058_v0  ;;  %v13163_v31 = vpop.eup %6052  ;;  %v13166_v30 = vadd.f32 %v16585_v32, %v4621_v63  ;;  %v3503_v11 = vadd.f32 %v12837_v41, %v3183_v22  ;;  %v16600_v32 = vld [vmem:[#allocation299_spill] sm:$0xff]  ;;  %v16602_v63 = vld [vmem:[#allocation166_spill] sm:$0xff] }
 0x559   : > { %v4420_v47 = vadd.f32 %v16597_v8, %v4220_v9  ;;  %v4531_v19 = vsub.f32 %v16598_v21, %v16501_v26  ;;  %5129 = vrot.lane.b32.xlu1 %v5048_v54, %s6346_s17  ;;  %v4266_v34 = vmul.f32 %v13163_v31, %v13033_v23  ;;  %v4391_v18 = vmul.f32 1.442695, %v4331_v3  ;;  %v16603_v41 = vld [vmem:[#allocation46_spill] sm:$0xff]  ;;  %v13183_v26 = vpop.permute.xlu0 %4633  ;;  %v16604_v3 = vld [vmem:[#allocation148_spill] sm:$0xff] }
 0x55a   : > { %v4987_v37 = vsub.f32 2.0, %v4955_v35  ;;  %v3900_v0 = vadd.f32 %v16599_v5, %v3700_v39  ;;  %6058 = vrcp.f32 %v13166_v30  ;;  %v3414_v9 = vsub.f32 %v16602_v63, %v16601_v45  ;;  %v16605_v21 = vld [vmem:[#allocation356_spill] sm:$0xff] }
 0x55b   : > { %v4620_v43 = vadd.f32 %v16600_v32, %v4420_v47  ;;  %v3823_v55 = vadd.f32 %v16603_v41, %v3503_v11  ;;  %v4298_v54 = vadd.f32 %v4266_v34, %v4098_v7  ;;  %v4591_v39 = vmul.f32 1.442695, %v4531_v19  ;;  %v16606_v32 = vld [vmem:[#allocation224_spill] sm:$0xff]  ;;  %v16607_v41 = vld [vmem:[#allocation358_spill] sm:$0xff] }
 0x55c   : > { %v5019_v22 = vmul.f32 %v6051_v4, %v4987_v37  ;;  %v13186_v35 = vadd.f32 %v13090_v24, %v3900_v0  ;;  %v4863_v10 = vmul.f32 %v16604_v3, %v12951_v6  ;;  %v3475_v8 = vmul.f32 1.442695, %v3413_v61  ;;  %v16608_v4 = vld [vmem:[#allocation140_spill] sm:$0xff]  ;;  %v16610_v61 = vld [vmem:[#allocation301_spill] sm:$0xff] }
 0x55d   : > { %v13191_v47 = vadd.f32 %v16587_v38, %v4620_v43  ;;  %v4023_v5 = vadd.f32 %v16605_v21, %v3823_v55  ;;  %v4498_v63 = vadd.f32 %v16606_v32, %v4298_v54  ;;  %6060 = vpow2.f32 %v4391_v18  ;;  %v16609_v38 = vld [vmem:[#allocation48_spill] sm:$0xff]  ;;  %v16611_v18 = vld [vmem:[#allocation213_spill] sm:$0xff]  ;;  %v16612_v43 = vld [vmem:[#allocation14_spill] sm:$0xff] }
 0x55e   : > { %v5051_v11 = vmul.f32 %v5019_v22, %v4891_v13  ;;  %v3182_v7 = vadd.f32 %v16608_v4, %v16607_v41  ;;  %v3795_v37 = vmul.f32 1.442695, %v3733_v36  ;;  %v3477_v24 = vmul.f32 1.442695, %v3414_v9  ;;  %v16613_v9 = vld [vmem:[#allocation54_spill] sm:$0xff]  ;;  %v16614_v22 = vld [vmem:[#allocation100_spill] sm:$0xff] }
 0x55f   : > { %6062 = vrcp.f32 %v13191_v47  ;;  %v4223_v19 = vadd.f32 %v12927_v28, %v4023_v5  ;;  %v13201_v6 = vadd.f32 %v13101_v27, %v4498_v63  ;;  %v3185_v0 = vadd.f32 %v16610_v61, %v16609_v38  ;;  %v16615_v54 = vld [vmem:[#allocation253_spill] sm:$0xff]  ;;  %v13213_v27 = vpop.permute.xlu1 %4435  ;;  %v16619_v63 = vld [vmem:[#allocation216_spill] sm:$0xff] }
 0x560   : > { %5135 = vrot.lane.b32.xlu0 %v5051_v11, %s6346_s17  ;;  %6064 = vpow2.f32 %v4591_v39  ;;  %v3502_v13 = vadd.f32 %v12868_v58, %v3182_v7  ;;  %v4132_v36 = vsub.f32 %v16611_v18, %v16558_v12  ;;  %v3933_v28 = vsub.f32 %v16613_v9, %v16590_v25  ;;  %16616 = vst [vmem:[#allocation376_spill] sm:$0xff] %v13213_v27  ;;  %v13215_v39 = vpop.permute.xlu0 %4833  ;;  %v16618_v11 = vld [vmem:[#allocation10_spill] sm:$0xff]  ;;  %v16620_v4 = vld [vmem:[#allocation152_spill] sm:$0xff] }
 0x561   : > { %v6055_v34 = vpop.eup %6054  ;;  %v4423_v55 = vadd.f32 %v16612_v43, %v4223_v19  ;;  %v3187_v21 = vadd.f32 %v16615_v54, %v16614_v22  ;;  %16617 = vst [vmem:[#allocation74_spill] sm:$0xff] %v13215_v39  ;;  %v13218_v58 = vadd.f32 %v4860_v40, %v12944_v15  ;;  %6066 = vpow2.f32 %v3475_v8  ;;  %v16621_v19 = vld [vmem:[#allocation69_spill] sm:$0xff]  ;;  %v16622_v43 = vld [vmem:[#allocation422_spill] sm:$0xff] }
 0x562   : > { %v4954_v5 = vmul.f32 %v6055_v34, %v13121_v60  ;;  %v3822_v32 = vadd.f32 %v16618_v11, %v3502_v13  ;;  %v13223_v41 = vadd.f32 %v4863_v10, %v16619_v63  ;;  %v13227_v7 = vmul.f32 %v16620_v4, %v12995_v2  ;;  %v16623_v40 = vld [vmem:[#allocation378_spill] sm:$0xff] }
 0x563   : > { %6068 = vpow2.f32 %v3795_v37  ;;  %v4623_v38 = vadd.f32 %v16621_v19, %v4423_v55  ;;  %v6057_v61 = vpop.eup %6056  ;;  %v3505_v8 = vadd.f32 %v16623_v40, %v3185_v0  ;;  %v3507_v60 = vadd.f32 %v13008_v17, %v3187_v21  ;;  %v16624_v37 = vld [vmem:[#allocation262_spill] sm:$0xff]  ;;  %v16625_v55 = vld [vmem:[#allocation365_spill] sm:$0xff]  ;;  %v16627_v0 = vld [vmem:[#allocation92_spill] sm:$0xff]  ;;  %v13248_v21 = vpop.permute.xlu1 %4635 }
 0x564   : > { %v4986_v18 = vsub.f32 2.0, %v4954_v5  ;;  %v4022_v15 = vadd.f32 %v16622_v43, %v3822_v32  ;;  %6070 = vpow2.f32 %v3477_v24  ;;  %v4193_v13 = vmul.f32 1.442695, %v4132_v36  ;;  %v13236_v22 = vpop.permute.xlu0 %5095  ;;  %v16626_v5 = vld [vmem:[#allocation167_spill] sm:$0xff]  ;;  %16630 = vst [vmem:[#allocation66_spill] sm:$0xff] %v13248_v21  ;;  %v16631_v19 = vld [vmem:[#allocation22_spill] sm:$0xff] }
 0x565   : > { %v13234_v10 = vadd.f32 %v16604_v3, %v4623_v38  ;;  %v3995_v9 = vmul.f32 1.442695, %v3933_v28  ;;  %v3825_v11 = vadd.f32 %v16625_v55, %v3505_v8  ;;  %v3827_v63 = vadd.f32 %v16626_v5, %v3507_v60  ;;  %v16628_v24 = vld [vmem:[#allocation279_spill] sm:$0xff]  ;;  %v16629_v3 = vld [vmem:[#allocation212_spill] sm:$0xff]  ;;  %v16634_v8 = vld [vmem:[#allocation309_spill] sm:$0xff]  ;;  %5192 = vst.msk [vmem:[%s13384_s24] sm:$0xff] %vm5191_vm2, %v13236_v22 }
 0x566   : > { %v5018_v2 = vmul.f32 %v6055_v34, %v4986_v18  ;;  %v4222_v54 = vadd.f32 %v16624_v37, %v4022_v15  ;;  %v3734_v17 = vsub.f32 %v16627_v0, %v16601_v45  ;;  %v4332_v36 = vsub.f32 %v16628_v24, %v16558_v12  ;;  %v16632_v18 = vld [vmem:[#allocation59_spill] sm:$0xff]  ;;  %v16635_v60 = vld [vmem:[#allocation306_spill] sm:$0xff]  ;;  %v16637_v0 = vld [vmem:[#allocation420_spill] sm:$0xff] }
 0x567   : > { %6072 = vrcp.f32 %v13234_v10  ;;  %v4133_v28 = vsub.f32 %v16629_v3, %v16590_v25  ;;  %v6059_v34 = vpop.eup %6058  ;;  %v4025_v43 = vadd.f32 %v16632_v18, %v3825_v11  ;;  %v16633_v15 = vld [vmem:[#allocation83_spill] sm:$0xff]  ;;  %v13256_v37 = vmul.f32 %v16635_v60, %v16634_v8  ;;  %v16636_v5 = vld [vmem:[#allocation42_spill] sm:$0xff] }
 0x568   : > { %v5050_v32 = vmul.f32 %v5018_v2, %v13133_v57  ;;  %v4422_v38 = vadd.f32 %v16631_v19, %v4222_v54  ;;  %v4027_v40 = vadd.f32 %v16633_v15, %v3827_v63  ;;  %v4957_v55 = vmul.f32 %v6059_v34, %v13166_v30  ;;  %v16638_v57 = vld [vmem:[#allocation269_spill] sm:$0xff]  ;;  %v16639_v54 = vld [vmem:[#allocation380_spill] sm:$0xff]  ;;  %v16640_v21 = vld [vmem:[#allocation238_spill] sm:$0xff]  ;;  %v13265_v39 = vpop.permute.xlu0 %5099 }
 0x569   : > { %6074 = vpow2.f32 %v4193_v13  ;;  %v3184_v24 = vadd.f32 %v16637_v0, %v16636_v5  ;;  %v4225_v3 = vadd.f32 %v16639_v54, %v4025_v43  ;;  %v3797_v18 = vmul.f32 1.442695, %v3734_v17  ;;  %v16641_v5 = vld [vmem:[#allocation64_spill] sm:$0xff]  ;;  %5194 = vst.msk [vmem:[%s13384_s24 + $0x10] sm:$0xff] %vm5191_vm2, %v13265_v39 }
 0x56a   : > { %5133 = vrot.lane.b32.xlu1 %v5050_v32, %s6346_s17  ;;  %6076 = vpow2.f32 %v3995_v9  ;;  %v4622_v2 = vadd.f32 %v16638_v57, %v4422_v38  ;;  %v4227_v11 = vadd.f32 %v6057_v61, %v4027_v40  ;;  %v6061_v19 = vpop.eup %6060  ;;  %v4989_v63 = vsub.f32 2.0, %v4957_v55  ;;  %v16642_v55 = vld [vmem:[#allocation159_spill] sm:$0xff] }
 0x56b   : > { %v4393_v15 = vmul.f32 1.442695, %v4332_v36  ;;  %v3504_v27 = vadd.f32 %v16640_v21, %v3184_v24  ;;  %v4425_v32 = vadd.f32 %v16641_v5, %v4225_v3  ;;  %v4195_v9 = vmul.f32 1.442695, %v4133_v28  ;;  %v16643_v36 = vld [vmem:[#allocation259_spill] sm:$0xff]  ;;  %v13277_v24 = vpop.permute.xlu1 %4835  ;;  %v16646_v28 = vld [vmem:[#allocation298_spill] sm:$0xff] }
 0x56c   : > { %v6063_v30 = vpop.eup %6062  ;;  %v13268_v13 = vadd.f32 %v16620_v4, %v4622_v2  ;;  %v4427_v0 = vadd.f32 %v6061_v19, %v4227_v11  ;;  %v5021_v43 = vmul.f32 %v6059_v34, %v4989_v63  ;;  %v3934_v21 = vsub.f32 %v16643_v36, %v16601_v45  ;;  %16644 = vst [vmem:[#allocation241_spill] sm:$0xff] %v13277_v24  ;;  %v16645_v4 = vld [vmem:[#allocation188_spill] sm:$0xff]  ;;  %v16650_v36 = vld [vmem:[#allocation78_spill] sm:$0xff] }
 0x56d   : > { %v13271_v38 = vpop.eup %6064  ;;  %v4956_v40 = vmul.f32 %v6063_v30, %v13191_v47  ;;  %v3824_v17 = vadd.f32 %v16642_v55, %v3504_v27  ;;  %v4625_v57 = vadd.f32 %v16645_v4, %v4425_v32  ;;  %v4532_v54 = vsub.f32 %v16646_v28, %v16558_v12  ;;  %v16647_v27 = vld [vmem:[#allocation104_spill] sm:$0xff]  ;;  %v16651_v4 = vld [vmem:[#allocation150_spill] sm:$0xff] }
 0x56e   : > { %6078 = vrcp.f32 %v13268_v13  ;;  %v4627_v2 = vadd.f32 %v13271_v38, %v4427_v0  ;;  %v13284_v3 = vpop.eup %6066  ;;  %v5053_v47 = vmul.f32 %v5021_v43, %v13139_v14  ;;  %v4267_v5 = vmul.f32 %v6057_v61, %v16634_v8  ;;  %v16648_v0 = vld [vmem:[#allocation307_spill] sm:$0xff] }
 0x56f   : > { %v4988_v34 = vsub.f32 2.0, %v4956_v40  ;;  %6080 = vpow2.f32 %v3797_v18  ;;  %v4024_v11 = vadd.f32 %v16647_v27, %v3824_v17  ;;  %v13292_v32 = vadd.f32 %v16635_v60, %v4625_v57  ;;  %v13299_v43 = vpop.permute.xlu1 %5097  ;;  %v13301_v40 = vpop.permute.xlu0 %5103  ;;  %v16649_v60 = vld [vmem:[#allocation228_spill] sm:$0xff]  ;;  %v16654_v27 = vld [vmem:[#allocation371_spill] sm:$0xff] }
 0x570   : > { %v13288_v63 = vpop.eup %6068  ;;  %6082 = vpow2.f32 %v4393_v15  ;;  %v13295_v55 = vadd.f32 %v16648_v0, %v4627_v2  ;;  %5139 = vrot.lane.b32.xlu0 %v5053_v47, %s6346_s17  ;;  %v4593_v18 = vmul.f32 1.442695, %v4532_v54  ;;  %v3997_v61 = vmul.f32 1.442695, %v3934_v21  ;;  %v16653_v54 = vld [vmem:[#allocation283_spill] sm:$0xff]  ;;  %5193 = vst.msk [vmem:[%s13384_s24 + $0x8] sm:$0xff] %vm5191_vm2, %v13299_v43 }
 0x571   : > { %v5020_v12 = vmul.f32 %v6063_v30, %v4988_v34  ;;  %6084 = vpow2.f32 %v4195_v9  ;;  %v4224_v14 = vadd.f32 %v13078_v49, %v4024_v11  ;;  %v13303_v17 = vpop.eup %6070  ;;  %v4333_v15 = vsub.f32 %v16649_v60, %v16590_v25  ;;  %v16652_v9 = vld [vmem:[#allocation281_spill] sm:$0xff]  ;;  %5196 = vst.msk [vmem:[%s13384_s24 + $0x20] sm:$0xff] %vm5191_vm2, %v13301_v40 }
 0x572   : > { %6086 = vrcp.f32 %v13292_v32  ;;  %v3186_v57 = vadd.f32 %v16651_v4, %v16650_v36  ;;  %v4299_v30 = vadd.f32 %v4267_v5, %v13051_v46  ;;  %v4467_v47 = vmul.f32 %v6061_v19, %v16653_v54  ;;  %v16655_v11 = vld [vmem:[#allocation189_spill] sm:$0xff]  ;;  %v16656_v5 = vld [vmem:[#allocation76_spill] sm:$0xff]  ;;  %v16658_v36 = vld [vmem:[#allocation274_spill] sm:$0xff] }
 0x573   : > { %v5052_v49 = vmul.f32 %v5020_v12, %v13218_v58  ;;  %6088 = vrcp.f32 %v13295_v55  ;;  %v4424_v2 = vadd.f32 %v16652_v9, %v4224_v14  ;;  %v4395_v34 = vmul.f32 1.442695, %v4333_v15  ;;  %v16657_v19 = vld [vmem:[#allocation108_spill] sm:$0xff] }
 0x574   : > { %v6073_v28 = vpop.eup %6072  ;;  %v3506_v21 = vadd.f32 %v13055_v51, %v3186_v57  ;;  %v3188_v60 = vadd.f32 %v16655_v11, %v16654_v27  ;;  %6090 = vpow2.f32 %v4593_v18  ;;  %v4134_v12 = vsub.f32 %v16656_v5, %v16601_v45  ;;  %v5102_v18 = vpop.permute.xlu1 %5101  ;;  %v16663_v5 = vld [vmem:[#allocation312_spill] sm:$0xff] }
 0x575   : > { %5137 = vrot.lane.b32.xlu1 %v5052_v49, %s6346_s17  ;;  %v4959_v46 = vmul.f32 %v6073_v28, %v13234_v10  ;;  %v4624_v58 = vadd.f32 %v16568_v52, %v4424_v2  ;;  %6092 = vpow2.f32 %v3997_v61  ;;  %v4533_v4 = vsub.f32 %v16658_v36, %v16590_v25  ;;  %v16659_v10 = vld [vmem:[#allocation168_spill] sm:$0xff]  ;;  %v5108_v2 = vpop.permute.xlu0 %5107  ;;  %v16660_v61 = vld [vmem:[#allocation302_spill] sm:$0xff]  ;;  %5195 = vst.msk [vmem:[%s13384_s24 + $0x18] sm:$0xff] %vm5191_vm2, %v5102_v18 }
 0x576   : > { %v13323_v14 = vpop.eup %6074  ;;  %v3826_v15 = vadd.f32 %v16657_v19, %v3506_v21  ;;  %v3508_v51 = vadd.f32 %v13136_v62, %v3188_v60  ;;  %6094 = vpow2.f32 %v4395_v34  ;;  %v4197_v52 = vmul.f32 1.442695, %v4134_v12  ;;  %v16661_v21 = vld [vmem:[#allocation173_spill] sm:$0xff]  ;;  %v16664_v34 = vld [vmem:[#allocation223_spill] sm:$0xff]  ;;  %5198 = vst.msk [vmem:[%s13384_s24 + $0x30] sm:$0xff] %vm5191_vm2, %v5108_v2  ;;  %v16671_v18 = vld [vmem:[#allocation156_spill] sm:$0xff] }
 0x577   : > { %v13329_v57 = vpop.eup %6076  ;;  %v4991_v49 = vsub.f32 2.0, %v4959_v46  ;;  %v13332_v9 = vadd.f32 %v16659_v10, %v4624_v58  ;;  %v4595_v62 = vmul.f32 1.442695, %v4533_v4  ;;  %v16662_v60 = vld [vmem:[#allocation165_spill] sm:$0xff]  ;;  %v4894_v46 = vadd.f32 %v13227_v7, %v16663_v5  ;;  %v16665_v58 = vld [vmem:[#allocation47_spill] sm:$0xff] }
 0x578   : > { %v4026_v27 = vadd.f32 %v16660_v61, %v3826_v15  ;;  %v3828_v11 = vadd.f32 %v16661_v21, %v3508_v51  ;;  %v4334_v25 = vsub.f32 %v16662_v60, %v16601_v45  ;;  %v3189_v12 = vadd.f32 %v16665_v58, %v16664_v34 }
 0x579   : > { %v5023_v19 = vmul.f32 %v6073_v28, %v4991_v49  ;;  %6096 = vrcp.f32 %v13332_v9  ;;  %v13352_v4 = vadd.f32 %v13256_v37, %v13066_v1 }
 0x57a   : > { %v4226_v36 = vadd.f32 %v13163_v31, %v4026_v27  ;;  %v4028_v24 = vadd.f32 %v16573_v20, %v3828_v11  ;;  %6098 = vpow2.f32 %v4197_v52  ;;  %v4397_v15 = vmul.f32 1.442695, %v4334_v25  ;;  %v16666_v52 = vld [vmem:[#allocation373_spill] sm:$0xff]  ;;  %v16668_v11 = vld [vmem:[#allocation282_spill] sm:$0xff] }
 0x57b   : > { %v6079_v51 = vpop.eup %6078  ;;  %v5055_v7 = vmul.f32 %v5023_v19, %v13223_v41  ;;  %6100 = vpow2.f32 %v4595_v62  ;;  %v3509_v28 = vadd.f32 %v13284_v3, %v3189_v12  ;;  %v4499_v31 = vadd.f32 %v4467_v47, %v4299_v30  ;;  %v16667_v41 = vld [vmem:[#allocation30_spill] sm:$0xff]  ;;  %v16669_v62 = vld [vmem:[#allocation304_spill] sm:$0xff]  ;;  %v5106_v30 = vpop.permute.xlu1 %5105 }
 0x57c   : > { %v13356_v49 = vpop.eup %6080  ;;  %v4958_v20 = vmul.f32 %v6079_v51, %v13268_v13  ;;  %v4426_v61 = vadd.f32 %v16666_v52, %v4226_v36  ;;  %v4228_v27 = vadd.f32 %v13323_v14, %v4028_v24  ;;  %6102 = vpow2.f32 %v4397_v15  ;;  %v5112_v47 = vpop.permute.xlu0 %5111  ;;  %5197 = vst.msk [vmem:[%s13384_s24 + $0x28] sm:$0xff] %vm5191_vm2, %v5106_v30 }
 0x57d   : > { %v13361_v21 = vpop.eup %6082  ;;  %5143 = vrot.lane.b32.xlu0 %v5055_v7, %s6346_s17  ;;  %v3829_v1 = vadd.f32 %v13288_v63, %v3509_v28  ;;  %v4534_v37 = vsub.f32 %v16667_v41, %v16601_v45  ;;  %v3190_v60 = vadd.f32 %v16669_v62, %v16668_v11  ;;  %v4667_v24 = vmul.f32 %v13271_v38, %v13070_v44  ;;  %v16670_v38 = vld [vmem:[#allocation55_spill] sm:$0xff] }
 0x57e   : > { %v13369_v13 = vpop.eup %6084  ;;  %v4990_v25 = vsub.f32 2.0, %v4958_v20  ;;  %v4626_v5 = vadd.f32 %v16579_v16, %v4426_v61  ;;  %v4428_v19 = vadd.f32 %v13361_v21, %v4228_v27  ;;  %v4867_v41 = vmul.f32 %v16648_v0, %v13107_v53  ;;  %5200 = vst.msk [vmem:[%s13384_s24 + $0x40] sm:$0xff] %vm5191_vm2, %v5112_v47 }
 0x57f   : > { %v6087_v12 = vpop.eup %6086  ;;  %v4029_v36 = vadd.f32 %v13329_v57, %v3829_v1  ;;  %v4597_v45 = vmul.f32 1.442695, %v4534_v37  ;;  %v3510_v15 = vadd.f32 %v13303_v17, %v3190_v60  ;;  %v4699_v0 = vadd.f32 %v4667_v24, %v4499_v31  ;;  %v16672_v31 = vld [vmem:[#allocation38_spill] sm:$0xff] }
 0x580   : > { %v6089_v7 = vpop.eup %6088  ;;  %v5022_v28 = vmul.f32 %v6079_v51, %v4990_v25  ;;  %v4961_v52 = vmul.f32 %v6087_v12, %v13292_v32  ;;  %v13381_v20 = vadd.f32 %v16670_v38, %v4626_v5 }
 0x581   : > { %v4963_v16 = vmul.f32 %v6089_v7, %v13295_v55  ;;  %v4229_v22 = vadd.f32 %v13369_v13, %v4029_v36  ;;  %6104 = vpow2.f32 %v4597_v45  ;;  %v3830_v39 = vadd.f32 %v13356_v49, %v3510_v15  ;;  %v6091_v32 = vpop.eup %6090 }
 0x582   : > { %v5054_v43 = vmul.f32 %v5022_v28, %v4894_v46  ;;  %v4993_v51 = vsub.f32 2.0, %v4961_v52  ;;  %6106 = vrcp.f32 %v13381_v20  ;;  %v13410_v40 = vpop.eup %6092  ;;  %v4628_v61 = vadd.f32 %v6091_v32, %v4428_v19 }
 0x583   : > { %6108 = vpow2.f32 %v16671_v18  ;;  %v4995_v2 = vsub.f32 2.0, %v4963_v16  ;;  %v13413_v27 = vpop.eup %6094  ;;  %v4899_v1 = vadd.f32 %v4867_v41, %v4699_v0  ;;  %v4030_v37 = vadd.f32 %v13410_v40, %v3830_v39  ;;  %v16673_v41 = vld [vmem:[#allocation419_spill] sm:$0xff]  ;;  %v16675_v0 = vld [vmem:[#allocation49_spill] sm:$0xff] }
 0x584   : > { %5141 = vrot.lane.b32.xlu1 %v5054_v43, %s6346_s17  ;;  %v5025_v55 = vmul.f32 %v6087_v12, %v4993_v51  ;;  %v13418_v46 = vadd.f32 %v16672_v31, %v4628_v61  ;;  %v4429_v60 = vadd.f32 %v13413_v27, %v4229_v22  ;;  %v5110_v30 = vpop.permute.xlu1 %5109  ;;  %v4864_v19 = vmul.f32 %v16659_v10, %v13033_v23 }
 0x585   : > { %v5027_v25 = vmul.f32 %v6089_v7, %v4995_v2  ;;  %5199 = vst.msk [vmem:[%s13384_s24 + $0x38] sm:$0xff] %vm5191_vm2, %v5110_v30  ;;  %v3349_v23 = vmul.f32 %v16665_v58, %v16673_v41  ;;  %v3029_v43 = vmul.f32 %v16664_v34, %v16675_v0  ;;  %v4268_v58 = vmul.f32 %v13323_v14, %v13068_v42 }
 0x586   : > { %v6097_v47 = vpop.eup %6096  ;;  %v5057_v24 = vmul.f32 %v5025_v55, %v13352_v4  ;;  %6110 = vrcp.f32 %v13418_v46  ;;  %v4896_v4 = vadd.f32 %v4864_v19, %v13123_v56  ;;  %v3669_v56 = vmul.f32 %v13284_v3, %v16634_v8 }
 0x587   : > { %v13424_v5 = vpop.eup %6098  ;;  %v4960_v12 = vmul.f32 %v6097_v47, %v13332_v9  ;;  %v5059_v45 = vmul.f32 %v5027_v25, %v4899_v1  ;;  %v16674_v9 = vld [vmem:[#allocation314_spill] sm:$0xff]  ;;  %v3381_v2 = vadd.f32 %v3349_v23, %v3029_v43  ;;  %v3869_v61 = vmul.f32 %v13288_v63, %v16653_v54  ;;  %v16676_v54 = vld [vmem:[#allocation364_spill] sm:$0xff] }
 0x588   : > { %v6101_v36 = vpop.eup %6100  ;;  %5147 = vrot.lane.b32.xlu0 %v5057_v24, %s6346_s17  ;;  %v4230_v15 = vadd.f32 %v13424_v5, %v4030_v37  ;;  %v4300_v34 = vadd.f32 %v4268_v58, %v13186_v35  ;;  %v4468_v8 = vmul.f32 %v13361_v21, %v13105_v59  ;;  %v3350_v14 = vmul.f32 %v16669_v62, %v16572_v29 }
 0x589   : > { %v4992_v7 = vsub.f32 2.0, %v4960_v12  ;;  %v4629_v28 = vadd.f32 %v6101_v36, %v4429_v60  ;;  %v13433_v52 = vpop.eup %6102  ;;  %v3701_v37 = vadd.f32 %v3669_v56, %v3381_v2  ;;  %v4866_v60 = vmul.f32 %v16670_v38, %v13068_v42 }
 0x58a   : > { %v4430_v22 = vadd.f32 %v13433_v52, %v4230_v15  ;;  %v5116_v39 = vpop.permute.xlu0 %5115  ;;  %v3030_v35 = vmul.f32 %v16668_v11, %v16676_v54  ;;  %v4069_v21 = vmul.f32 %v13329_v57, %v13070_v44  ;;  %v4668_v30 = vmul.f32 %v6091_v32, %v13145_v48 }
 0x58b   : > { %v5024_v10 = vmul.f32 %v6097_v47, %v4992_v7  ;;  %v13438_v16 = vadd.f32 %v16674_v9, %v4629_v28  ;;  %5202 = vst.msk [vmem:[%s13384_s24 + $0x50] sm:$0xff] %vm5191_vm2, %v5116_v39  ;;  %v3901_v24 = vadd.f32 %v3869_v61, %v3701_v37  ;;  %v3670_v29 = vmul.f32 %v13303_v17, %v13068_v42 }
 0x58c   : > { %5151 = vrot.lane.b32.xlu0 %v5059_v45, %s6346_s17  ;;  %v4898_v62 = vadd.f32 %v4866_v60, %v13201_v6  ;;  %v4500_v38 = vadd.f32 %v4468_v8, %v4300_v34  ;;  %v4868_v11 = vmul.f32 %v16672_v31, %v13181_v50  ;;  %v3382_v57 = vadd.f32 %v3350_v14, %v3030_v35 }
 0x58d   : > { %v5056_v51 = vmul.f32 %v5024_v10, %v4896_v4  ;;  %6112 = vrcp.f32 %v13438_v16  ;;  %v3870_v32 = vmul.f32 %v13356_v49, %v13105_v59  ;;  %v4101_v17 = vadd.f32 %v4069_v21, %v3901_v24 }
 0x58e   : > { %v6105_v18 = vpop.eup %6104  ;;  %v4700_v6 = vadd.f32 %v4668_v30, %v4500_v38  ;;  %v4469_v12 = vmul.f32 %v13413_v27, %v13147_v33  ;;  %v4669_v28 = vmul.f32 %v6101_v36, %v13183_v26  ;;  %v4270_v33 = vmul.f32 %v13424_v5, %v13181_v50  ;;  %v16677_v27 = vld [vmem:[#allocation74_spill] sm:$0xff] }
 0x58f   : > { %v6107_v55 = vpop.eup %6106  ;;  %5145 = vrot.lane.b32.xlu1 %v5056_v51, %s6346_s17  ;;  %v4630_v3 = vadd.f32 %v6105_v18, %v4430_v22  ;;  %v16678_v22 = vld [vmem:[#allocation376_spill] sm:$0xff]  ;;  %v16679_v50 = vld [vmem:[#allocation66_spill] sm:$0xff]  ;;  %v16680_v51 = vld [vmem:[#allocation241_spill] sm:$0xff] }
 0x590   : > { %v6109_v1 = vpop.eup %6108  ;;  %v4962_v63 = vmul.f32 %v6107_v55, %v13381_v20  ;;  %v4269_v20 = vmul.f32 %v13369_v13, %v13107_v53  ;;  %v3702_v53 = vadd.f32 %v3670_v29, %v3382_v57  ;;  %v4070_v13 = vmul.f32 %v13410_v40, %v13145_v48 }
 0x591   : > { %v4830_v47 = vadd.f32 %v6109_v1, %v4630_v3  ;;  %v5114_v19 = vpop.permute.xlu1 %5113  ;;  %v4900_v7 = vadd.f32 %v4868_v11, %v4700_v6  ;;  %v4470_v39 = vmul.f32 %v13433_v52, %v16678_v22  ;;  %v4670_v5 = vmul.f32 %v6105_v18, %v16679_v50 }
 0x592   : > { %v4994_v25 = vsub.f32 2.0, %v4962_v63  ;;  %5201 = vst.msk [vmem:[%s13384_s24 + $0x48] sm:$0xff] %vm5191_vm2, %v5114_v19  ;;  %v4301_v15 = vadd.f32 %v4269_v20, %v4101_v17  ;;  %v3902_v59 = vadd.f32 %v3870_v32, %v3702_v53  ;;  %v4870_v2 = vmul.f32 %v6109_v1, %v16680_v51 }
 0x593   : > { %6114 = vrcp.f32 %v4830_v47  ;;  %v6111_v44 = vpop.eup %6110 }
 0x594   : > { %v5026_v42 = vmul.f32 %v6107_v55, %v4994_v25  ;;  %v4964_v45 = vmul.f32 %v6111_v44, %v13418_v46  ;;  %v4501_v49 = vadd.f32 %v4469_v12, %v4301_v15  ;;  %v4869_v46 = vmul.f32 %v16674_v9, %v16677_v27 }
 0x595   : > { %v4102_v48 = vadd.f32 %v4070_v13, %v3902_v59 }
 0x596   : > { %v5058_v31 = vmul.f32 %v5026_v42, %v4898_v62  ;;  %v4996_v4 = vsub.f32 2.0, %v4964_v45  ;;  %v4701_v10 = vadd.f32 %v4669_v28, %v4501_v49 }
 0x597   : > { %v4302_v0 = vadd.f32 %v4270_v33, %v4102_v48 }
 0x598   : > { %5149 = vrot.lane.b32.xlu1 %v5058_v31, %s6346_s17  ;;  %v5028_v41 = vmul.f32 %v6111_v44, %v4996_v4  ;;  %v4901_v56 = vadd.f32 %v4869_v46, %v4701_v10 }
 0x599   : > { %v4502_v9 = vadd.f32 %v4470_v39, %v4302_v0 }
 0x59a   : > { %v6113_v23 = vpop.eup %6112  ;;  %v5060_v40 = vmul.f32 %v5028_v41, %v4900_v7  ;;  %v5120_v36 = vpop.permute.xlu0 %5119 }
 0x59b   : > { %v4965_v26 = vmul.f32 %v6113_v23, %v13438_v16  ;;  %5204 = vst.msk [vmem:[%s13384_s24 + $0x60] sm:$0xff] %vm5191_vm2, %v5120_v36  ;;  %v4702_v16 = vadd.f32 %v4670_v5, %v4502_v9 }
 0x59c   : > { %5153 = vrot.lane.b32.xlu1 %v5060_v40, %s6346_s17 }
 0x59d   : > { %v4997_v43 = vsub.f32 2.0, %v4965_v26  ;;  %v4902_v3 = vadd.f32 %v4870_v2, %v4702_v16 }
 0x59f   : > { %v5029_v58 = vmul.f32 %v6113_v23, %v4997_v43 }
 0x5a0   : > { %v6115_v52 = vpop.eup %6114 }
 0x5a1   : > { %v5061_v61 = vmul.f32 %v5029_v58, %v4901_v56  ;;  %v4966_v55 = vmul.f32 %v6115_v52, %v4830_v47  ;;  %v5118_v34 = vpop.permute.xlu1 %5117 }
 0x5a2   : > { %5203 = vst.msk [vmem:[%s13384_s24 + $0x58] sm:$0xff] %vm5191_vm2, %v5118_v34 }
 0x5a3   : > { %v4998_v8 = vsub.f32 2.0, %v4966_v55  ;;  %5155 = vrot.lane.b32.xlu0 %v5061_v61, %s6346_s17 }
 0x5a5   : > { %v5030_v18 = vmul.f32 %v6115_v52, %v4998_v8 }
 0x5a7   : > { %v5062_v14 = vmul.f32 %v5030_v18, %v4902_v3  ;;  %v5124_v1 = vpop.permute.xlu0 %5123 }
 0x5a8   : > { %5206 = vst.msk [vmem:[%s13384_s24 + $0x70] sm:$0xff] %vm5191_vm2, %v5124_v1 }
 0x5a9   : > { %5157 = vrot.lane.b32.xlu1 %v5062_v14, %s6346_s17 }
 0x5af   : > { %v5122_v37 = vpop.permute.xlu1 %5121 }
 0x5b0   : > { %5205 = vst.msk [vmem:[%s13384_s24 + $0x68] sm:$0xff] %vm5191_vm2, %v5122_v37 }
 0x5b7   : > { %v5128_v60 = vpop.permute.xlu0 %5127 }
 0x5b8   : > { %5208 = vst.msk [vmem:[%s13384_s24 + $0x80] sm:$0xff] %vm5191_vm2, %v5128_v60 }
 0x5be   : > { %v5126_v63 = vpop.permute.xlu1 %5125 }
 0x5bf   : > { %5207 = vst.msk [vmem:[%s13384_s24 + $0x78] sm:$0xff] %vm5191_vm2, %v5126_v63 }
 0x5c4   : > { %v5132_v54 = vpop.permute.xlu0 %5131 }
 0x5c5   : > { %5210 = vst.msk [vmem:[%s13384_s24 + $0x90] sm:$0xff] %vm5191_vm2, %v5132_v54 }
 0x5cb   : > { %v5130_v35 = vpop.permute.xlu1 %5129 }
 0x5cc   : > { %5209 = vst.msk [vmem:[%s13384_s24 + $0x88] sm:$0xff] %vm5191_vm2, %v5130_v35 }
 0x5d2   : > { %v5136_v21 = vpop.permute.xlu0 %5135 }
 0x5d3   : > { %5212 = vst.msk [vmem:[%s13384_s24 + $0xa0] sm:$0xff] %vm5191_vm2, %v5136_v21 }
 0x5dc   : > { %v5134_v30 = vpop.permute.xlu1 %5133 }
 0x5dd   : > { %5211 = vst.msk [vmem:[%s13384_s24 + $0x98] sm:$0xff] %vm5191_vm2, %v5134_v30 }
 0x5e2   : > { %v5140_v47 = vpop.permute.xlu0 %5139 }
 0x5e3   : > { %5214 = vst.msk [vmem:[%s13384_s24 + $0xb0] sm:$0xff] %vm5191_vm2, %v5140_v47 }
 0x5e7   : > { %v5138_v24 = vpop.permute.xlu1 %5137 }
 0x5e8   : > { %5213 = vst.msk [vmem:[%s13384_s24 + $0xa8] sm:$0xff] %vm5191_vm2, %v5138_v24 }
 0x5ef   : > { %v5144_v29 = vpop.permute.xlu0 %5143 }
 0x5f0   : > { %5216 = vst.msk [vmem:[%s13384_s24 + $0xc0] sm:$0xff] %vm5191_vm2, %v5144_v29 }
 0x5f6   : > { %v5142_v62 = vpop.permute.xlu1 %5141 }
 0x5f7   : > { %5215 = vst.msk [vmem:[%s13384_s24 + $0xb8] sm:$0xff] %vm5191_vm2, %v5142_v62 }
 0x5fa   : > { %v5148_v25 = vpop.permute.xlu0 %5147 }
 0x5fb   : > { %5218 = vst.msk [vmem:[%s13384_s24 + $0xd0] sm:$0xff] %vm5191_vm2, %v5148_v25 }
 0x5fe   : > { %v5152_v19 = vpop.permute.xlu0 %5151 }
 0x5ff   : > { %5220 = vst.msk [vmem:[%s13384_s24 + $0xe0] sm:$0xff] %vm5191_vm2, %v5152_v19 }
 0x601   : > { %v5146_v38 = vpop.permute.xlu1 %5145 }
 0x602   : > { %5217 = vst.msk [vmem:[%s13384_s24 + $0xc8] sm:$0xff] %vm5191_vm2, %v5146_v38 }
 0x60a   : > { %v5150_v20 = vpop.permute.xlu1 %5149 }
 0x60b   : > { %5219 = vst.msk [vmem:[%s13384_s24 + $0xd8] sm:$0xff] %vm5191_vm2, %v5150_v20 }
 0x60e   : > { %v5154_v11 = vpop.permute.xlu1 %5153 }
 0x60f   : > { %5221 = vst.msk [vmem:[%s13384_s24 + $0xe8] sm:$0xff] %vm5191_vm2, %v5154_v11 }
 0x615   : > { %v5156_v44 = vpop.permute.xlu0 %5155 }
 0x616   : > { %5222 = vst.msk [vmem:[%s13384_s24 + $0xf0] sm:$0xff] %vm5191_vm2, %v5156_v44 }
 0x61b   : > { %v5158_v57 = vpop.permute.xlu1 %5157 }
 0x61c   : > { %5223 = vst.msk [vmem:[%s13384_s24 + $0xf8] sm:$0xff] %vm5191_vm2, %v5158_v57 }
 0x61d   : > { %6294 = shalt.err (!%p6291_p3)
}
 0x61e   : > { %s6295_s7 = scalar_lea.hbm %s13542_s29, 4096  ;;  %s6299_s10 = scalar_lea.hbm %s13593_s3, 8192 }
 0x61f   : > { %p6296_p4 = scmp.ne.s32.totalorder %s13542_s29, %s6295_s7  ;;  %p6300_p9 = scmp.lt.s32.totalorder %s13542_s29, %s13593_s3 }
 0x620   : > { %p6301_p10 = scmp.lt.s32.totalorder %s6299_s10, %s6295_s7 }
 0x621   : > { %p6297_p7 = pnand %p6296_p4, %p6408_p5 }
 0x622   : > { %p6302_p11 = por %p6301_p10, %p6300_p9 }
 0x623   : > { %p6298_p8 = pneg %p6297_p7 }
 0x625   : > { %p6303_p12 = pnand %p6302_p11, %p6298_p8 }
 0x627   : > { %6306 = shalt.err (!%p6303_p12)
}
 0x628   : > { %s6348_s19 = smov 128   ;;  %s6349_s20 = smov 8  }
 0x629   : > { %5431 = dma.vmem_to_hbm [thread:$0]  (%p6408_p5), %s13544_s26, 4096, %s13542_s29, %s13550_s30, %s6348_s19, %s6348_s19, %s6349_s20  }
 0x62a PF: > { %p5437_p13 = scmp.ge.s32.totalorder %s6341_s15, 2  ;;  %s5253_s24 = sand.u32 1, %s6329_s12  }
 0x62b   : > { %s5254_s25 = scalar_lea.sflag [#allocation4], %s5253_s24 }
 0x62c   : > { %p5434_p0 = pnand %p5437_p13, %p6412_p6 }
 0x62e   : > { %p5435_p1 = pneg %p5434_p0 }
 0x630   : > { %6324 = dma.done.wait (%p5435_p1), %s5254_s25, 4096  }
 0x631   : > { %6326 = vsyncadd (%p5435_p1), %s5254_s25, 4294963200  ;;  %p13_p2 = scmp.ge.s32.totalorder %s6395_s18, 4   ;;  %s16681_s12 = smov %s6333_s13 }
 0x632   : > { %s16682_s13 = smov %s6337_s14  ;;  %s16683_s14 = smov %s6406_s21 }
 0x633   : > { %s16684_s15 = smov %s6395_s18  ;;  %15 = sbr.rel (!%p13_p2) target bundleno = 3 (0x3), region = 68 }
 0x638   :  { %5259 = vsyncpa [#allocation4], 1 }
 0x639   :  { %5261 = vsyncpa [#allocation4 + $0x1], 1 }

</bundles_post_ra>
